<compile_context>
chip_gen: v5e
topology: v5e:2x2
jax: 0.10.0
libtpu: 0.0.40
codegen_flags: <defaults>
</compile_context>

<pallas_src>
import jax
import jax.numpy as jnp
import numpy as np
from jax.experimental import pallas as pl
from jax.experimental.pallas import tpu as pltpu

C_PAD = 128           # lane-dense channel padding
W_IN, H_IN = 6, 13    # module attributes used by the final .view
NEG_SLOPE = 0.01      # nn.LeakyReLU() default
BN_EPS = 1e-5         # nn.BatchNorm2d default


def _make_decoder_kernel(n, h, w, num_layers, c_small):
    hp, wp = h + 2, w + 2                  # zero-padded spatial grid
    rows = n * hp * wp                     # flattened padded rows (multiple of 8)
    halo = ((wp + 1 + 7) // 8) * 8         # sublane-aligned halo depth >= wp+1
    inv_count = 1.0 / float(n * h * w)     # BN divisor: valid positions only

    def kernel(x_ref, w_ref, p_ref, mask_ref, out_ref, act_ref, wscr_ref):
        # Zero only the halo strips; the interior is overwritten right below and
        # re-written (already masked) after every layer.
        act_ref[0:halo, :] = jnp.zeros((halo, C_PAD), jnp.float32)
        act_ref[halo + rows:, :] = jnp.zeros((halo, C_PAD), jnp.float32)
        act_ref[pl.ds(halo, rows), :] = x_ref[...]

        # Weight staging tiles (two slots): rows >= c_small stay zero for the
        # whole kernel, so each tap only overwrites the first c_small rows.
        wscr_ref[...] = jnp.zeros_like(wscr_ref)

        mask = mask_ref[...]               # 1.0 on valid (interior) rows

        for layer in range(num_layers):
            pv = p_ref[layer, :, :]        # (8,128): row0 conv bias, row1 gamma, row2 beta
            cb, g, b = pv[0:1, :], pv[1:2, :], pv[2:3, :]

            # ---- Conv2d 3x3, padding=1: 9 shifted-row MXU matmuls ----
            acc = None
            for t in range(9):
                ky, kx = divmod(t, 3)
                shift = (ky - 1) * wp + (kx - 1)
                base = (t & 1) * C_PAD                       # double-buffered slot
                wscr_ref[base:base + c_small, :] = w_ref[layer, t, :, :]
                lhs = act_ref[pl.ds(halo + shift, rows), :]
                d = jnp.dot(lhs, wscr_ref[base:base + C_PAD, :],
                            preferred_element_type=jnp.float32)
                acc = d if acc is None else acc + d
            conv = (acc + cb) * mask

            # ---- BatchNorm2d (train mode): single-pass biased batch stats ----
            s1 = jnp.sum(conv, axis=0, keepdims=True)
            s2 = jnp.sum(conv * conv, axis=0, keepdims=True)
            mean = s1 * inv_count
            var = s2 * inv_count - mean * mean               # biased variance
            inv_std = jax.lax.rsqrt(var + BN_EPS)            # EUP
            scale = g * inv_std                              # fold BN into scale/bias
            bias = b - mean * scale

            # ---- affine + LeakyReLU; re-zero halo rows for the next conv ----
            z = conv * scale + bias
            z = jnp.where(z > 0, z, NEG_SLOPE * z)
            act_ref[pl.ds(halo, rows), :] = z * mask

        out_ref[...] = act_ref[pl.ds(halo, rows), :]

    return kernel, rows, halo


def _pack_params(conv_ws, conv_bs, gammas, betas, c_small):
    """Pack per-layer params compactly: weights (L,9,c_small,128), vectors (L,8,128)."""
    num_layers = len(conv_ws)
    w_all = jnp.zeros((num_layers, 9, c_small, C_PAD), jnp.float32)
    pv = jnp.zeros((num_layers, 8, C_PAD), jnp.float32)
    for l in range(num_layers):
        wt = conv_ws[l].astype(jnp.float32)            # (cout, cin, 3, 3)
        cout, cin = wt.shape[0], wt.shape[1]
        # tap t = ky*3+kx, W_tap[cin, cout] = wt[cout, cin, ky, kx]
        taps = jnp.transpose(wt, (2, 3, 1, 0)).reshape(9, cin, cout)
        w_all = w_all.at[l, :, :cin, :cout].set(taps)
        pv = pv.at[l, 0, :cout].set(conv_bs[l].astype(jnp.float32))
        pv = pv.at[l, 1, :cout].set(gammas[l].astype(jnp.float32))
        pv = pv.at[l, 2, :cout].set(betas[l].astype(jnp.float32))
    return w_all, pv


@jax.jit
def decoder_forward(x, conv_ws, conv_bs, gammas, betas):
    """Decoder.forward: fused (conv+BN+LeakyReLU)x3 in one Pallas kernel."""
    n, cin0, h, w_sp = x.shape
    num_layers = len(conv_ws)
    cout_last = conv_ws[-1].shape[0]
    hp, wp = h + 2, w_sp + 2

    max_c = max([int(cin0)] + [int(w.shape[0]) for w in conv_ws])
    c_small = max(8, ((max_c + 7) // 8) * 8)           # real-channel rows, sublane-aligned
    assert c_small <= C_PAD

    kernel, rows, halo = _make_decoder_kernel(n, h, w_sp, num_layers, c_small)
    assert rows % 8 == 0

    # NCHW -> zero-padded NHWC with channels on the 128-lane axis, flattened to
    # a lane-dense (rows, 128) slab (one-time, tiny layout glue).
    x_nhwc = jnp.transpose(x.astype(jnp.float32), (0, 2, 3, 1))
    x_pad = jnp.pad(x_nhwc, ((0, 0), (1, 1), (1, 1), (0, C_PAD - cin0)))
    x_flat = x_pad.reshape(rows, C_PAD)

    # Row-validity mask: 1.0 on interior rows of each image's padded grid.
    yy = jnp.arange(hp)[:, None]
    xx = jnp.arange(wp)[None, :]
    m2d = ((yy >= 1) & (yy <= h) & (xx >= 1) & (xx <= w_sp)).astype(jnp.float32)
    mask = jnp.broadcast_to(
        jnp.tile(m2d.reshape(1, hp * wp), (n, 1)).reshape(rows, 1),
        (rows, C_PAD))

    w_all, pvec = _pack_params(conv_ws, conv_bs, gammas, betas, c_small)

    out_flat = pl.pallas_call(
        kernel,
        out_shape=jax.ShapeDtypeStruct((rows, C_PAD), jnp.float32),
        grid=(1,),
        in_specs=[
            pl.BlockSpec((rows, C_PAD), lambda i: (0, 0)),                 # x
            pl.BlockSpec((num_layers, 9, c_small, C_PAD),
                         lambda i: (0, 0, 0, 0)),                          # compact conv weights
            pl.BlockSpec((num_layers, 8, C_PAD), lambda i: (0, 0, 0)),     # bias/gamma/beta
            pl.BlockSpec((rows, C_PAD), lambda i: (0, 0)),                 # row mask
        ],
        out_specs=pl.BlockSpec((rows, C_PAD), lambda i: (0, 0)),
        scratch_shapes=[
            pltpu.VMEM((rows + 2 * halo, C_PAD), jnp.float32),   # zero-halo activations
            pltpu.VMEM((2 * C_PAD, C_PAD), jnp.float32),         # double-buffered weight tile
        ],
        compiler_params=pltpu.CompilerParams(
            dimension_semantics=("arbitrary",),
            vmem_limit_bytes=32 * 1024 * 1024,
        ),
    )(x_flat, w_all, pvec, mask)

    # Un-pad: (rows, 128) -> (N, Cout, H, W) -> .view(-1, 1, w_in, h_in)
    out = out_flat.reshape(n, hp, wp, C_PAD)[:, 1:1 + h, 1:1 + w_sp, :cout_last]
    out = jnp.transpose(out, (0, 3, 1, 2))
    return out.reshape(-1, 1, W_IN, H_IN)


def reference_forward(x, conv_ws, conv_bs, gammas, betas):
    """Pure-JAX reference matching the PyTorch forward (train-mode BN)."""
    h = x.astype(jnp.float32)
    for wt, cb, g, b in zip(conv_ws, conv_bs, gammas, betas):
        h = jax.lax.conv_general_dilated(
            h, wt.astype(jnp.float32), window_strides=(1, 1),
            padding=((1, 1), (1, 1)),
            dimension_numbers=("NCHW", "OIHW", "NCHW"),
            precision=jax.lax.Precision.HIGHEST)
        h = h + cb[None, :, None, None]
        mean = jnp.mean(h, axis=(0, 2, 3), keepdims=True)
        var = jnp.mean(jnp.square(h - mean), axis=(0, 2, 3), keepdims=True)
        h = (h - mean) * jax.lax.rsqrt(var + BN_EPS)
        h = h * g[None, :, None, None] + b[None, :, None, None]
        h = jnp.where(h > 0, h, NEG_SLOPE * h)
    return h.reshape(-1, 1, W_IN, H_IN)


if __name__ == "__main__":
    key = jax.random.PRNGKey(0)
    n_batch, in_ch = 2, 1
    h_sp, w_sp = W_IN, H_IN                 # input spatial = (6, 13)
    hidden_dims = [8, 4, 2]                 # module defaults

    keys = jax.random.split(key, 1 + 4 * len(hidden_dims))
    x = jax.random.normal(keys[0], (n_batch, in_ch, h_sp, w_sp), jnp.float32)

    conv_ws, conv_bs, gammas, betas = [], [], [], []
    c_prev = in_ch
    k = 1
    for h_dim in hidden_dims:
        fan_in = c_prev * 9
        conv_ws.append(jax.random.normal(keys[k], (h_dim, c_prev, 3, 3),
                                         jnp.float32) / np.sqrt(fan_in)); k += 1
        conv_bs.append(0.1 * jax.random.normal(keys[k], (h_dim,), jnp.float32)); k += 1
        gammas.append(1.0 + 0.1 * jax.random.normal(keys[k], (h_dim,), jnp.float32)); k += 1
        betas.append(0.1 * jax.random.normal(keys[k], (h_dim,), jnp.float32)); k += 1
        c_prev = h_dim

    out = jax.block_until_ready(decoder_forward(x, conv_ws, conv_bs, gammas, betas))
    ref = jax.block_until_ready(reference_forward(x, conv_ws, conv_bs, gammas, betas))

    assert out.shape == (2 * n_batch, 1, W_IN, H_IN), out.shape
    max_err = float(jnp.max(jnp.abs(out - ref)))
    assert max_err < 5e-2, f"kernel/reference mismatch: max abs err = {max_err}"
    print("KERNEL_OK")
</pallas_src>

<mosaic_0001>
module attributes {stable_mosaic.version = 11 : i64} {
  func.func @kernel(%arg0: i32, %arg1: memref<240x128xf32, #tpu.memory_space<vmem>>, %arg2: memref<3x9x8x128xf32, #tpu.memory_space<vmem>>, %arg3: memref<3x8x128xf32, #tpu.memory_space<vmem>>, %arg4: memref<240x128xf32, #tpu.memory_space<vmem>>, %arg5: memref<240x128xf32, #tpu.memory_space<vmem>>, %arg6: memref<272x128xf32, #tpu.memory_space<vmem>>, %arg7: memref<256x128xf32, #tpu.memory_space<vmem>>) attributes {dimension_semantics = [#tpu.dimension_semantics<arbitrary>], iteration_bounds = array<i64: 1>, scalar_prefetch = 0 : i64, scratch_operands = 2 : i64, tpu.core_type = #tpu.core_type<tc>, window_params = [{pipeline_mode = #tpu.pipeline_mode<synchronous>, transform_indices = @transform_0, window_bounds = array<i64: 240, 128>}, {pipeline_mode = #tpu.pipeline_mode<synchronous>, transform_indices = @transform_1, window_bounds = array<i64: 3, 9, 8, 128>}, {pipeline_mode = #tpu.pipeline_mode<synchronous>, transform_indices = @transform_2, window_bounds = array<i64: 3, 8, 128>}, {pipeline_mode = #tpu.pipeline_mode<synchronous>, transform_indices = @transform_3, window_bounds = array<i64: 240, 128>}, {pipeline_mode = #tpu.pipeline_mode<synchronous>, transform_indices = @transform_4, window_bounds = array<i64: 240, 128>}]} {
    %cst = arith.constant 0.000000e+00 : f32
    %0 = vector.broadcast %cst : f32 to vector<16x128xf32>
    %c0 = arith.constant 0 : index
    %c0_0 = arith.constant 0 : index
    %1 = vector.load %arg6[%c0, %c0_0] : memref<272x128xf32, #tpu.memory_space<vmem>>, vector<16x128xf32>
    tpu.vector_store %arg6[%c0, %c0_0], %0 {strides = array<i32>} : memref<272x128xf32, #tpu.memory_space<vmem>>, vector<16x128xf32>,
    %cst_1 = arith.constant 0.000000e+00 : f32
    %2 = vector.broadcast %cst_1 : f32 to vector<16x128xf32>
    %c256 = arith.constant 256 : index
    %c0_2 = arith.constant 0 : index
    %3 = vector.load %arg6[%c256, %c0_2] : memref<272x128xf32, #tpu.memory_space<vmem>>, vector<16x128xf32>
    tpu.vector_store %arg6[%c256, %c0_2], %2 {strides = array<i32>} : memref<272x128xf32, #tpu.memory_space<vmem>>, vector<16x128xf32>,
    %c0_3 = arith.constant 0 : index
    %c0_4 = arith.constant 0 : index
    %4 = vector.load %arg1[%c0_3, %c0_4] : memref<240x128xf32, #tpu.memory_space<vmem>>, vector<240x128xf32>
    %c16 = arith.constant 16 : index
    %c0_5 = arith.constant 0 : index
    %5 = vector.load %arg6[%c16, %c0_5] : memref<272x128xf32, #tpu.memory_space<vmem>>, vector<240x128xf32>
    tpu.vector_store %arg6[%c16, %c0_5], %4 {strides = array<i32>} : memref<272x128xf32, #tpu.memory_space<vmem>>, vector<240x128xf32>,
    %cst_6 = arith.constant 0.000000e+00 : f32
    %6 = vector.broadcast %cst_6 : f32 to vector<256x128xf32>
    %c0_7 = arith.constant 0 : index
    %c0_8 = arith.constant 0 : index
    %7 = vector.load %arg7[%c0_7, %c0_8] : memref<256x128xf32, #tpu.memory_space<vmem>>, vector<256x128xf32>
    tpu.vector_store %arg7[%c0_7, %c0_8], %6 {strides = array<i32>} : memref<256x128xf32, #tpu.memory_space<vmem>>, vector<256x128xf32>,
    %c0_9 = arith.constant 0 : index
    %c0_10 = arith.constant 0 : index
    %8 = vector.load %arg4[%c0_9, %c0_10] : memref<240x128xf32, #tpu.memory_space<vmem>>, vector<240x128xf32>
    %c0_11 = arith.constant 0 : index
    %c0_12 = arith.constant 0 : index
    %c0_13 = arith.constant 0 : index
    %9 = vector.load %arg3[%c0_11, %c0_12, %c0_13] : memref<3x8x128xf32, #tpu.memory_space<vmem>>, vector<1x8x128xf32>
    %10 = vector.shape_cast %9 : vector<1x8x128xf32> to vector<8x128xf32>
    %11 = vector.extract_strided_slice %10 {offsets = [0, 0], sizes = [1, 128], strides = [1, 1]} : vector<8x128xf32> to vector<1x128xf32>
    %12 = vector.extract_strided_slice %10 {offsets = [1, 0], sizes = [1, 128], strides = [1, 1]} : vector<8x128xf32> to vector<1x128xf32>
    %13 = vector.extract_strided_slice %10 {offsets = [2, 0], sizes = [1, 128], strides = [1, 1]} : vector<8x128xf32> to vector<1x128xf32>
    %c0_14 = arith.constant 0 : index
    %c0_15 = arith.constant 0 : index
    %c0_16 = arith.constant 0 : index
    %c0_17 = arith.constant 0 : index
    %14 = vector.load %arg2[%c0_14, %c0_15, %c0_16, %c0_17] : memref<3x9x8x128xf32, #tpu.memory_space<vmem>>, vector<1x1x8x128xf32>
    %15 = vector.shape_cast %14 : vector<1x1x8x128xf32> to vector<8x128xf32>
    %c0_18 = arith.constant 0 : index
    %c0_19 = arith.constant 0 : index
    %16 = vector.load %arg7[%c0_18, %c0_19] : memref<256x128xf32, #tpu.memory_space<vmem>>, vector<8x128xf32>
    tpu.vector_store %arg7[%c0_18, %c0_19], %15 {strides = array<i32>} : memref<256x128xf32, #tpu.memory_space<vmem>>, vector<8x128xf32>,
    %c0_20 = arith.constant 0 : index
    %c0_21 = arith.constant 0 : index
    %17 = vector.load %arg6[%c0_20, %c0_21] : memref<272x128xf32, #tpu.memory_space<vmem>>, vector<240x128xf32>
    %c0_22 = arith.constant 0 : index
    %c0_23 = arith.constant 0 : index
    %18 = vector.load %arg7[%c0_22, %c0_23] : memref<256x128xf32, #tpu.memory_space<vmem>>, vector<128x128xf32>
    %cst_24 = arith.constant dense<0.000000e+00> : vector<240x128xf32>
    %19 = tpu.matmul %17, %18, %cst_24 {dimension_numbers = #tpu.dot_dimension_numbers<[1], [0], [0], [1], [0, 0, 1, 1], [], []>} : vector<240x128xf32>, vector<128x128xf32>, vector<240x128xf32> -> vector<240x128xf32>
    %c0_25 = arith.constant 0 : index
    %c1 = arith.constant 1 : index
    %c0_26 = arith.constant 0 : index
    %c0_27 = arith.constant 0 : index
    %20 = vector.load %arg2[%c0_25, %c1, %c0_26, %c0_27] : memref<3x9x8x128xf32, #tpu.memory_space<vmem>>, vector<1x1x8x128xf32>
    %21 = vector.shape_cast %20 : vector<1x1x8x128xf32> to vector<8x128xf32>
    %c128 = arith.constant 128 : index
    %c0_28 = arith.constant 0 : index
    %22 = vector.load %arg7[%c128, %c0_28] : memref<256x128xf32, #tpu.memory_space<vmem>>, vector<8x128xf32>
    tpu.vector_store %arg7[%c128, %c0_28], %21 {strides = array<i32>} : memref<256x128xf32, #tpu.memory_space<vmem>>, vector<8x128xf32>,
    %c1_29 = arith.constant 1 : index
    %c0_30 = arith.constant 0 : index
    %23 = vector.load %arg6[%c1_29, %c0_30] : memref<272x128xf32, #tpu.memory_space<vmem>>, vector<240x128xf32>
    %c128_31 = arith.constant 128 : index
    %c0_32 = arith.constant 0 : index
    %24 = vector.load %arg7[%c128_31, %c0_32] : memref<256x128xf32, #tpu.memory_space<vmem>>, vector<128x128xf32>
    %cst_33 = arith.constant dense<0.000000e+00> : vector<240x128xf32>
    %25 = tpu.matmul %23, %24, %cst_33 {dimension_numbers = #tpu.dot_dimension_numbers<[1], [0], [0], [1], [0, 0, 1, 1], [], []>} : vector<240x128xf32>, vector<128x128xf32>, vector<240x128xf32> -> vector<240x128xf32>
    %26 = arith.addf %19, %25 : vector<240x128xf32>
    %c0_34 = arith.constant 0 : index
    %c2 = arith.constant 2 : index
    %c0_35 = arith.constant 0 : index
    %c0_36 = arith.constant 0 : index
    %27 = vector.load %arg2[%c0_34, %c2, %c0_35, %c0_36] : memref<3x9x8x128xf32, #tpu.memory_space<vmem>>, vector<1x1x8x128xf32>
    %28 = vector.shape_cast %27 : vector<1x1x8x128xf32> to vector<8x128xf32>
    %c0_37 = arith.constant 0 : index
    %c0_38 = arith.constant 0 : index
    %29 = vector.load %arg7[%c0_37, %c0_38] : memref<256x128xf32, #tpu.memory_space<vmem>>, vector<8x128xf32>
    tpu.vector_store %arg7[%c0_37, %c0_38], %28 {strides = array<i32>} : memref<256x128xf32, #tpu.memory_space<vmem>>, vector<8x128xf32>,
    %c2_39 = arith.constant 2 : index
    %c0_40 = arith.constant 0 : index
    %30 = vector.load %arg6[%c2_39, %c0_40] : memref<272x128xf32, #tpu.memory_space<vmem>>, vector<240x128xf32>
    %c0_41 = arith.constant 0 : index
    %c0_42 = arith.constant 0 : index
    %31 = vector.load %arg7[%c0_41, %c0_42] : memref<256x128xf32, #tpu.memory_space<vmem>>, vector<128x128xf32>
    %cst_43 = arith.constant dense<0.000000e+00> : vector<240x128xf32>
    %32 = tpu.matmul %30, %31, %cst_43 {dimension_numbers = #tpu.dot_dimension_numbers<[1], [0], [0], [1], [0, 0, 1, 1], [], []>} : vector<240x128xf32>, vector<128x128xf32>, vector<240x128xf32> -> vector<240x128xf32>
    %33 = arith.addf %26, %32 : vector<240x128xf32>
    %c0_44 = arith.constant 0 : index
    %c3 = arith.constant 3 : index
    %c0_45 = arith.constant 0 : index
    %c0_46 = arith.constant 0 : index
    %34 = vector.load %arg2[%c0_44, %c3, %c0_45, %c0_46] : memref<3x9x8x128xf32, #tpu.memory_space<vmem>>, vector<1x1x8x128xf32>
    %35 = vector.shape_cast %34 : vector<1x1x8x128xf32> to vector<8x128xf32>
    %c128_47 = arith.constant 128 : index
    %c0_48 = arith.constant 0 : index
    %36 = vector.load %arg7[%c128_47, %c0_48] : memref<256x128xf32, #tpu.memory_space<vmem>>, vector<8x128xf32>
    tpu.vector_store %arg7[%c128_47, %c0_48], %35 {strides = array<i32>} : memref<256x128xf32, #tpu.memory_space<vmem>>, vector<8x128xf32>,
    %c15 = arith.constant 15 : index
    %c0_49 = arith.constant 0 : index
    %37 = vector.load %arg6[%c15, %c0_49] : memref<272x128xf32, #tpu.memory_space<vmem>>, vector<240x128xf32>
    %c128_50 = arith.constant 128 : index
    %c0_51 = arith.constant 0 : index
    %38 = vector.load %arg7[%c128_50, %c0_51] : memref<256x128xf32, #tpu.memory_space<vmem>>, vector<128x128xf32>
    %cst_52 = arith.constant dense<0.000000e+00> : vector<240x128xf32>
    %39 = tpu.matmul %37, %38, %cst_52 {dimension_numbers = #tpu.dot_dimension_numbers<[1], [0], [0], [1], [0, 0, 1, 1], [], []>} : vector<240x128xf32>, vector<128x128xf32>, vector<240x128xf32> -> vector<240x128xf32>
    %40 = arith.addf %33, %39 : vector<240x128xf32>
    %c0_53 = arith.constant 0 : index
    %c4 = arith.constant 4 : index
    %c0_54 = arith.constant 0 : index
    %c0_55 = arith.constant 0 : index
    %41 = vector.load %arg2[%c0_53, %c4, %c0_54, %c0_55] : memref<3x9x8x128xf32, #tpu.memory_space<vmem>>, vector<1x1x8x128xf32>
    %42 = vector.shape_cast %41 : vector<1x1x8x128xf32> to vector<8x128xf32>
    %c0_56 = arith.constant 0 : index
    %c0_57 = arith.constant 0 : index
    %43 = vector.load %arg7[%c0_56, %c0_57] : memref<256x128xf32, #tpu.memory_space<vmem>>, vector<8x128xf32>
    tpu.vector_store %arg7[%c0_56, %c0_57], %42 {strides = array<i32>} : memref<256x128xf32, #tpu.memory_space<vmem>>, vector<8x128xf32>,
    %c16_58 = arith.constant 16 : index
    %c0_59 = arith.constant 0 : index
    %44 = vector.load %arg6[%c16_58, %c0_59] : memref<272x128xf32, #tpu.memory_space<vmem>>, vector<240x128xf32>
    %c0_60 = arith.constant 0 : index
    %c0_61 = arith.constant 0 : index
    %45 = vector.load %arg7[%c0_60, %c0_61] : memref<256x128xf32, #tpu.memory_space<vmem>>, vector<128x128xf32>
    %cst_62 = arith.constant dense<0.000000e+00> : vector<240x128xf32>
    %46 = tpu.matmul %44, %45, %cst_62 {dimension_numbers = #tpu.dot_dimension_numbers<[1], [0], [0], [1], [0, 0, 1, 1], [], []>} : vector<240x128xf32>, vector<128x128xf32>, vector<240x128xf32> -> vector<240x128xf32>
    %47 = arith.addf %40, %46 : vector<240x128xf32>
    %c0_63 = arith.constant 0 : index
    %c5 = arith.constant 5 : index
    %c0_64 = arith.constant 0 : index
    %c0_65 = arith.constant 0 : index
    %48 = vector.load %arg2[%c0_63, %c5, %c0_64, %c0_65] : memref<3x9x8x128xf32, #tpu.memory_space<vmem>>, vector<1x1x8x128xf32>
    %49 = vector.shape_cast %48 : vector<1x1x8x128xf32> to vector<8x128xf32>
    %c128_66 = arith.constant 128 : index
    %c0_67 = arith.constant 0 : index
    %50 = vector.load %arg7[%c128_66, %c0_67] : memref<256x128xf32, #tpu.memory_space<vmem>>, vector<8x128xf32>
    tpu.vector_store %arg7[%c128_66, %c0_67], %49 {strides = array<i32>} : memref<256x128xf32, #tpu.memory_space<vmem>>, vector<8x128xf32>,
    %c17 = arith.constant 17 : index
    %c0_68 = arith.constant 0 : index
    %51 = vector.load %arg6[%c17, %c0_68] : memref<272x128xf32, #tpu.memory_space<vmem>>, vector<240x128xf32>
    %c128_69 = arith.constant 128 : index
    %c0_70 = arith.constant 0 : index
    %52 = vector.load %arg7[%c128_69, %c0_70] : memref<256x128xf32, #tpu.memory_space<vmem>>, vector<128x128xf32>
    %cst_71 = arith.constant dense<0.000000e+00> : vector<240x128xf32>
    %53 = tpu.matmul %51, %52, %cst_71 {dimension_numbers = #tpu.dot_dimension_numbers<[1], [0], [0], [1], [0, 0, 1, 1], [], []>} : vector<240x128xf32>, vector<128x128xf32>, vector<240x128xf32> -> vector<240x128xf32>
    %54 = arith.addf %47, %53 : vector<240x128xf32>
    %c0_72 = arith.constant 0 : index
    %c6 = arith.constant 6 : index
    %c0_73 = arith.constant 0 : index
    %c0_74 = arith.constant 0 : index
    %55 = vector.load %arg2[%c0_72, %c6, %c0_73, %c0_74] : memref<3x9x8x128xf32, #tpu.memory_space<vmem>>, vector<1x1x8x128xf32>
    %56 = vector.shape_cast %55 : vector<1x1x8x128xf32> to vector<8x128xf32>
    %c0_75 = arith.constant 0 : index
    %c0_76 = arith.constant 0 : index
    %57 = vector.load %arg7[%c0_75, %c0_76] : memref<256x128xf32, #tpu.memory_space<vmem>>, vector<8x128xf32>
    tpu.vector_store %arg7[%c0_75, %c0_76], %56 {strides = array<i32>} : memref<256x128xf32, #tpu.memory_space<vmem>>, vector<8x128xf32>,
    %c30 = arith.constant 30 : index
    %c0_77 = arith.constant 0 : index
    %58 = vector.load %arg6[%c30, %c0_77] : memref<272x128xf32, #tpu.memory_space<vmem>>, vector<240x128xf32>
    %c0_78 = arith.constant 0 : index
    %c0_79 = arith.constant 0 : index
    %59 = vector.load %arg7[%c0_78, %c0_79] : memref<256x128xf32, #tpu.memory_space<vmem>>, vector<128x128xf32>
    %cst_80 = arith.constant dense<0.000000e+00> : vector<240x128xf32>
    %60 = tpu.matmul %58, %59, %cst_80 {dimension_numbers = #tpu.dot_dimension_numbers<[1], [0], [0], [1], [0, 0, 1, 1], [], []>} : vector<240x128xf32>, vector<128x128xf32>, vector<240x128xf32> -> vector<240x128xf32>
    %61 = arith.addf %54, %60 : vector<240x128xf32>
    %c0_81 = arith.constant 0 : index
    %c7 = arith.constant 7 : index
    %c0_82 = arith.constant 0 : index
    %c0_83 = arith.constant 0 : index
    %62 = vector.load %arg2[%c0_81, %c7, %c0_82, %c0_83] : memref<3x9x8x128xf32, #tpu.memory_space<vmem>>, vector<1x1x8x128xf32>
    %63 = vector.shape_cast %62 : vector<1x1x8x128xf32> to vector<8x128xf32>
    %c128_84 = arith.constant 128 : index
    %c0_85 = arith.constant 0 : index
    %64 = vector.load %arg7[%c128_84, %c0_85] : memref<256x128xf32, #tpu.memory_space<vmem>>, vector<8x128xf32>
    tpu.vector_store %arg7[%c128_84, %c0_85], %63 {strides = array<i32>} : memref<256x128xf32, #tpu.memory_space<vmem>>, vector<8x128xf32>,
    %c31 = arith.constant 31 : index
    %c0_86 = arith.constant 0 : index
    %65 = vector.load %arg6[%c31, %c0_86] : memref<272x128xf32, #tpu.memory_space<vmem>>, vector<240x128xf32>
    %c128_87 = arith.constant 128 : index
    %c0_88 = arith.constant 0 : index
    %66 = vector.load %arg7[%c128_87, %c0_88] : memref<256x128xf32, #tpu.memory_space<vmem>>, vector<128x128xf32>
    %cst_89 = arith.constant dense<0.000000e+00> : vector<240x128xf32>
    %67 = tpu.matmul %65, %66, %cst_89 {dimension_numbers = #tpu.dot_dimension_numbers<[1], [0], [0], [1], [0, 0, 1, 1], [], []>} : vector<240x128xf32>, vector<128x128xf32>, vector<240x128xf32> -> vector<240x128xf32>
    %68 = arith.addf %61, %67 : vector<240x128xf32>
    %c0_90 = arith.constant 0 : index
    %c8 = arith.constant 8 : index
    %c0_91 = arith.constant 0 : index
    %c0_92 = arith.constant 0 : index
    %69 = vector.load %arg2[%c0_90, %c8, %c0_91, %c0_92] : memref<3x9x8x128xf32, #tpu.memory_space<vmem>>, vector<1x1x8x128xf32>
    %70 = vector.shape_cast %69 : vector<1x1x8x128xf32> to vector<8x128xf32>
    %c0_93 = arith.constant 0 : index
    %c0_94 = arith.constant 0 : index
    %71 = vector.load %arg7[%c0_93, %c0_94] : memref<256x128xf32, #tpu.memory_space<vmem>>, vector<8x128xf32>
    tpu.vector_store %arg7[%c0_93, %c0_94], %70 {strides = array<i32>} : memref<256x128xf32, #tpu.memory_space<vmem>>, vector<8x128xf32>,
    %c32 = arith.constant 32 : index
    %c0_95 = arith.constant 0 : index
    %72 = vector.load %arg6[%c32, %c0_95] : memref<272x128xf32, #tpu.memory_space<vmem>>, vector<240x128xf32>
    %c0_96 = arith.constant 0 : index
    %c0_97 = arith.constant 0 : index
    %73 = vector.load %arg7[%c0_96, %c0_97] : memref<256x128xf32, #tpu.memory_space<vmem>>, vector<128x128xf32>
    %cst_98 = arith.constant dense<0.000000e+00> : vector<240x128xf32>
    %74 = tpu.matmul %72, %73, %cst_98 {dimension_numbers = #tpu.dot_dimension_numbers<[1], [0], [0], [1], [0, 0, 1, 1], [], []>} : vector<240x128xf32>, vector<128x128xf32>, vector<240x128xf32> -> vector<240x128xf32>
    %75 = arith.addf %68, %74 : vector<240x128xf32>
    %76 = vector.broadcast %11 : vector<1x128xf32> to vector<240x128xf32>
    %77 = arith.addf %75, %76 : vector<240x128xf32>
    %78 = arith.mulf %77, %8 : vector<240x128xf32>
    %cst_99 = arith.constant dense<0.000000e+00> : vector<128xf32>
    %79 = vector.multi_reduction <add>, %78, %cst_99 [0] : vector<240x128xf32> to vector<128xf32>
    %80 = vector.shape_cast %79 : vector<128xf32> to vector<1x128xf32>
    %81 = arith.mulf %78, %78 : vector<240x128xf32>
    %cst_100 = arith.constant dense<0.000000e+00> : vector<128xf32>
    %82 = vector.multi_reduction <add>, %81, %cst_100 [0] : vector<240x128xf32> to vector<128xf32>
    %83 = vector.shape_cast %82 : vector<128xf32> to vector<1x128xf32>
    %cst_101 = arith.constant 0.00641025649 : f32
    %84 = vector.broadcast %cst_101 : f32 to vector<1x128xf32>
    %85 = arith.mulf %80, %84 : vector<1x128xf32>
    %cst_102 = arith.constant 0.00641025649 : f32
    %86 = vector.broadcast %cst_102 : f32 to vector<1x128xf32>
    %87 = arith.mulf %83, %86 : vector<1x128xf32>
    %88 = arith.mulf %85, %85 : vector<1x128xf32>
    %89 = arith.subf %87, %88 : vector<1x128xf32>
    %cst_103 = arith.constant 9.99999974E-6 : f32
    %90 = vector.broadcast %cst_103 : f32 to vector<1x128xf32>
    %91 = arith.addf %89, %90 : vector<1x128xf32>
    %92 = math.rsqrt %91 : vector<1x128xf32>
    %93 = arith.mulf %12, %92 : vector<1x128xf32>
    %94 = arith.mulf %85, %93 : vector<1x128xf32>
    %95 = arith.subf %13, %94 : vector<1x128xf32>
    %96 = vector.broadcast %93 : vector<1x128xf32> to vector<240x128xf32>
    %97 = arith.mulf %78, %96 : vector<240x128xf32>
    %98 = vector.broadcast %95 : vector<1x128xf32> to vector<240x128xf32>
    %99 = arith.addf %97, %98 : vector<240x128xf32>
    %cst_104 = arith.constant 0.000000e+00 : f32
    %100 = vector.broadcast %cst_104 : f32 to vector<240x128xf32>
    %101 = arith.cmpf ogt, %99, %100 : vector<240x128xf32>
    %cst_105 = arith.constant 0.00999999977 : f32
    %102 = vector.broadcast %cst_105 : f32 to vector<240x128xf32>
    %103 = arith.mulf %102, %99 : vector<240x128xf32>
    %104 = arith.select %101, %99, %103 : vector<240x128xi1>, vector<240x128xf32>
    %105 = arith.mulf %104, %8 : vector<240x128xf32>
    %c16_106 = arith.constant 16 : index
    %c0_107 = arith.constant 0 : index
    %106 = vector.load %arg6[%c16_106, %c0_107] : memref<272x128xf32, #tpu.memory_space<vmem>>, vector<240x128xf32>
    tpu.vector_store %arg6[%c16_106, %c0_107], %105 {strides = array<i32>} : memref<272x128xf32, #tpu.memory_space<vmem>>, vector<240x128xf32>,
    %c1_108 = arith.constant 1 : index
    %c0_109 = arith.constant 0 : index
    %c0_110 = arith.constant 0 : index
    %107 = vector.load %arg3[%c1_108, %c0_109, %c0_110] : memref<3x8x128xf32, #tpu.memory_space<vmem>>, vector<1x8x128xf32>
    %108 = vector.shape_cast %107 : vector<1x8x128xf32> to vector<8x128xf32>
    %109 = vector.extract_strided_slice %108 {offsets = [0, 0], sizes = [1, 128], strides = [1, 1]} : vector<8x128xf32> to vector<1x128xf32>
    %110 = vector.extract_strided_slice %108 {offsets = [1, 0], sizes = [1, 128], strides = [1, 1]} : vector<8x128xf32> to vector<1x128xf32>
    %111 = vector.extract_strided_slice %108 {offsets = [2, 0], sizes = [1, 128], strides = [1, 1]} : vector<8x128xf32> to vector<1x128xf32>
    %c1_111 = arith.constant 1 : index
    %c0_112 = arith.constant 0 : index
    %c0_113 = arith.constant 0 : index
    %c0_114 = arith.constant 0 : index
    %112 = vector.load %arg2[%c1_111, %c0_112, %c0_113, %c0_114] : memref<3x9x8x128xf32, #tpu.memory_space<vmem>>, vector<1x1x8x128xf32>
    %113 = vector.shape_cast %112 : vector<1x1x8x128xf32> to vector<8x128xf32>
    %c0_115 = arith.constant 0 : index
    %c0_116 = arith.constant 0 : index
    %114 = vector.load %arg7[%c0_115, %c0_116] : memref<256x128xf32, #tpu.memory_space<vmem>>, vector<8x128xf32>
    tpu.vector_store %arg7[%c0_115, %c0_116], %113 {strides = array<i32>} : memref<256x128xf32, #tpu.memory_space<vmem>>, vector<8x128xf32>,
    %c0_117 = arith.constant 0 : index
    %c0_118 = arith.constant 0 : index
    %115 = vector.load %arg6[%c0_117, %c0_118] : memref<272x128xf32, #tpu.memory_space<vmem>>, vector<240x128xf32>
    %c0_119 = arith.constant 0 : index
    %c0_120 = arith.constant 0 : index
    %116 = vector.load %arg7[%c0_119, %c0_120] : memref<256x128xf32, #tpu.memory_space<vmem>>, vector<128x128xf32>
    %cst_121 = arith.constant dense<0.000000e+00> : vector<240x128xf32>
    %117 = tpu.matmul %115, %116, %cst_121 {dimension_numbers = #tpu.dot_dimension_numbers<[1], [0], [0], [1], [0, 0, 1, 1], [], []>} : vector<240x128xf32>, vector<128x128xf32>, vector<240x128xf32> -> vector<240x128xf32>
    %c1_122 = arith.constant 1 : index
    %c1_123 = arith.constant 1 : index
    %c0_124 = arith.constant 0 : index
    %c0_125 = arith.constant 0 : index
    %118 = vector.load %arg2[%c1_122, %c1_123, %c0_124, %c0_125] : memref<3x9x8x128xf32, #tpu.memory_space<vmem>>, vector<1x1x8x128xf32>
    %119 = vector.shape_cast %118 : vector<1x1x8x128xf32> to vector<8x128xf32>
    %c128_126 = arith.constant 128 : index
    %c0_127 = arith.constant 0 : index
    %120 = vector.load %arg7[%c128_126, %c0_127] : memref<256x128xf32, #tpu.memory_space<vmem>>, vector<8x128xf32>
    tpu.vector_store %arg7[%c128_126, %c0_127], %119 {strides = array<i32>} : memref<256x128xf32, #tpu.memory_space<vmem>>, vector<8x128xf32>,
    %c1_128 = arith.constant 1 : index
    %c0_129 = arith.constant 0 : index
    %121 = vector.load %arg6[%c1_128, %c0_129] : memref<272x128xf32, #tpu.memory_space<vmem>>, vector<240x128xf32>
    %c128_130 = arith.constant 128 : index
    %c0_131 = arith.constant 0 : index
    %122 = vector.load %arg7[%c128_130, %c0_131] : memref<256x128xf32, #tpu.memory_space<vmem>>, vector<128x128xf32>
    %cst_132 = arith.constant dense<0.000000e+00> : vector<240x128xf32>
    %123 = tpu.matmul %121, %122, %cst_132 {dimension_numbers = #tpu.dot_dimension_numbers<[1], [0], [0], [1], [0, 0, 1, 1], [], []>} : vector<240x128xf32>, vector<128x128xf32>, vector<240x128xf32> -> vector<240x128xf32>
    %124 = arith.addf %117, %123 : vector<240x128xf32>
    %c1_133 = arith.constant 1 : index
    %c2_134 = arith.constant 2 : index
    %c0_135 = arith.constant 0 : index
    %c0_136 = arith.constant 0 : index
    %125 = vector.load %arg2[%c1_133, %c2_134, %c0_135, %c0_136] : memref<3x9x8x128xf32, #tpu.memory_space<vmem>>, vector<1x1x8x128xf32>
    %126 = vector.shape_cast %125 : vector<1x1x8x128xf32> to vector<8x128xf32>
    %c0_137 = arith.constant 0 : index
    %c0_138 = arith.constant 0 : index
    %127 = vector.load %arg7[%c0_137, %c0_138] : memref<256x128xf32, #tpu.memory_space<vmem>>, vector<8x128xf32>
    tpu.vector_store %arg7[%c0_137, %c0_138], %126 {strides = array<i32>} : memref<256x128xf32, #tpu.memory_space<vmem>>, vector<8x128xf32>,
    %c2_139 = arith.constant 2 : index
    %c0_140 = arith.constant 0 : index
    %128 = vector.load %arg6[%c2_139, %c0_140] : memref<272x128xf32, #tpu.memory_space<vmem>>, vector<240x128xf32>
    %c0_141 = arith.constant 0 : index
    %c0_142 = arith.constant 0 : index
    %129 = vector.load %arg7[%c0_141, %c0_142] : memref<256x128xf32, #tpu.memory_space<vmem>>, vector<128x128xf32>
    %cst_143 = arith.constant dense<0.000000e+00> : vector<240x128xf32>
    %130 = tpu.matmul %128, %129, %cst_143 {dimension_numbers = #tpu.dot_dimension_numbers<[1], [0], [0], [1], [0, 0, 1, 1], [], []>} : vector<240x128xf32>, vector<128x128xf32>, vector<240x128xf32> -> vector<240x128xf32>
    %131 = arith.addf %124, %130 : vector<240x128xf32>
    %c1_144 = arith.constant 1 : index
    %c3_145 = arith.constant 3 : index
    %c0_146 = arith.constant 0 : index
    %c0_147 = arith.constant 0 : index
    %132 = vector.load %arg2[%c1_144, %c3_145, %c0_146, %c0_147] : memref<3x9x8x128xf32, #tpu.memory_space<vmem>>, vector<1x1x8x128xf32>
    %133 = vector.shape_cast %132 : vector<1x1x8x128xf32> to vector<8x128xf32>
    %c128_148 = arith.constant 128 : index
    %c0_149 = arith.constant 0 : index
    %134 = vector.load %arg7[%c128_148, %c0_149] : memref<256x128xf32, #tpu.memory_space<vmem>>, vector<8x128xf32>
    tpu.vector_store %arg7[%c128_148, %c0_149], %133 {strides = array<i32>} : memref<256x128xf32, #tpu.memory_space<vmem>>, vector<8x128xf32>,
    %c15_150 = arith.constant 15 : index
    %c0_151 = arith.constant 0 : index
    %135 = vector.load %arg6[%c15_150, %c0_151] : memref<272x128xf32, #tpu.memory_space<vmem>>, vector<240x128xf32>
    %c128_152 = arith.constant 128 : index
    %c0_153 = arith.constant 0 : index
    %136 = vector.load %arg7[%c128_152, %c0_153] : memref<256x128xf32, #tpu.memory_space<vmem>>, vector<128x128xf32>
    %cst_154 = arith.constant dense<0.000000e+00> : vector<240x128xf32>
    %137 = tpu.matmul %135, %136, %cst_154 {dimension_numbers = #tpu.dot_dimension_numbers<[1], [0], [0], [1], [0, 0, 1, 1], [], []>} : vector<240x128xf32>, vector<128x128xf32>, vector<240x128xf32> -> vector<240x128xf32>
    %138 = arith.addf %131, %137 : vector<240x128xf32>
    %c1_155 = arith.constant 1 : index
    %c4_156 = arith.constant 4 : index
    %c0_157 = arith.constant 0 : index
    %c0_158 = arith.constant 0 : index
    %139 = vector.load %arg2[%c1_155, %c4_156, %c0_157, %c0_158] : memref<3x9x8x128xf32, #tpu.memory_space<vmem>>, vector<1x1x8x128xf32>
    %140 = vector.shape_cast %139 : vector<1x1x8x128xf32> to vector<8x128xf32>
    %c0_159 = arith.constant 0 : index
    %c0_160 = arith.constant 0 : index
    %141 = vector.load %arg7[%c0_159, %c0_160] : memref<256x128xf32, #tpu.memory_space<vmem>>, vector<8x128xf32>
    tpu.vector_store %arg7[%c0_159, %c0_160], %140 {strides = array<i32>} : memref<256x128xf32, #tpu.memory_space<vmem>>, vector<8x128xf32>,
    %c16_161 = arith.constant 16 : index
    %c0_162 = arith.constant 0 : index
    %142 = vector.load %arg6[%c16_161, %c0_162] : memref<272x128xf32, #tpu.memory_space<vmem>>, vector<240x128xf32>
    %c0_163 = arith.constant 0 : index
    %c0_164 = arith.constant 0 : index
    %143 = vector.load %arg7[%c0_163, %c0_164] : memref<256x128xf32, #tpu.memory_space<vmem>>, vector<128x128xf32>
    %cst_165 = arith.constant dense<0.000000e+00> : vector<240x128xf32>
    %144 = tpu.matmul %142, %143, %cst_165 {dimension_numbers = #tpu.dot_dimension_numbers<[1], [0], [0], [1], [0, 0, 1, 1], [], []>} : vector<240x128xf32>, vector<128x128xf32>, vector<240x128xf32> -> vector<240x128xf32>
    %145 = arith.addf %138, %144 : vector<240x128xf32>
    %c1_166 = arith.constant 1 : index
    %c5_167 = arith.constant 5 : index
    %c0_168 = arith.constant 0 : index
    %c0_169 = arith.constant 0 : index
    %146 = vector.load %arg2[%c1_166, %c5_167, %c0_168, %c0_169] : memref<3x9x8x128xf32, #tpu.memory_space<vmem>>, vector<1x1x8x128xf32>
    %147 = vector.shape_cast %146 : vector<1x1x8x128xf32> to vector<8x128xf32>
    %c128_170 = arith.constant 128 : index
    %c0_171 = arith.constant 0 : index
    %148 = vector.load %arg7[%c128_170, %c0_171] : memref<256x128xf32, #tpu.memory_space<vmem>>, vector<8x128xf32>
    tpu.vector_store %arg7[%c128_170, %c0_171], %147 {strides = array<i32>} : memref<256x128xf32, #tpu.memory_space<vmem>>, vector<8x128xf32>,
    %c17_172 = arith.constant 17 : index
    %c0_173 = arith.constant 0 : index
    %149 = vector.load %arg6[%c17_172, %c0_173] : memref<272x128xf32, #tpu.memory_space<vmem>>, vector<240x128xf32>
    %c128_174 = arith.constant 128 : index
    %c0_175 = arith.constant 0 : index
    %150 = vector.load %arg7[%c128_174, %c0_175] : memref<256x128xf32, #tpu.memory_space<vmem>>, vector<128x128xf32>
    %cst_176 = arith.constant dense<0.000000e+00> : vector<240x128xf32>
    %151 = tpu.matmul %149, %150, %cst_176 {dimension_numbers = #tpu.dot_dimension_numbers<[1], [0], [0], [1], [0, 0, 1, 1], [], []>} : vector<240x128xf32>, vector<128x128xf32>, vector<240x128xf32> -> vector<240x128xf32>
    %152 = arith.addf %145, %151 : vector<240x128xf32>
    %c1_177 = arith.constant 1 : index
    %c6_178 = arith.constant 6 : index
    %c0_179 = arith.constant 0 : index
    %c0_180 = arith.constant 0 : index
    %153 = vector.load %arg2[%c1_177, %c6_178, %c0_179, %c0_180] : memref<3x9x8x128xf32, #tpu.memory_space<vmem>>, vector<1x1x8x128xf32>
    %154 = vector.shape_cast %153 : vector<1x1x8x128xf32> to vector<8x128xf32>
    %c0_181 = arith.constant 0 : index
    %c0_182 = arith.constant 0 : index
    %155 = vector.load %arg7[%c0_181, %c0_182] : memref<256x128xf32, #tpu.memory_space<vmem>>, vector<8x128xf32>
    tpu.vector_store %arg7[%c0_181, %c0_182], %154 {strides = array<i32>} : memref<256x128xf32, #tpu.memory_space<vmem>>, vector<8x128xf32>,
    %c30_183 = arith.constant 30 : index
    %c0_184 = arith.constant 0 : index
    %156 = vector.load %arg6[%c30_183, %c0_184] : memref<272x128xf32, #tpu.memory_space<vmem>>, vector<240x128xf32>
    %c0_185 = arith.constant 0 : index
    %c0_186 = arith.constant 0 : index
    %157 = vector.load %arg7[%c0_185, %c0_186] : memref<256x128xf32, #tpu.memory_space<vmem>>, vector<128x128xf32>
    %cst_187 = arith.constant dense<0.000000e+00> : vector<240x128xf32>
    %158 = tpu.matmul %156, %157, %cst_187 {dimension_numbers = #tpu.dot_dimension_numbers<[1], [0], [0], [1], [0, 0, 1, 1], [], []>} : vector<240x128xf32>, vector<128x128xf32>, vector<240x128xf32> -> vector<240x128xf32>
    %159 = arith.addf %152, %158 : vector<240x128xf32>
    %c1_188 = arith.constant 1 : index
    %c7_189 = arith.constant 7 : index
    %c0_190 = arith.constant 0 : index
    %c0_191 = arith.constant 0 : index
    %160 = vector.load %arg2[%c1_188, %c7_189, %c0_190, %c0_191] : memref<3x9x8x128xf32, #tpu.memory_space<vmem>>, vector<1x1x8x128xf32>
    %161 = vector.shape_cast %160 : vector<1x1x8x128xf32> to vector<8x128xf32>
    %c128_192 = arith.constant 128 : index
    %c0_193 = arith.constant 0 : index
    %162 = vector.load %arg7[%c128_192, %c0_193] : memref<256x128xf32, #tpu.memory_space<vmem>>, vector<8x128xf32>
    tpu.vector_store %arg7[%c128_192, %c0_193], %161 {strides = array<i32>} : memref<256x128xf32, #tpu.memory_space<vmem>>, vector<8x128xf32>,
    %c31_194 = arith.constant 31 : index
    %c0_195 = arith.constant 0 : index
    %163 = vector.load %arg6[%c31_194, %c0_195] : memref<272x128xf32, #tpu.memory_space<vmem>>, vector<240x128xf32>
    %c128_196 = arith.constant 128 : index
    %c0_197 = arith.constant 0 : index
    %164 = vector.load %arg7[%c128_196, %c0_197] : memref<256x128xf32, #tpu.memory_space<vmem>>, vector<128x128xf32>
    %cst_198 = arith.constant dense<0.000000e+00> : vector<240x128xf32>
    %165 = tpu.matmul %163, %164, %cst_198 {dimension_numbers = #tpu.dot_dimension_numbers<[1], [0], [0], [1], [0, 0, 1, 1], [], []>} : vector<240x128xf32>, vector<128x128xf32>, vector<240x128xf32> -> vector<240x128xf32>
    %166 = arith.addf %159, %165 : vector<240x128xf32>
    %c1_199 = arith.constant 1 : index
    %c8_200 = arith.constant 8 : index
    %c0_201 = arith.constant 0 : index
    %c0_202 = arith.constant 0 : index
    %167 = vector.load %arg2[%c1_199, %c8_200, %c0_201, %c0_202] : memref<3x9x8x128xf32, #tpu.memory_space<vmem>>, vector<1x1x8x128xf32>
    %168 = vector.shape_cast %167 : vector<1x1x8x128xf32> to vector<8x128xf32>
    %c0_203 = arith.constant 0 : index
    %c0_204 = arith.constant 0 : index
    %169 = vector.load %arg7[%c0_203, %c0_204] : memref<256x128xf32, #tpu.memory_space<vmem>>, vector<8x128xf32>
    tpu.vector_store %arg7[%c0_203, %c0_204], %168 {strides = array<i32>} : memref<256x128xf32, #tpu.memory_space<vmem>>, vector<8x128xf32>,
    %c32_205 = arith.constant 32 : index
    %c0_206 = arith.constant 0 : index
    %170 = vector.load %arg6[%c32_205, %c0_206] : memref<272x128xf32, #tpu.memory_space<vmem>>, vector<240x128xf32>
    %c0_207 = arith.constant 0 : index
    %c0_208 = arith.constant 0 : index
    %171 = vector.load %arg7[%c0_207, %c0_208] : memref<256x128xf32, #tpu.memory_space<vmem>>, vector<128x128xf32>
    %cst_209 = arith.constant dense<0.000000e+00> : vector<240x128xf32>
    %172 = tpu.matmul %170, %171, %cst_209 {dimension_numbers = #tpu.dot_dimension_numbers<[1], [0], [0], [1], [0, 0, 1, 1], [], []>} : vector<240x128xf32>, vector<128x128xf32>, vector<240x128xf32> -> vector<240x128xf32>
    %173 = arith.addf %166, %172 : vector<240x128xf32>
    %174 = vector.broadcast %109 : vector<1x128xf32> to vector<240x128xf32>
    %175 = arith.addf %173, %174 : vector<240x128xf32>
    %176 = arith.mulf %175, %8 : vector<240x128xf32>
    %cst_210 = arith.constant dense<0.000000e+00> : vector<128xf32>
    %177 = vector.multi_reduction <add>, %176, %cst_210 [0] : vector<240x128xf32> to vector<128xf32>
    %178 = vector.shape_cast %177 : vector<128xf32> to vector<1x128xf32>
    %179 = arith.mulf %176, %176 : vector<240x128xf32>
    %cst_211 = arith.constant dense<0.000000e+00> : vector<128xf32>
    %180 = vector.multi_reduction <add>, %179, %cst_211 [0] : vector<240x128xf32> to vector<128xf32>
    %181 = vector.shape_cast %180 : vector<128xf32> to vector<1x128xf32>
    %cst_212 = arith.constant 0.00641025649 : f32
    %182 = vector.broadcast %cst_212 : f32 to vector<1x128xf32>
    %183 = arith.mulf %178, %182 : vector<1x128xf32>
    %cst_213 = arith.constant 0.00641025649 : f32
    %184 = vector.broadcast %cst_213 : f32 to vector<1x128xf32>
    %185 = arith.mulf %181, %184 : vector<1x128xf32>
    %186 = arith.mulf %183, %183 : vector<1x128xf32>
    %187 = arith.subf %185, %186 : vector<1x128xf32>
    %cst_214 = arith.constant 9.99999974E-6 : f32
    %188 = vector.broadcast %cst_214 : f32 to vector<1x128xf32>
    %189 = arith.addf %187, %188 : vector<1x128xf32>
    %190 = math.rsqrt %189 : vector<1x128xf32>
    %191 = arith.mulf %110, %190 : vector<1x128xf32>
    %192 = arith.mulf %183, %191 : vector<1x128xf32>
    %193 = arith.subf %111, %192 : vector<1x128xf32>
    %194 = vector.broadcast %191 : vector<1x128xf32> to vector<240x128xf32>
    %195 = arith.mulf %176, %194 : vector<240x128xf32>
    %196 = vector.broadcast %193 : vector<1x128xf32> to vector<240x128xf32>
    %197 = arith.addf %195, %196 : vector<240x128xf32>
    %cst_215 = arith.constant 0.000000e+00 : f32
    %198 = vector.broadcast %cst_215 : f32 to vector<240x128xf32>
    %199 = arith.cmpf ogt, %197, %198 : vector<240x128xf32>
    %cst_216 = arith.constant 0.00999999977 : f32
    %200 = vector.broadcast %cst_216 : f32 to vector<240x128xf32>
    %201 = arith.mulf %200, %197 : vector<240x128xf32>
    %202 = arith.select %199, %197, %201 : vector<240x128xi1>, vector<240x128xf32>
    %203 = arith.mulf %202, %8 : vector<240x128xf32>
    %c16_217 = arith.constant 16 : index
    %c0_218 = arith.constant 0 : index
    %204 = vector.load %arg6[%c16_217, %c0_218] : memref<272x128xf32, #tpu.memory_space<vmem>>, vector<240x128xf32>
    tpu.vector_store %arg6[%c16_217, %c0_218], %203 {strides = array<i32>} : memref<272x128xf32, #tpu.memory_space<vmem>>, vector<240x128xf32>,
    %c2_219 = arith.constant 2 : index
    %c0_220 = arith.constant 0 : index
    %c0_221 = arith.constant 0 : index
    %205 = vector.load %arg3[%c2_219, %c0_220, %c0_221] : memref<3x8x128xf32, #tpu.memory_space<vmem>>, vector<1x8x128xf32>
    %206 = vector.shape_cast %205 : vector<1x8x128xf32> to vector<8x128xf32>
    %207 = vector.extract_strided_slice %206 {offsets = [0, 0], sizes = [1, 128], strides = [1, 1]} : vector<8x128xf32> to vector<1x128xf32>
    %208 = vector.extract_strided_slice %206 {offsets = [1, 0], sizes = [1, 128], strides = [1, 1]} : vector<8x128xf32> to vector<1x128xf32>
    %209 = vector.extract_strided_slice %206 {offsets = [2, 0], sizes = [1, 128], strides = [1, 1]} : vector<8x128xf32> to vector<1x128xf32>
    %c2_222 = arith.constant 2 : index
    %c0_223 = arith.constant 0 : index
    %c0_224 = arith.constant 0 : index
    %c0_225 = arith.constant 0 : index
    %210 = vector.load %arg2[%c2_222, %c0_223, %c0_224, %c0_225] : memref<3x9x8x128xf32, #tpu.memory_space<vmem>>, vector<1x1x8x128xf32>
    %211 = vector.shape_cast %210 : vector<1x1x8x128xf32> to vector<8x128xf32>
    %c0_226 = arith.constant 0 : index
    %c0_227 = arith.constant 0 : index
    %212 = vector.load %arg7[%c0_226, %c0_227] : memref<256x128xf32, #tpu.memory_space<vmem>>, vector<8x128xf32>
    tpu.vector_store %arg7[%c0_226, %c0_227], %211 {strides = array<i32>} : memref<256x128xf32, #tpu.memory_space<vmem>>, vector<8x128xf32>,
    %c0_228 = arith.constant 0 : index
    %c0_229 = arith.constant 0 : index
    %213 = vector.load %arg6[%c0_228, %c0_229] : memref<272x128xf32, #tpu.memory_space<vmem>>, vector<240x128xf32>
    %c0_230 = arith.constant 0 : index
    %c0_231 = arith.constant 0 : index
    %214 = vector.load %arg7[%c0_230, %c0_231] : memref<256x128xf32, #tpu.memory_space<vmem>>, vector<128x128xf32>
    %cst_232 = arith.constant dense<0.000000e+00> : vector<240x128xf32>
    %215 = tpu.matmul %213, %214, %cst_232 {dimension_numbers = #tpu.dot_dimension_numbers<[1], [0], [0], [1], [0, 0, 1, 1], [], []>} : vector<240x128xf32>, vector<128x128xf32>, vector<240x128xf32> -> vector<240x128xf32>
    %c2_233 = arith.constant 2 : index
    %c1_234 = arith.constant 1 : index
    %c0_235 = arith.constant 0 : index
    %c0_236 = arith.constant 0 : index
    %216 = vector.load %arg2[%c2_233, %c1_234, %c0_235, %c0_236] : memref<3x9x8x128xf32, #tpu.memory_space<vmem>>, vector<1x1x8x128xf32>
    %217 = vector.shape_cast %216 : vector<1x1x8x128xf32> to vector<8x128xf32>
    %c128_237 = arith.constant 128 : index
    %c0_238 = arith.constant 0 : index
    %218 = vector.load %arg7[%c128_237, %c0_238] : memref<256x128xf32, #tpu.memory_space<vmem>>, vector<8x128xf32>
    tpu.vector_store %arg7[%c128_237, %c0_238], %217 {strides = array<i32>} : memref<256x128xf32, #tpu.memory_space<vmem>>, vector<8x128xf32>,
    %c1_239 = arith.constant 1 : index
    %c0_240 = arith.constant 0 : index
    %219 = vector.load %arg6[%c1_239, %c0_240] : memref<272x128xf32, #tpu.memory_space<vmem>>, vector<240x128xf32>
    %c128_241 = arith.constant 128 : index
    %c0_242 = arith.constant 0 : index
    %220 = vector.load %arg7[%c128_241, %c0_242] : memref<256x128xf32, #tpu.memory_space<vmem>>, vector<128x128xf32>
    %cst_243 = arith.constant dense<0.000000e+00> : vector<240x128xf32>
    %221 = tpu.matmul %219, %220, %cst_243 {dimension_numbers = #tpu.dot_dimension_numbers<[1], [0], [0], [1], [0, 0, 1, 1], [], []>} : vector<240x128xf32>, vector<128x128xf32>, vector<240x128xf32> -> vector<240x128xf32>
    %222 = arith.addf %215, %221 : vector<240x128xf32>
    %c2_244 = arith.constant 2 : index
    %c2_245 = arith.constant 2 : index
    %c0_246 = arith.constant 0 : index
    %c0_247 = arith.constant 0 : index
    %223 = vector.load %arg2[%c2_244, %c2_245, %c0_246, %c0_247] : memref<3x9x8x128xf32, #tpu.memory_space<vmem>>, vector<1x1x8x128xf32>
    %224 = vector.shape_cast %223 : vector<1x1x8x128xf32> to vector<8x128xf32>
    %c0_248 = arith.constant 0 : index
    %c0_249 = arith.constant 0 : index
    %225 = vector.load %arg7[%c0_248, %c0_249] : memref<256x128xf32, #tpu.memory_space<vmem>>, vector<8x128xf32>
    tpu.vector_store %arg7[%c0_248, %c0_249], %224 {strides = array<i32>} : memref<256x128xf32, #tpu.memory_space<vmem>>, vector<8x128xf32>,
    %c2_250 = arith.constant 2 : index
    %c0_251 = arith.constant 0 : index
    %226 = vector.load %arg6[%c2_250, %c0_251] : memref<272x128xf32, #tpu.memory_space<vmem>>, vector<240x128xf32>
    %c0_252 = arith.constant 0 : index
    %c0_253 = arith.constant 0 : index
    %227 = vector.load %arg7[%c0_252, %c0_253] : memref<256x128xf32, #tpu.memory_space<vmem>>, vector<128x128xf32>
    %cst_254 = arith.constant dense<0.000000e+00> : vector<240x128xf32>
    %228 = tpu.matmul %226, %227, %cst_254 {dimension_numbers = #tpu.dot_dimension_numbers<[1], [0], [0], [1], [0, 0, 1, 1], [], []>} : vector<240x128xf32>, vector<128x128xf32>, vector<240x128xf32> -> vector<240x128xf32>
    %229 = arith.addf %222, %228 : vector<240x128xf32>
    %c2_255 = arith.constant 2 : index
    %c3_256 = arith.constant 3 : index
    %c0_257 = arith.constant 0 : index
    %c0_258 = arith.constant 0 : index
    %230 = vector.load %arg2[%c2_255, %c3_256, %c0_257, %c0_258] : memref<3x9x8x128xf32, #tpu.memory_space<vmem>>, vector<1x1x8x128xf32>
    %231 = vector.shape_cast %230 : vector<1x1x8x128xf32> to vector<8x128xf32>
    %c128_259 = arith.constant 128 : index
    %c0_260 = arith.constant 0 : index
    %232 = vector.load %arg7[%c128_259, %c0_260] : memref<256x128xf32, #tpu.memory_space<vmem>>, vector<8x128xf32>
    tpu.vector_store %arg7[%c128_259, %c0_260], %231 {strides = array<i32>} : memref<256x128xf32, #tpu.memory_space<vmem>>, vector<8x128xf32>,
    %c15_261 = arith.constant 15 : index
    %c0_262 = arith.constant 0 : index
    %233 = vector.load %arg6[%c15_261, %c0_262] : memref<272x128xf32, #tpu.memory_space<vmem>>, vector<240x128xf32>
    %c128_263 = arith.constant 128 : index
    %c0_264 = arith.constant 0 : index
    %234 = vector.load %arg7[%c128_263, %c0_264] : memref<256x128xf32, #tpu.memory_space<vmem>>, vector<128x128xf32>
    %cst_265 = arith.constant dense<0.000000e+00> : vector<240x128xf32>
    %235 = tpu.matmul %233, %234, %cst_265 {dimension_numbers = #tpu.dot_dimension_numbers<[1], [0], [0], [1], [0, 0, 1, 1], [], []>} : vector<240x128xf32>, vector<128x128xf32>, vector<240x128xf32> -> vector<240x128xf32>
    %236 = arith.addf %229, %235 : vector<240x128xf32>
    %c2_266 = arith.constant 2 : index
    %c4_267 = arith.constant 4 : index
    %c0_268 = arith.constant 0 : index
    %c0_269 = arith.constant 0 : index
    %237 = vector.load %arg2[%c2_266, %c4_267, %c0_268, %c0_269] : memref<3x9x8x128xf32, #tpu.memory_space<vmem>>, vector<1x1x8x128xf32>
    %238 = vector.shape_cast %237 : vector<1x1x8x128xf32> to vector<8x128xf32>
    %c0_270 = arith.constant 0 : index
    %c0_271 = arith.constant 0 : index
    %239 = vector.load %arg7[%c0_270, %c0_271] : memref<256x128xf32, #tpu.memory_space<vmem>>, vector<8x128xf32>
    tpu.vector_store %arg7[%c0_270, %c0_271], %238 {strides = array<i32>} : memref<256x128xf32, #tpu.memory_space<vmem>>, vector<8x128xf32>,
    %c16_272 = arith.constant 16 : index
    %c0_273 = arith.constant 0 : index
    %240 = vector.load %arg6[%c16_272, %c0_273] : memref<272x128xf32, #tpu.memory_space<vmem>>, vector<240x128xf32>
    %c0_274 = arith.constant 0 : index
    %c0_275 = arith.constant 0 : index
    %241 = vector.load %arg7[%c0_274, %c0_275] : memref<256x128xf32, #tpu.memory_space<vmem>>, vector<128x128xf32>
    %cst_276 = arith.constant dense<0.000000e+00> : vector<240x128xf32>
    %242 = tpu.matmul %240, %241, %cst_276 {dimension_numbers = #tpu.dot_dimension_numbers<[1], [0], [0], [1], [0, 0, 1, 1], [], []>} : vector<240x128xf32>, vector<128x128xf32>, vector<240x128xf32> -> vector<240x128xf32>
    %243 = arith.addf %236, %242 : vector<240x128xf32>
    %c2_277 = arith.constant 2 : index
    %c5_278 = arith.constant 5 : index
    %c0_279 = arith.constant 0 : index
    %c0_280 = arith.constant 0 : index
    %244 = vector.load %arg2[%c2_277, %c5_278, %c0_279, %c0_280] : memref<3x9x8x128xf32, #tpu.memory_space<vmem>>, vector<1x1x8x128xf32>
    %245 = vector.shape_cast %244 : vector<1x1x8x128xf32> to vector<8x128xf32>
    %c128_281 = arith.constant 128 : index
    %c0_282 = arith.constant 0 : index
    %246 = vector.load %arg7[%c128_281, %c0_282] : memref<256x128xf32, #tpu.memory_space<vmem>>, vector<8x128xf32>
    tpu.vector_store %arg7[%c128_281, %c0_282], %245 {strides = array<i32>} : memref<256x128xf32, #tpu.memory_space<vmem>>, vector<8x128xf32>,
    %c17_283 = arith.constant 17 : index
    %c0_284 = arith.constant 0 : index
    %247 = vector.load %arg6[%c17_283, %c0_284] : memref<272x128xf32, #tpu.memory_space<vmem>>, vector<240x128xf32>
    %c128_285 = arith.constant 128 : index
    %c0_286 = arith.constant 0 : index
    %248 = vector.load %arg7[%c128_285, %c0_286] : memref<256x128xf32, #tpu.memory_space<vmem>>, vector<128x128xf32>
    %cst_287 = arith.constant dense<0.000000e+00> : vector<240x128xf32>
    %249 = tpu.matmul %247, %248, %cst_287 {dimension_numbers = #tpu.dot_dimension_numbers<[1], [0], [0], [1], [0, 0, 1, 1], [], []>} : vector<240x128xf32>, vector<128x128xf32>, vector<240x128xf32> -> vector<240x128xf32>
    %250 = arith.addf %243, %249 : vector<240x128xf32>
    %c2_288 = arith.constant 2 : index
    %c6_289 = arith.constant 6 : index
    %c0_290 = arith.constant 0 : index
    %c0_291 = arith.constant 0 : index
    %251 = vector.load %arg2[%c2_288, %c6_289, %c0_290, %c0_291] : memref<3x9x8x128xf32, #tpu.memory_space<vmem>>, vector<1x1x8x128xf32>
    %252 = vector.shape_cast %251 : vector<1x1x8x128xf32> to vector<8x128xf32>
    %c0_292 = arith.constant 0 : index
    %c0_293 = arith.constant 0 : index
    %253 = vector.load %arg7[%c0_292, %c0_293] : memref<256x128xf32, #tpu.memory_space<vmem>>, vector<8x128xf32>
    tpu.vector_store %arg7[%c0_292, %c0_293], %252 {strides = array<i32>} : memref<256x128xf32, #tpu.memory_space<vmem>>, vector<8x128xf32>,
    %c30_294 = arith.constant 30 : index
    %c0_295 = arith.constant 0 : index
    %254 = vector.load %arg6[%c30_294, %c0_295] : memref<272x128xf32, #tpu.memory_space<vmem>>, vector<240x128xf32>
    %c0_296 = arith.constant 0 : index
    %c0_297 = arith.constant 0 : index
    %255 = vector.load %arg7[%c0_296, %c0_297] : memref<256x128xf32, #tpu.memory_space<vmem>>, vector<128x128xf32>
    %cst_298 = arith.constant dense<0.000000e+00> : vector<240x128xf32>
    %256 = tpu.matmul %254, %255, %cst_298 {dimension_numbers = #tpu.dot_dimension_numbers<[1], [0], [0], [1], [0, 0, 1, 1], [], []>} : vector<240x128xf32>, vector<128x128xf32>, vector<240x128xf32> -> vector<240x128xf32>
    %257 = arith.addf %250, %256 : vector<240x128xf32>
    %c2_299 = arith.constant 2 : index
    %c7_300 = arith.constant 7 : index
    %c0_301 = arith.constant 0 : index
    %c0_302 = arith.constant 0 : index
    %258 = vector.load %arg2[%c2_299, %c7_300, %c0_301, %c0_302] : memref<3x9x8x128xf32, #tpu.memory_space<vmem>>, vector<1x1x8x128xf32>
    %259 = vector.shape_cast %258 : vector<1x1x8x128xf32> to vector<8x128xf32>
    %c128_303 = arith.constant 128 : index
    %c0_304 = arith.constant 0 : index
    %260 = vector.load %arg7[%c128_303, %c0_304] : memref<256x128xf32, #tpu.memory_space<vmem>>, vector<8x128xf32>
    tpu.vector_store %arg7[%c128_303, %c0_304], %259 {strides = array<i32>} : memref<256x128xf32, #tpu.memory_space<vmem>>, vector<8x128xf32>,
    %c31_305 = arith.constant 31 : index
    %c0_306 = arith.constant 0 : index
    %261 = vector.load %arg6[%c31_305, %c0_306] : memref<272x128xf32, #tpu.memory_space<vmem>>, vector<240x128xf32>
    %c128_307 = arith.constant 128 : index
    %c0_308 = arith.constant 0 : index
    %262 = vector.load %arg7[%c128_307, %c0_308] : memref<256x128xf32, #tpu.memory_space<vmem>>, vector<128x128xf32>
    %cst_309 = arith.constant dense<0.000000e+00> : vector<240x128xf32>
    %263 = tpu.matmul %261, %262, %cst_309 {dimension_numbers = #tpu.dot_dimension_numbers<[1], [0], [0], [1], [0, 0, 1, 1], [], []>} : vector<240x128xf32>, vector<128x128xf32>, vector<240x128xf32> -> vector<240x128xf32>
    %264 = arith.addf %257, %263 : vector<240x128xf32>
    %c2_310 = arith.constant 2 : index
    %c8_311 = arith.constant 8 : index
    %c0_312 = arith.constant 0 : index
    %c0_313 = arith.constant 0 : index
    %265 = vector.load %arg2[%c2_310, %c8_311, %c0_312, %c0_313] : memref<3x9x8x128xf32, #tpu.memory_space<vmem>>, vector<1x1x8x128xf32>
    %266 = vector.shape_cast %265 : vector<1x1x8x128xf32> to vector<8x128xf32>
    %c0_314 = arith.constant 0 : index
    %c0_315 = arith.constant 0 : index
    %267 = vector.load %arg7[%c0_314, %c0_315] : memref<256x128xf32, #tpu.memory_space<vmem>>, vector<8x128xf32>
    tpu.vector_store %arg7[%c0_314, %c0_315], %266 {strides = array<i32>} : memref<256x128xf32, #tpu.memory_space<vmem>>, vector<8x128xf32>,
    %c32_316 = arith.constant 32 : index
    %c0_317 = arith.constant 0 : index
    %268 = vector.load %arg6[%c32_316, %c0_317] : memref<272x128xf32, #tpu.memory_space<vmem>>, vector<240x128xf32>
    %c0_318 = arith.constant 0 : index
    %c0_319 = arith.constant 0 : index
    %269 = vector.load %arg7[%c0_318, %c0_319] : memref<256x128xf32, #tpu.memory_space<vmem>>, vector<128x128xf32>
    %cst_320 = arith.constant dense<0.000000e+00> : vector<240x128xf32>
    %270 = tpu.matmul %268, %269, %cst_320 {dimension_numbers = #tpu.dot_dimension_numbers<[1], [0], [0], [1], [0, 0, 1, 1], [], []>} : vector<240x128xf32>, vector<128x128xf32>, vector<240x128xf32> -> vector<240x128xf32>
    %271 = arith.addf %264, %270 : vector<240x128xf32>
    %272 = vector.broadcast %207 : vector<1x128xf32> to vector<240x128xf32>
    %273 = arith.addf %271, %272 : vector<240x128xf32>
    %274 = arith.mulf %273, %8 : vector<240x128xf32>
    %cst_321 = arith.constant dense<0.000000e+00> : vector<128xf32>
    %275 = vector.multi_reduction <add>, %274, %cst_321 [0] : vector<240x128xf32> to vector<128xf32>
    %276 = vector.shape_cast %275 : vector<128xf32> to vector<1x128xf32>
    %277 = arith.mulf %274, %274 : vector<240x128xf32>
    %cst_322 = arith.constant dense<0.000000e+00> : vector<128xf32>
    %278 = vector.multi_reduction <add>, %277, %cst_322 [0] : vector<240x128xf32> to vector<128xf32>
    %279 = vector.shape_cast %278 : vector<128xf32> to vector<1x128xf32>
    %cst_323 = arith.constant 0.00641025649 : f32
    %280 = vector.broadcast %cst_323 : f32 to vector<1x128xf32>
    %281 = arith.mulf %276, %280 : vector<1x128xf32>
    %cst_324 = arith.constant 0.00641025649 : f32
    %282 = vector.broadcast %cst_324 : f32 to vector<1x128xf32>
    %283 = arith.mulf %279, %282 : vector<1x128xf32>
    %284 = arith.mulf %281, %281 : vector<1x128xf32>
    %285 = arith.subf %283, %284 : vector<1x128xf32>
    %cst_325 = arith.constant 9.99999974E-6 : f32
    %286 = vector.broadcast %cst_325 : f32 to vector<1x128xf32>
    %287 = arith.addf %285, %286 : vector<1x128xf32>
    %288 = math.rsqrt %287 : vector<1x128xf32>
    %289 = arith.mulf %208, %288 : vector<1x128xf32>
    %290 = arith.mulf %281, %289 : vector<1x128xf32>
    %291 = arith.subf %209, %290 : vector<1x128xf32>
    %292 = vector.broadcast %289 : vector<1x128xf32> to vector<240x128xf32>
    %293 = arith.mulf %274, %292 : vector<240x128xf32>
    %294 = vector.broadcast %291 : vector<1x128xf32> to vector<240x128xf32>
    %295 = arith.addf %293, %294 : vector<240x128xf32>
    %cst_326 = arith.constant 0.000000e+00 : f32
    %296 = vector.broadcast %cst_326 : f32 to vector<240x128xf32>
    %297 = arith.cmpf ogt, %295, %296 : vector<240x128xf32>
    %cst_327 = arith.constant 0.00999999977 : f32
    %298 = vector.broadcast %cst_327 : f32 to vector<240x128xf32>
    %299 = arith.mulf %298, %295 : vector<240x128xf32>
    %300 = arith.select %297, %295, %299 : vector<240x128xi1>, vector<240x128xf32>
    %301 = arith.mulf %300, %8 : vector<240x128xf32>
    %c16_328 = arith.constant 16 : index
    %c0_329 = arith.constant 0 : index
    %302 = vector.load %arg6[%c16_328, %c0_329] : memref<272x128xf32, #tpu.memory_space<vmem>>, vector<240x128xf32>
    tpu.vector_store %arg6[%c16_328, %c0_329], %301 {strides = array<i32>} : memref<272x128xf32, #tpu.memory_space<vmem>>, vector<240x128xf32>,
    %c16_330 = arith.constant 16 : index
    %c0_331 = arith.constant 0 : index
    %303 = vector.load %arg6[%c16_330, %c0_331] : memref<272x128xf32, #tpu.memory_space<vmem>>, vector<240x128xf32>
    %c0_332 = arith.constant 0 : index
    %c0_333 = arith.constant 0 : index
    %304 = vector.load %arg5[%c0_332, %c0_333] : memref<240x128xf32, #tpu.memory_space<vmem>>, vector<240x128xf32>
    tpu.vector_store %arg5[%c0_332, %c0_333], %303 {strides = array<i32>} : memref<240x128xf32, #tpu.memory_space<vmem>>, vector<240x128xf32>,
    return
  }
  func.func @transform_0(%arg0: i32) -> (i32, i32) {
    %c0_i32 = arith.constant 0 : i32
    %c0_i32_0 = arith.constant 0 : i32
    %c0_i32_1 = arith.constant 0 : i32
    return %c0_i32, %c0_i32_0 : i32, i32
  }
  func.func @transform_1(%arg0: i32) -> (i32, i32, i32, i32) {
    %c0_i32 = arith.constant 0 : i32
    %c0_i32_0 = arith.constant 0 : i32
    %c0_i32_1 = arith.constant 0 : i32
    %c0_i32_2 = arith.constant 0 : i32
    %c0_i32_3 = arith.constant 0 : i32
    return %c0_i32, %c0_i32_0, %c0_i32_1, %c0_i32_2 : i32, i32, i32, i32
  }
  func.func @transform_2(%arg0: i32) -> (i32, i32, i32) {
    %c0_i32 = arith.constant 0 : i32
    %c0_i32_0 = arith.constant 0 : i32
    %c0_i32_1 = arith.constant 0 : i32
    %c0_i32_2 = arith.constant 0 : i32
    return %c0_i32, %c0_i32_0, %c0_i32_1 : i32, i32, i32
  }
  func.func @transform_3(%arg0: i32) -> (i32, i32) {
    %c0_i32 = arith.constant 0 : i32
    %c0_i32_0 = arith.constant 0 : i32
    %c0_i32_1 = arith.constant 0 : i32
    return %c0_i32, %c0_i32_0 : i32, i32
  }
  func.func @transform_4(%arg0: i32) -> (i32, i32) {
    %c0_i32 = arith.constant 0 : i32
    %c0_i32_0 = arith.constant 0 : i32
    %c0_i32_1 = arith.constant 0 : i32
    return %c0_i32, %c0_i32_0 : i32, i32
  }
}

</mosaic_0001>

<bundles_post_ra>
// kernel: decoder_forward.1
= control target key start
LH: loop header
LB: loop body
LE: loop exit
PB: predicated region body
PF: predicated region fallthrough
CT: control target
= control target key end

     0   :  { %v6356_v3 = vmov 0.0   ;;  %s11059_s1 = inlined_call_operand.vmem [shape: f32[3,9,8,128], index: 1, kind: input, shape index: {}]   ;;  %s11060_s0 = inlined_call_operand.vmem [shape: f32[240,128], index: 0, kind: input, shape index: {}]   ;;  %s11061_s2 = inlined_call_operand.vmem [shape: f32[3,8,128], index: 2, kind: input, shape index: {}]   ;;  %s11062_s3 = inlined_call_operand.vmem [shape: f32[240,128], index: 3, kind: input, shape index: {}]   ;;  %s11063_s4 = inlined_call_operand.vmem [shape: f32[240,128], index: 4, kind: output, shape index: {}]  }
   0x1   :  { %v6235_v0 = vld [vmem:[%s11059_s1 + $0x8] sm:$0xff]  ;;  %v144_v1 = vld [vmem:[%s11059_s1] sm:$0xff]  ;;  %v6236_v2 = vld [vmem:[%s11059_s1 + $0x10] sm:$0xff]  ;;  %17 = vst [vmem:[#allocation2] sm:$0xff] %v6356_v3 }
   0x2   :  { %256 = vmatpush.msra.mxu0 %v6235_v0  ;;  %363 = vmatpush.msra.mxu1 %v144_v1  ;;  %18 = vst [vmem:[#allocation2 + $0x8] sm:$0xff] %v6356_v3  ;;  %v6238_v4 = vld [vmem:[%s11059_s1 + $0x20] sm:$0xff]  ;;  %v6397_v5 = vld [vmem:[%s11060_s0 + $0xa8] sm:$0xff]  ;;  %v6402_v6 = vld [vmem:[%s11060_s0 + $0xb0] sm:$0xff] }
   0x3   :  { %519 = vmatpush.msra.mxu2 %v6236_v2  ;;  %6263 = vmatpush.msra.mxu3 %v6235_v0  ;;  %19 = vst [vmem:[#allocation2 + $0x100] sm:$0xff] %v6356_v3  ;;  %v6407_v7 = vld [vmem:[%s11060_s0] sm:$0xff]  ;;  %v6413_v8 = vld [vmem:[%s11060_s0 + $0xb8] sm:$0xff]  ;;  %v6419_v9 = vld [vmem:[%s11060_s0 + $0x8] sm:$0xff] }
   0x4   :  { %20 = vst [vmem:[#allocation2 + $0x108] sm:$0xff] %v6356_v3  ;;  %364 = vmatmul.f32.vlgmr.msra.gmra.mxu1 %v6356_v3  ;;  %891 = vmatpush.msrb.mxu0 %v6238_v4  ;;  %v6425_v10 = vld [vmem:[%s11060_s0 + $0xc0] sm:$0xff]  ;;  %v6431_v11 = vld [vmem:[%s11060_s0 + $0x10] sm:$0xff]  ;;  %v6437_v14 = vld [vmem:[%s11060_s0 + $0xc8] sm:$0xff] }
   0x5   :  { %72 = vst [vmem:[#allocation2 + $0xb8] sm:$0xff] %v6397_v5  ;;  %6264 = vmatpush.msrb.mxu3 %v144_v1  ;;  %v6443_v15 = vld [vmem:[%s11060_s0 + $0x18] sm:$0xff]  ;;  %v6449_v16 = vld [vmem:[%s11060_s0 + $0xd0] sm:$0xff]  ;;  %v6455_v17 = vld [vmem:[%s11060_s0 + $0x20] sm:$0xff] }
   0x6   :  { %73 = vst [vmem:[#allocation2 + $0xc0] sm:$0xff] %v6402_v6  ;;  %v6461_v19 = vld [vmem:[%s11060_s0 + $0xd8] sm:$0xff]  ;;  %v6470_v23 = vld [vmem:[%s11060_s0 + $0x28] sm:$0xff]  ;;  %v49_v24 = vld [vmem:[%s11060_s0 + $0xe0] sm:$0xff] }
   0x7   :  { %51 = vst [vmem:[#allocation2 + $0x10] sm:$0xff] %v6407_v7  ;;  %v6483_v28 = vld [vmem:[%s11060_s0 + $0x30] sm:$0xff]  ;;  %v6493_v32 = vld [vmem:[%s11060_s0 + $0x38] sm:$0xff]  ;;  %v6503_v36 = vld [vmem:[%s11060_s0 + $0x40] sm:$0xff] }
   0x8   :  { %74 = vst [vmem:[#allocation2 + $0xc8] sm:$0xff] %v6413_v8  ;;  %v6513_v40 = vld [vmem:[%s11060_s0 + $0x48] sm:$0xff]  ;;  %v6523_v44 = vld [vmem:[%s11060_s0 + $0x50] sm:$0xff]  ;;  %v6533_v47 = vld [vmem:[%s11060_s0 + $0x58] sm:$0xff] }
   0x9   :  { %v195_v12 = vld [vmem:[#allocation2 + $0x1] sm:$0xff]  ;;  %52 = vst [vmem:[#allocation2 + $0x18] sm:$0xff] %v6419_v9  ;;  %v6566_v56 = vld [vmem:[%s11060_s0 + $0x70] sm:$0xff]  ;;  %v6237_v59 = vld [vmem:[%s11059_s1 + $0x18] sm:$0xff] }
   0xa   :  { %v458_v13 = vld [vmem:[#allocation2 + $0x2] sm:$0xff]  ;;  %257 = vmatmul.f32.vlgmr.msra.gmra.mxu0 %v195_v12  ;;  %75 = vst [vmem:[#allocation2 + $0xd0] sm:$0xff] %v6425_v10  ;;  %v6580_v60 = vld [vmem:[%s11060_s0 + $0x78] sm:$0xff] }
   0xb   :  { %520 = vmatmul.f32.vlgmr.msra.gmra.mxu2 %v458_v13  ;;  %53 = vst [vmem:[#allocation2 + $0x20] sm:$0xff] %v6431_v11  ;;  %v6544_v50 = vld [vmem:[%s11060_s0 + $0x60] sm:$0xff]  ;;  %v6555_v53 = vld [vmem:[%s11060_s0 + $0x68] sm:$0xff] }
   0xc   :  { %367 = vmatmul.f32.gmra.mxu1 %v6356_v3  ;;  %76 = vst [vmem:[#allocation2 + $0xd8] sm:$0xff] %v6437_v14  ;;  %v6591_v63 = vld [vmem:[%s11060_s0 + $0x80] sm:$0xff] }
   0xd   :  { %v218_v18 = vld [vmem:[#allocation2 + $0xb9] sm:$0xff]  ;;  %54 = vst [vmem:[#allocation2 + $0x28] sm:$0xff] %v6443_v15 }
   0xe   :  { %326 = vmatmul.f32.vlgmr.msra.gmra.mxu3 %v218_v18  ;;  %77 = vst [vmem:[#allocation2 + $0xe0] sm:$0xff] %v6449_v16  ;;  %v196_v20 = vld [vmem:[#allocation2 + $0x9] sm:$0xff] }
   0xf   :  { %v459_v21 = vld [vmem:[#allocation2 + $0xa] sm:$0xff]  ;;  %55 = vst [vmem:[#allocation2 + $0x30] sm:$0xff] %v6455_v17  ;;  %6265 = vmatpush.msra.mxu3 %v6236_v2  ;;  %v219_v22 = vld [vmem:[#allocation2 + $0xc1] sm:$0xff] }
  0x10   :  { %78 = vst [vmem:[#allocation2 + $0xe8] sm:$0xff] %v6461_v19  ;;  %v6476_v25 = vld [vmem:[#allocation2 + $0x11] sm:$0xff]  ;;  %v6602_v2 = vld [vmem:[%s11060_s0 + $0x88] sm:$0xff] }
  0x11   :  { %56 = vst [vmem:[#allocation2 + $0x38] sm:$0xff] %v6470_v23  ;;  %v460_v26 = vld [vmem:[#allocation2 + $0x12] sm:$0xff]  ;;  %v220_v27 = vld [vmem:[#allocation2 + $0xc9] sm:$0xff] }
  0x12   :  { %260 = vmatmul.f32.gmra.mxu0 %v196_v20  ;;  %79 = vst [vmem:[#allocation2 + $0xf0] sm:$0xff] %v49_v24  ;;  %v6486_v29 = vld [vmem:[#allocation2 + $0x19] sm:$0xff]  ;;  %v482_v13 = vld [vmem:[#allocation2 + $0xc2] sm:$0xff] }
  0x13   :  { %523 = vmatmul.f32.gmra.mxu2 %v459_v21  ;;  %57 = vst [vmem:[#allocation2 + $0x40] sm:$0xff] %v6483_v28  ;;  %v461_v30 = vld [vmem:[#allocation2 + $0x1a] sm:$0xff]  ;;  %v221_v31 = vld [vmem:[#allocation2 + $0xd1] sm:$0xff] }
  0x14   :  { %370 = vmatmul.f32.gmra.mxu1 %v6407_v7  ;;  %58 = vst [vmem:[#allocation2 + $0x48] sm:$0xff] %v6493_v32  ;;  %v6496_v33 = vld [vmem:[#allocation2 + $0x21] sm:$0xff]  ;;  %v483_v21 = vld [vmem:[#allocation2 + $0xca] sm:$0xff] }
  0x15   :  { %v462_v34 = vld [vmem:[#allocation2 + $0x22] sm:$0xff]  ;;  %v222_v35 = vld [vmem:[#allocation2 + $0xd9] sm:$0xff]  ;;  %59 = vst [vmem:[#allocation2 + $0x50] sm:$0xff] %v6503_v36 }
  0x16   :  { %329 = vmatmul.f32.gmra.mxu3 %v219_v22  ;;  %v6506_v37 = vld [vmem:[#allocation2 + $0x29] sm:$0xff]  ;;  %60 = vst [vmem:[#allocation2 + $0x58] sm:$0xff] %v6513_v40  ;;  %v6633_v24 = vld [vmem:[%s11060_s0 + $0xa0] sm:$0xff] }
  0x17   :  { %v463_v38 = vld [vmem:[#allocation2 + $0x2a] sm:$0xff]  ;;  %v223_v39 = vld [vmem:[#allocation2 + $0xe1] sm:$0xff]  ;;  %61 = vst [vmem:[#allocation2 + $0x60] sm:$0xff] %v6523_v44 }
  0x18   :  { %v6516_v41 = vld [vmem:[#allocation2 + $0x31] sm:$0xff]  ;;  %62 = vst [vmem:[#allocation2 + $0x68] sm:$0xff] %v6533_v47 }
  0x19   :  { %v464_v42 = vld [vmem:[#allocation2 + $0x32] sm:$0xff]  ;;  %v224_v43 = vld [vmem:[#allocation2 + $0xe9] sm:$0xff]  ;;  %63 = vst [vmem:[#allocation2 + $0x70] sm:$0xff] %v6544_v50 }
  0x1a   :  { %263 = vmatmul.f32.gmra.mxu0 %v6476_v25  ;;  %v6526_v45 = vld [vmem:[#allocation2 + $0x39] sm:$0xff]  ;;  %64 = vst [vmem:[#allocation2 + $0x78] sm:$0xff] %v6555_v53 }
  0x1b   :  { %526 = vmatmul.f32.gmra.mxu2 %v460_v26  ;;  %v465_v46 = vld [vmem:[#allocation2 + $0x3a] sm:$0xff]  ;;  %v466_v49 = vld [vmem:[#allocation2 + $0x42] sm:$0xff]  ;;  %65 = vst [vmem:[#allocation2 + $0x80] sm:$0xff] %v6566_v56 }
  0x1c   :  { %373 = vmatmul.f32.gmra.mxu1 %v6419_v9  ;;  %v6537_v48 = vld [vmem:[#allocation2 + $0x41] sm:$0xff]  ;;  %v6548_v51 = vld [vmem:[#allocation2 + $0x49] sm:$0xff]  ;;  %66 = vst [vmem:[#allocation2 + $0x88] sm:$0xff] %v6580_v60 }
  0x1d   :  { %v467_v52 = vld [vmem:[#allocation2 + $0x4a] sm:$0xff]  ;;  %v468_v55 = vld [vmem:[#allocation2 + $0x52] sm:$0xff]  ;;  %67 = vst [vmem:[#allocation2 + $0x90] sm:$0xff] %v6591_v63 }
  0x1e   :  { %332 = vmatmul.f32.gmra.mxu3 %v220_v27  ;;  %v6559_v54 = vld [vmem:[#allocation2 + $0x51] sm:$0xff]  ;;  %v6570_v57 = vld [vmem:[#allocation2 + $0x59] sm:$0xff]  ;;  %68 = vst [vmem:[#allocation2 + $0x98] sm:$0xff] %v6602_v2 }
  0x1f   :  { %v469_v58 = vld [vmem:[#allocation2 + $0x5a] sm:$0xff]  ;;  %v470_v62 = vld [vmem:[#allocation2 + $0x62] sm:$0xff]  ;;  %11154 = vst [vmem:[#allocation5_spill] sm:$0xff] %v6633_v24 }
  0x20   :  { %v6584_v61 = vld [vmem:[#allocation2 + $0x61] sm:$0xff]  ;;  %v6595_v0 = vld [vmem:[#allocation2 + $0x69] sm:$0xff]  ;;  %71 = vst [vmem:[#allocation2 + $0xb0] sm:$0xff] %v6633_v24 }
  0x21   :  { %v471_v1 = vld [vmem:[#allocation2 + $0x6a] sm:$0xff]  ;;  %v472_v4 = vld [vmem:[#allocation2 + $0x72] sm:$0xff] }
  0x22   :  { %266 = vmatmul.f32.gmra.mxu0 %v6486_v29  ;;  %v6606_v3 = vld [vmem:[#allocation2 + $0x71] sm:$0xff] }
  0x23   :  { %529 = vmatmul.f32.gmra.mxu2 %v461_v30  ;;  %v6626_v18 = vld [vmem:[#allocation2 + $0x81] sm:$0xff] }
  0x24   :  { %376 = vmatmul.f32.gmra.mxu1 %v6431_v11 }
  0x26   :  { %335 = vmatmul.f32.gmra.mxu3 %v221_v31  ;;  %v6638_v31 = vld [vmem:[#allocation2 + $0x89] sm:$0xff] }
  0x2a   :  { %269 = vmatmul.f32.gmra.mxu0 %v6496_v33 }
  0x2b   :  { %532 = vmatmul.f32.gmra.mxu2 %v462_v34  ;;  %v475_v34 = vld [vmem:[#allocation2 + $0x8a] sm:$0xff] }
  0x2c   :  { %379 = vmatmul.f32.gmra.mxu1 %v6443_v15 }
  0x2e   :  { %338 = vmatmul.f32.gmra.mxu3 %v222_v35 }
  0x32   :  { %272 = vmatmul.f32.gmra.mxu0 %v6506_v37 }
  0x33   :  { %535 = vmatmul.f32.gmra.mxu2 %v463_v38 }
  0x34   :  { %382 = vmatmul.f32.gmra.mxu1 %v6455_v17 }
  0x36   :  { %341 = vmatmul.f32.gmra.mxu3 %v223_v39  ;;  %v484_v39 = vld [vmem:[#allocation2 + $0xd2] sm:$0xff] }
  0x3a   :  { %275 = vmatmul.f32.gmra.mxu0 %v6516_v41 }
  0x3b   :  { %538 = vmatmul.f32.gmra.mxu2 %v464_v42 }
  0x3c   :  { %385 = vmatmul.f32.gmra.mxu1 %v6470_v23 }
  0x3e   :  { %344 = vmatmul.f32.gmra.mxu3 %v224_v43 }
  0x42   :  { %278 = vmatmul.f32.gmra.mxu0 %v6526_v45 }
  0x43   :  { %541 = vmatmul.f32.gmra.mxu2 %v465_v46 }
  0x44   :  { %388 = vmatmul.f32.gmra.mxu1 %v6483_v28 }
  0x46   :  { %433 = vmatmul.f32.vlgmr.msrb.gmra.mxu3 %v6397_v5  ;;  %v481_v5 = vld [vmem:[#allocation2 + $0xba] sm:$0xff] }
  0x47   :  { %705 = vmatpush.msrb.mxu3 %v6237_v59 }
  0x4a   :  { %281 = vmatmul.f32.gmra.mxu0 %v6537_v48 }
  0x4b   :  { %544 = vmatmul.f32.gmra.mxu2 %v466_v49 }
  0x4c   :  { %391 = vmatmul.f32.gmra.mxu1 %v6493_v32 }
  0x4e   :  { %436 = vmatmul.f32.gmra.mxu3 %v6402_v6  ;;  %v6613_v6 = vld [vmem:[%s11060_s0 + $0x90] sm:$0xff] }
  0x4f   :  { %69 = vst [vmem:[#allocation2 + $0xa0] sm:$0xff] %v6613_v6 }
  0x52   :  { %284 = vmatmul.f32.gmra.mxu0 %v6548_v51 }
  0x53   :  { %547 = vmatmul.f32.gmra.mxu2 %v467_v52  ;;  %v6646_v52 = vld [vmem:[#allocation2 + $0x91] sm:$0xff] }
  0x54   :  { %394 = vmatmul.f32.gmra.mxu1 %v6503_v36 }
  0x56   :  { %439 = vmatmul.f32.gmra.mxu3 %v6413_v8  ;;  %v6616_v8 = vld [vmem:[#allocation2 + $0x79] sm:$0xff] }
  0x5a   :  { %287 = vmatmul.f32.gmra.mxu0 %v6559_v54 }
  0x5b   :  { %550 = vmatmul.f32.gmra.mxu2 %v468_v55  ;;  %v476_v55 = vld [vmem:[#allocation2 + $0x92] sm:$0xff] }
  0x5c   :  { %397 = vmatmul.f32.gmra.mxu1 %v6513_v40 }
  0x5e   :  { %442 = vmatmul.f32.gmra.mxu3 %v6425_v10  ;;  %v473_v10 = vld [vmem:[#allocation2 + $0x7a] sm:$0xff] }
  0x62   :  { %290 = vmatmul.f32.gmra.mxu0 %v6570_v57 }
  0x63   :  { %553 = vmatmul.f32.gmra.mxu2 %v469_v58 }
  0x64   :  { %400 = vmatmul.f32.gmra.mxu1 %v6523_v44 }
  0x66   :  { %445 = vmatmul.f32.gmra.mxu3 %v6437_v14  ;;  %v6623_v14 = vld [vmem:[%s11060_s0 + $0x98] sm:$0xff] }
  0x67   :  { %11153 = vst [vmem:[#allocation4_spill] sm:$0xff] %v6623_v14 }
  0x68   :  { %70 = vst [vmem:[#allocation2 + $0xa8] sm:$0xff] %v6623_v14 }
  0x6a   :  { %293 = vmatmul.f32.gmra.mxu0 %v6584_v61 }
  0x6b   :  { %556 = vmatmul.f32.gmra.mxu2 %v470_v62  ;;  %v6241_v62 = vld [vmem:[%s11059_s1 + $0x38] sm:$0xff] }
  0x6c   :  { %403 = vmatmul.f32.gmra.mxu1 %v6533_v47 }
  0x6e   :  { %448 = vmatmul.f32.gmra.mxu3 %v6449_v16 }
  0x72   :  { %296 = vmatmul.f32.gmra.mxu0 %v6595_v0 }
  0x73   :  { %559 = vmatmul.f32.gmra.mxu2 %v471_v1  ;;  %v485_v1 = vld [vmem:[#allocation2 + $0xda] sm:$0xff] }
  0x74   :  { %406 = vmatmul.f32.gmra.mxu1 %v6544_v50 }
  0x76   :  { %451 = vmatmul.f32.gmra.mxu3 %v6461_v19  ;;  %v474_v19 = vld [vmem:[#allocation2 + $0x82] sm:$0xff] }
  0x7a   :  { %299 = vmatmul.f32.gmra.mxu0 %v6606_v3 }
  0x7b   :  { %562 = vmatmul.f32.gmra.mxu2 %v472_v4 }
  0x7c   :  { %409 = vmatmul.f32.gmra.mxu1 %v6555_v53 }
  0x7e   :  { %589 = vmatmul.f32.vlgmr.msra.gmra.mxu3 %v481_v5 }
  0x7f   :  { %1449 = vmatpush.msra.mxu3 %v6241_v62 }
  0x81   :  { %v365_v12 = vpop.f32.mrf.mxu1 }
  0x82   :  { %302 = vmatmul.f32.gmra.mxu0 %v6616_v8 }
  0x83   :  { %565 = vmatmul.f32.gmra.mxu2 %v473_v10 }
  0x84   :  { %412 = vmatmul.f32.gmra.mxu1 %v6566_v56 }
  0x86   :  { %592 = vmatmul.f32.gmra.mxu3 %v482_v13  ;;  %v6657_v13 = vld [vmem:[#allocation2 + $0x99] sm:$0xff] }
  0x87   :  { %v258_v16 = vpop.f32.mrf.mxu0 }
  0x88   :  { %v366_v22 = vadd.f32 %v365_v12, %v258_v16  ;;  %v477_v16 = vld [vmem:[#allocation2 + $0x9a] sm:$0xff] }
  0x89   :  { %v368_v20 = vpop.f32.mrf.mxu1 }
  0x8a   :  { %305 = vmatmul.f32.gmra.mxu0 %v6626_v18 }
  0x8b   :  { %568 = vmatmul.f32.gmra.mxu2 %v474_v19 }
  0x8c   :  { %415 = vmatmul.f32.gmra.mxu1 %v6580_v60 }
  0x8e   :  { %v521_v26 = vpop.f32.mrf.mxu2  ;;  %595 = vmatmul.f32.gmra.mxu3 %v483_v21  ;;  %v6240_v21 = vld [vmem:[%s11059_s1 + $0x30] sm:$0xff] }
  0x8f   :  { %v6636_v27 = vadd.f32 %v521_v26, %v366_v22  ;;  %v261_v30 = vpop.f32.mrf.mxu0  ;;  %v6242_v22 = vld [vmem:[%s11059_s1 + $0x40] sm:$0xff]  ;;  %1263 = vmatpush.msrb.mxu2 %v6240_v21  ;;  %v479_v21 = vld [vmem:[#allocation2 + $0xaa] sm:$0xff] }
  0x90   :  { %v369_v42 = vadd.f32 %v368_v20, %v261_v30  ;;  %v486_v26 = vld [vmem:[#allocation2 + $0xe2] sm:$0xff]  ;;  %1635 = vmatpush.msra.mxu0 %v6242_v22 }
  0x91   :  { %v6640_v35 = vpop.f32.mrf.mxu3  ;;  %v371_v38 = vpop.f32.mrf.mxu1 }
  0x92   :  { %308 = vmatmul.f32.gmra.mxu0 %v6638_v31 }
  0x93   :  { %571 = vmatmul.f32.gmra.mxu2 %v475_v34 }
  0x94   :  { %418 = vmatmul.f32.gmra.mxu1 %v6591_v63 }
  0x96   :  { %v524_v43 = vpop.f32.mrf.mxu2  ;;  %598 = vmatmul.f32.gmra.mxu3 %v484_v39 }
  0x97   :  { %v6644_v46 = vadd.f32 %v524_v43, %v369_v42  ;;  %v264_v49 = vpop.f32.mrf.mxu0  ;;  %v6674_v43 = vld [vmem:[#allocation2 + $0xa1] sm:$0xff] }
  0x98   :  { %v372_v4 = vadd.f32 %v371_v38, %v264_v49  ;;  %v6239_v38 = vld [vmem:[%s11059_s1 + $0x28] sm:$0xff] }
  0x99   :  { %v6648_v58 = vpop.f32.mrf.mxu3  ;;  %v374_v59 = vpop.f32.mrf.mxu1  ;;  %1077 = vmatpush.msrb.mxu1 %v6239_v38  ;;  %v478_v49 = vld [vmem:[#allocation2 + $0xa2] sm:$0xff] }
  0x9a   :  { %311 = vmatmul.f32.gmra.mxu0 %v6646_v52 }
  0x9b   :  { %574 = vmatmul.f32.gmra.mxu2 %v476_v55 }
  0x9c   :  { %421 = vmatmul.f32.gmra.mxu1 %v6602_v2 }
  0x9e   :  { %v527_v5 = vpop.f32.mrf.mxu2  ;;  %601 = vmatmul.f32.gmra.mxu3 %v485_v1 }
  0x9f   :  { %v6655_v10 = vadd.f32 %v527_v5, %v372_v4  ;;  %v267_v12 = vpop.f32.mrf.mxu0 }
  0xa0   :  { %v375_v30 = vadd.f32 %v374_v59, %v267_v12  ;;  %v487_v59 = vld [vmem:[#allocation2 + $0xea] sm:$0xff] }
  0xa1   :  { %v6659_v19 = vpop.f32.mrf.mxu3  ;;  %v377_v20 = vpop.f32.mrf.mxu1 }
  0xa2   :  { %314 = vmatmul.f32.gmra.mxu0 %v6657_v13 }
  0xa3   :  { %577 = vmatmul.f32.gmra.mxu2 %v477_v16  ;;  %v6682_v16 = vld [vmem:[#allocation2 + $0xa9] sm:$0xff] }
  0xa4   :  { %424 = vmatmul.f32.gmra.mxu1 %v6613_v6 }
  0xa6   :  { %v530_v34 = vpop.f32.mrf.mxu2  ;;  %604 = vmatmul.f32.gmra.mxu3 %v486_v26 }
  0xa7   :  { %v6672_v39 = vadd.f32 %v530_v34, %v375_v30  ;;  %v270_v42 = vpop.f32.mrf.mxu0  ;;  %v644_v30 = vld [vmem:[#allocation2 + $0xf] sm:$0xff] }
  0xa8   :  { %v378_v1 = vadd.f32 %v377_v20, %v270_v42 }
  0xa9   :  { %v6676_v55 = vpop.f32.mrf.mxu3  ;;  %v380_v62 = vpop.f32.mrf.mxu1 }
  0xaa   :  { %317 = vmatmul.f32.gmra.mxu0 %v6674_v43 }
  0xab   :  { %580 = vmatmul.f32.gmra.mxu2 %v478_v49  ;;  %v6690_v49 = vld [vmem:[#allocation2 + $0xb1] sm:$0xff] }
  0xac   :  { %427 = vmatmul.f32.gmra.mxu1 %v6623_v14  ;;  %11156 = vst [vmem:[#allocation7_spill] sm:$0xff] %v6690_v49  ;;  %v645_v14 = vld [vmem:[#allocation2 + $0x17] sm:$0xff] }
  0xae   :  { %v533_v4 = vpop.f32.mrf.mxu2  ;;  %607 = vmatmul.f32.gmra.mxu3 %v487_v59  ;;  %v480_v59 = vld [vmem:[#allocation2 + $0xb2] sm:$0xff] }
  0xaf   :  { %v6680_v5 = vadd.f32 %v533_v4, %v378_v1  ;;  %v273_v12 = vpop.f32.mrf.mxu0 }
  0xb0   :  { %v381_v34 = vadd.f32 %v380_v62, %v273_v12 }
  0xb1   :  { %v6684_v22 = vpop.f32.mrf.mxu3  ;;  %v383_v26 = vpop.f32.mrf.mxu1 }
  0xb2   :  { %320 = vmatmul.f32.gmra.mxu0 %v6682_v16 }
  0xb3   :  { %583 = vmatmul.f32.gmra.mxu2 %v479_v21 }
  0xb4   :  { %430 = vmatmul.f32.gmra.mxu1 %v6633_v24 }
  0xb6   :  { %v536_v20 = vpop.f32.mrf.mxu2  ;;  %706 = vmatmul.f32.vlgmr.msrb.gmra.mxu3 %v644_v30 }
  0xb7   :  { %v6688_v38 = vadd.f32 %v536_v20, %v381_v34  ;;  %v276_v42 = vpop.f32.mrf.mxu0  ;;  %v1202_v34 = vld [vmem:[#allocation2 + $0x1e] sm:$0xff] }
  0xb8   :  { %v384_v21 = vadd.f32 %v383_v26, %v276_v42  ;;  %v1203_v42 = vld [vmem:[#allocation2 + $0x26] sm:$0xff] }
  0xb9   :  { %11155 = vst [vmem:[#allocation6_spill] sm:$0xff] %v6688_v38  ;;  %v6692_v1 = vpop.f32.mrf.mxu3  ;;  %v386_v4 = vpop.f32.mrf.mxu1  ;;  %v6701_v38 = vld [vmem:[#allocation2 + $0x1f] sm:$0xff] }
  0xba   :  { %323 = vmatmul.f32.gmra.mxu0 %v6690_v49  ;;  %11157 = vst [vmem:[#allocation8_spill] sm:$0xff] %v6701_v38 }
  0xbb   :  { %586 = vmatmul.f32.gmra.mxu2 %v480_v59 }
  0xbc   :  { %1078 = vmatmul.f32.vlgmr.msrb.gmra.mxu1 %v6476_v25 }
  0xbe   :  { %v539_v62 = vpop.f32.mrf.mxu2  ;;  %709 = vmatmul.f32.gmra.mxu3 %v645_v14 }
  0xbf   :  { %v6696_v12 = vadd.f32 %v539_v62, %v384_v21  ;;  %v279_v30 = vpop.f32.mrf.mxu0 }
  0xc0   :  { %v387_v49 = vadd.f32 %v386_v4, %v279_v30 }
  0xc1   :  { %v6698_v20 = vpop.f32.mrf.mxu3  ;;  %v389_v24 = vpop.f32.mrf.mxu1 }
  0xc2   :  { %892 = vmatmul.f32.vlgmr.msrb.gmra.mxu0 %v6407_v7  ;;  %v6711_v7 = vld [vmem:[#allocation2 + $0x27] sm:$0xff] }
  0xc3   :  { %1264 = vmatmul.f32.vlgmr.msrb.gmra.mxu2 %v1202_v34  ;;  %v1204_v34 = vld [vmem:[#allocation2 + $0x2e] sm:$0xff] }
  0xc4   :  { %1081 = vmatmul.f32.gmra.mxu1 %v6486_v29 }
  0xc6   :  { %v542_v26 = vpop.f32.mrf.mxu2  ;;  %712 = vmatmul.f32.gmra.mxu3 %v6701_v38 }
  0xc7   :  { %v6705_v25 = vadd.f32 %v542_v26, %v387_v49  ;;  %v282_v14 = vpop.f32.mrf.mxu0 }
  0xc8   :  { %v390_v4 = vadd.f32 %v389_v24, %v282_v14 }
  0xc9   :  { %v434_v59 = vpop.f32.mrf.mxu3  ;;  %v392_v21 = vpop.f32.mrf.mxu1 }
  0xca   :  { %v6708_v62 = vadd.f32 %v434_v59, %v6640_v35  ;;  %895 = vmatmul.f32.gmra.mxu0 %v6419_v9  ;;  %v6721_v9 = vld [vmem:[#allocation2 + $0x2f] sm:$0xff] }
  0xcb   :  { %1267 = vmatmul.f32.gmra.mxu2 %v1203_v42  ;;  %v1205_v59 = vld [vmem:[#allocation2 + $0x36] sm:$0xff] }
  0xcc   :  { %1084 = vmatmul.f32.gmra.mxu1 %v6496_v33 }
  0xce   :  { %v545_v29 = vpop.f32.mrf.mxu2  ;;  %715 = vmatmul.f32.gmra.mxu3 %v6711_v7 }
  0xcf   :  { %v6715_v49 = vadd.f32 %v545_v29, %v390_v4  ;;  %v285_v30 = vpop.f32.mrf.mxu0 }
  0xd0   :  { %v393_v24 = vadd.f32 %v392_v21, %v285_v30 }
  0xd1   :  { %v437_v26 = vpop.f32.mrf.mxu3  ;;  %v395_v38 = vpop.f32.mrf.mxu1 }
  0xd2   :  { %v6718_v35 = vadd.f32 %v437_v26, %v6648_v58  ;;  %898 = vmatmul.f32.gmra.mxu0 %v6431_v11  ;;  %v6731_v11 = vld [vmem:[#allocation2 + $0x37] sm:$0xff] }
  0xd3   :  { %1270 = vmatmul.f32.gmra.mxu2 %v1204_v34  ;;  %v1206_v26 = vld [vmem:[#allocation2 + $0x3e] sm:$0xff] }
  0xd4   :  { %1087 = vmatmul.f32.gmra.mxu1 %v6506_v37 }
  0xd6   :  { %v548_v33 = vpop.f32.mrf.mxu2  ;;  %718 = vmatmul.f32.gmra.mxu3 %v6721_v9 }
  0xd7   :  { %v6725_v14 = vadd.f32 %v548_v33, %v393_v24  ;;  %v288_v42 = vpop.f32.mrf.mxu0 }
  0xd8   :  { %v396_v21 = vadd.f32 %v395_v38, %v288_v42 }
  0xd9   :  { %v440_v4 = vpop.f32.mrf.mxu3  ;;  %v398_v29 = vpop.f32.mrf.mxu1 }
  0xda   :  { %v6728_v58 = vadd.f32 %v440_v4, %v6659_v19  ;;  %901 = vmatmul.f32.gmra.mxu0 %v6443_v15  ;;  %v6741_v15 = vld [vmem:[#allocation2 + $0x3f] sm:$0xff] }
  0xdb   :  { %1273 = vmatmul.f32.gmra.mxu2 %v1205_v59  ;;  %v1207_v4 = vld [vmem:[#allocation2 + $0x46] sm:$0xff] }
  0xdc   :  { %1090 = vmatmul.f32.gmra.mxu1 %v6516_v41 }
  0xde   :  { %v551_v37 = vpop.f32.mrf.mxu2  ;;  %721 = vmatmul.f32.gmra.mxu3 %v6731_v11 }
  0xdf   :  { %v6735_v30 = vadd.f32 %v551_v37, %v396_v21  ;;  %v291_v34 = vpop.f32.mrf.mxu0 }
  0xe0   :  { %v399_v38 = vadd.f32 %v398_v29, %v291_v34 }
  0xe1   :  { %v443_v24 = vpop.f32.mrf.mxu3  ;;  %v401_v33 = vpop.f32.mrf.mxu1 }
  0xe2   :  { %v6738_v19 = vadd.f32 %v443_v24, %v6676_v55  ;;  %904 = vmatmul.f32.gmra.mxu0 %v6455_v17  ;;  %v6751_v17 = vld [vmem:[#allocation2 + $0x47] sm:$0xff] }
  0xe3   :  { %1276 = vmatmul.f32.gmra.mxu2 %v1206_v26  ;;  %v1208_v24 = vld [vmem:[#allocation2 + $0x4e] sm:$0xff] }
  0xe4   :  { %1093 = vmatmul.f32.gmra.mxu1 %v6526_v45 }
  0xe6   :  { %v554_v41 = vpop.f32.mrf.mxu2  ;;  %724 = vmatmul.f32.gmra.mxu3 %v6741_v15 }
  0xe7   :  { %v6745_v42 = vadd.f32 %v554_v41, %v399_v38  ;;  %v294_v59 = vpop.f32.mrf.mxu0 }
  0xe8   :  { %v402_v29 = vadd.f32 %v401_v33, %v294_v59 }
  0xe9   :  { %v446_v21 = vpop.f32.mrf.mxu3  ;;  %v404_v37 = vpop.f32.mrf.mxu1 }
  0xea   :  { %v6748_v55 = vadd.f32 %v446_v21, %v6684_v22  ;;  %907 = vmatmul.f32.gmra.mxu0 %v6470_v23  ;;  %v6761_v23 = vld [vmem:[#allocation2 + $0x4f] sm:$0xff] }
  0xeb   :  { %1279 = vmatmul.f32.gmra.mxu2 %v1207_v4  ;;  %v1209_v21 = vld [vmem:[#allocation2 + $0x56] sm:$0xff] }
  0xec   :  { %1096 = vmatmul.f32.gmra.mxu1 %v6537_v48 }
  0xee   :  { %v557_v45 = vpop.f32.mrf.mxu2  ;;  %727 = vmatmul.f32.gmra.mxu3 %v6751_v17 }
  0xef   :  { %v6755_v34 = vadd.f32 %v557_v45, %v402_v29  ;;  %v297_v26 = vpop.f32.mrf.mxu0 }
  0xf0   :  { %v405_v33 = vadd.f32 %v404_v37, %v297_v26 }
  0xf1   :  { %v449_v38 = vpop.f32.mrf.mxu3  ;;  %v407_v41 = vpop.f32.mrf.mxu1 }
  0xf2   :  { %v6758_v22 = vadd.f32 %v449_v38, %v6692_v1  ;;  %910 = vmatmul.f32.gmra.mxu0 %v6483_v28  ;;  %v6771_v28 = vld [vmem:[#allocation2 + $0x57] sm:$0xff] }
  0xf3   :  { %1282 = vmatmul.f32.gmra.mxu2 %v1208_v24  ;;  %v1210_v38 = vld [vmem:[#allocation2 + $0x5e] sm:$0xff] }
  0xf4   :  { %1099 = vmatmul.f32.gmra.mxu1 %v6548_v51 }
  0xf6   :  { %v560_v48 = vpop.f32.mrf.mxu2  ;;  %730 = vmatmul.f32.gmra.mxu3 %v6761_v23 }
  0xf7   :  { %v6765_v59 = vadd.f32 %v560_v48, %v405_v33  ;;  %v300_v4 = vpop.f32.mrf.mxu0 }
  0xf8   :  { %v408_v37 = vadd.f32 %v407_v41, %v300_v4 }
  0xf9   :  { %v452_v29 = vpop.f32.mrf.mxu3  ;;  %v410_v45 = vpop.f32.mrf.mxu1 }
  0xfa   :  { %v6768_v1 = vadd.f32 %v452_v29, %v6698_v20  ;;  %913 = vmatmul.f32.gmra.mxu0 %v6493_v32  ;;  %v6781_v32 = vld [vmem:[#allocation2 + $0x5f] sm:$0xff] }
  0xfb   :  { %1285 = vmatmul.f32.gmra.mxu2 %v1209_v21  ;;  %v1211_v29 = vld [vmem:[#allocation2 + $0x66] sm:$0xff] }
  0xfc   :  { %1102 = vmatmul.f32.gmra.mxu1 %v6559_v54 }
  0xfe   :  { %v563_v51 = vpop.f32.mrf.mxu2  ;;  %733 = vmatmul.f32.gmra.mxu3 %v6771_v28 }
  0xff   :  { %v6775_v26 = vadd.f32 %v563_v51, %v408_v37  ;;  %v303_v24 = vpop.f32.mrf.mxu0 }
 0x100   :  { %v411_v41 = vadd.f32 %v410_v45, %v303_v24 }
 0x101   :  { %v590_v33 = vpop.f32.mrf.mxu3  ;;  %v413_v48 = vpop.f32.mrf.mxu1 }
 0x102   :  { %v6778_v20 = vadd.f32 %v590_v33, %v6708_v62  ;;  %916 = vmatmul.f32.gmra.mxu0 %v6503_v36  ;;  %v6791_v36 = vld [vmem:[#allocation2 + $0x67] sm:$0xff] }
 0x103   :  { %1288 = vmatmul.f32.gmra.mxu2 %v1210_v38  ;;  %v1212_v33 = vld [vmem:[#allocation2 + $0x6e] sm:$0xff] }
 0x104   :  { %1105 = vmatmul.f32.gmra.mxu1 %v6570_v57 }
 0x106   :  { %v566_v54 = vpop.f32.mrf.mxu2  ;;  %736 = vmatmul.f32.gmra.mxu3 %v6781_v32 }
 0x107   :  { %v6785_v4 = vadd.f32 %v566_v54, %v411_v41  ;;  %v306_v21 = vpop.f32.mrf.mxu0 }
 0x108   :  { %v414_v45 = vadd.f32 %v413_v48, %v306_v21 }
 0x109   :  { %v593_v37 = vpop.f32.mrf.mxu3  ;;  %v416_v51 = vpop.f32.mrf.mxu1 }
 0x10a   :  { %v6788_v62 = vadd.f32 %v593_v37, %v6718_v35  ;;  %919 = vmatmul.f32.gmra.mxu0 %v6513_v40  ;;  %v6801_v40 = vld [vmem:[#allocation2 + $0x6f] sm:$0xff] }
 0x10b   :  { %1291 = vmatmul.f32.gmra.mxu2 %v1211_v29  ;;  %v1213_v37 = vld [vmem:[#allocation2 + $0x76] sm:$0xff] }
 0x10c   :  { %1108 = vmatmul.f32.gmra.mxu1 %v6584_v61 }
 0x10e   :  { %v569_v57 = vpop.f32.mrf.mxu2  ;;  %739 = vmatmul.f32.gmra.mxu3 %v6791_v36 }
 0x10f   :  { %v6795_v24 = vadd.f32 %v569_v57, %v414_v45  ;;  %v309_v38 = vpop.f32.mrf.mxu0 }
 0x110   :  { %v417_v48 = vadd.f32 %v416_v51, %v309_v38 }
 0x111   :  { %v596_v41 = vpop.f32.mrf.mxu3  ;;  %v419_v54 = vpop.f32.mrf.mxu1 }
 0x112   :  { %v6798_v35 = vadd.f32 %v596_v41, %v6728_v58  ;;  %922 = vmatmul.f32.gmra.mxu0 %v6523_v44  ;;  %v6811_v44 = vld [vmem:[#allocation2 + $0x77] sm:$0xff] }
 0x113   :  { %1294 = vmatmul.f32.gmra.mxu2 %v1212_v33  ;;  %v1214_v41 = vld [vmem:[#allocation2 + $0x7e] sm:$0xff] }
 0x114   :  { %1111 = vmatmul.f32.gmra.mxu1 %v6595_v0 }
 0x116   :  { %v572_v61 = vpop.f32.mrf.mxu2  ;;  %742 = vmatmul.f32.gmra.mxu3 %v6801_v40 }
 0x117   :  { %v6805_v21 = vadd.f32 %v572_v61, %v417_v48  ;;  %v312_v29 = vpop.f32.mrf.mxu0 }
 0x118   :  { %v420_v51 = vadd.f32 %v419_v54, %v312_v29 }
 0x119   :  { %v599_v45 = vpop.f32.mrf.mxu3  ;;  %v422_v57 = vpop.f32.mrf.mxu1 }
 0x11a   :  { %v6808_v58 = vadd.f32 %v599_v45, %v6738_v19  ;;  %925 = vmatmul.f32.gmra.mxu0 %v6533_v47  ;;  %v6821_v47 = vld [vmem:[#allocation2 + $0x7f] sm:$0xff] }
 0x11b   :  { %1297 = vmatmul.f32.gmra.mxu2 %v1213_v37  ;;  %v1215_v45 = vld [vmem:[#allocation2 + $0x86] sm:$0xff] }
 0x11c   :  { %1114 = vmatmul.f32.gmra.mxu1 %v6606_v3 }
 0x11e   :  { %v575_v0 = vpop.f32.mrf.mxu2  ;;  %745 = vmatmul.f32.gmra.mxu3 %v6811_v44 }
 0x11f   :  { %v6815_v38 = vadd.f32 %v575_v0, %v420_v51  ;;  %v315_v33 = vpop.f32.mrf.mxu0 }
 0x120   :  { %v423_v54 = vadd.f32 %v422_v57, %v315_v33 }
 0x121   :  { %v602_v48 = vpop.f32.mrf.mxu3  ;;  %v425_v61 = vpop.f32.mrf.mxu1 }
 0x122   :  { %v6818_v19 = vadd.f32 %v602_v48, %v6748_v55  ;;  %928 = vmatmul.f32.gmra.mxu0 %v6544_v50  ;;  %v6831_v50 = vld [vmem:[#allocation2 + $0x87] sm:$0xff] }
 0x123   :  { %1300 = vmatmul.f32.gmra.mxu2 %v1214_v41  ;;  %v1216_v48 = vld [vmem:[#allocation2 + $0x8e] sm:$0xff] }
 0x124   :  { %1117 = vmatmul.f32.gmra.mxu1 %v6616_v8 }
 0x126   :  { %v578_v3 = vpop.f32.mrf.mxu2  ;;  %748 = vmatmul.f32.gmra.mxu3 %v6821_v47 }
 0x127   :  { %v6825_v29 = vadd.f32 %v578_v3, %v423_v54  ;;  %v318_v37 = vpop.f32.mrf.mxu0 }
 0x128   :  { %v426_v57 = vadd.f32 %v425_v61, %v318_v37 }
 0x129   :  { %v605_v51 = vpop.f32.mrf.mxu3  ;;  %v428_v0 = vpop.f32.mrf.mxu1 }
 0x12a   :  { %v6828_v55 = vadd.f32 %v605_v51, %v6758_v22  ;;  %931 = vmatmul.f32.gmra.mxu0 %v6555_v53  ;;  %v6841_v53 = vld [vmem:[#allocation2 + $0x8f] sm:$0xff] }
 0x12b   :  { %1303 = vmatmul.f32.gmra.mxu2 %v1215_v45  ;;  %v1217_v51 = vld [vmem:[#allocation2 + $0x96] sm:$0xff] }
 0x12c   :  { %1120 = vmatmul.f32.gmra.mxu1 %v6626_v18 }
 0x12e   :  { %v581_v8 = vpop.f32.mrf.mxu2  ;;  %751 = vmatmul.f32.gmra.mxu3 %v6831_v50 }
 0x12f   :  { %v6835_v33 = vadd.f32 %v581_v8, %v426_v57  ;;  %v321_v41 = vpop.f32.mrf.mxu0 }
 0x130   :  { %v429_v61 = vadd.f32 %v428_v0, %v321_v41 }
 0x131   :  { %v608_v54 = vpop.f32.mrf.mxu3  ;;  %v431_v3 = vpop.f32.mrf.mxu1 }
 0x132   :  { %v6838_v22 = vadd.f32 %v608_v54, %v6768_v1  ;;  %934 = vmatmul.f32.gmra.mxu0 %v6566_v56  ;;  %v6849_v56 = vld [vmem:[#allocation2 + $0x97] sm:$0xff] }
 0x133   :  { %1306 = vmatmul.f32.gmra.mxu2 %v1216_v48  ;;  %v1218_v54 = vld [vmem:[#allocation2 + $0x9e] sm:$0xff] }
 0x134   :  { %11158 = vst [vmem:[#allocation9_spill] sm:$0xff] %v6838_v22  ;;  %1123 = vmatmul.f32.gmra.mxu1 %v6638_v31 }
 0x136   :  { %v584_v18 = vpop.f32.mrf.mxu2  ;;  %754 = vmatmul.f32.gmra.mxu3 %v6841_v53 }
 0x137   :  { %v6845_v37 = vadd.f32 %v584_v18, %v429_v61  ;;  %v324_v45 = vpop.f32.mrf.mxu0 }
 0x138   :  { %v432_v48 = vadd.f32 %v431_v3, %v324_v45 }
 0x139   :  { %v707_v57 = vpop.f32.mrf.mxu3  ;;  %v1079_v8 = vpop.f32.mrf.mxu1 }
 0x13a   :  { %v797_v1 = vadd.f32 %v707_v57, %v6636_v27  ;;  %937 = vmatmul.f32.gmra.mxu0 %v6580_v60  ;;  %v6857_v60 = vld [vmem:[#allocation2 + $0x9f] sm:$0xff] }
 0x13b   :  { %1309 = vmatmul.f32.gmra.mxu2 %v1217_v51  ;;  %v1219_v51 = vld [vmem:[#allocation2 + $0xa6] sm:$0xff] }
 0x13c   :  { %1126 = vmatmul.f32.gmra.mxu1 %v6646_v52 }
 0x13e   :  { %v587_v31 = vpop.f32.mrf.mxu2  ;;  %757 = vmatmul.f32.gmra.mxu3 %v6849_v56 }
 0x13f   :  { %v6853_v0 = vadd.f32 %v587_v31, %v432_v48  ;;  %v893_v41 = vpop.f32.mrf.mxu0 }
 0x140   :  { %v983_v61 = vadd.f32 %v893_v41, %v797_v1 }
 0x141   :  { %v710_v18 = vpop.f32.mrf.mxu3  ;;  %v1082_v22 = vpop.f32.mrf.mxu1 }
 0x142   :  { %v798_v27 = vadd.f32 %v710_v18, %v6644_v46  ;;  %v1169_v57 = vadd.f32 %v1079_v8, %v983_v61  ;;  %940 = vmatmul.f32.gmra.mxu0 %v6591_v63  ;;  %v6865_v63 = vld [vmem:[#allocation2 + $0xa7] sm:$0xff] }
 0x143   :  { %1312 = vmatmul.f32.gmra.mxu2 %v1218_v54  ;;  %v1220_v61 = vld [vmem:[#allocation2 + $0xae] sm:$0xff] }
 0x144   :  { %1129 = vmatmul.f32.gmra.mxu1 %v6657_v13 }
 0x146   :  { %v1265_v52 = vpop.f32.mrf.mxu2  ;;  %760 = vmatmul.f32.gmra.mxu3 %v6857_v60 }
 0x147   :  { %v6861_v3 = vadd.f32 %v1265_v52, %v1169_v57  ;;  %v896_v45 = vpop.f32.mrf.mxu0 }
 0x148   :  { %v984_v1 = vadd.f32 %v896_v45, %v798_v27 }
 0x149   :  { %v713_v48 = vpop.f32.mrf.mxu3  ;;  %v1085_v31 = vpop.f32.mrf.mxu1 }
 0x14a   :  { %v799_v46 = vadd.f32 %v713_v48, %v6655_v10  ;;  %v1170_v8 = vadd.f32 %v1082_v22, %v984_v1  ;;  %943 = vmatmul.f32.gmra.mxu0 %v6602_v2  ;;  %v6873_v2 = vld [vmem:[#allocation2 + $0xaf] sm:$0xff] }
 0x14b   :  { %1315 = vmatmul.f32.gmra.mxu2 %v1219_v51  ;;  %v1221_v51 = vld [vmem:[#allocation2 + $0xb6] sm:$0xff] }
 0x14c   :  { %1132 = vmatmul.f32.gmra.mxu1 %v6674_v43 }
 0x14e   :  { %v1268_v13 = vpop.f32.mrf.mxu2  ;;  %763 = vmatmul.f32.gmra.mxu3 %v6865_v63 }
 0x14f   :  { %v6869_v41 = vadd.f32 %v1268_v13, %v1170_v8  ;;  %v899_v54 = vpop.f32.mrf.mxu0  ;;  %v11160_v8 = vld [vmem:[#allocation7_spill] sm:$0xff] }
 0x150   :  { %v985_v18 = vadd.f32 %v899_v54, %v799_v46  ;;  %v11159_v46 = vld [vmem:[#allocation4_spill] sm:$0xff] }
 0x151   :  { %v716_v27 = vpop.f32.mrf.mxu3  ;;  %v1088_v22 = vpop.f32.mrf.mxu1 }
 0x152   :  { %v800_v57 = vadd.f32 %v716_v27, %v6672_v39  ;;  %v1171_v10 = vadd.f32 %v1085_v31, %v985_v18  ;;  %946 = vmatmul.f32.gmra.mxu0 %v6613_v6  ;;  %v6881_v6 = vld [vmem:[#allocation2 + $0xb7] sm:$0xff] }
 0x153   :  { %1318 = vmatmul.f32.gmra.mxu2 %v1220_v61  ;;  %v1222_v18 = vld [vmem:[#allocation2 + $0xbe] sm:$0xff] }
 0x154   :  { %1135 = vmatmul.f32.gmra.mxu1 %v6682_v16 }
 0x156   :  { %v1271_v43 = vpop.f32.mrf.mxu2  ;;  %766 = vmatmul.f32.gmra.mxu3 %v6873_v2 }
 0x157   :  { %v6877_v52 = vadd.f32 %v1271_v43, %v1171_v10  ;;  %v902_v45 = vpop.f32.mrf.mxu0  ;;  %v1037_v10 = vld [vmem:[#allocation2 + $0xb9] sm:$0xff] }
 0x158   :  { %v986_v1 = vadd.f32 %v902_v45, %v800_v57  ;;  %v11162_v45 = vld [vmem:[#allocation5_spill] sm:$0xff] }
 0x159   :  { %v719_v48 = vpop.f32.mrf.mxu3  ;;  %v1091_v13 = vpop.f32.mrf.mxu1 }
 0x15a   :  { %v801_v39 = vadd.f32 %v719_v48, %v6680_v5  ;;  %v1172_v31 = vadd.f32 %v1088_v22, %v986_v1  ;;  %949 = vmatmul.f32.gmra.mxu0 %v11159_v46  ;;  %v11161_v5 = vld [vmem:[#allocation6_spill] sm:$0xff] }
 0x15b   :  { %1321 = vmatmul.f32.gmra.mxu2 %v1221_v51  ;;  %v6889_v51 = vld [vmem:[#allocation2 + $0xbf] sm:$0xff] }
 0x15c   :  { %1138 = vmatmul.f32.gmra.mxu1 %v11160_v8  ;;  %v6894_v8 = vld [vmem:[#allocation2 + $0xb8] sm:$0xff] }
 0x15e   :  { %v1274_v16 = vpop.f32.mrf.mxu2  ;;  %769 = vmatmul.f32.gmra.mxu3 %v6881_v6 }
 0x15f   :  { %v6885_v54 = vadd.f32 %v1274_v16, %v1172_v31  ;;  %v905_v61 = vpop.f32.mrf.mxu0 }
 0x160   :  { %v987_v27 = vadd.f32 %v905_v61, %v801_v39  ;;  %v1223_v39 = vld [vmem:[#allocation2 + $0xc6] sm:$0xff] }
 0x161   :  { %v722_v57 = vpop.f32.mrf.mxu3  ;;  %v1094_v46 = vpop.f32.mrf.mxu1 }
 0x162   :  { %v802_v22 = vadd.f32 %v722_v57, %v11161_v5  ;;  %v1173_v43 = vadd.f32 %v1091_v13, %v987_v27  ;;  %952 = vmatmul.f32.gmra.mxu0 %v11162_v45  ;;  %v1038_v57 = vld [vmem:[#allocation2 + $0xc1] sm:$0xff]  ;;  %v1224_v45 = vld [vmem:[#allocation2 + $0xce] sm:$0xff] }
 0x163   :  { %1324 = vmatmul.f32.gmra.mxu2 %v1222_v18  ;;  %v6900_v27 = vld [vmem:[#allocation2 + $0xc7] sm:$0xff] }
 0x164   :  { %1141 = vmatmul.f32.gmra.mxu1 %v1037_v10 }
 0x166   :  { %v1277_v1 = vpop.f32.mrf.mxu2  ;;  %772 = vmatmul.f32.gmra.mxu3 %v6889_v51 }
 0x167   :  { %v6892_v48 = vadd.f32 %v1277_v1, %v1173_v43  ;;  %v908_v31 = vpop.f32.mrf.mxu0 }
 0x168   :  { %v988_v16 = vadd.f32 %v908_v31, %v802_v22  ;;  %v6907_v22 = vld [vmem:[#allocation2 + $0xc0] sm:$0xff] }
 0x169   :  { %v725_v61 = vpop.f32.mrf.mxu3 }
 0x16a   :  { %v6897_v13 = vadd.f32 %v725_v61, %v6696_v12  ;;  %v1174_v18 = vadd.f32 %v1094_v46, %v988_v16  ;;  %955 = vmatmul.f32.gmra.mxu0 %v6894_v8  ;;  %v1039_v12 = vld [vmem:[#allocation2 + $0xc9] sm:$0xff] }
 0x16b   :  { %1327 = vmatmul.f32.gmra.mxu2 %v1223_v39  ;;  %v6913_v46 = vld [vmem:[#allocation2 + $0xcf] sm:$0xff] }
 0x16c   :  { %11163 = vst [vmem:[#allocation4_spill] sm:$0xff] %v6897_v13  ;;  %1144 = vmatmul.f32.gmra.mxu1 %v1038_v57  ;;  %v6918_v39 = vld [vmem:[%s11060_s0 + $0xe8] sm:$0xff] }
 0x16d   :  { %80 = vst [vmem:[#allocation2 + $0xf8] sm:$0xff] %v6918_v39  ;;  %v6924_v61 = vld [vmem:[#allocation2 + $0xc8] sm:$0xff] }
 0x16e   :  { %v1280_v10 = vpop.f32.mrf.mxu2  ;;  %775 = vmatmul.f32.gmra.mxu3 %v6900_v27 }
 0x16f   :  { %v6903_v5 = vadd.f32 %v1280_v10, %v1174_v18  ;;  %v6905_v43 = vpop.f32.mrf.mxu0  ;;  %v1040_v18 = vld [vmem:[#allocation2 + $0xd1] sm:$0xff] }
 0x170   :  { %11164 = vst [vmem:[#allocation7_spill] sm:$0xff] %v6905_v43  ;;  %v1041_v43 = vld [vmem:[#allocation2 + $0xd9] sm:$0xff] }
 0x171   :  { %v728_v1 = vpop.f32.mrf.mxu3 }
 0x172   :  { %v6910_v31 = vadd.f32 %v728_v1, %v6705_v25  ;;  %958 = vmatmul.f32.gmra.mxu0 %v6907_v22  ;;  %v1225_v25 = vld [vmem:[#allocation2 + $0xd6] sm:$0xff] }
 0x173   :  { %1330 = vmatmul.f32.gmra.mxu2 %v1224_v45  ;;  %v6930_v45 = vld [vmem:[#allocation2 + $0xd7] sm:$0xff] }
 0x174   :  { %11165 = vst [vmem:[#allocation6_spill] sm:$0xff] %v6910_v31  ;;  %1147 = vmatmul.f32.gmra.mxu1 %v1039_v12  ;;  %v6935_v12 = vld [vmem:[#allocation2 + $0xd0] sm:$0xff] }
 0x175   :  { %11168 = vst [vmem:[#allocation11_spill] sm:$0xff] %v6930_v45 }
 0x176   :  { %778 = vmatmul.f32.gmra.mxu3 %v6913_v46 }
 0x177   :  { %v6922_v16 = vpop.f32.mrf.mxu0 }
 0x178   :  { %11166 = vst [vmem:[#allocation5_spill] sm:$0xff] %v6922_v16  ;;  %v1226_v16 = vld [vmem:[#allocation2 + $0xde] sm:$0xff] }
 0x179   :  { %v731_v57 = vpop.f32.mrf.mxu3 }
 0x17a   :  { %v6927_v10 = vadd.f32 %v731_v57, %v6715_v49  ;;  %961 = vmatmul.f32.gmra.mxu0 %v6924_v61  ;;  %v6941_v49 = vld [vmem:[#allocation2 + $0xdf] sm:$0xff] }
 0x17b   :  { %1333 = vmatmul.f32.gmra.mxu2 %v1225_v25  ;;  %11171 = vst [vmem:[#allocation14_spill] sm:$0xff] %v6941_v49  ;;  %v6946_v57 = vld [vmem:[#allocation2 + $0xd8] sm:$0xff] }
 0x17c   :  { %11167 = vst [vmem:[#allocation10_spill] sm:$0xff] %v6927_v10  ;;  %1150 = vmatmul.f32.gmra.mxu1 %v1040_v18  ;;  %v1227_v18 = vld [vmem:[#allocation2 + $0xe6] sm:$0xff] }
 0x17d   :  { %v1042_v10 = vld [vmem:[#allocation2 + $0xe1] sm:$0xff] }
 0x17e   :  { %781 = vmatmul.f32.gmra.mxu3 %v6930_v45 }
 0x17f   :  { %v6933_v1 = vpop.f32.mrf.mxu0 }
 0x180   :  { %11169 = vst [vmem:[#allocation12_spill] sm:$0xff] %v6933_v1 }
 0x181   :  { %v734_v31 = vpop.f32.mrf.mxu3 }
 0x182   :  { %v6938_v13 = vadd.f32 %v734_v31, %v6725_v14  ;;  %964 = vmatmul.f32.gmra.mxu0 %v6935_v12  ;;  %v6952_v14 = vld [vmem:[#allocation2 + $0xe7] sm:$0xff] }
 0x183   :  { %1336 = vmatmul.f32.gmra.mxu2 %v1226_v16  ;;  %11174 = vst [vmem:[#allocation17_spill] sm:$0xff] %v6952_v14  ;;  %v6957_v31 = vld [vmem:[#allocation2 + $0xe0] sm:$0xff]  ;;  %v1228_v16 = vld [vmem:[#allocation2 + $0xee] sm:$0xff] }
 0x184   :  { %11170 = vst [vmem:[#allocation13_spill] sm:$0xff] %v6938_v13  ;;  %1153 = vmatmul.f32.gmra.mxu1 %v1041_v43  ;;  %v1043_v13 = vld [vmem:[#allocation2 + $0xe9] sm:$0xff] }
 0x186   :  { %784 = vmatmul.f32.gmra.mxu3 %v6941_v49 }
 0x187   :  { %v6944_v25 = vpop.f32.mrf.mxu0 }
 0x188   :  { %11172 = vst [vmem:[#allocation15_spill] sm:$0xff] %v6944_v25 }
 0x189   :  { %v737_v1 = vpop.f32.mrf.mxu3 }
 0x18a   :  { %v6949_v45 = vadd.f32 %v737_v1, %v6735_v30  ;;  %967 = vmatmul.f32.gmra.mxu0 %v6946_v57  ;;  %v6963_v30 = vld [vmem:[#allocation2 + $0xef] sm:$0xff] }
 0x18b   :  { %1339 = vmatmul.f32.gmra.mxu2 %v1227_v18  ;;  %11177 = vst [vmem:[#allocation20_spill] sm:$0xff] %v6963_v30  ;;  %v6968_v1 = vld [vmem:[#allocation2 + $0xe8] sm:$0xff]  ;;  %v1229_v18 = vld [vmem:[#allocation2 + $0xf6] sm:$0xff] }
 0x18c   :  { %11173 = vst [vmem:[#allocation16_spill] sm:$0xff] %v6949_v45  ;;  %1156 = vmatmul.f32.gmra.mxu1 %v1042_v10  ;;  %v1044_v45 = vld [vmem:[#allocation2 + $0xf1] sm:$0xff] }
 0x18e   :  { %787 = vmatmul.f32.gmra.mxu3 %v6952_v14 }
 0x18f   :  { %v6955_v43 = vpop.f32.mrf.mxu0 }
 0x190   :  { %11175 = vst [vmem:[#allocation18_spill] sm:$0xff] %v6955_v43 }
 0x191   :  { %v740_v25 = vpop.f32.mrf.mxu3 }
 0x192   :  { %v6960_v49 = vadd.f32 %v740_v25, %v6745_v42  ;;  %970 = vmatmul.f32.gmra.mxu0 %v6957_v31  ;;  %v6974_v42 = vld [vmem:[#allocation2 + $0xf7] sm:$0xff] }
 0x193   :  { %1342 = vmatmul.f32.gmra.mxu2 %v1228_v16  ;;  %v6979_v25 = vld [vmem:[#allocation2 + $0xf0] sm:$0xff]  ;;  %v1230_v16 = vld [vmem:[#allocation2 + $0xfe] sm:$0xff] }
 0x194   :  { %11176 = vst [vmem:[#allocation19_spill] sm:$0xff] %v6960_v49  ;;  %1159 = vmatmul.f32.gmra.mxu1 %v1043_v13  ;;  %v1045_v49 = vld [vmem:[#allocation2 + $0xf9] sm:$0xff] }
 0x196   :  { %790 = vmatmul.f32.gmra.mxu3 %v6963_v30 }
 0x197   :  { %v6966_v10 = vpop.f32.mrf.mxu0 }
 0x198   :  { %11178 = vst [vmem:[#allocation21_spill] sm:$0xff] %v6966_v10 }
 0x199   :  { %v743_v43 = vpop.f32.mrf.mxu3 }
 0x19a   :  { %v6971_v14 = vadd.f32 %v743_v43, %v6755_v34  ;;  %973 = vmatmul.f32.gmra.mxu0 %v6968_v1  ;;  %v11181_v34 = vld [vmem:[#allocation8_spill] sm:$0xff] }
 0x19b   :  { %1345 = vmatmul.f32.gmra.mxu2 %v1229_v18 }
 0x19c   :  { %1162 = vmatmul.f32.gmra.mxu1 %v1044_v45  ;;  %v1231_v45 = vld [vmem:[#allocation2 + $0x106] sm:$0xff] }
 0x19e   :  { %793 = vmatmul.f32.gmra.mxu3 %v6974_v42 }
 0x19f   :  { %v6977_v13 = vpop.f32.mrf.mxu0 }
 0x1a0   :  { %11179 = vst [vmem:[#allocation22_spill] sm:$0xff] %v6977_v13 }
 0x1a1   :  { %v746_v10 = vpop.f32.mrf.mxu3 }
 0x1a2   :  { %v6982_v30 = vadd.f32 %v746_v10, %v6765_v59  ;;  %976 = vmatmul.f32.gmra.mxu0 %v6979_v25  ;;  %v1574_v10 = vld [vmem:[#allocation2 + $0x20] sm:$0xff] }
 0x1a3   :  { %1348 = vmatmul.f32.gmra.mxu2 %v1230_v16 }
 0x1a4   :  { %11180 = vst [vmem:[#allocation23_spill] sm:$0xff] %v6982_v30  ;;  %1165 = vmatmul.f32.gmra.mxu1 %v1045_v49 }
 0x1a6   :  { %1450 = vmatmul.f32.vlgmr.msra.gmra.mxu3 %v11181_v34  ;;  %v1575_v34 = vld [vmem:[#allocation2 + $0x28] sm:$0xff] }
 0x1a7   :  { %v6986_v43 = vpop.f32.mrf.mxu0 }
 0x1a9   :  { %v749_v18 = vpop.f32.mrf.mxu3 }
 0x1aa   :  { %v6989_v13 = vadd.f32 %v749_v18, %v6775_v26  ;;  %979 = vmatmul.f32.gmra.mxu0 %v6918_v39 }
 0x1ab   :  { %1351 = vmatmul.f32.gmra.mxu2 %v1231_v45  ;;  %v1576_v45 = vld [vmem:[#allocation2 + $0x30] sm:$0xff] }
 0x1ae   :  { %1453 = vmatmul.f32.gmra.mxu3 %v6711_v7 }
 0x1af   :  { %v6993_v59 = vpop.f32.mrf.mxu0 }
 0x1b0   :  { %11182 = vst [vmem:[#allocation8_spill] sm:$0xff] %v6993_v59 }
 0x1b1   :  { %v752_v30 = vpop.f32.mrf.mxu3 }
 0x1b2   :  { %v6996_v49 = vadd.f32 %v752_v30, %v6785_v4  ;;  %1636 = vmatmul.f32.vlgmr.msra.gmra.mxu0 %v1574_v10  ;;  %v1577_v30 = vld [vmem:[#allocation2 + $0x38] sm:$0xff] }
 0x1b6   :  { %1456 = vmatmul.f32.gmra.mxu3 %v6721_v9 }
 0x1b7   :  { %v6999_v16 = vpop.f32.mrf.mxu0 }
 0x1b9   :  { %v755_v26 = vpop.f32.mrf.mxu3 }
 0x1ba   :  { %v7002_v18 = vadd.f32 %v755_v26, %v6795_v24  ;;  %1639 = vmatmul.f32.gmra.mxu0 %v1575_v34  ;;  %v1578_v34 = vld [vmem:[#allocation2 + $0x40] sm:$0xff] }
 0x1be   :  { %1459 = vmatmul.f32.gmra.mxu3 %v6731_v11 }
 0x1bf   :  { %v7005_v7 = vpop.f32.mrf.mxu0 }
 0x1c1   :  { %v758_v59 = vpop.f32.mrf.mxu3 }
 0x1c2   :  { %v7008_v4 = vadd.f32 %v758_v59, %v6805_v21  ;;  %1642 = vmatmul.f32.gmra.mxu0 %v1576_v45  ;;  %v1579_v59 = vld [vmem:[#allocation2 + $0x48] sm:$0xff] }
 0x1c6   :  { %1462 = vmatmul.f32.gmra.mxu3 %v6741_v15 }
 0x1c7   :  { %v7011_v9 = vpop.f32.mrf.mxu0 }
 0x1c9   :  { %v761_v10 = vpop.f32.mrf.mxu3 }
 0x1ca   :  { %v7014_v24 = vadd.f32 %v761_v10, %v6815_v38  ;;  %1645 = vmatmul.f32.gmra.mxu0 %v1577_v30  ;;  %v1580_v30 = vld [vmem:[#allocation2 + $0x50] sm:$0xff] }
 0x1ce   :  { %1465 = vmatmul.f32.gmra.mxu3 %v6751_v17 }
 0x1cf   :  { %v7017_v11 = vpop.f32.mrf.mxu0 }
 0x1d1   :  { %v764_v26 = vpop.f32.mrf.mxu3 }
 0x1d2   :  { %v7020_v21 = vadd.f32 %v764_v26, %v6825_v29  ;;  %1648 = vmatmul.f32.gmra.mxu0 %v1578_v34  ;;  %v1581_v34 = vld [vmem:[#allocation2 + $0x58] sm:$0xff] }
 0x1d4   :  { %11183 = vst [vmem:[#allocation24_spill] sm:$0xff] %v7020_v21 }
 0x1d6   :  { %1468 = vmatmul.f32.gmra.mxu3 %v6761_v23 }
 0x1d7   :  { %v7023_v15 = vpop.f32.mrf.mxu0 }
 0x1d8   :  { %11184 = vst [vmem:[#allocation25_spill] sm:$0xff] %v7023_v15 }
 0x1d9   :  { %v767_v45 = vpop.f32.mrf.mxu3 }
 0x1da   :  { %v7026_v38 = vadd.f32 %v767_v45, %v6835_v33  ;;  %1651 = vmatmul.f32.gmra.mxu0 %v1579_v59  ;;  %v1582_v59 = vld [vmem:[#allocation2 + $0x60] sm:$0xff] }
 0x1dc   :  { %11185 = vst [vmem:[#allocation26_spill] sm:$0xff] %v7026_v38  ;;  %v7212_v38 = vld [vmem:[#allocation2] sm:$0xff] }
 0x1dd   :  { %11225 = vst [vmem:[#allocation56_spill] sm:$0xff] %v7212_v38 }
 0x1de   :  { %1471 = vmatmul.f32.gmra.mxu3 %v6771_v28 }
 0x1df   :  { %v7029_v17 = vpop.f32.mrf.mxu0 }
 0x1e0   :  { %11186 = vst [vmem:[#allocation27_spill] sm:$0xff] %v7029_v17 }
 0x1e1   :  { %v770_v10 = vpop.f32.mrf.mxu3 }
 0x1e2   :  { %v7032_v29 = vadd.f32 %v770_v10, %v6845_v37  ;;  %1654 = vmatmul.f32.gmra.mxu0 %v1580_v30  ;;  %v1583_v30 = vld [vmem:[#allocation2 + $0x68] sm:$0xff] }
 0x1e4   :  { %11187 = vst [vmem:[#allocation28_spill] sm:$0xff] %v7032_v29 }
 0x1e6   :  { %1474 = vmatmul.f32.gmra.mxu3 %v6781_v32 }
 0x1e7   :  { %v7035_v23 = vpop.f32.mrf.mxu0 }
 0x1e8   :  { %11188 = vst [vmem:[#allocation29_spill] sm:$0xff] %v7035_v23 }
 0x1e9   :  { %v773_v26 = vpop.f32.mrf.mxu3 }
 0x1ea   :  { %v7038_v33 = vadd.f32 %v773_v26, %v6853_v0  ;;  %1657 = vmatmul.f32.gmra.mxu0 %v1581_v34  ;;  %v1584_v34 = vld [vmem:[#allocation2 + $0x70] sm:$0xff] }
 0x1ec   :  { %11189 = vst [vmem:[#allocation30_spill] sm:$0xff] %v7038_v33 }
 0x1ee   :  { %1477 = vmatmul.f32.gmra.mxu3 %v6791_v36 }
 0x1ef   :  { %v7041_v28 = vpop.f32.mrf.mxu0 }
 0x1f0   :  { %11190 = vst [vmem:[#allocation31_spill] sm:$0xff] %v7041_v28 }
 0x1f1   :  { %v776_v45 = vpop.f32.mrf.mxu3 }
 0x1f2   :  { %v7044_v37 = vadd.f32 %v776_v45, %v6778_v20  ;;  %1660 = vmatmul.f32.gmra.mxu0 %v1582_v59  ;;  %v1585_v59 = vld [vmem:[#allocation2 + $0x78] sm:$0xff] }
 0x1f4   :  { %11191 = vst [vmem:[#allocation32_spill] sm:$0xff] %v7044_v37 }
 0x1f6   :  { %1480 = vmatmul.f32.gmra.mxu3 %v6801_v40 }
 0x1f7   :  { %v7047_v32 = vpop.f32.mrf.mxu0 }
 0x1f8   :  { %11192 = vst [vmem:[#allocation33_spill] sm:$0xff] %v7047_v32 }
 0x1f9   :  { %v779_v10 = vpop.f32.mrf.mxu3 }
 0x1fa   :  { %v7050_v0 = vadd.f32 %v779_v10, %v6788_v62  ;;  %1663 = vmatmul.f32.gmra.mxu0 %v1583_v30  ;;  %v1586_v30 = vld [vmem:[#allocation2 + $0x80] sm:$0xff] }
 0x1fc   :  { %11193 = vst [vmem:[#allocation34_spill] sm:$0xff] %v7050_v0 }
 0x1fe   :  { %1483 = vmatmul.f32.gmra.mxu3 %v6811_v44 }
 0x1ff   :  { %v7053_v36 = vpop.f32.mrf.mxu0 }
 0x200   :  { %11194 = vst [vmem:[#allocation35_spill] sm:$0xff] %v7053_v36 }
 0x201   :  { %v782_v26 = vpop.f32.mrf.mxu3 }
 0x202   :  { %v7056_v20 = vadd.f32 %v782_v26, %v6798_v35  ;;  %1666 = vmatmul.f32.gmra.mxu0 %v1584_v34  ;;  %v1587_v34 = vld [vmem:[#allocation2 + $0x88] sm:$0xff] }
 0x204   :  { %11195 = vst [vmem:[#allocation36_spill] sm:$0xff] %v7056_v20  ;;  %v11211_v20 = vld [vmem:[#allocation17_spill] sm:$0xff] }
 0x206   :  { %1486 = vmatmul.f32.gmra.mxu3 %v6821_v47 }
 0x207   :  { %v7059_v40 = vpop.f32.mrf.mxu0 }
 0x208   :  { %11196 = vst [vmem:[#allocation37_spill] sm:$0xff] %v7059_v40 }
 0x209   :  { %v785_v45 = vpop.f32.mrf.mxu3 }
 0x20a   :  { %v7062_v62 = vadd.f32 %v785_v45, %v6808_v58  ;;  %1669 = vmatmul.f32.gmra.mxu0 %v1585_v59  ;;  %v1588_v59 = vld [vmem:[#allocation2 + $0x90] sm:$0xff] }
 0x20c   :  { %11197 = vst [vmem:[#allocation38_spill] sm:$0xff] %v7062_v62 }
 0x20e   :  { %1489 = vmatmul.f32.gmra.mxu3 %v6831_v50 }
 0x20f   :  { %v7065_v44 = vpop.f32.mrf.mxu0 }
 0x210   :  { %11198 = vst [vmem:[#allocation39_spill] sm:$0xff] %v7065_v44  ;;  %v11203_v44 = vld [vmem:[#allocation9_spill] sm:$0xff] }
 0x211   :  { %v788_v10 = vpop.f32.mrf.mxu3 }
 0x212   :  { %v7068_v35 = vadd.f32 %v788_v10, %v6818_v19  ;;  %1672 = vmatmul.f32.gmra.mxu0 %v1586_v30  ;;  %v1589_v30 = vld [vmem:[#allocation2 + $0x98] sm:$0xff]  ;;  %v7085_v10 = vpop.f32.mrf.mxu1 }
 0x214   :  { %11199 = vst [vmem:[#allocation40_spill] sm:$0xff] %v7068_v35 }
 0x216   :  { %1492 = vmatmul.f32.gmra.mxu3 %v6841_v53 }
 0x217   :  { %v7071_v47 = vpop.f32.mrf.mxu0 }
 0x218   :  { %11200 = vst [vmem:[#allocation41_spill] sm:$0xff] %v7071_v47 }
 0x219   :  { %v791_v26 = vpop.f32.mrf.mxu3 }
 0x21a   :  { %v7074_v58 = vadd.f32 %v791_v26, %v6828_v55  ;;  %1675 = vmatmul.f32.gmra.mxu0 %v1587_v34 }
 0x21c   :  { %11201 = vst [vmem:[#allocation42_spill] sm:$0xff] %v7074_v58 }
 0x21e   :  { %1495 = vmatmul.f32.gmra.mxu3 %v6849_v56  ;;  %v7090_v56 = vpop.f32.mrf.mxu2 }
 0x21f   :  { %v7077_v50 = vpop.f32.mrf.mxu0 }
 0x220   :  { %11202 = vst [vmem:[#allocation43_spill] sm:$0xff] %v7077_v50 }
 0x221   :  { %v794_v45 = vpop.f32.mrf.mxu3 }
 0x222   :  { %v7080_v19 = vadd.f32 %v794_v45, %v11203_v44  ;;  %1678 = vmatmul.f32.gmra.mxu0 %v1588_v59  ;;  %v1590_v44 = vld [vmem:[#allocation2 + $0xa0] sm:$0xff]  ;;  %v7098_v45 = vpop.f32.mrf.mxu1 }
 0x224   :  { %11204 = vst [vmem:[#allocation9_spill] sm:$0xff] %v7080_v19 }
 0x226   :  { %1498 = vmatmul.f32.gmra.mxu3 %v6857_v60 }
 0x227   :  { %v7083_v53 = vpop.f32.mrf.mxu0 }
 0x228   :  { %11205 = vst [vmem:[#allocation44_spill] sm:$0xff] %v7083_v53  ;;  %v7100_v53 = vpop.f32.mrf.mxu2 }
 0x229   :  { %v1451_v55 = vpop.f32.mrf.mxu3 }
 0x22a   :  { %v7088_v34 = vadd.f32 %v1451_v55, %v6861_v3  ;;  %1681 = vmatmul.f32.gmra.mxu0 %v1589_v30  ;;  %v1591_v30 = vld [vmem:[#allocation2 + $0xa8] sm:$0xff]  ;;  %v7108_v19 = vpop.f32.mrf.mxu1 }
 0x22e   :  { %1501 = vmatmul.f32.gmra.mxu3 %v6865_v63 }
 0x22f   :  { %v7093_v26 = vpop.f32.mrf.mxu0 }
 0x231   :  { %v1454_v59 = vpop.f32.mrf.mxu3 }
 0x232   :  { %v7096_v60 = vadd.f32 %v1454_v59, %v6869_v41  ;;  %1684 = vmatmul.f32.gmra.mxu0 %v1590_v44  ;;  %v7111_v41 = vpop.f32.mrf.mxu2  ;;  %v1592_v59 = vld [vmem:[#allocation2 + $0xb0] sm:$0xff]  ;;  %v7119_v58 = vpop.f32.mrf.mxu1 }
 0x236   :  { %1504 = vmatmul.f32.gmra.mxu3 %v6873_v2 }
 0x237   :  { %v7103_v3 = vpop.f32.mrf.mxu0 }
 0x239   :  { %v1457_v55 = vpop.f32.mrf.mxu3 }
 0x23a   :  { %v7106_v63 = vadd.f32 %v1457_v55, %v6877_v52  ;;  %1687 = vmatmul.f32.gmra.mxu0 %v1591_v30  ;;  %v7123_v30 = vpop.f32.mrf.mxu2 }
 0x23e   :  { %1507 = vmatmul.f32.gmra.mxu3 %v6881_v6 }
 0x23f   :  { %v7113_v44 = vpop.f32.mrf.mxu0 }
 0x241   :  { %v1460_v50 = vpop.f32.mrf.mxu3 }
 0x242   :  { %v7116_v2 = vadd.f32 %v1460_v50, %v6885_v54  ;;  %1690 = vmatmul.f32.gmra.mxu0 %v1592_v59  ;;  %v6245_v54 = vld [vmem:[%s11059_s1 + $0x50] sm:$0xff] }
 0x243   :  { %2266 = vmatpush.msra.mxu1 %v6245_v54  ;;  %v11206_v54 = vld [vmem:[#allocation11_spill] sm:$0xff] }
 0x246   :  { %1510 = vmatmul.f32.gmra.mxu3 %v6889_v51  ;;  %v7135_v51 = vpop.f32.mrf.mxu1 }
 0x247   :  { %v7121_v52 = vpop.f32.mrf.mxu0 }
 0x249   :  { %v1463_v55 = vpop.f32.mrf.mxu3 }
 0x24a   :  { %v7126_v6 = vadd.f32 %v1463_v55, %v6892_v48  ;;  %1693 = vmatmul.f32.gmra.mxu0 %v6894_v8  ;;  %v7141_v48 = vpop.f32.mrf.mxu2 }
 0x24e   :  { %1513 = vmatmul.f32.gmra.mxu3 %v6900_v27  ;;  %v7149_v55 = vpop.f32.mrf.mxu1 }
 0x24f   :  { %v7130_v47 = vpop.f32.mrf.mxu0 }
 0x251   :  { %v1466_v50 = vpop.f32.mrf.mxu3 }
 0x252   :  { %v7138_v59 = vadd.f32 %v1466_v50, %v6903_v5  ;;  %1696 = vmatmul.f32.gmra.mxu0 %v6907_v22  ;;  %v7151_v35 = vpop.f32.mrf.mxu2 }
 0x256   :  { %1516 = vmatmul.f32.gmra.mxu3 %v6913_v46  ;;  %v7159_v22 = vpop.f32.mrf.mxu1  ;;  %v11208_v46 = vld [vmem:[#allocation14_spill] sm:$0xff] }
 0x257   :  { %v7144_v8 = vpop.f32.mrf.mxu0 }
 0x259   :  { %v7146_v27 = vpop.f32.mrf.mxu3 }
 0x25a   :  { %1699 = vmatmul.f32.gmra.mxu0 %v6924_v61  ;;  %v7162_v62 = vpop.f32.mrf.mxu2 }
 0x25e   :  { %1519 = vmatmul.f32.gmra.mxu3 %v11206_v54  ;;  %v7170_v54 = vpop.f32.mrf.mxu1 }
 0x25f   :  { %v7154_v5 = vpop.f32.mrf.mxu0 }
 0x260   :  { %11207 = vst [vmem:[#allocation11_spill] sm:$0xff] %v7154_v5 }
 0x261   :  { %v7156_v50 = vpop.f32.mrf.mxu3 }
 0x262   :  { %1702 = vmatmul.f32.gmra.mxu0 %v6935_v12  ;;  %v7174_v0 = vpop.f32.mrf.mxu2 }
 0x266   :  { %1522 = vmatmul.f32.gmra.mxu3 %v11208_v46  ;;  %v11214_v46 = vld [vmem:[#allocation20_spill] sm:$0xff]  ;;  %v7182_v37 = vpop.f32.mrf.mxu1 }
 0x267   :  { %v7164_v40 = vpop.f32.mrf.mxu0 }
 0x268   :  { %11209 = vst [vmem:[#allocation14_spill] sm:$0xff] %v7164_v40  ;;  %v11255_v40 = vld [vmem:[#allocation5_spill] sm:$0xff] }
 0x269   :  { %v7166_v61 = vpop.f32.mrf.mxu3 }
 0x26a   :  { %11210 = vst [vmem:[#allocation45_spill] sm:$0xff] %v7166_v61  ;;  %1705 = vmatmul.f32.gmra.mxu0 %v6946_v57  ;;  %v7187_v57 = vpop.f32.mrf.mxu2  ;;  %v11256_v61 = vld [vmem:[#allocation10_spill] sm:$0xff] }
 0x26e   :  { %1525 = vmatmul.f32.gmra.mxu3 %v11211_v20 }
 0x26f   :  { %v7172_v36 = vpop.f32.mrf.mxu0 }
 0x270   :  { %11212 = vst [vmem:[#allocation17_spill] sm:$0xff] %v7172_v36 }
 0x271   :  { %v7176_v12 = vpop.f32.mrf.mxu3 }
 0x272   :  { %11213 = vst [vmem:[#allocation46_spill] sm:$0xff] %v7176_v12  ;;  %1708 = vmatmul.f32.gmra.mxu0 %v6957_v31  ;;  %v7195_v31 = vpop.f32.mrf.mxu1  ;;  %v7197_v23 = vpop.f32.mrf.mxu2 }
 0x273   :  { %11219 = vst [vmem:[#allocation50_spill] sm:$0xff] %v7197_v23 }
 0x276   :  { %1528 = vmatmul.f32.gmra.mxu3 %v11214_v46  ;;  %v1416_v46 = vld [vmem:[#allocation2 + $0xff] sm:$0xff] }
 0x277   :  { %v7180_v32 = vpop.f32.mrf.mxu0 }
 0x278   :  { %11215 = vst [vmem:[#allocation20_spill] sm:$0xff] %v7180_v32 }
 0x279   :  { %v7184_v28 = vpop.f32.mrf.mxu3 }
 0x27a   :  { %11216 = vst [vmem:[#allocation47_spill] sm:$0xff] %v7184_v28  ;;  %1711 = vmatmul.f32.gmra.mxu0 %v6968_v1  ;;  %v1417_v1 = vld [vmem:[#allocation2 + $0x107] sm:$0xff] }
 0x27e   :  { %1531 = vmatmul.f32.gmra.mxu3 %v6974_v42  ;;  %v7204_v42 = vpop.f32.mrf.mxu1 }
 0x27f   :  { %v7190_v20 = vpop.f32.mrf.mxu0 }
 0x280   :  { %11217 = vst [vmem:[#allocation48_spill] sm:$0xff] %v7190_v20  ;;  %v7206_v20 = vpop.f32.mrf.mxu2 }
 0x281   :  { %v7192_v33 = vpop.f32.mrf.mxu3  ;;  %11222 = vst [vmem:[#allocation53_spill] sm:$0xff] %v7206_v20  ;;  %v11259_v20 = vld [vmem:[#allocation15_spill] sm:$0xff] }
 0x282   :  { %11218 = vst [vmem:[#allocation49_spill] sm:$0xff] %v7192_v33  ;;  %1714 = vmatmul.f32.gmra.mxu0 %v6979_v25 }
 0x286   :  { %1534 = vmatmul.f32.gmra.mxu3 %v1416_v46  ;;  %v7215_v46 = vpop.f32.mrf.mxu1 }
 0x287   :  { %v7199_v29 = vpop.f32.mrf.mxu0 }
 0x288   :  { %11220 = vst [vmem:[#allocation51_spill] sm:$0xff] %v7199_v29 }
 0x289   :  { %v7201_v17 = vpop.f32.mrf.mxu3 }
 0x28a   :  { %11221 = vst [vmem:[#allocation52_spill] sm:$0xff] %v7201_v17  ;;  %1717 = vmatmul.f32.gmra.mxu0 %v6918_v39  ;;  %v7219_v17 = vpop.f32.mrf.mxu2 }
 0x28b   :  { %11227 = vst [vmem:[#allocation58_spill] sm:$0xff] %v7219_v17 }
 0x28e   :  { %1537 = vmatmul.f32.gmra.mxu3 %v1417_v1  ;;  %v7226_v32 = vpop.f32.mrf.mxu1 }
 0x28f   :  { %v7208_v33 = vpop.f32.mrf.mxu0  ;;  %11230 = vst [vmem:[#allocation61_spill] sm:$0xff] %v7226_v32 }
 0x290   :  { %11223 = vst [vmem:[#allocation54_spill] sm:$0xff] %v7208_v33 }
 0x291   :  { %v7210_v25 = vpop.f32.mrf.mxu3 }
 0x292   :  { %11224 = vst [vmem:[#allocation55_spill] sm:$0xff] %v7210_v25  ;;  %1720 = vmatmul.f32.gmra.mxu0 %v7212_v38  ;;  %v7230_v25 = vpop.f32.mrf.mxu2 }
 0x293   :  { %11232 = vst [vmem:[#allocation63_spill] sm:$0xff] %v7230_v25 }
 0x296   :  { %v7236_v12 = vpop.f32.mrf.mxu1 }
 0x297   :  { %v7217_v29 = vpop.f32.mrf.mxu0  ;;  %11235 = vst [vmem:[#allocation66_spill] sm:$0xff] %v7236_v12 }
 0x298   :  { %11226 = vst [vmem:[#allocation57_spill] sm:$0xff] %v7217_v29 }
 0x299   :  { %v7221_v39 = vpop.f32.mrf.mxu3 }
 0x29a   :  { %11228 = vst [vmem:[#allocation59_spill] sm:$0xff] %v7221_v39  ;;  %1723 = vmatmul.f32.gmra.mxu0 %v7212_v38  ;;  %v7238_v29 = vpop.f32.mrf.mxu2 }
 0x29b   :  { %11236 = vst [vmem:[#allocation67_spill] sm:$0xff] %v7238_v29 }
 0x29e   :  { %v7244_v38 = vpop.f32.mrf.mxu1 }
 0x29f   :  { %v7224_v1 = vpop.f32.mrf.mxu0  ;;  %11239 = vst [vmem:[#allocation70_spill] sm:$0xff] %v7244_v38 }
 0x2a0   :  { %11229 = vst [vmem:[#allocation60_spill] sm:$0xff] %v7224_v1 }
 0x2a1   :  { %v7228_v33 = vpop.f32.mrf.mxu3 }
 0x2a2   :  { %11231 = vst [vmem:[#allocation62_spill] sm:$0xff] %v7228_v33  ;;  %v7246_v1 = vpop.f32.mrf.mxu2 }
 0x2a3   :  { %11240 = vst [vmem:[#allocation71_spill] sm:$0xff] %v7246_v1 }
 0x2a6   :  { %v7252_v25 = vpop.f32.mrf.mxu1 }
 0x2a7   :  { %v7232_v28 = vpop.f32.mrf.mxu0  ;;  %11243 = vst [vmem:[#allocation74_spill] sm:$0xff] %v7252_v25  ;;  %v11254_v25 = vld [vmem:[#allocation6_spill] sm:$0xff] }
 0x2a8   :  { %11233 = vst [vmem:[#allocation64_spill] sm:$0xff] %v7232_v28 }
 0x2a9   :  { %v7234_v36 = vpop.f32.mrf.mxu3 }
 0x2aa   :  { %11234 = vst [vmem:[#allocation65_spill] sm:$0xff] %v7234_v36  ;;  %v7256_v36 = vpop.f32.mrf.mxu2 }
 0x2ab   :  { %11245 = vst [vmem:[#allocation76_spill] sm:$0xff] %v7256_v36  ;;  %v11257_v36 = vld [vmem:[#allocation12_spill] sm:$0xff] }
 0x2ac   :  { %v991_v17 = vadd.f32 %v11257_v36, %v11256_v61  ;;  %v1728_v36 = vadd.f32 %v7103_v3, %v7096_v60 }
 0x2ae   :  { %v1177_v61 = vadd.f32 %v7108_v19, %v991_v17  ;;  %v1729_v17 = vadd.f32 %v7113_v44, %v7106_v63  ;;  %v11268_v19 = vld [vmem:[#allocation8_spill] sm:$0xff]  ;;  %v7330_v63 = vld [vmem:[%s11062_s3 + $0x8] sm:$0xff] }
 0x2af   :  { %v7240_v15 = vpop.f32.mrf.mxu0  ;;  %v997_v60 = vadd.f32 %v11268_v19, %v6989_v13  ;;  %v998_v13 = vadd.f32 %v6999_v16, %v6996_v49  ;;  %11269 = vst [vmem:[#allocation6_spill] sm:$0xff] %v7330_v63  ;;  %v1000_v16 = vadd.f32 %v7011_v9, %v7008_v4  ;;  %v11281_v19 = vld [vmem:[#allocation24_spill] sm:$0xff] }
 0x2b0   :  { %11237 = vst [vmem:[#allocation68_spill] sm:$0xff] %v7240_v15  ;;  %v7262_v15 = vpop.f32.mrf.mxu1 }
 0x2b1   :  { %v7242_v39 = vpop.f32.mrf.mxu3  ;;  %11248 = vst [vmem:[#allocation79_spill] sm:$0xff] %v7262_v15  ;;  %v11261_v15 = vld [vmem:[#allocation16_spill] sm:$0xff]  ;;  %v1183_v49 = vadd.f32 %v7182_v37, %v997_v60  ;;  %v11282_v60 = vld [vmem:[#allocation25_spill] sm:$0xff] }
 0x2b2   :  { %11238 = vst [vmem:[#allocation69_spill] sm:$0xff] %v7242_v39  ;;  %v7266_v38 = vpop.f32.mrf.mxu2 }
 0x2b3   :  { %11250 = vst [vmem:[#allocation81_spill] sm:$0xff] %v7266_v38 }
 0x2b7   :  { %v7248_v21 = vpop.f32.mrf.mxu0 }
 0x2b8   :  { %11241 = vst [vmem:[#allocation72_spill] sm:$0xff] %v7248_v21  ;;  %v11252_v21 = vld [vmem:[#allocation4_spill] sm:$0xff]  ;;  %v7282_v38 = vpop.f32.mrf.mxu1 }
 0x2b9   :  { %v7250_v33 = vpop.f32.mrf.mxu3 }
 0x2ba   :  { %11242 = vst [vmem:[#allocation73_spill] sm:$0xff] %v7250_v33  ;;  %v11253_v33 = vld [vmem:[#allocation7_spill] sm:$0xff] }
 0x2bb   :  { %v989_v32 = vadd.f32 %v11253_v33, %v11252_v21  ;;  %11263 = vst [vmem:[#allocation7_spill] sm:$0xff] %v7282_v38  ;;  %v7287_v21 = vld [vmem:[%s11061_s2] sm:$0xff]  ;;  %v11267_v38 = vld [vmem:[#allocation23_spill] sm:$0xff] }
 0x2bd   :  { %v1175_v33 = vadd.f32 %v7085_v10, %v989_v32  ;;  %v996_v32 = vadd.f32 %v6986_v43, %v11267_v38  ;;  %v7306_v10 = vperm.slane %v7287_v21, 0  ;;  %v1363_v43 = vadd.f32 %v7111_v41, %v1177_v61 }
 0x2bf   :  { %v7254_v28 = vpop.f32.mrf.mxu0  ;;  %v1182_v44 = vadd.f32 %v7170_v54, %v996_v32  ;;  %v1001_v54 = vadd.f32 %v7017_v11, %v7014_v24  ;;  %v11275_v11 = vld [vmem:[#allocation53_spill] sm:$0xff] }
 0x2c0   :  { %11244 = vst [vmem:[#allocation75_spill] sm:$0xff] %v7254_v28  ;;  %v990_v28 = vadd.f32 %v11255_v40, %v11254_v25 }
 0x2c1   :  { %v7258_v12 = vpop.f32.mrf.mxu3  ;;  %v7361_v37 = vadd.f32 %v7174_v0, %v1182_v44  ;;  %v11284_v44 = vld [vmem:[#allocation46_spill] sm:$0xff] }
 0x2c2   :  { %11246 = vst [vmem:[#allocation77_spill] sm:$0xff] %v7258_v12  ;;  %v11258_v12 = vld [vmem:[#allocation13_spill] sm:$0xff]  ;;  %v1176_v40 = vadd.f32 %v7098_v45, %v990_v28  ;;  %v1727_v28 = vadd.f32 %v7093_v26, %v7088_v34  ;;  %v1759_v34 = vadd.f32 %v7306_v10, %v1728_v36  ;;  %v1730_v26 = vadd.f32 %v7121_v52, %v7116_v2  ;;  %v11274_v36 = vld [vmem:[#allocation50_spill] sm:$0xff] }
 0x2c3   :  { %v999_v2 = vadd.f32 %v7005_v7, %v7002_v18  ;;  %v7353_v18 = vld [vmem:[%s11062_s3 + $0x10] sm:$0xff]  ;;  %v1731_v7 = vadd.f32 %v7130_v47, %v7126_v6  ;;  %v1732_v47 = vadd.f32 %v7144_v8, %v7138_v59  ;;  %v11273_v59 = vld [vmem:[#allocation11_spill] sm:$0xff] }
 0x2c4   :  { %v1758_v52 = vadd.f32 %v7306_v10, %v1727_v28  ;;  %11271 = vst [vmem:[#allocation10_spill] sm:$0xff] %v7353_v18  ;;  %v7364_v4 = vmul.f32 %v1759_v34, %v7330_v63  ;;  %v1761_v9 = vadd.f32 %v7306_v10, %v1730_v26  ;;  %v11279_v28 = vld [vmem:[#allocation14_spill] sm:$0xff]  ;;  %v1002_v34 = vadd.f32 %v11282_v60, %v11281_v19  ;;  %v11295_v19 = vld [vmem:[#allocation67_spill] sm:$0xff] }
 0x2c5   :  { %v1185_v6 = vadd.f32 %v7204_v42, %v999_v2 }
 0x2c7   :  { %v7260_v29 = vpop.f32.mrf.mxu0  ;;  %v7402_v61 = vadd.f32 %v11275_v11, %v1185_v6  ;;  %v11288_v6 = vld [vmem:[#allocation47_spill] sm:$0xff] }
 0x2c8   :  { %11247 = vst [vmem:[#allocation78_spill] sm:$0xff] %v7260_v29  ;;  %v992_v29 = vadd.f32 %v11259_v20, %v11258_v12  ;;  %v11264_v20 = vld [vmem:[#allocation19_spill] sm:$0xff] }
 0x2c9   :  { %v7264_v39 = vpop.f32.mrf.mxu3 }
 0x2ca   :  { %11249 = vst [vmem:[#allocation80_spill] sm:$0xff] %v7264_v39  ;;  %v11262_v39 = vld [vmem:[#allocation18_spill] sm:$0xff]  ;;  %v1178_v12 = vadd.f32 %v7119_v58, %v992_v29  ;;  %v1361_v29 = vadd.f32 %v7090_v56, %v1175_v33  ;;  %v1362_v58 = vadd.f32 %v7100_v53, %v1176_v40 }
 0x2cb   :  { %v993_v5 = vadd.f32 %v11262_v39, %v11261_v15  ;;  %v11265_v15 = vld [vmem:[#allocation21_spill] sm:$0xff]  ;;  %v11266_v39 = vld [vmem:[#allocation22_spill] sm:$0xff] }
 0x2cc   :  { %v994_v25 = vadd.f32 %v11265_v15, %v11264_v20  ;;  %v1364_v38 = vadd.f32 %v7123_v30, %v1178_v12  ;;  %v1760_v30 = vadd.f32 %v7306_v10, %v1729_v17  ;;  %v1547_v0 = vadd.f32 %v7146_v27, %v1361_v29  ;;  %v11277_v20 = vld [vmem:[#allocation58_spill] sm:$0xff] }
 0x2cd   :  { %v1762_v27 = vadd.f32 %v7306_v10, %v1731_v7  ;;  %v1548_v40 = vadd.f32 %v7156_v50, %v1362_v58  ;;  %v1854_v12 = vmul.f32 %v7364_v4, %v7364_v4  ;;  %v7412_v50 = vld [vmem:[%s11062_s3 + $0x20] sm:$0xff]  ;;  %v11280_v58 = vld [vmem:[#allocation61_spill] sm:$0xff] }
 0x2ce   :  { %v1180_v53 = vadd.f32 %v7149_v55, %v994_v25  ;;  %v7368_v55 = vadd.f32 %v7187_v57, %v1183_v49  ;;  %v1733_v8 = vadd.f32 %v11273_v59, %v1547_v0  ;;  %11276 = vst [vmem:[#allocation13_spill] sm:$0xff] %v7412_v50  ;;  %v1763_v25 = vadd.f32 %v7306_v10, %v1732_v47  ;;  %v11286_v49 = vld [vmem:[#allocation63_spill] sm:$0xff]  ;;  %v7450_v0 = vld [vmem:[%s11062_s3 + $0x30] sm:$0xff] }
 0x2cf   :  { %v7268_v1 = vpop.f32.mrf.mxu0  ;;  %v1734_v17 = vadd.f32 %v11279_v28, %v1548_v40  ;;  %v1550_v2 = vadd.f32 %v11284_v44, %v1364_v38  ;;  %11287 = vst [vmem:[#allocation16_spill] sm:$0xff] %v7450_v0  ;;  %v11290_v40 = vld [vmem:[#allocation66_spill] sm:$0xff] }
 0x2d0   :  { %11251 = vst [vmem:[#allocation82_spill] sm:$0xff] %v7268_v1  ;;  %v995_v1 = vadd.f32 %v11266_v39, %v6971_v14  ;;  %v1179_v14 = vadd.f32 %v7135_v51, %v993_v5  ;;  %v7340_v51 = vadd.f32 %v7151_v35, %v1180_v53  ;;  %v1184_v5 = vadd.f32 %v7195_v31, %v998_v13  ;;  %v11278_v39 = vld [vmem:[#allocation45_spill] sm:$0xff] }
 0x2d1   :  { %v7278_v23 = vpop.f32.mrf.mxu3  ;;  %v7388_v31 = vmul.f32 %v1760_v30, %v7353_v18  ;;  %v1549_v32 = vadd.f32 %v11278_v39, %v1363_v43  ;;  %v7435_v43 = vmul.f32 %v1762_v27, %v7412_v50  ;;  %v1764_v13 = vadd.f32 %v7306_v10, %v1733_v8  ;;  %v11291_v8 = vld [vmem:[#allocation26_spill] sm:$0xff]  ;;  %v7465_v39 = vld [vmem:[%s11062_s3 + $0x38] sm:$0xff] }
 0x2d2   :  { %11260 = vst [vmem:[#allocation4_spill] sm:$0xff] %v7278_v23  ;;  %v7299_v23 = vpop.f32.mrf.mxu2  ;;  %v1365_v56 = vadd.f32 %v7141_v48, %v1179_v14  ;;  %v1181_v3 = vadd.f32 %v7159_v22, %v995_v1  ;;  %v7348_v48 = vld [vmem:[%s11062_s3] sm:$0xff]  ;;  %v7371_v22 = vpop.f32.mrf.mxu1  ;;  %v1186_v1 = vadd.f32 %v7215_v46, %v1000_v16  ;;  %v7399_v24 = vadd.f32 %v11274_v36, %v1184_v5  ;;  %v11292_v36 = vld [vmem:[#allocation27_spill] sm:$0xff] }
 0x2d3   :  { %11270 = vst [vmem:[#allocation5_spill] sm:$0xff] %v7348_v48  ;;  %v7385_v57 = vmul.f32 %v1758_v52, %v7348_v48  ;;  %v1187_v14 = vadd.f32 %v11280_v58, %v1001_v54  ;;  %v1855_v53 = vmul.f32 %v7388_v31, %v7388_v31  ;;  %v11285_v52 = vld [vmem:[#allocation17_spill] sm:$0xff]  ;;  %v1765_v38 = vadd.f32 %v7306_v10, %v1734_v17  ;;  %v11294_v17 = vld [vmem:[#allocation48_spill] sm:$0xff] }
 0x2d4   :  { %v7358_v35 = vadd.f32 %v7162_v62, %v1181_v3  ;;  %v7376_v62 = vld [vmem:[%s11062_s3 + $0x18] sm:$0xff]  ;;  %v7415_v15 = vadd.f32 %v11277_v20, %v1186_v1  ;;  %v7432_v3 = vld [vmem:[%s11062_s3 + $0x28] sm:$0xff]  ;;  %v1735_v30 = vadd.f32 %v11285_v52, %v1549_v32  ;;  %v1551_v54 = vadd.f32 %v11288_v6, %v1365_v56  ;;  %v11289_v1 = vld [vmem:[#allocation20_spill] sm:$0xff]  ;;  %11293 = vst [vmem:[#allocation18_spill] sm:$0xff] %v7465_v39 }
 0x2d5   :  { %11272 = vst [vmem:[#allocation12_spill] sm:$0xff] %v7376_v62  ;;  %v7407_v46 = vmul.f32 %v1761_v9, %v7376_v62  ;;  %v1853_v26 = vmul.f32 %v7385_v57, %v7385_v57  ;;  %v7441_v16 = vadd.f32 %v11286_v49, %v1187_v14  ;;  %v1818_v7 = vadd.f32 %v7364_v4, %v7385_v57  ;;  %v11339_v62 = vld [vmem:[#allocation39_spill] sm:$0xff] }
 0x2d6   :  { %11283 = vst [vmem:[#allocation15_spill] sm:$0xff] %v7432_v3  ;;  %v7453_v47 = vmul.f32 %v1763_v25, %v7432_v3  ;;  %v1736_v27 = vadd.f32 %v11289_v1, %v1550_v2  ;;  %v1188_v59 = vadd.f32 %v11290_v40, %v1002_v34  ;;  %v1003_v11 = vadd.f32 %v11292_v36, %v11291_v8  ;;  %v11296_v34 = vld [vmem:[#allocation28_spill] sm:$0xff]  ;;  %v7487_v2 = vld [vmem:[%s11062_s3 + $0x40] sm:$0xff]  ;;  %v11303_v36 = vld [vmem:[#allocation51_spill] sm:$0xff] }
 0x2d7   :  { %v7315_v45 = vpop.f32.mrf.mxu0  ;;  %v1883_v9 = vadd.f32 %v1854_v12, %v1853_v26  ;;  %v1856_v5 = vmul.f32 %v7407_v46, %v7407_v46  ;;  %v1819_v12 = vadd.f32 %v1818_v7, %v7388_v31  ;;  %v1857_v56 = vmul.f32 %v7435_v43, %v7435_v43  ;;  %v11297_v26 = vld [vmem:[#allocation29_spill] sm:$0xff]  ;;  %11298 = vst [vmem:[#allocation19_spill] sm:$0xff] %v7487_v2  ;;  %v11300_v1 = vld [vmem:[#allocation70_spill] sm:$0xff] }
 0x2d8   :  { %v7472_v32 = vmul.f32 %v1764_v13, %v7450_v0  ;;  %v1766_v28 = vadd.f32 %v7306_v10, %v1735_v30  ;;  %v1737_v58 = vadd.f32 %v11294_v17, %v1551_v54  ;;  %v7479_v60 = vadd.f32 %v11295_v19, %v1188_v59  ;;  %v11299_v13 = vld [vmem:[#allocation49_spill] sm:$0xff]  ;;  %v11304_v17 = vld [vmem:[#allocation71_spill] sm:$0xff] }
 0x2d9   :  { %v7332_v41 = vpop.f32.mrf.mxu3  ;;  %v1884_v20 = vadd.f32 %v1883_v9, %v1855_v53  ;;  %v1004_v53 = vadd.f32 %v11297_v26, %v11296_v34  ;;  %v1820_v44 = vadd.f32 %v1819_v12, %v7407_v46  ;;  %v1552_v52 = vadd.f32 %v11299_v13, %v7340_v51  ;;  %v7506_v51 = vld [vmem:[%s11062_s3 + $0x48] sm:$0xff]  ;;  %v11305_v34 = vld [vmem:[#allocation74_spill] sm:$0xff]  ;;  %v11342_v63 = vld [vmem:[#allocation4_spill] sm:$0xff] }
 0x2da   :  { %v7391_v33 = vpop.f32.mrf.mxu2  ;;  %v7467_v25 = vpop.f32.mrf.mxu1  ;;  %v1858_v7 = vmul.f32 %v7453_v47, %v7453_v47  ;;  %v7496_v9 = vmul.f32 %v1765_v38, %v7465_v39  ;;  %v1767_v6 = vadd.f32 %v7306_v10, %v1736_v27  ;;  %v1189_v40 = vadd.f32 %v11300_v1, %v1003_v11  ;;  %11301 = vst [vmem:[#allocation21_spill] sm:$0xff] %v7506_v51  ;;  %v11308_v13 = vld [vmem:[#allocation54_spill] sm:$0xff] }
 0x2db   :  { %v1885_v49 = vadd.f32 %v1884_v20, %v1856_v5  ;;  %v1821_v59 = vadd.f32 %v1820_v44, %v7435_v43  ;;  %v11302_v5 = vld [vmem:[#allocation52_spill] sm:$0xff]  ;;  %v1738_v12 = vadd.f32 %v11303_v36, %v1552_v52  ;;  %v1859_v27 = vmul.f32 %v7472_v32, %v7472_v32 }
 0x2dc   :  { %v1553_v8 = vadd.f32 %v11302_v5, %v7358_v35  ;;  %v7514_v20 = vmul.f32 %v1766_v28, %v7487_v2  ;;  %v1768_v11 = vadd.f32 %v7306_v10, %v1737_v58  ;;  %v7518_v19 = vadd.f32 %v11304_v17, %v1189_v40  ;;  %v7524_v35 = vld [vmem:[%s11062_s3 + $0x50] sm:$0xff]  ;;  %v11310_v40 = vld [vmem:[#allocation31_spill] sm:$0xff] }
 0x2dd   :  { %v1886_v38 = vadd.f32 %v1885_v49, %v1857_v56  ;;  %v1190_v26 = vadd.f32 %v11305_v34, %v1004_v53  ;;  %11306 = vst [vmem:[#allocation22_spill] sm:$0xff] %v7524_v35  ;;  %v11307_v56 = vld [vmem:[#allocation55_spill] sm:$0xff]  ;;  %v1822_v28 = vadd.f32 %v1821_v59, %v7453_v47  ;;  %v1860_v58 = vmul.f32 %v7496_v9, %v7496_v9  ;;  %v11309_v53 = vld [vmem:[#allocation30_spill] sm:$0xff] }
 0x2de   :  { %v1554_v44 = vadd.f32 %v11307_v56, %v7361_v37  ;;  %v1739_v52 = vadd.f32 %v11308_v13, %v1553_v8  ;;  %v7533_v1 = vmul.f32 %v1767_v6, %v7506_v51  ;;  %v1005_v5 = vadd.f32 %v11310_v40, %v11309_v53  ;;  %v11311_v17 = vld [vmem:[#allocation59_spill] sm:$0xff]  ;;  %v11312_v37 = vld [vmem:[#allocation57_spill] sm:$0xff]  ;;  %v11314_v13 = vld [vmem:[#allocation76_spill] sm:$0xff] }
 0x2df   :  { %v7396_v42 = vpop.f32.mrf.mxu0  ;;  %v1887_v49 = vadd.f32 %v1886_v38, %v1858_v7  ;;  %v1769_v36 = vadd.f32 %v7306_v10, %v1738_v12  ;;  %v1555_v34 = vadd.f32 %v11311_v17, %v7368_v55  ;;  %v1823_v8 = vadd.f32 %v1822_v28, %v7472_v32  ;;  %v7550_v6 = vld [vmem:[%s11062_s3 + $0x58] sm:$0xff]  ;;  %v11317_v40 = vld [vmem:[#allocation32_spill] sm:$0xff] }
 0x2e0   :  { %v1740_v56 = vadd.f32 %v11312_v37, %v1554_v44  ;;  %v1861_v7 = vmul.f32 %v7514_v20, %v7514_v20  ;;  %v7545_v38 = vmul.f32 %v1768_v11, %v7524_v35  ;;  %11313 = vst [vmem:[#allocation23_spill] sm:$0xff] %v7550_v6  ;;  %v7555_v55 = vadd.f32 %v11314_v13, %v1190_v26  ;;  %v11318_v11 = vld [vmem:[#allocation33_spill] sm:$0xff]  ;;  %v7571_v26 = vld [vmem:[%s11062_s3 + $0x60] sm:$0xff] }
 0x2e1   :  { %v7420_v29 = vpop.f32.mrf.mxu3  ;;  %v1888_v59 = vadd.f32 %v1887_v49, %v1859_v27  ;;  %v1770_v44 = vadd.f32 %v7306_v10, %v1739_v52  ;;  %v11315_v27 = vld [vmem:[#allocation62_spill] sm:$0xff]  ;;  %v11316_v49 = vld [vmem:[#allocation60_spill] sm:$0xff]  ;;  %v1006_v17 = vadd.f32 %v11318_v11, %v11317_v40  ;;  %v1824_v35 = vadd.f32 %v1823_v8, %v7496_v9  ;;  %11319 = vst [vmem:[#allocation8_spill] sm:$0xff] %v7571_v26  ;;  %v11320_v13 = vld [vmem:[#allocation65_spill] sm:$0xff] }
 0x2e2   :  { %v7491_v30 = vpop.f32.mrf.mxu2  ;;  %v1556_v28 = vadd.f32 %v11315_v27, %v7399_v24  ;;  %v1741_v53 = vadd.f32 %v11316_v49, %v1555_v34  ;;  %v7563_v37 = vpop.f32.mrf.mxu1  ;;  %v1862_v2 = vmul.f32 %v7533_v1, %v7533_v1  ;;  %v7576_v24 = vmul.f32 %v1769_v36, %v7550_v6  ;;  %v11321_v8 = vld [vmem:[#allocation64_spill] sm:$0xff]  ;;  %v7591_v36 = vld [vmem:[%s11062_s3 + $0x68] sm:$0xff] }
 0x2e3   :  { %v1889_v51 = vadd.f32 %v1888_v59, %v1860_v58  ;;  %v1771_v34 = vadd.f32 %v7306_v10, %v1740_v56  ;;  %v1557_v27 = vadd.f32 %v11320_v13, %v7402_v61  ;;  %v11322_v59 = vld [vmem:[#allocation79_spill] sm:$0xff]  ;;  %v1825_v11 = vadd.f32 %v1824_v35, %v7514_v20  ;;  %11323 = vst [vmem:[#allocation11_spill] sm:$0xff] %v7591_v36  ;;  %v11325_v13 = vld [vmem:[#allocation68_spill] sm:$0xff] }
 0x2e4   :  { %v1742_v58 = vadd.f32 %v11321_v8, %v1556_v28  ;;  %v1191_v49 = vadd.f32 %v11322_v59, %v1005_v5  ;;  %v1863_v0 = vmul.f32 %v7545_v38, %v7545_v38  ;;  %v7594_v56 = vmul.f32 %v1770_v44, %v7571_v26  ;;  %v11324_v5 = vld [vmem:[#allocation69_spill] sm:$0xff]  ;;  %v11326_v35 = vld [vmem:[#allocation7_spill] sm:$0xff]  ;;  %v7607_v44 = vld [vmem:[%s11062_s3 + $0x70] sm:$0xff] }
 0x2e5   :  { %v1890_v39 = vadd.f32 %v1889_v51, %v1861_v7  ;;  %v1772_v61 = vadd.f32 %v7306_v10, %v1741_v53  ;;  %v1558_v28 = vadd.f32 %v11324_v5, %v7415_v15  ;;  %v1743_v8 = vadd.f32 %v11325_v13, %v1557_v27  ;;  %v11327_v7 = vld [vmem:[#allocation34_spill] sm:$0xff]  ;;  %v11328_v59 = vld [vmem:[#allocation35_spill] sm:$0xff]  ;;  %11329 = vst [vmem:[#allocation50_spill] sm:$0xff] %v7607_v44  ;;  %v11331_v13 = vld [vmem:[#allocation81_spill] sm:$0xff] }
 0x2e6   :  { %v1192_v51 = vadd.f32 %v11326_v35, %v1006_v17  ;;  %v1007_v6 = vadd.f32 %v11328_v59, %v11327_v7  ;;  %v1826_v3 = vadd.f32 %v1825_v11, %v7533_v1  ;;  %v1864_v53 = vmul.f32 %v7576_v24, %v7576_v24  ;;  %v11330_v17 = vld [vmem:[#allocation72_spill] sm:$0xff]  ;;  %v11333_v7 = vld [vmem:[#allocation73_spill] sm:$0xff]  ;;  %v11338_v26 = vld [vmem:[#allocation38_spill] sm:$0xff] }
 0x2e7   :  { %v7476_v14 = vpop.f32.mrf.mxu0  ;;  %v1891_v50 = vadd.f32 %v1890_v39, %v1862_v2  ;;  %v7612_v15 = vmul.f32 %v1771_v34, %v7591_v36  ;;  %v1773_v27 = vadd.f32 %v7306_v10, %v1742_v58  ;;  %v1744_v5 = vadd.f32 %v11330_v17, %v1558_v28  ;;  %v7622_v2 = vld [vmem:[%s11062_s3 + $0x78] sm:$0xff] }
 0x2e8   :  { %v1377_v35 = vadd.f32 %v11331_v13, %v1191_v49  ;;  %v1378_v11 = vadd.f32 %v7299_v23, %v1192_v51  ;;  %v1827_v39 = vadd.f32 %v1826_v3, %v7545_v38  ;;  %11332 = vst [vmem:[#allocation53_spill] sm:$0xff] %v7622_v2  ;;  %v1559_v59 = vadd.f32 %v11333_v7, %v7441_v16  ;;  %v7639_v51 = vld [vmem:[%s11062_s3 + $0x80] sm:$0xff]  ;;  %v11334_v16 = vld [vmem:[#allocation77_spill] sm:$0xff] }
 0x2e9   :  { %v7499_v54 = vpop.f32.mrf.mxu3  ;;  %v1892_v36 = vadd.f32 %v1891_v50, %v1863_v0  ;;  %v1865_v58 = vmul.f32 %v7594_v56, %v7594_v56  ;;  %v7631_v49 = vmul.f32 %v1772_v61, %v7607_v44  ;;  %v1774_v23 = vadd.f32 %v7306_v10, %v1743_v8  ;;  %v11335_v0 = vld [vmem:[#allocation75_spill] sm:$0xff]  ;;  %v11337_v7 = vld [vmem:[#allocation37_spill] sm:$0xff] }
 0x2ea   :  { %v7583_v40 = vpop.f32.mrf.mxu2  ;;  %v1193_v3 = vadd.f32 %v7371_v22, %v1007_v6  ;;  %v1828_v28 = vadd.f32 %v1827_v39, %v7576_v24  ;;  %v1560_v50 = vadd.f32 %v11334_v16, %v7479_v60  ;;  %v1745_v17 = vadd.f32 %v11335_v0, %v1559_v59  ;;  %v11336_v39 = vld [vmem:[#allocation36_spill] sm:$0xff]  ;;  %v1160_v60 = vpop.f32.mrf.mxu1  ;;  %v7659_v59 = vld [vmem:[%s11062_s3 + $0x88] sm:$0xff]  ;;  %v11341_v16 = vld [vmem:[#allocation78_spill] sm:$0xff] }
 0x2eb   :  { %v1893_v61 = vadd.f32 %v1892_v36, %v1864_v53  ;;  %v1866_v8 = vmul.f32 %v7612_v15, %v7612_v15  ;;  %v7649_v22 = vmul.f32 %v1773_v27, %v7622_v2  ;;  %v1775_v6 = vadd.f32 %v7306_v10, %v1744_v5  ;;  %v11340_v36 = vld [vmem:[#allocation80_spill] sm:$0xff] }
 0x2ec   :  { %v1008_v44 = vadd.f32 %v11337_v7, %v11336_v39  ;;  %v1009_v18 = vadd.f32 %v11339_v62, %v11338_v26  ;;  %v1561_v53 = vadd.f32 %v11340_v36, %v7518_v19  ;;  %v1746_v27 = vadd.f32 %v11341_v16, %v1560_v50  ;;  %v11343_v19 = vld [vmem:[#allocation82_spill] sm:$0xff] }
 0x2ed   :  { %v1829_v0 = vadd.f32 %v1828_v28, %v7594_v56  ;;  %v1894_v5 = vadd.f32 %v1893_v61, %v1865_v58  ;;  %v1867_v39 = vmul.f32 %v7631_v49, %v7631_v49  ;;  %v7668_v7 = vmul.f32 %v1774_v23, %v7639_v51 }
 0x2ee   :  { %v1379_v62 = vadd.f32 %v7391_v33, %v1193_v3  ;;  %v1776_v2 = vadd.f32 %v7306_v10, %v1745_v17  ;;  %v1562_v48 = vadd.f32 %v11342_v63, %v7555_v55  ;;  %v1747_v36 = vadd.f32 %v11343_v19, %v1561_v53  ;;  %v7684_v33 = vld [vmem:[%s11062_s3 + $0x90] sm:$0xff] }
 0x2ef   :  { %v7552_v12 = vpop.f32.mrf.mxu0  ;;  %v1830_v50 = vadd.f32 %v1829_v0, %v7612_v15  ;;  %v1895_v28 = vadd.f32 %v1894_v5, %v1866_v8  ;;  %v1868_v58 = vmul.f32 %v7649_v22, %v7649_v22  ;;  %v7679_v61 = vmul.f32 %v1775_v6, %v7659_v59  ;;  %v7697_v0 = vld [vmem:[%s11062_s3 + $0x98] sm:$0xff] }
 0x2f0   :  { %v1194_v23 = vadd.f32 %v7467_v25, %v1008_v44  ;;  %v1777_v63 = vadd.f32 %v7306_v10, %v1746_v27  ;;  %v1563_v55 = vadd.f32 %v7332_v41, %v1377_v35  ;;  %v1748_v3 = vadd.f32 %v7315_v45, %v1562_v48  ;;  %v11345_v44 = vld [vmem:[#allocation41_spill] sm:$0xff] }
 0x2f1   :  { %v7573_v52 = vpop.f32.mrf.mxu3  ;;  %v1195_v8 = vadd.f32 %v7563_v37, %v1009_v18  ;;  %v1831_v53 = vadd.f32 %v1830_v50, %v7631_v49  ;;  %v1896_v6 = vadd.f32 %v1895_v28, %v1867_v39  ;;  %v1869_v16 = vmul.f32 %v7668_v7, %v7668_v7  ;;  %v11344_v37 = vld [vmem:[#allocation40_spill] sm:$0xff] }
 0x2f2   :  { %v1346_v26 = vpop.f32.mrf.mxu2  ;;  %v7700_v25 = vmul.f32 %v1776_v2, %v7684_v33  ;;  %v1778_v41 = vadd.f32 %v7306_v10, %v1747_v36  ;;  %v1564_v45 = vadd.f32 %v7420_v29, %v1378_v11  ;;  %v1749_v48 = vadd.f32 %v7396_v42, %v1563_v55  ;;  %v7713_v2 = vld [vmem:[%s11062_s3 + $0xa0] sm:$0xff]  ;;  %v7727_v55 = vld [vmem:[%s11062_s3 + $0xa8] sm:$0xff] }
 0x2f3   :  { %v1010_v35 = vadd.f32 %v11345_v44, %v11344_v37  ;;  %v1832_v27 = vadd.f32 %v1831_v53, %v7649_v22  ;;  %v1897_v5 = vadd.f32 %v1896_v6, %v1868_v58  ;;  %v1870_v39 = vmul.f32 %v7679_v61, %v7679_v61  ;;  %v7742_v6 = vld [vmem:[%s11062_s3 + $0xb0] sm:$0xff] }
 0x2f4   :  { %v7716_v19 = vmul.f32 %v1777_v63, %v7697_v0  ;;  %v1779_v42 = vadd.f32 %v7306_v10, %v1748_v3  ;;  %v1565_v29 = vadd.f32 %v7499_v54, %v1379_v62  ;;  %v1750_v11 = vadd.f32 %v7476_v14, %v1564_v45  ;;  %v1163_v63 = vpop.f32.mrf.mxu1  ;;  %v11346_v62 = vld [vmem:[#allocation42_spill] sm:$0xff] }
 0x2f5   :  { %v1380_v36 = vadd.f32 %v7491_v30, %v1194_v23  ;;  %v1381_v50 = vadd.f32 %v7583_v40, %v1195_v8  ;;  %v1833_v28 = vadd.f32 %v1832_v27, %v7668_v7  ;;  %v1898_v58 = vadd.f32 %v1897_v5, %v1869_v16  ;;  %v11347_v23 = vld [vmem:[#allocation43_spill] sm:$0xff]  ;;  %v7755_v27 = vld [vmem:[%s11062_s3 + $0xb8] sm:$0xff] }
 0x2f6   :  { %v1871_v3 = vmul.f32 %v7700_v25, %v7700_v25  ;;  %v7732_v54 = vmul.f32 %v1778_v41, %v7713_v2  ;;  %v1780_v14 = vadd.f32 %v7306_v10, %v1749_v48  ;;  %v1751_v30 = vadd.f32 %v7552_v12, %v1565_v29 }
 0x2f7   :  { %v7626_v34 = vpop.f32.mrf.mxu0  ;;  %v1196_v40 = vadd.f32 %v1160_v60, %v1010_v35  ;;  %v1011_v8 = vadd.f32 %v11347_v23, %v11346_v62  ;;  %v1834_v53 = vadd.f32 %v1833_v28, %v7679_v61  ;;  %v1566_v16 = vadd.f32 %v7573_v52, %v1380_v36 }
 0x2f8   :  { %v1899_v41 = vadd.f32 %v1898_v58, %v1870_v39  ;;  %v1872_v48 = vmul.f32 %v7716_v19, %v7716_v19  ;;  %v7748_v12 = vmul.f32 %v1779_v42, %v7727_v55  ;;  %v1781_v60 = vadd.f32 %v7306_v10, %v1750_v11  ;;  %v7769_v58 = vld [vmem:[%s11062_s3 + $0xc0] sm:$0xff] }
 0x2f9   :  { %v7644_v13 = vpop.f32.mrf.mxu3  ;;  %v1382_v44 = vadd.f32 %v1346_v26, %v1196_v40  ;;  %v1835_v35 = vadd.f32 %v1834_v53, %v7700_v25  ;;  %v1752_v5 = vadd.f32 %v7626_v34, %v1566_v16  ;;  %v1873_v42 = vmul.f32 %v7732_v54, %v7732_v54  ;;  %v11348_v53 = vld [vmem:[#allocation9_spill] sm:$0xff]  ;;  %v11349_v16 = vld [vmem:[#allocation44_spill] sm:$0xff] }
 0x2fa   :  { %v1349_v45 = vpop.f32.mrf.mxu2  ;;  %v1567_v52 = vadd.f32 %v7644_v13, %v1381_v50  ;;  %v1900_v39 = vadd.f32 %v1899_v41, %v1871_v3  ;;  %v7762_v29 = vmul.f32 %v1780_v14, %v7742_v6  ;;  %v1782_v26 = vadd.f32 %v7306_v10, %v1751_v30 }
 0x2fb   :  { %v1197_v36 = vadd.f32 %v1163_v63, %v1011_v8  ;;  %v1836_v28 = vadd.f32 %v1835_v35, %v7716_v19  ;;  %v1874_v3 = vmul.f32 %v7748_v12, %v7748_v12  ;;  %v7774_v14 = vmul.f32 %v1781_v60, %v7755_v27 }
 0x2fc   :  { %v1901_v50 = vadd.f32 %v1900_v39, %v1872_v48  ;;  %v1783_v63 = vadd.f32 %v7306_v10, %v1752_v5  ;;  %v1875_v8 = vmul.f32 %v7762_v29, %v7762_v29 }
 0x2fd   :  { %v1383_v40 = vadd.f32 %v1349_v45, %v1197_v36  ;;  %v1837_v30 = vadd.f32 %v1836_v28, %v7732_v54  ;;  %v1012_v45 = vadd.f32 %v11349_v16, %v11348_v53  ;;  %v1876_v35 = vmul.f32 %v7774_v14, %v7774_v14 }
 0x2fe   :  { %v1902_v23 = vadd.f32 %v1901_v50, %v1873_v42 }
 0x2ff   :  { %v1715_v17 = vpop.f32.mrf.mxu0  ;;  %v1838_v41 = vadd.f32 %v1837_v30, %v7748_v12 }
 0x300   :  { %v1753_v34 = vadd.f32 %v1715_v17, %v1567_v52  ;;  %v7786_v17 = vld [vmem:[%s11062_s3 + $0xc8] sm:$0xff]  ;;  %v7797_v52 = vld [vmem:[%s11062_s3 + $0xd0] sm:$0xff] }
 0x301   :  { %v1532_v18 = vpop.f32.mrf.mxu3  ;;  %11350 = vst [vmem:[#allocation58_spill] sm:$0xff] %v7797_v52  ;;  %v1839_v39 = vadd.f32 %v1838_v41, %v7762_v29  ;;  %v7801_v42 = vmul.f32 %v1783_v63, %v7786_v17 }
 0x302   :  { %v1568_v13 = vadd.f32 %v1532_v18, %v1382_v44  ;;  %v7781_v18 = vmul.f32 %v1782_v26, %v7769_v58  ;;  %v1784_v48 = vadd.f32 %v7306_v10, %v1753_v34  ;;  %v1903_v44 = vadd.f32 %v1902_v23, %v1874_v3  ;;  %v7809_v34 = vld [vmem:[%s11062_s3 + $0xd8] sm:$0xff]  ;;  %v7819_v23 = vld [vmem:[%s11062_s3 + $0xe0] sm:$0xff] }
 0x303   :  { %11351 = vst [vmem:[#allocation45_spill] sm:$0xff] %v7809_v34  ;;  %v1840_v3 = vadd.f32 %v1839_v39, %v7774_v14  ;;  %v1878_v16 = vmul.f32 %v7801_v42, %v7801_v42 }
 0x304   :  { %v1904_v28 = vadd.f32 %v1903_v44, %v1875_v8  ;;  %11352 = vst [vmem:[#allocation14_spill] sm:$0xff] %v7819_v23 }
 0x305   :  { %v1841_v53 = vadd.f32 %v1840_v3, %v7781_v18 }
 0x306   :  { %v1905_v63 = vadd.f32 %v1904_v28, %v1876_v35 }
 0x307   :  { %v1718_v37 = vpop.f32.mrf.mxu0 }
 0x308   :  { %v1754_v62 = vadd.f32 %v1718_v37, %v1568_v13  ;;  %v1166_v37 = vpop.f32.mrf.mxu1  ;;  %v1877_v13 = vmul.f32 %v7781_v18, %v7781_v18 }
 0x309   :  { %v1535_v11 = vpop.f32.mrf.mxu3  ;;  %v1198_v50 = vadd.f32 %v1166_v37, %v1012_v45 }
 0x30a   :  { %v1569_v60 = vadd.f32 %v1535_v11, %v1383_v40  ;;  %v1785_v26 = vadd.f32 %v7306_v10, %v1754_v62  ;;  %v1352_v11 = vpop.f32.mrf.mxu2  ;;  %v7813_v40 = vmul.f32 %v1784_v48, %v7797_v52  ;;  %v1906_v41 = vadd.f32 %v1905_v63, %v1877_v13 }
 0x30b   :  { %v1384_v8 = vadd.f32 %v1352_v11, %v1198_v50  ;;  %v1842_v48 = vadd.f32 %v1841_v53, %v7801_v42 }
 0x30c   :  { %v7825_v45 = vmul.f32 %v1785_v26, %v7809_v34  ;;  %v7839_v26 = vld [vmem:[%s11062_s3 + $0xe8] sm:$0xff] }
 0x30d   :  { %v1843_v39 = vadd.f32 %v1842_v48, %v7813_v40 }
 0x30f   :  { %v1721_v5 = vpop.f32.mrf.mxu0  ;;  %v1844_v13 = vadd.f32 %v1843_v39, %v7825_v45 }
 0x310   :  { %v1755_v36 = vadd.f32 %v1721_v5, %v1569_v60  ;;  %v1879_v60 = vmul.f32 %v7813_v40, %v7813_v40  ;;  %v1907_v5 = vadd.f32 %v1906_v41, %v1878_v16 }
 0x311   :  { %v1538_v62 = vpop.f32.mrf.mxu3 }
 0x312   :  { %v1786_v30 = vadd.f32 %v7306_v10, %v1755_v36  ;;  %v1570_v37 = vadd.f32 %v1538_v62, %v1384_v8  ;;  %v1880_v36 = vmul.f32 %v7825_v45, %v7825_v45  ;;  %v1908_v28 = vadd.f32 %v1907_v5, %v1879_v60 }
 0x314   :  { %v7831_v44 = vmul.f32 %v1786_v30, %v7819_v23  ;;  %v1909_v30 = vadd.f32 %v1908_v28, %v1880_v36  ;;  %v11353_v28 = vld [vmem:[#allocation56_spill] sm:$0xff] }
 0x316   :  { %v1881_v50 = vmul.f32 %v7831_v44, %v7831_v44  ;;  %v1845_v63 = vadd.f32 %v1844_v13, %v7831_v44 }
 0x317   :  { %v1724_v35 = vpop.f32.mrf.mxu0 }
 0x318   :  { %v1756_v11 = vadd.f32 %v1724_v35, %v1570_v37  ;;  %v1910_v8 = vadd.f32 %v1909_v30, %v1881_v50 }
 0x31a   :  { %v1787_v3 = vadd.f32 %v7306_v10, %v1756_v11  ;;  %v6244_v10 = vld [vmem:[%s11059_s1 + $0x48] sm:$0xff] }
 0x31b   :  { %2373 = vmatpush.msra.mxu2 %v6244_v10 }
 0x31c   :  { %v1817_v62 = vmul.f32 %v1787_v3, %v7839_v26  ;;  %2374 = vmatmul.f32.vlgmr.msra.gmra.mxu2 %v11353_v28 }
 0x31e   :  { %v1846_v53 = vadd.f32 %v1845_v63, %v1817_v62  ;;  %v1882_v16 = vmul.f32 %v1817_v62, %v1817_v62 }
 0x320   :  { %v1847_v41 = vrot.slane %v1846_v53, 4  ;;  %v1911_v48 = vadd.f32 %v1910_v8, %v1882_v16  ;;  %v6248_v16 = vld [vmem:[%s11059_s1 + $0x68] sm:$0xff] }
 0x321   :  { %2901 = vmatpush.msrb.mxu1 %v6248_v16 }
 0x322   :  { %v1848_v37 = vadd.f32 %v1847_v41, %v1846_v53  ;;  %v1912_v35 = vrot.slane %v1911_v48, 4  ;;  %v2468_v53 = vld [vmem:[#allocation2 + $0x2] sm:$0xff] }
 0x324   :  { %v1849_v60 = vrot.slane %v1848_v37, 2  ;;  %v1913_v5 = vadd.f32 %v1912_v35, %v1911_v48  ;;  %2377 = vmatmul.f32.gmra.mxu2 %v11353_v28 }
 0x326   :  { %v1850_v39 = vadd.f32 %v1849_v60, %v1848_v37  ;;  %v1914_v23 = vrot.slane %v1913_v5, 2 }
 0x328   :  { %v1851_v34 = vrot.slane %v1850_v39, 1  ;;  %v1915_v52 = vadd.f32 %v1914_v23, %v1913_v5  ;;  %v6246_v23 = vld [vmem:[%s11059_s1 + $0x58] sm:$0xff] }
 0x329   :  { %2529 = vmatpush.msrb.mxu3 %v6246_v23 }
 0x32a   :  { %v1852_v36 = vadd.f32 %v1851_v34, %v1850_v39  ;;  %v1916_v11 = vrot.slane %v1915_v52, 1  ;;  %2530 = vmatmul.f32.vlgmr.msrb.gmra.mxu3 %v2468_v53  ;;  %v6247_v34 = vld [vmem:[%s11059_s1 + $0x60] sm:$0xff] }
 0x32b   :  { %2715 = vmatpush.msrb.mxu0 %v6247_v34 }
 0x32c   :  { %v1917_v13 = vadd.f32 %v1916_v11, %v1915_v52  ;;  %v1918_v50 = vmul.f32 0.0064102565, %v1852_v36  ;;  %v2205_v52 = vld [vmem:[#allocation2 + $0x1] sm:$0xff] }
 0x32d   :  { %2267 = vmatmul.f32.vlgmr.msra.gmra.mxu1 %v2205_v52 }
 0x32e   :  { %v1919_v3 = vmul.f32 0.0064102565, %v1917_v13  ;;  %v1920_v30 = vmul.f32 %v1918_v50, %v1918_v50 }
 0x330   :  { %v1921_v63 = vsub.f32 %v1919_v3, %v1920_v30 }
 0x332   :  { %v1922_v8 = vadd.f32 1e-05, %v1921_v63 }
 0x334   :  { %6267 = vrsqrt.f32 %v1922_v8  ;;  %vm1929_vm1 = vweird.f32 %v1922_v8 }
 0x33a   :  { %v6268_v41 = vpop.eup %6267 }
 0x33b   :  { %v1924_v48 = vmul.f32 %v6268_v41, %v1922_v8  ;;  %vm1930_vm0 = vweird.f32 %v6268_v41 }
 0x33c   :  { %vm1931_vm2 = vmor %vm1929_vm1, %vm1930_vm0 }
 0x33d   :  { %v1925_v37 = vmul.f32 %v6268_v41, %v1924_v48 }
 0x33f   :  { %v1926_v35 = vmul.f32 0.5, %v1925_v37 }
 0x341   :  { %v1927_v60 = vsub.f32 1.5, %v1926_v35 }
 0x343   :  { %v1928_v5 = vmul.f32 %v6268_v41, %v1927_v60 }
 0x345   :  { %v1932_v39 = vsel %vm1931_vm2, %v6268_v41, %v1928_v5 }
 0x346   :  { %v1933_v10 = vmul.f32 %v1932_v39, %v7287_v21  ;;  %v11354_v39 = vld [vmem:[#allocation5_spill] sm:$0xff] }
 0x348   :  { %v1934_v36 = vmul.f32 %v1933_v10, %v1918_v50  ;;  %v7862_v11 = vperm.slane %v1933_v10, 1 }
 0x34a   :  { %v1936_v28 = vrot.slane %v1934_v36, 7  ;;  %v1969_v13 = vmul.f32 %v7862_v11, %v1817_v62  ;;  %v1940_v3 = vmul.f32 %v7862_v11, %v7385_v57  ;;  %v1941_v30 = vmul.f32 %v7862_v11, %v7364_v4 }
 0x34b   :  { %v1942_v63 = vmul.f32 %v7862_v11, %v7388_v31  ;;  %v1943_v8 = vmul.f32 %v7862_v11, %v7407_v46  ;;  %v1944_v50 = vmul.f32 %v7862_v11, %v7435_v43  ;;  %v1945_v23 = vmul.f32 %v7862_v11, %v7453_v47 }
 0x34c   :  { %v1938_v62 = vsub.f32 %v7287_v21, %v1936_v28  ;;  %v1946_v57 = vmul.f32 %v7862_v11, %v7472_v32  ;;  %v1947_v4 = vmul.f32 %v7862_v11, %v7496_v9  ;;  %v1948_v31 = vmul.f32 %v7862_v11, %v7514_v20 }
 0x34d   :  { %v1949_v46 = vmul.f32 %v7862_v11, %v7533_v1  ;;  %v1950_v43 = vmul.f32 %v7862_v11, %v7545_v38  ;;  %v7890_v47 = vmul.f32 %v7862_v11, %v7576_v24  ;;  %v7894_v21 = vmul.f32 %v7862_v11, %v7594_v56 }
 0x34e   :  { %v7896_v32 = vperm.slane %v1938_v62, 2  ;;  %v7900_v9 = vmul.f32 %v7862_v11, %v7612_v15  ;;  %v7904_v20 = vmul.f32 %v7862_v11, %v7631_v49  ;;  %v7908_v1 = vmul.f32 %v7862_v11, %v7649_v22 }
 0x34f   :  { %v7912_v38 = vmul.f32 %v7862_v11, %v7668_v7  ;;  %v7916_v24 = vmul.f32 %v7862_v11, %v7679_v61  ;;  %v7920_v56 = vmul.f32 %v7862_v11, %v7700_v25  ;;  %v7924_v15 = vmul.f32 %v7862_v11, %v7716_v19 }
 0x350   :  { %v2000_v49 = vadd.f32 %v7896_v32, %v1969_v13  ;;  %v1971_v22 = vadd.f32 %v7896_v32, %v1940_v3  ;;  %v1972_v53 = vadd.f32 %v7896_v32, %v1941_v30  ;;  %v1973_v7 = vadd.f32 %v7896_v32, %v1942_v63  ;;  %v11355_v13 = vld [vmem:[#allocation6_spill] sm:$0xff] }
 0x351   :  { %v1974_v34 = vadd.f32 %v7896_v32, %v1943_v8  ;;  %v1975_v61 = vadd.f32 %v7896_v32, %v1944_v50  ;;  %v1976_v52 = vadd.f32 %v7896_v32, %v1945_v23  ;;  %v1977_v25 = vadd.f32 %v7896_v32, %v1946_v57  ;;  %v11356_v30 = vld [vmem:[#allocation10_spill] sm:$0xff]  ;;  %v11357_v50 = vld [vmem:[#allocation12_spill] sm:$0xff] }
 0x352   :  { %vm2030_vm3 = vcmp.gt.f32.partialorder %v2000_v49, 0.0  ;;  %v2060_v16 = vmul.f32 0.01, %v2000_v49  ;;  %vm2001_vm4 = vcmp.gt.f32.partialorder %v1971_v22, 0.0  ;;  %v2031_v19 = vmul.f32 0.01, %v1971_v22 }
 0x353   :  { %vm2002_vm5 = vcmp.gt.f32.partialorder %v1972_v53, 0.0  ;;  %v2032_v41 = vmul.f32 0.01, %v1972_v53  ;;  %vm2003_vm6 = vcmp.gt.f32.partialorder %v1973_v7, 0.0  ;;  %v2033_v48 = vmul.f32 0.01, %v1973_v7 }
 0x354   :  { %v2090_v37 = vsel %vm2030_vm3, %v2000_v49, %v2060_v16  ;;  %v2061_v35 = vsel %vm2001_vm4, %v1971_v22, %v2031_v19  ;;  %vm2004_vm7 = vcmp.gt.f32.partialorder %v1974_v34, 0.0  ;;  %v2034_v60 = vmul.f32 0.01, %v1974_v34  ;;  %v11358_v19 = vld [vmem:[#allocation13_spill] sm:$0xff] }
 0x355   :  { %v2120_v5 = vmul.f32 %v2090_v37, %v7839_v26  ;;  %v2091_v10 = vmul.f32 %v2061_v35, %v11354_v39  ;;  %v2062_v36 = vsel %vm2002_vm5, %v1972_v53, %v2032_v41  ;;  %v2063_v28 = vsel %vm2003_vm6, %v1973_v7, %v2033_v48  ;;  %v11359_v48 = vld [vmem:[#allocation15_spill] sm:$0xff] }
 0x356   :  { %v2092_v3 = vmul.f32 %v2062_v36, %v11355_v13  ;;  %v7938_v63 = vmul.f32 %v2063_v28, %v11356_v30  ;;  %v2064_v8 = vsel %vm2004_vm7, %v1974_v34, %v2034_v60  ;;  %vm2005_vm8 = vcmp.gt.f32.partialorder %v1975_v61, 0.0  ;;  %v11362_v28 = vld [vmem:[#allocation19_spill] sm:$0xff] }
 0x357   :  { %2150 = vst [vmem:[#allocation2 + $0xf8] sm:$0xff] %v2120_v5  ;;  %2380 = vmatmul.f32.gmra.mxu2 %v2091_v10  ;;  %v7941_v23 = vmul.f32 %v2064_v8, %v11357_v50  ;;  %v2035_v62 = vmul.f32 0.01, %v1975_v61  ;;  %vm2006_vm9 = vcmp.gt.f32.partialorder %v1976_v52, 0.0  ;;  %v2036_v57 = vmul.f32 0.01, %v1976_v52 }
 0x358   :  { %2121 = vst [vmem:[#allocation2 + $0x10] sm:$0xff] %v2091_v10  ;;  %vm2007_vm10 = vcmp.gt.f32.partialorder %v1977_v25, 0.0  ;;  %v2037_v26 = vmul.f32 0.01, %v1977_v25  ;;  %v1978_v49 = vadd.f32 %v7896_v32, %v1947_v4  ;;  %v1979_v22 = vadd.f32 %v7896_v32, %v1948_v31  ;;  %v11360_v4 = vld [vmem:[#allocation16_spill] sm:$0xff]  ;;  %v11361_v10 = vld [vmem:[#allocation18_spill] sm:$0xff] }
 0x359   :  { %2122 = vst [vmem:[#allocation2 + $0x18] sm:$0xff] %v2092_v3  ;;  %v2065_v53 = vsel %vm2005_vm8, %v1975_v61, %v2035_v62  ;;  %v2066_v7 = vsel %vm2006_vm9, %v1976_v52, %v2036_v57  ;;  %v1980_v34 = vadd.f32 %v7896_v32, %v1949_v46  ;;  %v1981_v16 = vadd.f32 %v7896_v32, %v1950_v43  ;;  %v11363_v62 = vld [vmem:[#allocation21_spill] sm:$0xff] }
 0x35a   :  { %2123 = vst [vmem:[#allocation2 + $0x20] sm:$0xff] %v7938_v63  ;;  %v7949_v41 = vmul.f32 %v2065_v53, %v11358_v19  ;;  %v7952_v37 = vmul.f32 %v2066_v7, %v11359_v48  ;;  %v2067_v35 = vsel %vm2007_vm10, %v1977_v25, %v2037_v26  ;;  %vm2008_vm11 = vcmp.gt.f32.partialorder %v1978_v49, 0.0  ;;  %v11365_v19 = vld [vmem:[#allocation23_spill] sm:$0xff] }
 0x35b   :  { %2124 = vst [vmem:[#allocation2 + $0x28] sm:$0xff] %v7941_v23  ;;  %v7956_v31 = vmul.f32 %v2067_v35, %v11360_v4  ;;  %v2038_v61 = vmul.f32 0.01, %v1978_v49  ;;  %vm2009_vm12 = vcmp.gt.f32.partialorder %v1979_v22, 0.0  ;;  %v2039_v46 = vmul.f32 0.01, %v1979_v22 }
 0x35c   :  { %2125 = vst [vmem:[#allocation2 + $0x30] sm:$0xff] %v7949_v41  ;;  %vm2010_vm13 = vcmp.gt.f32.partialorder %v1980_v34, 0.0  ;;  %v2040_v43 = vmul.f32 0.01, %v1980_v34  ;;  %vm2011_vm14 = vcmp.gt.f32.partialorder %v1981_v16, 0.0  ;;  %v1982_v52 = vadd.f32 %v7896_v32, %v7890_v47  ;;  %v11366_v4 = vld [vmem:[#allocation8_spill] sm:$0xff] }
 0x35d   :  { %2126 = vst [vmem:[#allocation2 + $0x38] sm:$0xff] %v7952_v37  ;;  %v2068_v25 = vsel %vm2008_vm11, %v1978_v49, %v2038_v61  ;;  %v2069_v60 = vsel %vm2009_vm12, %v1979_v22, %v2039_v46  ;;  %v2041_v5 = vmul.f32 0.01, %v1981_v16  ;;  %v1983_v39 = vadd.f32 %v7896_v32, %v7894_v21  ;;  %v11364_v49 = vld [vmem:[#allocation22_spill] sm:$0xff] }
 0x35e   :  { %2127 = vst [vmem:[#allocation2 + $0x40] sm:$0xff] %v7956_v31  ;;  %v7966_v36 = vmul.f32 %v2068_v25, %v11361_v10  ;;  %v7969_v13 = vmul.f32 %v2069_v60, %v11362_v28  ;;  %v2070_v30 = vsel %vm2010_vm13, %v1980_v34, %v2040_v43  ;;  %vm2012_vm15 = vcmp.gt.f32.partialorder %v1982_v52, 0.0  ;;  %v11367_v60 = vld [vmem:[#allocation11_spill] sm:$0xff] }
 0x35f   :  { %v2206_v8 = vld [vmem:[#allocation2 + $0x9] sm:$0xff]  ;;  %2383 = vmatmul.f32.gmra.mxu2 %v2092_v3  ;;  %v7972_v57 = vmul.f32 %v2070_v30, %v11363_v62  ;;  %v2071_v26 = vsel %vm2011_vm14, %v1981_v16, %v2041_v5  ;;  %v2042_v21 = vmul.f32 0.01, %v1982_v52  ;;  %vm2013_vm0 = vcmp.gt.f32.partialorder %v1983_v39, 0.0 }
 0x360   :  { %v2469_v47 = vld [vmem:[#allocation2 + $0xa] sm:$0xff]  ;;  %2270 = vmatmul.f32.gmra.mxu1 %v2206_v8  ;;  %2128 = vst [vmem:[#allocation2 + $0x48] sm:$0xff] %v7966_v36  ;;  %v7977_v22 = vmul.f32 %v2071_v26, %v11364_v49  ;;  %v2043_v53 = vmul.f32 0.01, %v1983_v39  ;;  %v1984_v7 = vadd.f32 %v7896_v32, %v7900_v9  ;;  %v1985_v34 = vadd.f32 %v7896_v32, %v7904_v20  ;;  %v2470_v28 = vld [vmem:[#allocation2 + $0x12] sm:$0xff]  ;;  %v11368_v8 = vld [vmem:[#allocation50_spill] sm:$0xff] }
 0x361   :  { %v2654_v50 = vld [vmem:[#allocation2 + $0xf] sm:$0xff]  ;;  %2533 = vmatmul.f32.gmra.mxu3 %v2469_v47  ;;  %2129 = vst [vmem:[#allocation2 + $0x50] sm:$0xff] %v7969_v13  ;;  %v2072_v3 = vsel %vm2012_vm15, %v1982_v52, %v2042_v21  ;;  %v1986_v16 = vadd.f32 %v7896_v32, %v7908_v1  ;;  %v1987_v9 = vadd.f32 %v7896_v32, %v7912_v38 }
 0x362   :  { %2716 = vmatmul.f32.vlgmr.msrb.gmra.mxu0 %v2654_v50  ;;  %2130 = vst [vmem:[#allocation2 + $0x58] sm:$0xff] %v7972_v57  ;;  %v7989_v48 = vmul.f32 %v2072_v3, %v11365_v19  ;;  %v2073_v35 = vsel %vm2013_vm0, %v1983_v39, %v2043_v53  ;;  %vm2014_vm1 = vcmp.gt.f32.partialorder %v1984_v7, 0.0  ;;  %v2044_v46 = vmul.f32 0.01, %v1984_v7 }
 0x363   :  { %2131 = vst [vmem:[#allocation2 + $0x60] sm:$0xff] %v7977_v22  ;;  %v7995_v61 = vmul.f32 %v2073_v35, %v11366_v4  ;;  %v1988_v20 = vadd.f32 %v7896_v32, %v7916_v24  ;;  %v1989_v1 = vadd.f32 %v7896_v32, %v7920_v56  ;;  %vm2015_vm2 = vcmp.gt.f32.partialorder %v1985_v34, 0.0 }
 0x364   :  { %2132 = vst [vmem:[#allocation2 + $0x68] sm:$0xff] %v7989_v48  ;;  %vm2016_vm3 = vcmp.gt.f32.partialorder %v1986_v16, 0.0  ;;  %v1990_v43 = vadd.f32 %v7896_v32, %v7924_v15  ;;  %v1960_v38 = vmul.f32 %v7862_v11, %v7732_v54  ;;  %v2074_v52 = vsel %vm2014_vm1, %v1984_v7, %v2044_v46  ;;  %v8014_v15 = vld [vmem:[#allocation2 + $0x11] sm:$0xff] }
 0x365   :  { %2133 = vst [vmem:[#allocation2 + $0x70] sm:$0xff] %v7995_v61  ;;  %v2045_v25 = vmul.f32 0.01, %v1985_v34  ;;  %v1961_v24 = vmul.f32 %v7862_v11, %v7748_v12  ;;  %v1962_v56 = vmul.f32 %v7862_v11, %v7762_v29  ;;  %v8012_v5 = vmul.f32 %v2074_v52, %v11367_v60  ;;  %v2655_v29 = vld [vmem:[#allocation2 + $0x17] sm:$0xff] }
 0x366   :  { %v2046_v39 = vmul.f32 0.01, %v1986_v16  ;;  %vm2017_vm4 = vcmp.gt.f32.partialorder %v1987_v9, 0.0  ;;  %v2047_v10 = vmul.f32 0.01, %v1987_v9  ;;  %vm2018_vm5 = vcmp.gt.f32.partialorder %v1988_v20, 0.0 }
 0x367   :  { %2386 = vmatmul.f32.gmra.mxu2 %v7938_v63  ;;  %v2075_v54 = vsel %vm2015_vm2, %v1985_v34, %v2045_v25  ;;  %v2048_v30 = vmul.f32 0.01, %v1988_v20  ;;  %v1991_v12 = vadd.f32 %v7896_v32, %v1960_v38  ;;  %2134 = vst [vmem:[#allocation2 + $0x78] sm:$0xff] %v8012_v5  ;;  %v11369_v63 = vld [vmem:[#allocation53_spill] sm:$0xff]  ;;  %vm2019_vm6 = vcmp.gt.f32.partialorder %v1989_v1, 0.0 }
 0x368   :  { %2273 = vmatmul.f32.gmra.mxu1 %v8014_v15  ;;  %v8022_v47 = vmul.f32 %v2075_v54, %v11368_v8  ;;  %v2076_v50 = vsel %vm2016_vm3, %v1986_v16, %v2046_v39  ;;  %v2077_v62 = vsel %vm2017_vm4, %v1987_v9, %v2047_v10  ;;  %v2049_v7 = vmul.f32 0.01, %v1989_v1  ;;  %v8052_v38 = vld [vmem:[#allocation2 + $0x19] sm:$0xff]  ;;  %v2472_v8 = vld [vmem:[#allocation2 + $0x22] sm:$0xff] }
 0x369   :  { %2536 = vmatmul.f32.gmra.mxu3 %v2470_v28  ;;  %v8026_v26 = vmul.f32 %v2076_v50, %v11369_v63  ;;  %v8029_v21 = vmul.f32 %v2077_v62, %v7639_v51  ;;  %v2078_v49 = vsel %vm2018_vm5, %v1988_v20, %v2048_v30  ;;  %v1992_v3 = vadd.f32 %v7896_v32, %v1961_v24  ;;  %v2471_v52 = vld [vmem:[#allocation2 + $0x1a] sm:$0xff]  ;;  %v2657_v63 = vld [vmem:[#allocation2 + $0x27] sm:$0xff] }
 0x36a   :  { %2719 = vmatmul.f32.gmra.mxu0 %v2655_v29  ;;  %2135 = vst [vmem:[#allocation2 + $0x80] sm:$0xff] %v8022_v47  ;;  %v8033_v53 = vmul.f32 %v2078_v49, %v7659_v59  ;;  %v1993_v34 = vadd.f32 %v7896_v32, %v1962_v56  ;;  %vm2020_vm7 = vcmp.gt.f32.partialorder %v1990_v43, 0.0  ;;  %vm2021_vm8 = vcmp.gt.f32.partialorder %v1991_v12, 0.0 }
 0x36b   :  { %2136 = vst [vmem:[#allocation2 + $0x88] sm:$0xff] %v8026_v26  ;;  %v1963_v51 = vmul.f32 %v7862_v11, %v7774_v14  ;;  %v1964_v16 = vmul.f32 %v7862_v11, %v7781_v18  ;;  %v2079_v19 = vsel %vm2019_vm6, %v1989_v1, %v2049_v7  ;;  %v2050_v59 = vmul.f32 0.01, %v1990_v43  ;;  %v11370_v7 = vld [vmem:[#allocation58_spill] sm:$0xff] }
 0x36c   :  { %2137 = vst [vmem:[#allocation2 + $0x90] sm:$0xff] %v8029_v21  ;;  %v1965_v35 = vmul.f32 %v7862_v11, %v7801_v42  ;;  %v1966_v9 = vmul.f32 %v7862_v11, %v7813_v40  ;;  %v8049_v4 = vmul.f32 %v2079_v19, %v7684_v33  ;;  %v2051_v46 = vmul.f32 0.01, %v1991_v12 }
 0x36d   :  { %2138 = vst [vmem:[#allocation2 + $0x98] sm:$0xff] %v8033_v53  ;;  %vm2022_vm9 = vcmp.gt.f32.partialorder %v1992_v3, 0.0  ;;  %v2052_v14 = vmul.f32 0.01, %v1992_v3  ;;  %v2080_v20 = vsel %vm2020_vm7, %v1990_v43, %v2050_v59  ;;  %vm2023_vm10 = vcmp.gt.f32.partialorder %v1993_v34, 0.0  ;;  %v2656_v43 = vld [vmem:[#allocation2 + $0x1f] sm:$0xff] }
 0x36e   :  { %v2053_v18 = vmul.f32 0.01, %v1993_v34  ;;  %v1994_v1 = vadd.f32 %v7896_v32, %v1963_v51  ;;  %2139 = vst [vmem:[#allocation2 + $0xa0] sm:$0xff] %v8049_v4  ;;  %v8057_v42 = vmul.f32 %v2080_v20, %v7697_v0  ;;  %v2081_v33 = vsel %vm2021_vm8, %v1991_v12, %v2051_v46  ;;  %v8111_v59 = vld [vmem:[#allocation2 + $0x29] sm:$0xff]  ;;  %v8115_v46 = vld [vmem:[#allocation2 + $0x31] sm:$0xff] }
 0x36f   :  { %2389 = vmatmul.f32.gmra.mxu2 %v7941_v23  ;;  %v2082_v40 = vsel %vm2022_vm9, %v1992_v3, %v2052_v14  ;;  %v8062_v25 = vmul.f32 %v2081_v33, %v7713_v2  ;;  %v1995_v60 = vadd.f32 %v7896_v32, %v1964_v16  ;;  %v1996_v39 = vadd.f32 %v7896_v32, %v1965_v35  ;;  %v2473_v35 = vld [vmem:[#allocation2 + $0x2a] sm:$0xff]  ;;  %v2474_v14 = vld [vmem:[#allocation2 + $0x32] sm:$0xff]  ;;  %v2476_v33 = vld [vmem:[#allocation2 + $0x42] sm:$0xff] }
 0x370   :  { %2276 = vmatmul.f32.gmra.mxu1 %v8052_v38  ;;  %v8065_v24 = vmul.f32 %v2082_v40, %v7727_v55  ;;  %v2083_v56 = vsel %vm2023_vm10, %v1993_v34, %v2053_v18  ;;  %vm2024_vm11 = vcmp.gt.f32.partialorder %v1994_v1, 0.0  ;;  %2140 = vst [vmem:[#allocation2 + $0xa8] sm:$0xff] %v8057_v42  ;;  %v2054_v23 = vmul.f32 0.01, %v1994_v1  ;;  %v2659_v20 = vld [vmem:[#allocation2 + $0x37] sm:$0xff]  ;;  %v8127_v40 = vld [vmem:[#allocation2 + $0x49] sm:$0xff] }
 0x371   :  { %2539 = vmatmul.f32.gmra.mxu3 %v2471_v52  ;;  %v8069_v0 = vmul.f32 %v2083_v56, %v7742_v6  ;;  %2141 = vst [vmem:[#allocation2 + $0xb0] sm:$0xff] %v8062_v25  ;;  %v1997_v2 = vadd.f32 %v7896_v32, %v1966_v9  ;;  %v1967_v55 = vmul.f32 %v7862_v11, %v7825_v45  ;;  %vm2025_vm12 = vcmp.gt.f32.partialorder %v1995_v60, 0.0  ;;  %v2658_v9 = vld [vmem:[#allocation2 + $0x2f] sm:$0xff]  ;;  %v8119_v18 = vld [vmem:[#allocation2 + $0x39] sm:$0xff]  ;;  %v8123_v52 = vld [vmem:[#allocation2 + $0x41] sm:$0xff] }
 0x372   :  { %2722 = vmatmul.f32.gmra.mxu0 %v2656_v43  ;;  %v1968_v10 = vmul.f32 %v7862_v11, %v7831_v44  ;;  %2142 = vst [vmem:[#allocation2 + $0xb8] sm:$0xff] %v8065_v24  ;;  %v2084_v28 = vsel %vm2024_vm11, %v1994_v1, %v2054_v23  ;;  %vm2026_vm13 = vcmp.gt.f32.partialorder %v1996_v39, 0.0  ;;  %v2055_v54 = vmul.f32 0.01, %v1995_v60  ;;  %v8087_v11 = vld [vmem:[#allocation2 + $0x21] sm:$0xff]  ;;  %v2477_v43 = vld [vmem:[#allocation2 + $0x4a] sm:$0xff] }
 0x373   :  { %2143 = vst [vmem:[#allocation2 + $0xc0] sm:$0xff] %v8069_v0  ;;  %v8082_v6 = vmul.f32 %v2084_v28, %v7755_v27  ;;  %v1998_v30 = vadd.f32 %v7896_v32, %v1967_v55  ;;  %v2056_v29 = vmul.f32 0.01, %v1996_v39  ;;  %vm2027_vm14 = vcmp.gt.f32.partialorder %v1997_v2, 0.0  ;;  %v2475_v1 = vld [vmem:[#allocation2 + $0x3a] sm:$0xff]  ;;  %v8131_v56 = vld [vmem:[#allocation2 + $0x51] sm:$0xff] }
 0x374   :  { %v1999_v12 = vadd.f32 %v7896_v32, %v1968_v10  ;;  %v2057_v45 = vmul.f32 0.01, %v1997_v2  ;;  %v2085_v44 = vsel %vm2025_vm12, %v1995_v60, %v2055_v54  ;;  %v2478_v23 = vld [vmem:[#allocation2 + $0x52] sm:$0xff]  ;;  %v2480_v55 = vld [vmem:[#allocation2 + $0x62] sm:$0xff]  ;;  %v2481_v28 = vld [vmem:[#allocation2 + $0x6a] sm:$0xff] }
 0x375   :  { %2144 = vst [vmem:[#allocation2 + $0xc8] sm:$0xff] %v8082_v6  ;;  %vm2028_vm15 = vcmp.gt.f32.partialorder %v1998_v30, 0.0  ;;  %v8091_v27 = vmul.f32 %v2085_v44, %v7769_v58  ;;  %v2086_v50 = vsel %vm2026_vm13, %v1996_v39, %v2056_v29  ;;  %v2058_v32 = vmul.f32 0.01, %v1998_v30  ;;  %v8135_v60 = vld [vmem:[#allocation2 + $0x59] sm:$0xff]  ;;  %v8143_v10 = vld [vmem:[#allocation2 + $0x69] sm:$0xff] }
 0x376   :  { %vm2029_vm0 = vcmp.gt.f32.partialorder %v1999_v12, 0.0  ;;  %v2087_v62 = vsel %vm2027_vm14, %v1997_v2, %v2057_v45  ;;  %v8096_v49 = vmul.f32 %v2086_v50, %v7786_v17  ;;  %v2059_v34 = vmul.f32 0.01, %v1999_v12  ;;  %v11372_v17 = vld [vmem:[#allocation14_spill] sm:$0xff] }
 0x377   :  { %2392 = vmatmul.f32.gmra.mxu2 %v7949_v41  ;;  %v8099_v3 = vmul.f32 %v2087_v62, %v11370_v7  ;;  %2145 = vst [vmem:[#allocation2 + $0xd0] sm:$0xff] %v8091_v27  ;;  %v2088_v58 = vsel %vm2028_vm15, %v1998_v30, %v2058_v32  ;;  %v11371_v41 = vld [vmem:[#allocation45_spill] sm:$0xff]  ;;  %v8139_v2 = vld [vmem:[#allocation2 + $0x61] sm:$0xff] }
 0x378   :  { %2279 = vmatmul.f32.gmra.mxu1 %v8087_v11  ;;  %2146 = vst [vmem:[#allocation2 + $0xd8] sm:$0xff] %v8096_v49  ;;  %v8105_v51 = vmul.f32 %v2088_v58, %v11371_v41  ;;  %v2089_v16 = vsel %vm2029_vm0, %v1999_v12, %v2059_v34  ;;  %v2479_v39 = vld [vmem:[#allocation2 + $0x5a] sm:$0xff]  ;;  %v8149_v30 = vld [vmem:[#allocation2 + $0x71] sm:$0xff]  ;;  %v2669_v62 = vld [vmem:[#allocation2 + $0x87] sm:$0xff] }
 0x379   :  { %2542 = vmatmul.f32.gmra.mxu3 %v2472_v8  ;;  %2147 = vst [vmem:[#allocation2 + $0xe0] sm:$0xff] %v8099_v3  ;;  %v2119_v19 = vmul.f32 %v2089_v16, %v11372_v17  ;;  %v2667_v12 = vld [vmem:[#allocation2 + $0x77] sm:$0xff]  ;;  %v2668_v45 = vld [vmem:[#allocation2 + $0x7f] sm:$0xff]  ;;  %v8167_v34 = vld [vmem:[#allocation2 + $0x89] sm:$0xff] }
 0x37a   :  { %2725 = vmatmul.f32.gmra.mxu0 %v2657_v63  ;;  %2148 = vst [vmem:[#allocation2 + $0xe8] sm:$0xff] %v8105_v51  ;;  %v8153_v29 = vld [vmem:[#allocation2 + $0x79] sm:$0xff]  ;;  %v8159_v50 = vld [vmem:[#allocation2 + $0x81] sm:$0xff]  ;;  %v2485_v58 = vld [vmem:[#allocation2 + $0x8a] sm:$0xff] }
 0x37b   :  { %2149 = vst [vmem:[#allocation2 + $0xf0] sm:$0xff] %v2119_v19 }
 0x37f   :  { %2395 = vmatmul.f32.gmra.mxu2 %v7952_v37  ;;  %v2660_v37 = vld [vmem:[#allocation2 + $0x3f] sm:$0xff] }
 0x380   :  { %2282 = vmatmul.f32.gmra.mxu1 %v8111_v59 }
 0x381   :  { %2545 = vmatmul.f32.gmra.mxu3 %v2473_v35 }
 0x382   :  { %2728 = vmatmul.f32.gmra.mxu0 %v2658_v9 }
 0x387   :  { %2398 = vmatmul.f32.gmra.mxu2 %v7956_v31  ;;  %v2661_v31 = vld [vmem:[#allocation2 + $0x47] sm:$0xff] }
 0x388   :  { %2285 = vmatmul.f32.gmra.mxu1 %v8115_v46 }
 0x389   :  { %2548 = vmatmul.f32.gmra.mxu3 %v2474_v14  ;;  %v8178_v14 = vld [vmem:[#allocation2 + $0x91] sm:$0xff] }
 0x38a   :  { %2731 = vmatmul.f32.gmra.mxu0 %v2659_v20  ;;  %v2486_v20 = vld [vmem:[#allocation2 + $0x92] sm:$0xff] }
 0x38f   :  { %2401 = vmatmul.f32.gmra.mxu2 %v7966_v36  ;;  %v2662_v36 = vld [vmem:[#allocation2 + $0x4f] sm:$0xff] }
 0x390   :  { %2288 = vmatmul.f32.gmra.mxu1 %v8119_v18 }
 0x391   :  { %2551 = vmatmul.f32.gmra.mxu3 %v2475_v1 }
 0x392   :  { %2734 = vmatmul.f32.gmra.mxu0 %v2660_v37 }
 0x397   :  { %2404 = vmatmul.f32.gmra.mxu2 %v7969_v13  ;;  %v2663_v13 = vld [vmem:[#allocation2 + $0x57] sm:$0xff] }
 0x398   :  { %2291 = vmatmul.f32.gmra.mxu1 %v8123_v52 }
 0x399   :  { %2554 = vmatmul.f32.gmra.mxu3 %v2476_v33 }
 0x39a   :  { %2737 = vmatmul.f32.gmra.mxu0 %v2661_v31 }
 0x39f   :  { %2407 = vmatmul.f32.gmra.mxu2 %v7972_v57  ;;  %v2664_v57 = vld [vmem:[#allocation2 + $0x5f] sm:$0xff]  ;;  %v8147_v54 = vpop.f32.mrf.mxu2 }
 0x3a0   :  { %2294 = vmatmul.f32.gmra.mxu1 %v8127_v40 }
 0x3a1   :  { %2557 = vmatmul.f32.gmra.mxu3 %v2477_v43 }
 0x3a2   :  { %2740 = vmatmul.f32.gmra.mxu0 %v2662_v36 }
 0x3a7   :  { %2410 = vmatmul.f32.gmra.mxu2 %v7977_v22  ;;  %v2665_v22 = vld [vmem:[#allocation2 + $0x67] sm:$0xff]  ;;  %v2378_v44 = vpop.f32.mrf.mxu2 }
 0x3a8   :  { %2297 = vmatmul.f32.gmra.mxu1 %v8131_v56 }
 0x3a9   :  { %2560 = vmatmul.f32.gmra.mxu3 %v2478_v23  ;;  %v8189_v23 = vld [vmem:[#allocation2 + $0x99] sm:$0xff] }
 0x3aa   :  { %2743 = vmatmul.f32.gmra.mxu0 %v2663_v13  ;;  %v8157_v8 = vpop.f32.mrf.mxu1  ;;  %v2487_v13 = vld [vmem:[#allocation2 + $0x9a] sm:$0xff] }
 0x3af   :  { %2413 = vmatmul.f32.gmra.mxu2 %v7989_v48  ;;  %v2666_v48 = vld [vmem:[#allocation2 + $0x6f] sm:$0xff] }
 0x3b0   :  { %2300 = vmatmul.f32.gmra.mxu1 %v8135_v60 }
 0x3b1   :  { %2563 = vmatmul.f32.gmra.mxu3 %v2479_v39 }
 0x3b2   :  { %2746 = vmatmul.f32.gmra.mxu0 %v2664_v57 }
 0x3b7   :  { %2416 = vmatmul.f32.gmra.mxu2 %v7995_v61  ;;  %v2482_v61 = vld [vmem:[#allocation2 + $0x72] sm:$0xff] }
 0x3b8   :  { %2303 = vmatmul.f32.gmra.mxu1 %v8139_v2 }
 0x3b9   :  { %2566 = vmatmul.f32.gmra.mxu3 %v2480_v55 }
 0x3ba   :  { %2749 = vmatmul.f32.gmra.mxu0 %v2665_v22 }
 0x3bf   :  { %2419 = vmatmul.f32.gmra.mxu2 %v8012_v5  ;;  %v2483_v5 = vld [vmem:[#allocation2 + $0x7a] sm:$0xff] }
 0x3c0   :  { %2306 = vmatmul.f32.gmra.mxu1 %v8143_v10 }
 0x3c1   :  { %2569 = vmatmul.f32.gmra.mxu3 %v2481_v28 }
 0x3c2   :  { %2752 = vmatmul.f32.gmra.mxu0 %v2666_v48  ;;  %v8198_v48 = vld [vmem:[#allocation2 + $0xa1] sm:$0xff] }
 0x3c7   :  { %2422 = vmatmul.f32.gmra.mxu2 %v8022_v47  ;;  %v2484_v47 = vld [vmem:[#allocation2 + $0x82] sm:$0xff] }
 0x3c8   :  { %2309 = vmatmul.f32.gmra.mxu1 %v8149_v30 }
 0x3c9   :  { %2572 = vmatmul.f32.gmra.mxu3 %v2482_v61  ;;  %v2488_v61 = vld [vmem:[#allocation2 + $0xa2] sm:$0xff] }
 0x3ca   :  { %2755 = vmatmul.f32.gmra.mxu0 %v2667_v12 }
 0x3cf   :  { %2425 = vmatmul.f32.gmra.mxu2 %v8026_v26  ;;  %v8163_v26 = vpop.f32.mrf.mxu3 }
 0x3d0   :  { %2312 = vmatmul.f32.gmra.mxu1 %v8153_v29 }
 0x3d1   :  { %2575 = vmatmul.f32.gmra.mxu3 %v2483_v5 }
 0x3d2   :  { %2758 = vmatmul.f32.gmra.mxu0 %v2668_v45 }
 0x3d7   :  { %2428 = vmatmul.f32.gmra.mxu2 %v8029_v21  ;;  %v8171_v21 = vld [vmem:[#allocation2 + $0x8f] sm:$0xff] }
 0x3d8   :  { %2315 = vmatmul.f32.gmra.mxu1 %v8159_v50 }
 0x3d9   :  { %2578 = vmatmul.f32.gmra.mxu3 %v2484_v47 }
 0x3da   :  { %2761 = vmatmul.f32.gmra.mxu0 %v2669_v62  ;;  %v2381_v32 = vpop.f32.mrf.mxu2 }
 0x3dd   :  { %v2271_v63 = vpop.f32.mrf.mxu1 }
 0x3de   :  { %v2379_v41 = vadd.f32 %v2378_v44, %v2271_v63  ;;  %v2489_v63 = vld [vmem:[#allocation2 + $0xaa] sm:$0xff] }
 0x3df   :  { %v8165_v7 = vpop.f32.mrf.mxu0  ;;  %2431 = vmatmul.f32.gmra.mxu2 %v8033_v53  ;;  %v8182_v53 = vld [vmem:[#allocation2 + $0x97] sm:$0xff] }
 0x3e0   :  { %2318 = vmatmul.f32.gmra.mxu1 %v8167_v34 }
 0x3e1   :  { %2581 = vmatmul.f32.gmra.mxu3 %v2485_v58 }
 0x3e2   :  { %2764 = vmatmul.f32.gmra.mxu0 %v8171_v21  ;;  %v2384_v16 = vpop.f32.mrf.mxu2 }
 0x3e4   :  { %v2534_v17 = vpop.f32.mrf.mxu3 }
 0x3e5   :  { %v8174_v19 = vadd.f32 %v2534_v17, %v2379_v41  ;;  %v2274_v35 = vpop.f32.mrf.mxu1 }
 0x3e6   :  { %v2382_v1 = vadd.f32 %v2381_v32, %v2274_v35  ;;  %v8209_v32 = vld [vmem:[#allocation2 + $0xa9] sm:$0xff] }
 0x3e7   :  { %v8176_v9 = vpop.f32.mrf.mxu0  ;;  %2434 = vmatmul.f32.gmra.mxu2 %v8049_v4  ;;  %v8193_v4 = vld [vmem:[#allocation2 + $0x9f] sm:$0xff] }
 0x3e8   :  { %2321 = vmatmul.f32.gmra.mxu1 %v8178_v14 }
 0x3e9   :  { %2584 = vmatmul.f32.gmra.mxu3 %v2486_v20 }
 0x3ea   :  { %2767 = vmatmul.f32.gmra.mxu0 %v8182_v53  ;;  %v2387_v37 = vpop.f32.mrf.mxu2 }
 0x3ec   :  { %v2537_v33 = vpop.f32.mrf.mxu3 }
 0x3ed   :  { %v8185_v31 = vadd.f32 %v2537_v33, %v2382_v1  ;;  %v2277_v43 = vpop.f32.mrf.mxu1  ;;  %v8220_v1 = vld [vmem:[#allocation2 + $0xb1] sm:$0xff] }
 0x3ee   :  { %v2385_v39 = vadd.f32 %v2384_v16, %v2277_v43 }
 0x3ef   :  { %v8187_v36 = vpop.f32.mrf.mxu0  ;;  %2437 = vmatmul.f32.gmra.mxu2 %v8057_v42  ;;  %v8202_v42 = vld [vmem:[#allocation2 + $0xa7] sm:$0xff] }
 0x3f0   :  { %2324 = vmatmul.f32.gmra.mxu1 %v8189_v23 }
 0x3f1   :  { %2587 = vmatmul.f32.gmra.mxu3 %v2487_v13 }
 0x3f2   :  { %2770 = vmatmul.f32.gmra.mxu0 %v8193_v4  ;;  %v2390_v57 = vpop.f32.mrf.mxu2 }
 0x3f4   :  { %v2540_v55 = vpop.f32.mrf.mxu3 }
 0x3f5   :  { %v8196_v22 = vadd.f32 %v2540_v55, %v2385_v39  ;;  %v2280_v28 = vpop.f32.mrf.mxu1 }
 0x3f6   :  { %v2388_v5 = vadd.f32 %v2387_v37, %v2280_v28  ;;  %v2490_v37 = vld [vmem:[#allocation2 + $0xb2] sm:$0xff] }
 0x3f7   :  { %2440 = vmatmul.f32.gmra.mxu2 %v8062_v25  ;;  %v8204_v12 = vpop.f32.mrf.mxu0  ;;  %v8213_v25 = vld [vmem:[#allocation2 + $0xaf] sm:$0xff]  ;;  %v8231_v28 = vld [vmem:[#allocation2 + $0xb9] sm:$0xff] }
 0x3f8   :  { %2327 = vmatmul.f32.gmra.mxu1 %v8198_v48 }
 0x3f9   :  { %2590 = vmatmul.f32.gmra.mxu3 %v2488_v61  ;;  %v2491_v61 = vld [vmem:[#allocation2 + $0xba] sm:$0xff] }
 0x3fa   :  { %2773 = vmatmul.f32.gmra.mxu0 %v8202_v42  ;;  %v2393_v45 = vpop.f32.mrf.mxu2 }
 0x3fc   :  { %v2543_v44 = vpop.f32.mrf.mxu3 }
 0x3fd   :  { %v8207_v47 = vadd.f32 %v2543_v44, %v2388_v5  ;;  %v2283_v62 = vpop.f32.mrf.mxu1 }
 0x3fe   :  { %v2391_v58 = vadd.f32 %v2390_v57, %v2283_v62 }
 0x3ff   :  { %2443 = vmatmul.f32.gmra.mxu2 %v8065_v24  ;;  %v8216_v16 = vpop.f32.mrf.mxu0  ;;  %v8224_v24 = vld [vmem:[#allocation2 + $0xb7] sm:$0xff] }
 0x400   :  { %2330 = vmatmul.f32.gmra.mxu1 %v8209_v32 }
 0x401   :  { %2593 = vmatmul.f32.gmra.mxu3 %v2489_v63 }
 0x402   :  { %2776 = vmatmul.f32.gmra.mxu0 %v8213_v25  ;;  %v2396_v41 = vpop.f32.mrf.mxu2 }
 0x404   :  { %v2546_v17 = vpop.f32.mrf.mxu3 }
 0x405   :  { %v8218_v35 = vadd.f32 %v2546_v17, %v2391_v58  ;;  %v2286_v20 = vpop.f32.mrf.mxu1  ;;  %v8242_v17 = vld [vmem:[#allocation2 + $0xc1] sm:$0xff] }
 0x406   :  { %v2394_v33 = vadd.f32 %v2393_v45, %v2286_v20  ;;  %v2492_v20 = vld [vmem:[#allocation2 + $0xc2] sm:$0xff] }
 0x407   :  { %2446 = vmatmul.f32.gmra.mxu2 %v8069_v0  ;;  %v8229_v57 = vpop.f32.mrf.mxu0  ;;  %v8235_v0 = vld [vmem:[#allocation2 + $0xbf] sm:$0xff] }
 0x408   :  { %2333 = vmatmul.f32.gmra.mxu1 %v8220_v1 }
 0x409   :  { %2596 = vmatmul.f32.gmra.mxu3 %v2490_v37 }
 0x40a   :  { %2779 = vmatmul.f32.gmra.mxu0 %v8224_v24  ;;  %v2399_v43 = vpop.f32.mrf.mxu2 }
 0x40c   :  { %v2549_v13 = vpop.f32.mrf.mxu3 }
 0x40d   :  { %v8227_v39 = vadd.f32 %v2549_v13, %v2394_v33  ;;  %v2289_v55 = vpop.f32.mrf.mxu1 }
 0x40e   :  { %v2397_v5 = vadd.f32 %v2396_v41, %v2289_v55  ;;  %v6249_v55 = vld [vmem:[%s11059_s1 + $0x70] sm:$0xff] }
 0x40f   :  { %11373 = vst [vmem:[#allocation61_spill] sm:$0xff] %v8227_v39  ;;  %2449 = vmatmul.f32.gmra.mxu2 %v8082_v6  ;;  %v8240_v58 = vpop.f32.mrf.mxu0  ;;  %v8246_v6 = vld [vmem:[#allocation2 + $0xc7] sm:$0xff]  ;;  %v8289_v39 = vld [vmem:[#allocation2 + $0xdf] sm:$0xff] }
 0x410   :  { %2336 = vmatmul.f32.gmra.mxu1 %v8231_v28  ;;  %11375 = vst [vmem:[#allocation25_spill] sm:$0xff] %v8240_v58  ;;  %3087 = vmatpush.msrb.mxu2 %v6249_v55  ;;  %v8285_v58 = vld [vmem:[#allocation2 + $0xd9] sm:$0xff] }
 0x411   :  { %2599 = vmatmul.f32.gmra.mxu3 %v2491_v61  ;;  %11381 = vst [vmem:[#allocation66_spill] sm:$0xff] %v8289_v39 }
 0x412   :  { %2782 = vmatmul.f32.gmra.mxu0 %v8235_v0  ;;  %v2402_v45 = vpop.f32.mrf.mxu2 }
 0x414   :  { %v2552_v44 = vpop.f32.mrf.mxu3 }
 0x415   :  { %v8238_v62 = vadd.f32 %v2552_v44, %v2397_v5  ;;  %v2292_v63 = vpop.f32.mrf.mxu1  ;;  %v8254_v5 = vld [vmem:[#allocation2 + $0xc9] sm:$0xff]  ;;  %v6250_v44 = vld [vmem:[%s11059_s1 + $0x78] sm:$0xff] }
 0x416   :  { %v2400_v41 = vadd.f32 %v2399_v43, %v2292_v63  ;;  %v8261_v43 = vld [vmem:[#allocation2 + $0xcf] sm:$0xff]  ;;  %3273 = vmatpush.msra.mxu3 %v6250_v44 }
 0x417   :  { %11374 = vst [vmem:[#allocation24_spill] sm:$0xff] %v8238_v62  ;;  %2452 = vmatmul.f32.gmra.mxu2 %v8091_v27  ;;  %v2493_v27 = vld [vmem:[#allocation2 + $0xca] sm:$0xff]  ;;  %v8263_v63 = vpop.f32.mrf.mxu0  ;;  %v2494_v62 = vld [vmem:[#allocation2 + $0xd2] sm:$0xff] }
 0x418   :  { %2339 = vmatmul.f32.gmra.mxu1 %v8242_v17  ;;  %11377 = vst [vmem:[#allocation17_spill] sm:$0xff] %v8263_v63  ;;  %v8275_v63 = vld [vmem:[#allocation2 + $0xd7] sm:$0xff] }
 0x419   :  { %2602 = vmatmul.f32.gmra.mxu3 %v2492_v20 }
 0x41a   :  { %2785 = vmatmul.f32.gmra.mxu0 %v8246_v6  ;;  %v2405_v37 = vpop.f32.mrf.mxu2 }
 0x41c   :  { %v2555_v33 = vpop.f32.mrf.mxu3 }
 0x41d   :  { %v8249_v13 = vadd.f32 %v2555_v33, %v2400_v41  ;;  %v2295_v61 = vpop.f32.mrf.mxu1 }
 0x41e   :  { %v2403_v20 = vadd.f32 %v2402_v45, %v2295_v61  ;;  %v6252_v45 = vld [vmem:[%s11059_s1 + $0x88] sm:$0xff] }
 0x41f   :  { %11376 = vst [vmem:[#allocation46_spill] sm:$0xff] %v8249_v13  ;;  %2455 = vmatmul.f32.gmra.mxu2 %v8096_v49  ;;  %v8268_v13 = vld [vmem:[#allocation2 + $0xd1] sm:$0xff]  ;;  %3645 = vmatpush.msra.mxu1 %v6252_v45 }
 0x420   :  { %2342 = vmatmul.f32.gmra.mxu1 %v8254_v5 }
 0x421   :  { %2605 = vmatmul.f32.gmra.mxu3 %v2493_v27  ;;  %v6251_v27 = vld [vmem:[%s11059_s1 + $0x80] sm:$0xff] }
 0x422   :  { %2788 = vmatmul.f32.gmra.mxu0 %v8261_v43  ;;  %v2408_v41 = vpop.f32.mrf.mxu2 }
 0x423   :  { %3459 = vmatpush.msra.mxu0 %v6251_v27 }
 0x424   :  { %v2558_v33 = vpop.f32.mrf.mxu3 }
 0x425   :  { %v8266_v55 = vadd.f32 %v2558_v33, %v2403_v20  ;;  %v2298_v49 = vpop.f32.mrf.mxu1 }
 0x426   :  { %v2406_v61 = vadd.f32 %v2405_v37, %v2298_v49 }
 0x427   :  { %11378 = vst [vmem:[#allocation63_spill] sm:$0xff] %v8266_v55  ;;  %2458 = vmatmul.f32.gmra.mxu2 %v8099_v3  ;;  %v8281_v3 = vpop.f32.mrf.mxu0 }
 0x428   :  { %2345 = vmatmul.f32.gmra.mxu1 %v8268_v13  ;;  %11379 = vst [vmem:[#allocation47_spill] sm:$0xff] %v8281_v3  ;;  %v2496_v3 = vld [vmem:[#allocation2 + $0xe2] sm:$0xff] }
 0x429   :  { %2608 = vmatmul.f32.gmra.mxu3 %v2494_v62  ;;  %v2495_v62 = vld [vmem:[#allocation2 + $0xda] sm:$0xff] }
 0x42a   :  { %2791 = vmatmul.f32.gmra.mxu0 %v8275_v63  ;;  %v2411_v44 = vpop.f32.mrf.mxu2 }
 0x42c   :  { %v2561_v20 = vpop.f32.mrf.mxu3 }
 0x42d   :  { %v8283_v33 = vadd.f32 %v2561_v20, %v2406_v61  ;;  %v2301_v55 = vpop.f32.mrf.mxu1 }
 0x42e   :  { %v2409_v37 = vadd.f32 %v2408_v41, %v2301_v55 }
 0x42f   :  { %11380 = vst [vmem:[#allocation20_spill] sm:$0xff] %v8283_v33  ;;  %2461 = vmatmul.f32.gmra.mxu2 %v8105_v51  ;;  %v8294_v61 = vpop.f32.mrf.mxu0  ;;  %v8296_v33 = vld [vmem:[#allocation2 + $0xe1] sm:$0xff] }
 0x430   :  { %2348 = vmatmul.f32.gmra.mxu1 %v8285_v58  ;;  %11383 = vst [vmem:[#allocation27_spill] sm:$0xff] %v8294_v61  ;;  %v8300_v51 = vld [vmem:[#allocation2 + $0xe7] sm:$0xff] }
 0x431   :  { %2611 = vmatmul.f32.gmra.mxu3 %v2495_v62  ;;  %11384 = vst [vmem:[#allocation48_spill] sm:$0xff] %v8300_v51  ;;  %v8307_v61 = vld [vmem:[#allocation2 + $0xe9] sm:$0xff] }
 0x432   :  { %2794 = vmatmul.f32.gmra.mxu0 %v8289_v39  ;;  %v2414_v49 = vpop.f32.mrf.mxu2  ;;  %11387 = vst [vmem:[#allocation29_spill] sm:$0xff] %v8307_v61  ;;  %v2497_v39 = vld [vmem:[#allocation2 + $0xea] sm:$0xff] }
 0x434   :  { %v2564_v27 = vpop.f32.mrf.mxu3 }
 0x435   :  { %v8292_v45 = vadd.f32 %v2564_v27, %v2409_v37  ;;  %v2304_v20 = vpop.f32.mrf.mxu1 }
 0x436   :  { %v2412_v41 = vadd.f32 %v2411_v44, %v2304_v20 }
 0x437   :  { %11382 = vst [vmem:[#allocation26_spill] sm:$0xff] %v8292_v45  ;;  %3088 = vmatmul.f32.vlgmr.msrb.gmra.mxu2 %v8014_v15  ;;  %v8305_v45 = vpop.f32.mrf.mxu0  ;;  %v8311_v15 = vld [vmem:[#allocation2 + $0xef] sm:$0xff] }
 0x438   :  { %2351 = vmatmul.f32.gmra.mxu1 %v8296_v33  ;;  %11386 = vst [vmem:[#allocation28_spill] sm:$0xff] %v8305_v45  ;;  %v3212_v45 = vld [vmem:[#allocation2 + $0x1e] sm:$0xff] }
 0x439   :  { %2614 = vmatmul.f32.gmra.mxu3 %v2496_v3  ;;  %11388 = vst [vmem:[#allocation49_spill] sm:$0xff] %v8311_v15 }
 0x43a   :  { %2797 = vmatmul.f32.gmra.mxu0 %v8300_v51  ;;  %v2417_v55 = vpop.f32.mrf.mxu2  ;;  %v8317_v51 = vld [vmem:[#allocation2 + $0xf7] sm:$0xff] }
 0x43b   :  { %11390 = vst [vmem:[#allocation52_spill] sm:$0xff] %v8317_v51 }
 0x43c   :  { %v2567_v62 = vpop.f32.mrf.mxu3 }
 0x43d   :  { %v8303_v37 = vadd.f32 %v2567_v62, %v2412_v41  ;;  %v2307_v27 = vpop.f32.mrf.mxu1 }
 0x43e   :  { %v2415_v44 = vadd.f32 %v2414_v49, %v2307_v27 }
 0x43f   :  { %11385 = vst [vmem:[#allocation67_spill] sm:$0xff] %v8303_v37  ;;  %3091 = vmatmul.f32.gmra.mxu2 %v8052_v38  ;;  %v2840_v37 = vld [vmem:[#allocation2 + $0x10] sm:$0xff]  ;;  %v8319_v38 = vpop.f32.mrf.mxu0 }
 0x440   :  { %2354 = vmatmul.f32.gmra.mxu1 %v8307_v61  ;;  %11391 = vst [vmem:[#allocation51_spill] sm:$0xff] %v8319_v38 }
 0x441   :  { %2617 = vmatmul.f32.gmra.mxu3 %v2497_v39 }
 0x442   :  { %2800 = vmatmul.f32.gmra.mxu0 %v8311_v15  ;;  %v2420_v3 = vpop.f32.mrf.mxu2 }
 0x444   :  { %v2570_v20 = vpop.f32.mrf.mxu3 }
 0x445   :  { %v8314_v41 = vadd.f32 %v2570_v20, %v2415_v44  ;;  %v2310_v62 = vpop.f32.mrf.mxu1  ;;  %v2841_v20 = vld [vmem:[#allocation2 + $0x18] sm:$0xff] }
 0x446   :  { %v2418_v39 = vadd.f32 %v2417_v55, %v2310_v62  ;;  %v8329_v62 = vld [vmem:[#allocation2 + $0x20] sm:$0xff] }
 0x447   :  { %11389 = vst [vmem:[#allocation70_spill] sm:$0xff] %v8314_v41  ;;  %3094 = vmatmul.f32.gmra.mxu2 %v8087_v11  ;;  %v3213_v41 = vld [vmem:[#allocation2 + $0x26] sm:$0xff]  ;;  %v8325_v61 = vpop.f32.mrf.mxu0 }
 0x448   :  { %2902 = vmatmul.f32.vlgmr.msrb.gmra.mxu1 %v2840_v37  ;;  %v3398_v11 = vld [vmem:[#allocation2 + $0x1f] sm:$0xff] }
 0x449   :  { %3274 = vmatmul.f32.vlgmr.msra.gmra.mxu3 %v3212_v45 }
 0x44a   :  { %2803 = vmatmul.f32.gmra.mxu0 %v8317_v51  ;;  %v2423_v15 = vpop.f32.mrf.mxu2 }
 0x44c   :  { %v2573_v49 = vpop.f32.mrf.mxu3 }
 0x44d   :  { %v8322_v27 = vadd.f32 %v2573_v49, %v2418_v39  ;;  %v2313_v44 = vpop.f32.mrf.mxu1  ;;  %v3214_v39 = vld [vmem:[#allocation2 + $0x2e] sm:$0xff] }
 0x44e   :  { %v2421_v37 = vadd.f32 %v2420_v3, %v2313_v44 }
 0x44f   :  { %11392 = vst [vmem:[#allocation71_spill] sm:$0xff] %v8322_v27  ;;  %3097 = vmatmul.f32.gmra.mxu2 %v8111_v59  ;;  %v3399_v59 = vld [vmem:[#allocation2 + $0x27] sm:$0xff] }
 0x450   :  { %2905 = vmatmul.f32.gmra.mxu1 %v2841_v20  ;;  %v8335_v20 = vpop.f32.mrf.mxu0 }
 0x451   :  { %3277 = vmatmul.f32.gmra.mxu3 %v3213_v41 }
 0x452   :  { %3460 = vmatmul.f32.vlgmr.msra.gmra.mxu0 %v3398_v11  ;;  %v2426_v45 = vpop.f32.mrf.mxu2  ;;  %v8337_v11 = vld [vmem:[#allocation2 + $0x28] sm:$0xff] }
 0x454   :  { %v2576_v38 = vpop.f32.mrf.mxu3 }
 0x455   :  { %v8327_v51 = vadd.f32 %v2576_v38, %v2421_v37  ;;  %v2316_v55 = vpop.f32.mrf.mxu1  ;;  %v3215_v37 = vld [vmem:[#allocation2 + $0x36] sm:$0xff] }
 0x456   :  { %v2424_v41 = vadd.f32 %v2423_v15, %v2316_v55 }
 0x457   :  { %11393 = vst [vmem:[#allocation74_spill] sm:$0xff] %v8327_v51  ;;  %3100 = vmatmul.f32.gmra.mxu2 %v8115_v46  ;;  %v3400_v46 = vld [vmem:[#allocation2 + $0x2f] sm:$0xff]  ;;  %v3216_v51 = vld [vmem:[#allocation2 + $0x3e] sm:$0xff] }
 0x458   :  { %2908 = vmatmul.f32.gmra.mxu1 %v8329_v62 }
 0x459   :  { %3280 = vmatmul.f32.gmra.mxu3 %v3214_v39 }
 0x45a   :  { %3463 = vmatmul.f32.gmra.mxu0 %v3399_v59  ;;  %v2429_v49 = vpop.f32.mrf.mxu2 }
 0x45c   :  { %v2579_v3 = vpop.f32.mrf.mxu3 }
 0x45d   :  { %v8333_v44 = vadd.f32 %v2579_v3, %v2424_v41  ;;  %v2319_v38 = vpop.f32.mrf.mxu1  ;;  %v8343_v3 = vpop.f32.mrf.mxu0 }
 0x45e   :  { %v2427_v39 = vadd.f32 %v2426_v45, %v2319_v38  ;;  %11396 = vst [vmem:[#allocation30_spill] sm:$0xff] %v8343_v3 }
 0x45f   :  { %11394 = vst [vmem:[#allocation55_spill] sm:$0xff] %v8333_v44  ;;  %3103 = vmatmul.f32.gmra.mxu2 %v8119_v18  ;;  %v8345_v44 = vld [vmem:[#allocation2 + $0x30] sm:$0xff] }
 0x460   :  { %2911 = vmatmul.f32.gmra.mxu1 %v8337_v11  ;;  %v3401_v18 = vld [vmem:[#allocation2 + $0x37] sm:$0xff] }
 0x461   :  { %3283 = vmatmul.f32.gmra.mxu3 %v3215_v37 }
 0x462   :  { %3466 = vmatmul.f32.gmra.mxu0 %v3400_v46  ;;  %v2432_v59 = vpop.f32.mrf.mxu2 }
 0x464   :  { %v2582_v15 = vpop.f32.mrf.mxu3 }
 0x465   :  { %v8341_v55 = vadd.f32 %v2582_v15, %v2427_v39  ;;  %v2322_v41 = vpop.f32.mrf.mxu1  ;;  %v8351_v15 = vld [vmem:[#allocation2 + $0x38] sm:$0xff]  ;;  %v8355_v3 = vpop.f32.mrf.mxu0 }
 0x466   :  { %v2430_v37 = vadd.f32 %v2429_v49, %v2322_v41  ;;  %11398 = vst [vmem:[#allocation59_spill] sm:$0xff] %v8355_v3 }
 0x467   :  { %11395 = vst [vmem:[#allocation54_spill] sm:$0xff] %v8341_v55  ;;  %3106 = vmatmul.f32.gmra.mxu2 %v8123_v52  ;;  %v3217_v55 = vld [vmem:[#allocation2 + $0x46] sm:$0xff] }
 0x468   :  { %2914 = vmatmul.f32.gmra.mxu1 %v8345_v44  ;;  %v3402_v52 = vld [vmem:[#allocation2 + $0x3f] sm:$0xff] }
 0x469   :  { %3286 = vmatmul.f32.gmra.mxu3 %v3216_v51 }
 0x46a   :  { %3469 = vmatmul.f32.gmra.mxu0 %v3401_v18  ;;  %v2435_v46 = vpop.f32.mrf.mxu2 }
 0x46c   :  { %v2585_v45 = vpop.f32.mrf.mxu3 }
 0x46d   :  { %v8349_v38 = vadd.f32 %v2585_v45, %v2430_v37  ;;  %v2325_v39 = vpop.f32.mrf.mxu1  ;;  %v8359_v45 = vld [vmem:[#allocation2 + $0x40] sm:$0xff]  ;;  %v8363_v3 = vpop.f32.mrf.mxu0 }
 0x46e   :  { %v2433_v51 = vadd.f32 %v2432_v59, %v2325_v39  ;;  %11400 = vst [vmem:[#allocation76_spill] sm:$0xff] %v8363_v3 }
 0x46f   :  { %11397 = vst [vmem:[#allocation31_spill] sm:$0xff] %v8349_v38  ;;  %3109 = vmatmul.f32.gmra.mxu2 %v8127_v40  ;;  %v3218_v38 = vld [vmem:[#allocation2 + $0x4e] sm:$0xff] }
 0x470   :  { %2917 = vmatmul.f32.gmra.mxu1 %v8351_v15  ;;  %v3403_v40 = vld [vmem:[#allocation2 + $0x47] sm:$0xff] }
 0x471   :  { %3289 = vmatmul.f32.gmra.mxu3 %v3217_v55 }
 0x472   :  { %3472 = vmatmul.f32.gmra.mxu0 %v3402_v52  ;;  %v2438_v18 = vpop.f32.mrf.mxu2 }
 0x474   :  { %v2588_v49 = vpop.f32.mrf.mxu3 }
 0x475   :  { %v8357_v41 = vadd.f32 %v2588_v49, %v2433_v51  ;;  %v2328_v37 = vpop.f32.mrf.mxu1  ;;  %v8367_v51 = vld [vmem:[#allocation2 + $0x48] sm:$0xff]  ;;  %v3219_v49 = vld [vmem:[#allocation2 + $0x56] sm:$0xff] }
 0x476   :  { %v2436_v55 = vadd.f32 %v2435_v46, %v2328_v37 }
 0x477   :  { %11399 = vst [vmem:[#allocation57_spill] sm:$0xff] %v8357_v41  ;;  %3112 = vmatmul.f32.gmra.mxu2 %v8131_v56  ;;  %v3404_v56 = vld [vmem:[#allocation2 + $0x4f] sm:$0xff]  ;;  %v8373_v41 = vpop.f32.mrf.mxu0 }
 0x478   :  { %2920 = vmatmul.f32.gmra.mxu1 %v8359_v45  ;;  %11403 = vst [vmem:[#allocation32_spill] sm:$0xff] %v8373_v41  ;;  %v3221_v41 = vld [vmem:[#allocation2 + $0x66] sm:$0xff] }
 0x479   :  { %3292 = vmatmul.f32.gmra.mxu3 %v3218_v38 }
 0x47a   :  { %3475 = vmatmul.f32.gmra.mxu0 %v3403_v40  ;;  %v2441_v27 = vpop.f32.mrf.mxu2 }
 0x47c   :  { %v2591_v59 = vpop.f32.mrf.mxu3 }
 0x47d   :  { %v8365_v39 = vadd.f32 %v2591_v59, %v2436_v55  ;;  %v2331_v52 = vpop.f32.mrf.mxu1  ;;  %v8375_v59 = vld [vmem:[#allocation2 + $0x50] sm:$0xff] }
 0x47e   :  { %v2439_v38 = vadd.f32 %v2438_v18, %v2331_v52 }
 0x47f   :  { %11401 = vst [vmem:[#allocation62_spill] sm:$0xff] %v8365_v39  ;;  %3115 = vmatmul.f32.gmra.mxu2 %v8135_v60  ;;  %v3220_v39 = vld [vmem:[#allocation2 + $0x5e] sm:$0xff] }
 0x480   :  { %2923 = vmatmul.f32.gmra.mxu1 %v8367_v51  ;;  %v3405_v60 = vld [vmem:[#allocation2 + $0x57] sm:$0xff] }
 0x481   :  { %3295 = vmatmul.f32.gmra.mxu3 %v3219_v49 }
 0x482   :  { %3478 = vmatmul.f32.gmra.mxu0 %v3404_v56  ;;  %v2444_v40 = vpop.f32.mrf.mxu2 }
 0x484   :  { %v2594_v46 = vpop.f32.mrf.mxu3 }
 0x485   :  { %v8371_v37 = vadd.f32 %v2594_v46, %v2439_v38  ;;  %v2334_v55 = vpop.f32.mrf.mxu1  ;;  %v8381_v46 = vpop.f32.mrf.mxu0 }
 0x486   :  { %v2442_v49 = vadd.f32 %v2441_v27, %v2334_v55  ;;  %11405 = vst [vmem:[#allocation65_spill] sm:$0xff] %v8381_v46 }
 0x487   :  { %11402 = vst [vmem:[#allocation60_spill] sm:$0xff] %v8371_v37  ;;  %3118 = vmatmul.f32.gmra.mxu2 %v8139_v2  ;;  %v8383_v37 = vld [vmem:[#allocation2 + $0x58] sm:$0xff] }
 0x488   :  { %2926 = vmatmul.f32.gmra.mxu1 %v8375_v59  ;;  %v3406_v2 = vld [vmem:[#allocation2 + $0x5f] sm:$0xff] }
 0x489   :  { %3298 = vmatmul.f32.gmra.mxu3 %v3220_v39 }
 0x48a   :  { %3481 = vmatmul.f32.gmra.mxu0 %v3405_v60  ;;  %v2447_v56 = vpop.f32.mrf.mxu2 }
 0x48c   :  { %v2597_v18 = vpop.f32.mrf.mxu3 }
 0x48d   :  { %v8379_v52 = vadd.f32 %v2597_v18, %v2442_v49  ;;  %v2337_v38 = vpop.f32.mrf.mxu1  ;;  %v8389_v18 = vld [vmem:[#allocation2 + $0x60] sm:$0xff]  ;;  %v8393_v46 = vpop.f32.mrf.mxu0 }
 0x48e   :  { %v2445_v39 = vadd.f32 %v2444_v40, %v2337_v38  ;;  %11407 = vst [vmem:[#allocation79_spill] sm:$0xff] %v8393_v46 }
 0x48f   :  { %11404 = vst [vmem:[#allocation33_spill] sm:$0xff] %v8379_v52  ;;  %3121 = vmatmul.f32.gmra.mxu2 %v8143_v10  ;;  %v3222_v52 = vld [vmem:[#allocation2 + $0x6e] sm:$0xff] }
 0x490   :  { %2929 = vmatmul.f32.gmra.mxu1 %v8383_v37  ;;  %v3407_v10 = vld [vmem:[#allocation2 + $0x67] sm:$0xff] }
 0x491   :  { %3301 = vmatmul.f32.gmra.mxu3 %v3221_v41 }
 0x492   :  { %3484 = vmatmul.f32.gmra.mxu0 %v3406_v2  ;;  %v2450_v60 = vpop.f32.mrf.mxu2 }
 0x494   :  { %v2600_v27 = vpop.f32.mrf.mxu3 }
 0x495   :  { %v8387_v55 = vadd.f32 %v2600_v27, %v2445_v39  ;;  %v2340_v49 = vpop.f32.mrf.mxu1  ;;  %v8397_v27 = vld [vmem:[#allocation2 + $0x68] sm:$0xff]  ;;  %v8401_v46 = vpop.f32.mrf.mxu0 }
 0x496   :  { %v2448_v41 = vadd.f32 %v2447_v56, %v2340_v49 }
 0x497   :  { %11406 = vst [vmem:[#allocation64_spill] sm:$0xff] %v8387_v55  ;;  %3124 = vmatmul.f32.gmra.mxu2 %v8149_v30  ;;  %v3223_v55 = vld [vmem:[#allocation2 + $0x76] sm:$0xff] }
 0x498   :  { %2932 = vmatmul.f32.gmra.mxu1 %v8389_v18  ;;  %v3408_v30 = vld [vmem:[#allocation2 + $0x6f] sm:$0xff] }
 0x499   :  { %3304 = vmatmul.f32.gmra.mxu3 %v3222_v52 }
 0x49a   :  { %3487 = vmatmul.f32.gmra.mxu0 %v3407_v10  ;;  %v2453_v2 = vpop.f32.mrf.mxu2 }
 0x49c   :  { %v2603_v40 = vpop.f32.mrf.mxu3 }
 0x49d   :  { %v8395_v38 = vadd.f32 %v2603_v40, %v2448_v41  ;;  %v2343_v39 = vpop.f32.mrf.mxu1  ;;  %v8405_v41 = vld [vmem:[#allocation2 + $0x70] sm:$0xff]  ;;  %v3224_v40 = vld [vmem:[#allocation2 + $0x7e] sm:$0xff] }
 0x49e   :  { %v2451_v52 = vadd.f32 %v2450_v60, %v2343_v39 }
 0x49f   :  { %11408 = vst [vmem:[#allocation69_spill] sm:$0xff] %v8395_v38  ;;  %3127 = vmatmul.f32.gmra.mxu2 %v8153_v29  ;;  %v3409_v29 = vld [vmem:[#allocation2 + $0x77] sm:$0xff]  ;;  %v8411_v38 = vpop.f32.mrf.mxu0 }
 0x4a0   :  { %2935 = vmatmul.f32.gmra.mxu1 %v8397_v27  ;;  %11411 = vst [vmem:[#allocation34_spill] sm:$0xff] %v8411_v38  ;;  %v3226_v38 = vld [vmem:[#allocation2 + $0x8e] sm:$0xff] }
 0x4a1   :  { %3307 = vmatmul.f32.gmra.mxu3 %v3223_v55 }
 0x4a2   :  { %3490 = vmatmul.f32.gmra.mxu0 %v3408_v30  ;;  %v2456_v3 = vpop.f32.mrf.mxu2 }
 0x4a4   :  { %v2606_v56 = vpop.f32.mrf.mxu3 }
 0x4a5   :  { %v8403_v49 = vadd.f32 %v2606_v56, %v2451_v52  ;;  %v2346_v10 = vpop.f32.mrf.mxu1  ;;  %v8413_v56 = vld [vmem:[#allocation2 + $0x78] sm:$0xff] }
 0x4a6   :  { %v2454_v55 = vadd.f32 %v2453_v2, %v2346_v10 }
 0x4a7   :  { %11409 = vst [vmem:[#allocation68_spill] sm:$0xff] %v8403_v49  ;;  %3130 = vmatmul.f32.gmra.mxu2 %v8159_v50  ;;  %v3225_v49 = vld [vmem:[#allocation2 + $0x86] sm:$0xff] }
 0x4a8   :  { %2938 = vmatmul.f32.gmra.mxu1 %v8405_v41  ;;  %v3410_v50 = vld [vmem:[#allocation2 + $0x7f] sm:$0xff] }
 0x4a9   :  { %3310 = vmatmul.f32.gmra.mxu3 %v3224_v40 }
 0x4aa   :  { %3493 = vmatmul.f32.gmra.mxu0 %v3409_v29  ;;  %v2459_v30 = vpop.f32.mrf.mxu2 }
 0x4ac   :  { %v2609_v60 = vpop.f32.mrf.mxu3 }
 0x4ad   :  { %v8409_v39 = vadd.f32 %v2609_v60, %v2454_v55  ;;  %v2349_v52 = vpop.f32.mrf.mxu1  ;;  %v8419_v60 = vpop.f32.mrf.mxu0 }
 0x4ae   :  { %v2457_v40 = vadd.f32 %v2456_v3, %v2349_v52  ;;  %11413 = vst [vmem:[#allocation72_spill] sm:$0xff] %v8419_v60  ;;  %v3227_v60 = vld [vmem:[#allocation2 + $0x96] sm:$0xff] }
 0x4af   :  { %11410 = vst [vmem:[#allocation7_spill] sm:$0xff] %v8409_v39  ;;  %3133 = vmatmul.f32.gmra.mxu2 %v8167_v34  ;;  %v8421_v39 = vld [vmem:[#allocation2 + $0x80] sm:$0xff] }
 0x4b0   :  { %2941 = vmatmul.f32.gmra.mxu1 %v8413_v56  ;;  %v3411_v34 = vld [vmem:[#allocation2 + $0x87] sm:$0xff] }
 0x4b1   :  { %3313 = vmatmul.f32.gmra.mxu3 %v3225_v49 }
 0x4b2   :  { %3496 = vmatmul.f32.gmra.mxu0 %v3410_v50  ;;  %v2462_v2 = vpop.f32.mrf.mxu2 }
 0x4b4   :  { %v2612_v29 = vpop.f32.mrf.mxu3 }
 0x4b5   :  { %v8417_v10 = vadd.f32 %v2612_v29, %v2457_v40  ;;  %v2352_v55 = vpop.f32.mrf.mxu1  ;;  %v2376_v29 = vadd.f32 %v8147_v54, %v8157_v8 }
 0x4b6   :  { %v2460_v49 = vadd.f32 %v2459_v30, %v2352_v55 }
 0x4b7   :  { %11412 = vst [vmem:[#allocation35_spill] sm:$0xff] %v8417_v10  ;;  %3136 = vmatmul.f32.gmra.mxu2 %v8178_v14  ;;  %v8429_v10 = vld [vmem:[#allocation2 + $0x88] sm:$0xff]  ;;  %v8433_v14 = vpop.f32.mrf.mxu0 }
 0x4b8   :  { %2944 = vmatmul.f32.gmra.mxu1 %v8421_v39 }
 0x4b9   :  { %3316 = vmatmul.f32.gmra.mxu3 %v3226_v38  ;;  %v2621_v38 = vadd.f32 %v8163_v26, %v2376_v29 }
 0x4ba   :  { %3499 = vmatmul.f32.gmra.mxu0 %v3411_v34  ;;  %v3089_v40 = vpop.f32.mrf.mxu2 }
 0x4bb   :  { %v2807_v34 = vadd.f32 %v8165_v7, %v2621_v38  ;;  %v2808_v7 = vadd.f32 %v8176_v9, %v8174_v19  ;;  %v8451_v38 = vld [vmem:[#allocation2 + $0x98] sm:$0xff]  ;;  %v2809_v19 = vadd.f32 %v8187_v36, %v8185_v31  ;;  %v2810_v31 = vadd.f32 %v8204_v12, %v8196_v22 }
 0x4bc   :  { %v2615_v50 = vpop.f32.mrf.mxu3 }
 0x4bd   :  { %v8425_v3 = vadd.f32 %v2615_v50, %v2460_v49  ;;  %v2355_v52 = vpop.f32.mrf.mxu1  ;;  %v8440_v50 = vld [vmem:[#allocation2 + $0x90] sm:$0xff] }
 0x4be   :  { %v2463_v30 = vadd.f32 %v2462_v2, %v2355_v52 }
 0x4bf   :  { %11414 = vst [vmem:[#allocation81_spill] sm:$0xff] %v8425_v3  ;;  %3139 = vmatmul.f32.gmra.mxu2 %v8189_v23  ;;  %v3228_v23 = vld [vmem:[#allocation2 + $0x9e] sm:$0xff] }
 0x4c0   :  { %2947 = vmatmul.f32.gmra.mxu1 %v8429_v10 }
 0x4c1   :  { %3319 = vmatmul.f32.gmra.mxu3 %v3227_v60 }
 0x4c2   :  { %3502 = vmatmul.f32.gmra.mxu0 %v8171_v21  ;;  %v3092_v3 = vpop.f32.mrf.mxu2  ;;  %v8445_v21 = vpop.f32.mrf.mxu0 }
 0x4c4   :  { %v2618_v55 = vpop.f32.mrf.mxu3 }
 0x4c5   :  { %v8438_v49 = vadd.f32 %v2618_v55, %v2463_v30  ;;  %v2903_v54 = vpop.f32.mrf.mxu1  ;;  %v3229_v30 = vld [vmem:[#allocation2 + $0xa6] sm:$0xff] }
 0x4c6   :  { %v2993_v8 = vadd.f32 %v2903_v54, %v2807_v34 }
 0x4c7   :  { %11415 = vst [vmem:[#allocation73_spill] sm:$0xff] %v8438_v49  ;;  %3142 = vmatmul.f32.gmra.mxu2 %v8198_v48 }
 0x4c8   :  { %2950 = vmatmul.f32.gmra.mxu1 %v8440_v50  ;;  %v3179_v26 = vadd.f32 %v3089_v40, %v2993_v8  ;;  %v8462_v8 = vld [vmem:[#allocation2 + $0xa0] sm:$0xff] }
 0x4c9   :  { %3322 = vmatmul.f32.gmra.mxu3 %v3228_v23 }
 0x4ca   :  { %3505 = vmatmul.f32.gmra.mxu0 %v8182_v53  ;;  %v3095_v48 = vpop.f32.mrf.mxu2  ;;  %v8460_v55 = vpop.f32.mrf.mxu0 }
 0x4cc   :  { %v3275_v2 = vpop.f32.mrf.mxu3 }
 0x4cd   :  { %v8449_v60 = vadd.f32 %v3275_v2, %v3179_v26  ;;  %v2906_v52 = vpop.f32.mrf.mxu1 }
 0x4ce   :  { %v2994_v29 = vadd.f32 %v2906_v52, %v2808_v7  ;;  %v3231_v52 = vld [vmem:[#allocation2 + $0xb6] sm:$0xff] }
 0x4cf   :  { %3145 = vmatmul.f32.gmra.mxu2 %v8209_v32  ;;  %v3230_v32 = vld [vmem:[#allocation2 + $0xae] sm:$0xff] }
 0x4d0   :  { %2953 = vmatmul.f32.gmra.mxu1 %v8451_v38  ;;  %v3180_v53 = vadd.f32 %v3092_v3, %v2994_v29 }
 0x4d1   :  { %3325 = vmatmul.f32.gmra.mxu3 %v3229_v30  ;;  %v2811_v30 = vadd.f32 %v8216_v16, %v8207_v47  ;;  %v2812_v47 = vadd.f32 %v8229_v57, %v8218_v35  ;;  %v3234_v57 = vld [vmem:[#allocation2 + $0xce] sm:$0xff] }
 0x4d2   :  { %3508 = vmatmul.f32.gmra.mxu0 %v8193_v4  ;;  %v3098_v3 = vpop.f32.mrf.mxu2  ;;  %v8471_v7 = vpop.f32.mrf.mxu0 }
 0x4d4   :  { %v3278_v40 = vpop.f32.mrf.mxu3 }
 0x4d5   :  { %v8458_v9 = vadd.f32 %v3278_v40, %v3180_v53  ;;  %v2909_v34 = vpop.f32.mrf.mxu1  ;;  %v3232_v40 = vld [vmem:[#allocation2 + $0xbe] sm:$0xff] }
 0x4d6   :  { %v2995_v54 = vadd.f32 %v2909_v34, %v2809_v19  ;;  %v6275_v19 = vld [vmem:[#allocation2 + $0xb0] sm:$0xff] }
 0x4d7   :  { %3148 = vmatmul.f32.gmra.mxu2 %v8220_v1  ;;  %v6274_v1 = vld [vmem:[#allocation2 + $0xa8] sm:$0xff] }
 0x4d8   :  { %2956 = vmatmul.f32.gmra.mxu1 %v8462_v8  ;;  %v3181_v4 = vadd.f32 %v3095_v48, %v2995_v54 }
 0x4d9   :  { %3328 = vmatmul.f32.gmra.mxu3 %v3230_v32 }
 0x4da   :  { %3511 = vmatmul.f32.gmra.mxu0 %v8202_v42  ;;  %v3101_v12 = vpop.f32.mrf.mxu2  ;;  %v8480_v34 = vpop.f32.mrf.mxu0 }
 0x4dc   :  { %v3281_v23 = vpop.f32.mrf.mxu3 }
 0x4dd   :  { %v8469_v36 = vadd.f32 %v3281_v23, %v3181_v4  ;;  %v2912_v26 = vpop.f32.mrf.mxu1 }
 0x4de   :  { %v2996_v2 = vadd.f32 %v2912_v26, %v2810_v31 }
 0x4df   :  { %3151 = vmatmul.f32.gmra.mxu2 %v8231_v28 }
 0x4e0   :  { %2959 = vmatmul.f32.gmra.mxu1 %v6274_v1  ;;  %v3182_v29 = vadd.f32 %v3098_v3, %v2996_v2  ;;  %v3233_v3 = vld [vmem:[#allocation2 + $0xc6] sm:$0xff] }
 0x4e1   :  { %3331 = vmatmul.f32.gmra.mxu3 %v3231_v52  ;;  %v6277_v2 = vld [vmem:[#allocation2 + $0xc0] sm:$0xff]  ;;  %v6278_v1 = vld [vmem:[#allocation2 + $0xc8] sm:$0xff] }
 0x4e2   :  { %3514 = vmatmul.f32.gmra.mxu0 %v8213_v25  ;;  %v3104_v4 = vpop.f32.mrf.mxu2  ;;  %v8489_v31 = vpop.f32.mrf.mxu0 }
 0x4e4   :  { %v3284_v42 = vpop.f32.mrf.mxu3 }
 0x4e5   :  { %v8477_v22 = vadd.f32 %v3284_v42, %v3182_v29  ;;  %v2915_v53 = vpop.f32.mrf.mxu1  ;;  %v3236_v42 = vld [vmem:[#allocation2 + $0xde] sm:$0xff] }
 0x4e6   :  { %v2997_v48 = vadd.f32 %v2915_v53, %v2811_v30  ;;  %v6280_v53 = vld [vmem:[#allocation2 + $0xd8] sm:$0xff] }
 0x4e7   :  { %3154 = vmatmul.f32.gmra.mxu2 %v8242_v17  ;;  %v6276_v17 = vld [vmem:[#allocation2 + $0xb8] sm:$0xff] }
 0x4e8   :  { %2962 = vmatmul.f32.gmra.mxu1 %v6275_v19  ;;  %v3183_v28 = vadd.f32 %v3101_v12, %v2997_v48  ;;  %v11417_v12 = vld [vmem:[#allocation29_spill] sm:$0xff]  ;;  %v11418_v48 = vld [vmem:[#allocation66_spill] sm:$0xff]  ;;  %v3238_v19 = vld [vmem:[#allocation2 + $0xee] sm:$0xff] }
 0x4e9   :  { %3334 = vmatmul.f32.gmra.mxu3 %v3232_v40 }
 0x4ea   :  { %3517 = vmatmul.f32.gmra.mxu0 %v8224_v24 }
 0x4ec   :  { %v3287_v25 = vpop.f32.mrf.mxu3 }
 0x4ed   :  { %v8485_v16 = vadd.f32 %v3287_v25, %v3183_v28  ;;  %v2918_v54 = vpop.f32.mrf.mxu1  ;;  %v6281_v28 = vld [vmem:[#allocation2 + $0xe0] sm:$0xff] }
 0x4ee   :  { %v2998_v32 = vadd.f32 %v2918_v54, %v2812_v47  ;;  %v3055_v54 = vld [vmem:[#allocation2 + $0xf9] sm:$0xff] }
 0x4ef   :  { %3157 = vmatmul.f32.gmra.mxu2 %v8254_v5  ;;  %v8497_v5 = vpop.f32.mrf.mxu0 }
 0x4f0   :  { %2965 = vmatmul.f32.gmra.mxu1 %v6276_v17  ;;  %v3184_v23 = vadd.f32 %v3104_v4, %v2998_v32  ;;  %11416 = vst [vmem:[#allocation77_spill] sm:$0xff] %v8497_v5  ;;  %v3239_v32 = vld [vmem:[#allocation2 + $0xf6] sm:$0xff]  ;;  %v6282_v4 = vld [vmem:[#allocation2 + $0xe8] sm:$0xff] }
 0x4f1   :  { %3337 = vmatmul.f32.gmra.mxu3 %v3233_v3  ;;  %v11420_v3 = vld [vmem:[#allocation49_spill] sm:$0xff] }
 0x4f2   :  { %3520 = vmatmul.f32.gmra.mxu0 %v8235_v0  ;;  %v3235_v0 = vld [vmem:[#allocation2 + $0xd6] sm:$0xff] }
 0x4f3   :  { %v3603_v5 = vld [vmem:[#allocation2 + $0xb8] sm:$0xff] }
 0x4f4   :  { %v3290_v24 = vpop.f32.mrf.mxu3 }
 0x4f5   :  { %v8491_v26 = vadd.f32 %v3290_v24, %v3184_v23  ;;  %v8493_v35 = vpop.f32.mrf.mxu1  ;;  %v3240_v24 = vld [vmem:[#allocation2 + $0xfe] sm:$0xff] }
 0x4f7   :  { %3160 = vmatmul.f32.gmra.mxu2 %v8268_v13  ;;  %v8505_v13 = vpop.f32.mrf.mxu0 }
 0x4f8   :  { %2968 = vmatmul.f32.gmra.mxu1 %v6277_v2  ;;  %v11421_v2 = vld [vmem:[#allocation52_spill] sm:$0xff] }
 0x4f9   :  { %3340 = vmatmul.f32.gmra.mxu3 %v3234_v57  ;;  %v6283_v57 = vld [vmem:[#allocation2 + $0xf0] sm:$0xff] }
 0x4fa   :  { %3523 = vmatmul.f32.gmra.mxu0 %v8246_v6  ;;  %v6279_v6 = vld [vmem:[#allocation2 + $0xd0] sm:$0xff] }
 0x4fd   :  { %v8499_v52 = vpop.f32.mrf.mxu1 }
 0x4ff   :  { %3163 = vmatmul.f32.gmra.mxu2 %v8285_v58  ;;  %v3237_v58 = vld [vmem:[#allocation2 + $0xe6] sm:$0xff] }
 0x500   :  { %2971 = vmatmul.f32.gmra.mxu1 %v6278_v1  ;;  %v3241_v1 = vld [vmem:[#allocation2 + $0x106] sm:$0xff] }
 0x501   :  { %3343 = vmatmul.f32.gmra.mxu3 %v3235_v0 }
 0x502   :  { %3526 = vmatmul.f32.gmra.mxu0 %v8261_v43  ;;  %v8512_v43 = vpop.f32.mrf.mxu0 }
 0x505   :  { %v8503_v29 = vpop.f32.mrf.mxu1 }
 0x507   :  { %3166 = vmatmul.f32.gmra.mxu2 %v8296_v33  ;;  %v3054_v33 = vld [vmem:[#allocation2 + $0xf1] sm:$0xff] }
 0x508   :  { %2974 = vmatmul.f32.gmra.mxu1 %v6279_v6  ;;  %v8532_v6 = vld [vmem:[#allocation2 + $0xf8] sm:$0xff] }
 0x509   :  { %3346 = vmatmul.f32.gmra.mxu3 %v3236_v42 }
 0x50a   :  { %3529 = vmatmul.f32.gmra.mxu0 %v8275_v63  ;;  %v11419_v63 = vld [vmem:[#allocation48_spill] sm:$0xff]  ;;  %v8518_v25 = vpop.f32.mrf.mxu0 }
 0x50d   :  { %v8509_v30 = vpop.f32.mrf.mxu1 }
 0x50f   :  { %3169 = vmatmul.f32.gmra.mxu2 %v11417_v12 }
 0x510   :  { %2977 = vmatmul.f32.gmra.mxu1 %v6280_v53  ;;  %v3427_v53 = vld [vmem:[#allocation2 + $0x107] sm:$0xff] }
 0x511   :  { %3349 = vmatmul.f32.gmra.mxu3 %v3237_v58  ;;  %v3426_v58 = vld [vmem:[#allocation2 + $0xff] sm:$0xff] }
 0x512   :  { %3532 = vmatmul.f32.gmra.mxu0 %v11418_v48  ;;  %v8523_v17 = vpop.f32.mrf.mxu0 }
 0x515   :  { %v8515_v40 = vpop.f32.mrf.mxu1 }
 0x517   :  { %3172 = vmatmul.f32.gmra.mxu2 %v3054_v33 }
 0x518   :  { %2980 = vmatmul.f32.gmra.mxu1 %v6281_v28 }
 0x519   :  { %3352 = vmatmul.f32.gmra.mxu3 %v3238_v19 }
 0x51a   :  { %3535 = vmatmul.f32.gmra.mxu0 %v11419_v63  ;;  %v8530_v42 = vpop.f32.mrf.mxu0 }
 0x51d   :  { %v8520_v47 = vpop.f32.mrf.mxu1 }
 0x51f   :  { %3175 = vmatmul.f32.gmra.mxu2 %v3055_v54 }
 0x520   :  { %2983 = vmatmul.f32.gmra.mxu1 %v6282_v4 }
 0x521   :  { %3355 = vmatmul.f32.gmra.mxu3 %v3239_v32  ;;  %v8584_v32 = vpop.f32.mrf.mxu2 }
 0x522   :  { %3538 = vmatmul.f32.gmra.mxu0 %v11420_v3  ;;  %v8538_v48 = vpop.f32.mrf.mxu0 }
 0x525   :  { %v8525_v23 = vpop.f32.mrf.mxu1 }
 0x528   :  { %2986 = vmatmul.f32.gmra.mxu1 %v6283_v57 }
 0x529   :  { %3358 = vmatmul.f32.gmra.mxu3 %v3240_v24  ;;  %v3601_v24 = vld [vmem:[#allocation2 + $0xa8] sm:$0xff] }
 0x52a   :  { %3541 = vmatmul.f32.gmra.mxu0 %v11421_v2 }
 0x52d   :  { %v8528_v0 = vpop.f32.mrf.mxu1 }
 0x530   :  { %2989 = vmatmul.f32.gmra.mxu1 %v8532_v6 }
 0x531   :  { %3361 = vmatmul.f32.gmra.mxu3 %v3241_v1 }
 0x532   :  { %3544 = vmatmul.f32.gmra.mxu0 %v3426_v58  ;;  %v3602_v58 = vld [vmem:[#allocation2 + $0xb0] sm:$0xff] }
 0x535   :  { %v8535_v12 = vpop.f32.mrf.mxu1 }
 0x536   :  { %11422 = vst [vmem:[#allocation75_spill] sm:$0xff] %v8535_v12 }
 0x538   :  { %3646 = vmatmul.f32.vlgmr.msra.gmra.mxu1 %v8329_v62 }
 0x53a   :  { %3547 = vmatmul.f32.gmra.mxu0 %v3427_v53 }
 0x53d   :  { %v8540_v33 = vpop.f32.mrf.mxu1 }
 0x53e   :  { %11423 = vst [vmem:[#allocation36_spill] sm:$0xff] %v8540_v33  ;;  %v11502_v33 = vld [vmem:[#allocation46_spill] sm:$0xff] }
 0x540   :  { %3649 = vmatmul.f32.gmra.mxu1 %v8337_v11 }
 0x545   :  { %v8543_v19 = vpop.f32.mrf.mxu1 }
 0x546   :  { %11424 = vst [vmem:[#allocation37_spill] sm:$0xff] %v8543_v19  ;;  %v11501_v19 = vld [vmem:[#allocation17_spill] sm:$0xff] }
 0x548   :  { %3652 = vmatmul.f32.gmra.mxu1 %v8345_v44 }
 0x54d   :  { %v8546_v28 = vpop.f32.mrf.mxu1 }
 0x54e   :  { %11425 = vst [vmem:[#allocation38_spill] sm:$0xff] %v8546_v28 }
 0x550   :  { %3655 = vmatmul.f32.gmra.mxu1 %v8351_v15 }
 0x555   :  { %v8549_v63 = vpop.f32.mrf.mxu1 }
 0x556   :  { %11426 = vst [vmem:[#allocation39_spill] sm:$0xff] %v8549_v63 }
 0x558   :  { %3658 = vmatmul.f32.gmra.mxu1 %v8359_v45 }
 0x55d   :  { %v8552_v62 = vpop.f32.mrf.mxu1 }
 0x55e   :  { %11427 = vst [vmem:[#allocation80_spill] sm:$0xff] %v8552_v62  ;;  %v3606_v62 = vld [vmem:[#allocation2 + $0xd0] sm:$0xff] }
 0x560   :  { %3661 = vmatmul.f32.gmra.mxu1 %v8367_v51 }
 0x565   :  { %v8555_v54 = vpop.f32.mrf.mxu1 }
 0x566   :  { %11428 = vst [vmem:[#allocation78_spill] sm:$0xff] %v8555_v54 }
 0x568   :  { %3664 = vmatmul.f32.gmra.mxu1 %v8375_v59 }
 0x56d   :  { %v8558_v11 = vpop.f32.mrf.mxu1 }
 0x56e   :  { %11429 = vst [vmem:[#allocation4_spill] sm:$0xff] %v8558_v11 }
 0x570   :  { %3667 = vmatmul.f32.gmra.mxu1 %v8383_v37 }
 0x575   :  { %v8561_v44 = vpop.f32.mrf.mxu1 }
 0x576   :  { %11430 = vst [vmem:[#allocation82_spill] sm:$0xff] %v8561_v44 }
 0x578   :  { %3670 = vmatmul.f32.gmra.mxu1 %v8389_v18 }
 0x57d   :  { %v8564_v15 = vpop.f32.mrf.mxu1 }
 0x57e   :  { %11431 = vst [vmem:[#allocation40_spill] sm:$0xff] %v8564_v15  ;;  %v3605_v15 = vld [vmem:[#allocation2 + $0xc8] sm:$0xff] }
 0x580   :  { %3673 = vmatmul.f32.gmra.mxu1 %v8397_v27 }
 0x585   :  { %v8567_v45 = vpop.f32.mrf.mxu1 }
 0x586   :  { %11432 = vst [vmem:[#allocation41_spill] sm:$0xff] %v8567_v45 }
 0x588   :  { %3676 = vmatmul.f32.gmra.mxu1 %v8405_v41  ;;  %v8586_v41 = vpop.f32.mrf.mxu3 }
 0x58d   :  { %v8570_v51 = vpop.f32.mrf.mxu1 }
 0x58e   :  { %11433 = vst [vmem:[#allocation42_spill] sm:$0xff] %v8570_v51 }
 0x590   :  { %3679 = vmatmul.f32.gmra.mxu1 %v8413_v56  ;;  %v8589_v56 = vpop.f32.mrf.mxu0  ;;  %v8595_v3 = vpop.f32.mrf.mxu3 }
 0x595   :  { %v8573_v59 = vpop.f32.mrf.mxu1 }
 0x596   :  { %11434 = vst [vmem:[#allocation43_spill] sm:$0xff] %v8573_v59  ;;  %v3604_v59 = vld [vmem:[#allocation2 + $0xc0] sm:$0xff] }
 0x598   :  { %3682 = vmatmul.f32.gmra.mxu1 %v8421_v39  ;;  %v8593_v39 = vpop.f32.mrf.mxu2  ;;  %v8604_v2 = vpop.f32.mrf.mxu3 }
 0x59d   :  { %v8576_v37 = vpop.f32.mrf.mxu1 }
 0x59e   :  { %11435 = vst [vmem:[#allocation9_spill] sm:$0xff] %v8576_v37 }
 0x5a0   :  { %3685 = vmatmul.f32.gmra.mxu1 %v8429_v10  ;;  %v8598_v10 = vpop.f32.mrf.mxu0  ;;  %v8602_v57 = vpop.f32.mrf.mxu2 }
 0x5a1   :  { %11438 = vst [vmem:[#allocation5_spill] sm:$0xff] %v8598_v10  ;;  %v11516_v10 = vld [vmem:[#allocation59_spill] sm:$0xff] }
 0x5a5   :  { %v8579_v18 = vpop.f32.mrf.mxu1 }
 0x5a6   :  { %11436 = vst [vmem:[#allocation44_spill] sm:$0xff] %v8579_v18 }
 0x5a8   :  { %3688 = vmatmul.f32.gmra.mxu1 %v8440_v50  ;;  %v8608_v1 = vpop.f32.mrf.mxu0  ;;  %v8610_v53 = vpop.f32.mrf.mxu2 }
 0x5a9   :  { %11440 = vst [vmem:[#allocation10_spill] sm:$0xff] %v8608_v1 }
 0x5ad   :  { %v8582_v27 = vpop.f32.mrf.mxu1 }
 0x5ae   :  { %11437 = vst [vmem:[#allocation56_spill] sm:$0xff] %v8582_v27  ;;  %v8612_v27 = vpop.f32.mrf.mxu3 }
 0x5af   :  { %11441 = vst [vmem:[#allocation12_spill] sm:$0xff] %v8612_v27  ;;  %v11510_v27 = vld [vmem:[#allocation67_spill] sm:$0xff] }
 0x5b0   :  { %3691 = vmatmul.f32.gmra.mxu1 %v8451_v38  ;;  %v8616_v49 = vpop.f32.mrf.mxu0  ;;  %v8620_v18 = vpop.f32.mrf.mxu2 }
 0x5b1   :  { %11443 = vst [vmem:[#allocation15_spill] sm:$0xff] %v8616_v49 }
 0x5b5   :  { %v8591_v4 = vpop.f32.mrf.mxu1 }
 0x5b6   :  { %v8622_v37 = vpop.f32.mrf.mxu3 }
 0x5b7   :  { %11445 = vst [vmem:[#allocation18_spill] sm:$0xff] %v8622_v37  ;;  %v11509_v37 = vld [vmem:[#allocation51_spill] sm:$0xff] }
 0x5b8   :  { %3694 = vmatmul.f32.gmra.mxu1 %v8462_v8  ;;  %v8627_v51 = vpop.f32.mrf.mxu0  ;;  %v8631_v44 = vpop.f32.mrf.mxu2 }
 0x5b9   :  { %11446 = vst [vmem:[#allocation19_spill] sm:$0xff] %v8627_v51 }
 0x5ba   :  { %11448 = vst [vmem:[#allocation22_spill] sm:$0xff] %v8631_v44 }
 0x5bd   :  { %v8600_v50 = vpop.f32.mrf.mxu1 }
 0x5c0   :  { %3697 = vmatmul.f32.gmra.mxu1 %v3601_v24  ;;  %v8635_v11 = vpop.f32.mrf.mxu0  ;;  %v8639_v63 = vpop.f32.mrf.mxu2 }
 0x5c1   :  { %11450 = vst [vmem:[#allocation8_spill] sm:$0xff] %v8635_v11  ;;  %v3608_v11 = vld [vmem:[#allocation2 + $0xe0] sm:$0xff] }
 0x5c2   :  { %11452 = vst [vmem:[#allocation50_spill] sm:$0xff] %v8639_v63  ;;  %v11506_v63 = vld [vmem:[#allocation20_spill] sm:$0xff] }
 0x5c5   :  { %v8606_v38 = vpop.f32.mrf.mxu1 }
 0x5c6   :  { %11439 = vst [vmem:[#allocation6_spill] sm:$0xff] %v8606_v38 }
 0x5c8   :  { %3700 = vmatmul.f32.gmra.mxu1 %v3602_v58  ;;  %v6255_v58 = vld [vmem:[%s11059_s1 + $0x98] sm:$0xff]  ;;  %v8645_v28 = vpop.f32.mrf.mxu0  ;;  %v8647_v51 = vpop.f32.mrf.mxu2 }
 0x5c9   :  { %4276 = vmatpush.msra.mxu2 %v6255_v58  ;;  %11455 = vst [vmem:[#allocation45_spill] sm:$0xff] %v8645_v28 }
 0x5ca   :  { %11456 = vst [vmem:[#allocation14_spill] sm:$0xff] %v8647_v51 }
 0x5cd   :  { %v8614_v8 = vpop.f32.mrf.mxu1 }
 0x5ce   :  { %11442 = vst [vmem:[#allocation13_spill] sm:$0xff] %v8614_v8  ;;  %v11505_v8 = vld [vmem:[#allocation27_spill] sm:$0xff] }
 0x5d0   :  { %3703 = vmatmul.f32.gmra.mxu1 %v3603_v5  ;;  %v8633_v5 = vpop.f32.mrf.mxu3 }
 0x5d1   :  { %11449 = vst [vmem:[#allocation23_spill] sm:$0xff] %v8633_v5  ;;  %v3610_v5 = vld [vmem:[#allocation2 + $0xf0] sm:$0xff] }
 0x5d5   :  { %v8618_v24 = vpop.f32.mrf.mxu1 }
 0x5d6   :  { %11444 = vst [vmem:[#allocation16_spill] sm:$0xff] %v8618_v24  ;;  %v8657_v24 = vpop.f32.mrf.mxu2 }
 0x5d7   :  { %11461 = vst [vmem:[#allocation52_spill] sm:$0xff] %v8657_v24 }
 0x5d8   :  { %3706 = vmatmul.f32.gmra.mxu1 %v3604_v59  ;;  %v8641_v58 = vpop.f32.mrf.mxu3 }
 0x5d9   :  { %11453 = vst [vmem:[#allocation53_spill] sm:$0xff] %v8641_v58 }
 0x5dd   :  { %v8629_v45 = vpop.f32.mrf.mxu1 }
 0x5de   :  { %11447 = vst [vmem:[#allocation21_spill] sm:$0xff] %v8629_v45  ;;  %v3607_v45 = vld [vmem:[#allocation2 + $0xd8] sm:$0xff] }
 0x5e0   :  { %3709 = vmatmul.f32.gmra.mxu1 %v3605_v15  ;;  %v8649_v49 = vpop.f32.mrf.mxu3 }
 0x5e1   :  { %11457 = vst [vmem:[#allocation29_spill] sm:$0xff] %v8649_v49  ;;  %v8665_v49 = vpop.f32.mrf.mxu2 }
 0x5e2   :  { %11465 = vst [vmem:[#allocation86_spill] sm:$0xff] %v8665_v49 }
 0x5e5   :  { %v8637_v54 = vpop.f32.mrf.mxu1 }
 0x5e6   :  { %11451 = vst [vmem:[#allocation11_spill] sm:$0xff] %v8637_v54  ;;  %v8653_v54 = vpop.f32.mrf.mxu0 }
 0x5e7   :  { %11459 = vst [vmem:[#allocation48_spill] sm:$0xff] %v8653_v54 }
 0x5e8   :  { %3712 = vmatmul.f32.gmra.mxu1 %v3606_v62  ;;  %v8659_v58 = vpop.f32.mrf.mxu3 }
 0x5e9   :  { %11462 = vst [vmem:[#allocation83_spill] sm:$0xff] %v8659_v58 }
 0x5ed   :  { %v8643_v59 = vpop.f32.mrf.mxu1 }
 0x5ee   :  { %11454 = vst [vmem:[#allocation58_spill] sm:$0xff] %v8643_v59  ;;  %v3609_v59 = vld [vmem:[#allocation2 + $0xe8] sm:$0xff]  ;;  %v8661_v28 = vpop.f32.mrf.mxu0 }
 0x5ef   :  { %11463 = vst [vmem:[#allocation84_spill] sm:$0xff] %v8661_v28 }
 0x5f0   :  { %3715 = vmatmul.f32.gmra.mxu1 %v3607_v45 }
 0x5f5   :  { %v8651_v15 = vpop.f32.mrf.mxu1 }
 0x5f6   :  { %11458 = vst [vmem:[#allocation66_spill] sm:$0xff] %v8651_v15  ;;  %v8667_v15 = vpop.f32.mrf.mxu3  ;;  %v8669_v54 = vpop.f32.mrf.mxu0 }
 0x5f7   :  { %11466 = vst [vmem:[#allocation87_spill] sm:$0xff] %v8667_v15 }
 0x5f8   :  { %3718 = vmatmul.f32.gmra.mxu1 %v3608_v11  ;;  %11467 = vst [vmem:[#allocation88_spill] sm:$0xff] %v8669_v54 }
 0x5fd   :  { %v8655_v62 = vpop.f32.mrf.mxu1 }
 0x5fe   :  { %11460 = vst [vmem:[#allocation49_spill] sm:$0xff] %v8655_v62  ;;  %v8674_v62 = vpop.f32.mrf.mxu2  ;;  %v8676_v58 = vpop.f32.mrf.mxu3 }
 0x5ff   :  { %11469 = vst [vmem:[#allocation90_spill] sm:$0xff] %v8674_v62  ;;  %v8680_v28 = vpop.f32.mrf.mxu0 }
 0x600   :  { %3721 = vmatmul.f32.gmra.mxu1 %v3609_v59  ;;  %11470 = vst [vmem:[#allocation91_spill] sm:$0xff] %v8676_v58 }
 0x601   :  { %11472 = vst [vmem:[#allocation93_spill] sm:$0xff] %v8680_v28 }
 0x605   :  { %v8663_v45 = vpop.f32.mrf.mxu1 }
 0x606   :  { %11464 = vst [vmem:[#allocation85_spill] sm:$0xff] %v8663_v45  ;;  %v8682_v45 = vld [vmem:[#allocation2] sm:$0xff]  ;;  %v8685_v15 = vpop.f32.mrf.mxu2 }
 0x607   :  { %11473 = vst [vmem:[#allocation94_spill] sm:$0xff] %v8682_v45 }
 0x608   :  { %3724 = vmatmul.f32.gmra.mxu1 %v3610_v5  ;;  %11474 = vst [vmem:[#allocation95_spill] sm:$0xff] %v8685_v15  ;;  %v8687_v5 = vpop.f32.mrf.mxu3 }
 0x609   :  { %11475 = vst [vmem:[#allocation96_spill] sm:$0xff] %v8687_v5 }
 0x60d   :  { %v8671_v11 = vpop.f32.mrf.mxu1 }
 0x60e   :  { %11468 = vst [vmem:[#allocation89_spill] sm:$0xff] %v8671_v11  ;;  %v8691_v11 = vpop.f32.mrf.mxu0  ;;  %v8696_v58 = vpop.f32.mrf.mxu2 }
 0x60f   :  { %11477 = vst [vmem:[#allocation98_spill] sm:$0xff] %v8691_v11 }
 0x610   :  { %3727 = vmatmul.f32.gmra.mxu1 %v8532_v6  ;;  %11479 = vst [vmem:[#allocation100_spill] sm:$0xff] %v8696_v58 }
 0x615   :  { %v8678_v59 = vpop.f32.mrf.mxu1 }
 0x616   :  { %11471 = vst [vmem:[#allocation92_spill] sm:$0xff] %v8678_v59  ;;  %v8698_v59 = vpop.f32.mrf.mxu3  ;;  %v8700_v28 = vpop.f32.mrf.mxu0 }
 0x617   :  { %11480 = vst [vmem:[#allocation101_spill] sm:$0xff] %v8698_v59  ;;  %v8704_v49 = vpop.f32.mrf.mxu2 }
 0x618   :  { %3730 = vmatmul.f32.gmra.mxu1 %v8682_v45  ;;  %11481 = vst [vmem:[#allocation102_spill] sm:$0xff] %v8700_v28 }
 0x619   :  { %11483 = vst [vmem:[#allocation104_spill] sm:$0xff] %v8704_v49 }
 0x61d   :  { %v8689_v54 = vpop.f32.mrf.mxu1 }
 0x61e   :  { %11476 = vst [vmem:[#allocation97_spill] sm:$0xff] %v8689_v54  ;;  %v8706_v15 = vpop.f32.mrf.mxu3  ;;  %v8708_v5 = vpop.f32.mrf.mxu0 }
 0x61f   :  { %11484 = vst [vmem:[#allocation105_spill] sm:$0xff] %v8706_v15  ;;  %v8712_v11 = vpop.f32.mrf.mxu2 }
 0x620   :  { %3733 = vmatmul.f32.gmra.mxu1 %v8682_v45  ;;  %11485 = vst [vmem:[#allocation106_spill] sm:$0xff] %v8708_v5 }
 0x621   :  { %11487 = vst [vmem:[#allocation108_spill] sm:$0xff] %v8712_v11  ;;  %v11498_v11 = vld [vmem:[#allocation61_spill] sm:$0xff] }
 0x625   :  { %v8694_v6 = vpop.f32.mrf.mxu1 }
 0x626   :  { %11478 = vst [vmem:[#allocation99_spill] sm:$0xff] %v8694_v6  ;;  %v8714_v45 = vpop.f32.mrf.mxu3  ;;  %v8718_v58 = vpop.f32.mrf.mxu0 }
 0x627   :  { %11488 = vst [vmem:[#allocation109_spill] sm:$0xff] %v8714_v45  ;;  %v8720_v59 = vpop.f32.mrf.mxu2  ;;  %v11499_v45 = vld [vmem:[#allocation25_spill] sm:$0xff] }
 0x628   :  { %11490 = vst [vmem:[#allocation111_spill] sm:$0xff] %v8718_v58  ;;  %v2813_v24 = vadd.f32 %v11499_v45, %v11498_v11  ;;  %v11512_v45 = vld [vmem:[#allocation70_spill] sm:$0xff]  ;;  %v11513_v11 = vld [vmem:[#allocation71_spill] sm:$0xff] }
 0x629   :  { %11491 = vst [vmem:[#allocation112_spill] sm:$0xff] %v8720_v59  ;;  %v11503_v59 = vld [vmem:[#allocation47_spill] sm:$0xff] }
 0x62a   :  { %v2815_v51 = vadd.f32 %v11503_v59, %v11502_v33  ;;  %v11515_v59 = vld [vmem:[#allocation74_spill] sm:$0xff] }
 0x62d   :  { %v8702_v62 = vpop.f32.mrf.mxu1 }
 0x62e   :  { %11482 = vst [vmem:[#allocation103_spill] sm:$0xff] %v8702_v62  ;;  %v8722_v28 = vpop.f32.mrf.mxu3  ;;  %v8726_v49 = vpop.f32.mrf.mxu0 }
 0x62f   :  { %11492 = vst [vmem:[#allocation113_spill] sm:$0xff] %v8722_v28  ;;  %v8730_v5 = vpop.f32.mrf.mxu2  ;;  %v11504_v28 = vld [vmem:[#allocation63_spill] sm:$0xff] }
 0x630   :  { %11494 = vst [vmem:[#allocation115_spill] sm:$0xff] %v8726_v49  ;;  %v11507_v49 = vld [vmem:[#allocation28_spill] sm:$0xff] }
 0x631   :  { %11496 = vst [vmem:[#allocation117_spill] sm:$0xff] %v8730_v5  ;;  %v2817_v44 = vadd.f32 %v11507_v49, %v11506_v63  ;;  %v11517_v49 = vld [vmem:[#allocation55_spill] sm:$0xff]  ;;  %v11518_v63 = vld [vmem:[#allocation76_spill] sm:$0xff] }
 0x632   :  { %v2823_v38 = vadd.f32 %v11518_v63, %v11517_v49  ;;  %v11527_v49 = vld [vmem:[#allocation34_spill] sm:$0xff] }
 0x635   :  { %v8710_v54 = vpop.f32.mrf.mxu1 }
 0x636   :  { %11486 = vst [vmem:[#allocation107_spill] sm:$0xff] %v8710_v54  ;;  %v8732_v54 = vpop.f32.mrf.mxu3  ;;  %v8748_v1 = vpop.f32.mrf.mxu0 }
 0x637   :  { %11497 = vst [vmem:[#allocation118_spill] sm:$0xff] %v8732_v54  ;;  %v2819_v54 = vadd.f32 %v8325_v61, %v11510_v27  ;;  %v3001_v27 = vadd.f32 %v8503_v29, %v2815_v51  ;;  %v11529_v29 = vld [vmem:[#allocation72_spill] sm:$0xff] }
 0x638   :  { %11511 = vst [vmem:[#allocation61_spill] sm:$0xff] %v8748_v1 }
 0x63d   :  { %v8716_v6 = vpop.f32.mrf.mxu1 }
 0x63e   :  { %11489 = vst [vmem:[#allocation110_spill] sm:$0xff] %v8716_v6  ;;  %v11500_v6 = vld [vmem:[#allocation24_spill] sm:$0xff] }
 0x63f   :  { %v2814_v58 = vadd.f32 %v11501_v19, %v11500_v6  ;;  %v2820_v19 = vadd.f32 %v8335_v20, %v11512_v45  ;;  %v11514_v6 = vld [vmem:[#allocation30_spill] sm:$0xff]  ;;  %v11521_v20 = vld [vmem:[#allocation31_spill] sm:$0xff]  ;;  %v11522_v45 = vld [vmem:[#allocation65_spill] sm:$0xff] }
 0x640   :  { %v2821_v33 = vadd.f32 %v11514_v6, %v11513_v11  ;;  %v8767_v1 = vadd.f32 %v11522_v45, %v11521_v20  ;;  %v11523_v11 = vld [vmem:[#allocation57_spill] sm:$0xff]  ;;  %v11524_v6 = vld [vmem:[#allocation79_spill] sm:$0xff] }
 0x641   :  { %v3000_v61 = vadd.f32 %v8499_v52, %v2814_v58  ;;  %v11528_v52 = vld [vmem:[#allocation33_spill] sm:$0xff]  ;;  %v11530_v58 = vld [vmem:[#allocation64_spill] sm:$0xff] }
 0x642   :  { %v8785_v51 = vadd.f32 %v11529_v29, %v11528_v52  ;;  %v11531_v20 = vld [vmem:[#allocation69_spill] sm:$0xff] }
 0x643   :  { %v8793_v45 = vadd.f32 %v8445_v21, %v11531_v20  ;;  %v11535_v29 = vld [vmem:[#allocation81_spill] sm:$0xff]  ;;  %v3003_v20 = vadd.f32 %v8515_v40, %v2817_v44  ;;  %v3554_v40 = vadd.f32 %v8523_v17, %v8477_v22  ;;  %v3555_v44 = vadd.f32 %v8530_v42, %v8485_v16  ;;  %v8844_v22 = vpop.f32.mrf.mxu0 }
 0x644   :  { %v8811_v21 = vadd.f32 %v8489_v31, %v11535_v29  ;;  %v3553_v31 = vadd.f32 %v8518_v25, %v8469_v36  ;;  %v3556_v42 = vadd.f32 %v8538_v48, %v8491_v26 }
 0x645   :  { %v8724_v62 = vpop.f32.mrf.mxu1 }
 0x646   :  { %11493 = vst [vmem:[#allocation114_spill] sm:$0xff] %v8724_v62  ;;  %v2816_v62 = vadd.f32 %v11505_v8, %v11504_v28  ;;  %v2822_v28 = vadd.f32 %v11516_v10, %v11515_v59  ;;  %v2999_v8 = vadd.f32 %v8493_v35, %v2813_v24  ;;  %v8771_v10 = vadd.f32 %v11524_v6, %v11523_v11  ;;  %v11525_v35 = vld [vmem:[#allocation62_spill] sm:$0xff]  ;;  %v11526_v59 = vld [vmem:[#allocation60_spill] sm:$0xff]  ;;  %v11533_v6 = vld [vmem:[#allocation7_spill] sm:$0xff] }
 0x647   :  { %v8775_v24 = vadd.f32 %v8401_v46, %v11525_v35  ;;  %v8779_v63 = vadd.f32 %v11527_v49, %v11526_v59  ;;  %v11532_v46 = vld [vmem:[#allocation68_spill] sm:$0xff]  ;;  %v8801_v35 = vadd.f32 %v8471_v7, %v11533_v6  ;;  %v11534_v59 = vld [vmem:[#allocation35_spill] sm:$0xff]  ;;  %v8816_v7 = vpop.f32.mrf.mxu2  ;;  %v11543_v6 = vld [vmem:[#allocation50_spill] sm:$0xff] }
 0x648   :  { %v8797_v11 = vadd.f32 %v8460_v55, %v11532_v46  ;;  %v8805_v49 = vadd.f32 %v8480_v34, %v11534_v59  ;;  %v3185_v52 = vadd.f32 %v8584_v32, %v2999_v8  ;;  %v3187_v55 = vadd.f32 %v8602_v57, %v3001_v27  ;;  %v8818_v46 = vpop.f32.mrf.mxu3  ;;  %v11545_v59 = vld [vmem:[#allocation14_spill] sm:$0xff] }
 0x649   :  { %v3551_v34 = vadd.f32 %v8505_v13, %v8449_v60  ;;  %v3006_v57 = vadd.f32 %v8528_v0, %v2820_v19  ;;  %v11541_v19 = vld [vmem:[#allocation18_spill] sm:$0xff] }
 0x64a   :  { %v3371_v32 = vadd.f32 %v8586_v41, %v3185_v52  ;;  %v3189_v41 = vadd.f32 %v8620_v18, %v3003_v20  ;;  %v11538_v18 = vld [vmem:[#allocation5_spill] sm:$0xff] }
 0x64b   :  { %v3737_v16 = vadd.f32 %v8591_v4, %v3551_v34  ;;  %v3192_v52 = vadd.f32 %v11545_v59, %v3006_v57  ;;  %v11548_v34 = vld [vmem:[#allocation23_spill] sm:$0xff] }
 0x64c   :  { %v3375_v8 = vadd.f32 %v11541_v19, %v3189_v41  ;;  %v11553_v41 = vld [vmem:[#allocation53_spill] sm:$0xff] }
 0x64d   :  { %v8728_v15 = vpop.f32.mrf.mxu1 }
 0x64e   :  { %11495 = vst [vmem:[#allocation116_spill] sm:$0xff] %v8728_v15  ;;  %v11508_v15 = vld [vmem:[#allocation26_spill] sm:$0xff] }
 0x64f   :  { %v2818_v5 = vadd.f32 %v11509_v37, %v11508_v15  ;;  %v11519_v37 = vld [vmem:[#allocation54_spill] sm:$0xff]  ;;  %v11520_v15 = vld [vmem:[#allocation32_spill] sm:$0xff] }
 0x650   :  { %v8761_v12 = vadd.f32 %v11520_v15, %v11519_v37  ;;  %v8789_v15 = vadd.f32 %v8433_v14, %v11530_v58  ;;  %v3002_v14 = vadd.f32 %v8509_v30, %v2816_v62  ;;  %v3186_v58 = vadd.f32 %v8593_v39, %v3000_v61  ;;  %v8830_v39 = vld [vmem:[%s11061_s2 + $0x8] sm:$0xff]  ;;  %v11542_v61 = vld [vmem:[#allocation22_spill] sm:$0xff] }
 0x651   :  { %v3552_v30 = vadd.f32 %v8512_v43, %v8458_v9  ;;  %v3373_v9 = vadd.f32 %v8604_v2, %v3187_v55  ;;  %v3004_v36 = vadd.f32 %v8520_v47, %v2818_v5  ;;  %v3005_v43 = vadd.f32 %v8525_v23, %v2819_v54  ;;  %v11537_v54 = vld [vmem:[#allocation6_spill] sm:$0xff]  ;;  %v11540_v5 = vld [vmem:[#allocation12_spill] sm:$0xff] }
 0x652   :  { %v3372_v60 = vadd.f32 %v8595_v3, %v3186_v58  ;;  %v3188_v13 = vadd.f32 %v8610_v53, %v3002_v14  ;;  %v8848_v17 = vperm.slane %v8830_v39, 0  ;;  %v3557_v47 = vadd.f32 %v8589_v56, %v3371_v32  ;;  %v11536_v3 = vld [vmem:[#allocation75_spill] sm:$0xff]  ;;  %v11539_v53 = vld [vmem:[#allocation10_spill] sm:$0xff]  ;;  %v11544_v56 = vld [vmem:[#allocation13_spill] sm:$0xff] }
 0x653   :  { %v3738_v25 = vadd.f32 %v8600_v50, %v3552_v30  ;;  %v3007_v23 = vadd.f32 %v11536_v3, %v2821_v33  ;;  %v3739_v50 = vadd.f32 %v11537_v54, %v3553_v31  ;;  %v3559_v62 = vadd.f32 %v11539_v53, %v3373_v9  ;;  %v11546_v14 = vld [vmem:[#allocation36_spill] sm:$0xff]  ;;  %v11547_v58 = vld [vmem:[#allocation37_spill] sm:$0xff]  ;;  %v11555_v54 = vld [vmem:[#allocation83_spill] sm:$0xff] }
 0x654   :  { %v3558_v0 = vadd.f32 %v11538_v18, %v3372_v60  ;;  %v3374_v4 = vadd.f32 %v11540_v5, %v3188_v13  ;;  %v3190_v27 = vadd.f32 %v11542_v61, %v3004_v36  ;;  %v3191_v26 = vadd.f32 %v11543_v6, %v3005_v43  ;;  %v11549_v31 = vld [vmem:[#allocation52_spill] sm:$0xff]  ;;  %v11551_v36 = vld [vmem:[#allocation15_spill] sm:$0xff]  ;;  %v11556_v53 = vld [vmem:[#allocation21_spill] sm:$0xff] }
 0x655   :  { %v8781_v37 = vpop.f32.mrf.mxu1  ;;  %v3769_v48 = vadd.f32 %v8848_v17, %v3738_v25  ;;  %v3740_v33 = vadd.f32 %v11544_v56, %v3554_v40  ;;  %v3008_v29 = vadd.f32 %v11546_v14, %v2822_v28  ;;  %v3009_v55 = vadd.f32 %v11547_v58, %v2823_v38  ;;  %v11550_v9 = vld [vmem:[#allocation16_spill] sm:$0xff]  ;;  %v11552_v25 = vld [vmem:[#allocation19_spill] sm:$0xff]  ;;  %v11554_v28 = vld [vmem:[#allocation29_spill] sm:$0xff]  ;;  %v8879_v38 = vpop.f32.mrf.mxu2 }
 0x656   :  { %v3768_v20 = vadd.f32 %v8848_v17, %v3737_v16  ;;  %v3376_v30 = vadd.f32 %v11548_v34, %v3190_v27  ;;  %v3193_v32 = vadd.f32 %v11549_v31, %v3007_v23  ;;  %v3770_v60 = vadd.f32 %v8848_v17, %v3739_v50  ;;  %v8881_v16 = vpop.f32.mrf.mxu3  ;;  %v8887_v23 = vld [vmem:[%s11062_s3 + $0x8] sm:$0xff]  ;;  %v11559_v27 = vld [vmem:[#allocation38_spill] sm:$0xff]  ;;  %v11563_v58 = vld [vmem:[#allocation45_spill] sm:$0xff] }
 0x657   :  { %v3741_v13 = vadd.f32 %v11550_v9, %v3555_v44  ;;  %v3560_v43 = vadd.f32 %v11551_v36, %v3374_v4  ;;  %v8875_v40 = vadd.f32 %v11552_v25, %v3375_v8  ;;  %v3377_v57 = vadd.f32 %v11553_v41, %v3191_v26  ;;  %v11557_v4 = vld [vmem:[#allocation86_spill] sm:$0xff]  ;;  %v8925_v36 = vpop.f32.mrf.mxu0 }
 0x658   :  { %v3378_v3 = vadd.f32 %v11554_v28, %v3192_v52  ;;  %v3379_v18 = vadd.f32 %v11555_v54, %v3193_v32  ;;  %v8890_v44 = vmul.f32 %v8887_v23, %v3769_v48  ;;  %v3771_v50 = vadd.f32 %v8848_v17, %v3740_v33  ;;  %v11558_v8 = vld [vmem:[#allocation90_spill] sm:$0xff]  ;;  %v11560_v48 = vld [vmem:[#allocation8_spill] sm:$0xff]  ;;  %v11562_v52 = vld [vmem:[#allocation11_spill] sm:$0xff] }
 0x659   :  { %v3742_v5 = vadd.f32 %v11556_v53, %v3556_v42  ;;  %v3194_v19 = vadd.f32 %v11557_v4, %v3008_v29  ;;  %v3195_v61 = vadd.f32 %v11558_v8, %v3009_v55  ;;  %v3010_v6 = vadd.f32 %v11559_v27, %v8761_v12  ;;  %v8901_v26 = vld [vmem:[%s11062_s3] sm:$0xff]  ;;  %v8910_v42 = vld [vmem:[%s11062_s3 + $0x10] sm:$0xff]  ;;  %v11566_v32 = vld [vmem:[#allocation91_spill] sm:$0xff] }
 0x65a   :  { %v8904_v56 = vmul.f32 %v8901_v26, %v3768_v20  ;;  %v3562_v59 = vadd.f32 %v11560_v48, %v3376_v30  ;;  %11561 = vst [vmem:[#allocation25_spill] sm:$0xff] %v8910_v42  ;;  %v8913_v33 = vmul.f32 %v8910_v42, %v3770_v60  ;;  %v3772_v12 = vadd.f32 %v8848_v17, %v3741_v13  ;;  %v11564_v20 = vld [vmem:[#allocation48_spill] sm:$0xff]  ;;  %v11565_v30 = vld [vmem:[#allocation87_spill] sm:$0xff]  ;;  %v11568_v41 = vld [vmem:[#allocation58_spill] sm:$0xff] }
 0x65b   :  { %v3743_v14 = vadd.f32 %v11562_v52, %v3557_v47  ;;  %v3563_v55 = vadd.f32 %v11563_v58, %v3377_v57  ;;  %v8921_v34 = vadd.f32 %v11564_v20, %v3378_v3  ;;  %v3380_v31 = vadd.f32 %v11565_v30, %v3194_v19  ;;  %v8932_v47 = vld [vmem:[%s11062_s3 + $0x18] sm:$0xff]  ;;  %v11569_v28 = vld [vmem:[#allocation84_spill] sm:$0xff]  ;;  %v11570_v54 = vld [vmem:[#allocation95_spill] sm:$0xff] }
 0x65c   :  { %v3381_v9 = vadd.f32 %v11566_v32, %v3195_v61  ;;  %v3864_v60 = vmul.f32 %v8890_v44, %v8890_v44  ;;  %11567 = vst [vmem:[#allocation24_spill] sm:$0xff] %v8932_v47  ;;  %v8935_v13 = vmul.f32 %v8932_v47, %v3771_v50  ;;  %v3773_v25 = vadd.f32 %v8848_v17, %v3742_v5  ;;  %v11571_v4 = vld [vmem:[#allocation39_spill] sm:$0xff]  ;;  %v8952_v50 = vld [vmem:[%s11062_s3 + $0x20] sm:$0xff]  ;;  %v11576_v48 = vld [vmem:[#allocation93_spill] sm:$0xff] }
 0x65d   :  { %v8855_v2 = vpop.f32.mrf.mxu1  ;;  %v3744_v57 = vadd.f32 %v11568_v41, %v3558_v0  ;;  %v8940_v3 = vadd.f32 %v11569_v28, %v3379_v18  ;;  %v3196_v53 = vadd.f32 %v11570_v54, %v3010_v6  ;;  %v3011_v19 = vadd.f32 %v11571_v4, %v8767_v1  ;;  %11572 = vst [vmem:[#allocation17_spill] sm:$0xff] %v8952_v50  ;;  %v11574_v5 = vld [vmem:[#allocation66_spill] sm:$0xff]  ;;  %v11575_v6 = vld [vmem:[#allocation88_spill] sm:$0xff] }
 0x65e   :  { %v3863_v8 = vmul.f32 %v8904_v56, %v8904_v56  ;;  %v3865_v61 = vmul.f32 %v8913_v33, %v8913_v33  ;;  %v8955_v0 = vmul.f32 %v8952_v50, %v3772_v12  ;;  %v3774_v18 = vadd.f32 %v8848_v17, %v3743_v14  ;;  %v11577_v58 = vld [vmem:[#allocation96_spill] sm:$0xff]  ;;  %v8973_v14 = vld [vmem:[%s11062_s3 + $0x28] sm:$0xff] }
 0x65f   :  { %v3745_v27 = vadd.f32 %v11574_v5, %v3559_v62  ;;  %v8960_v1 = vadd.f32 %v11575_v6, %v3380_v31  ;;  %v8963_v52 = vadd.f32 %v11576_v48, %v3381_v9  ;;  %v3382_v20 = vadd.f32 %v11577_v58, %v3196_v53  ;;  %11578 = vst [vmem:[#allocation47_spill] sm:$0xff] %v8973_v14  ;;  %v11579_v9 = vld [vmem:[#allocation100_spill] sm:$0xff]  ;;  %v8982_v53 = vpop.f32.mrf.mxu2  ;;  %v11584_v58 = vld [vmem:[#allocation98_spill] sm:$0xff] }
 0x660   :  { %11573 = vst [vmem:[#allocation46_spill] sm:$0xff] %v8955_v0  ;;  %v3828_v30 = vadd.f32 %v8890_v44, %v8904_v56  ;;  %v3893_v32 = vadd.f32 %v3864_v60, %v3863_v8  ;;  %v3866_v12 = vmul.f32 %v8935_v13, %v8935_v13  ;;  %v8976_v62 = vmul.f32 %v8973_v14, %v3773_v25  ;;  %v11580_v28 = vld [vmem:[#allocation80_spill] sm:$0xff]  ;;  %v8984_v60 = vpop.f32.mrf.mxu3  ;;  %v11581_v8 = vld [vmem:[#allocation49_spill] sm:$0xff] }
 0x661   :  { %v3775_v31 = vadd.f32 %v8848_v17, %v3744_v57  ;;  %v3197_v41 = vadd.f32 %v11579_v9, %v3011_v19  ;;  %v3012_v54 = vadd.f32 %v11580_v28, %v8771_v10  ;;  %v3746_v5 = vadd.f32 %v11581_v8, %v3560_v43  ;;  %v8993_v57 = vld [vmem:[%s11062_s3 + $0x30] sm:$0xff]  ;;  %v11585_v43 = vld [vmem:[#allocation101_spill] sm:$0xff] }
 0x662   :  { %v3829_v4 = vadd.f32 %v3828_v30, %v8913_v33  ;;  %v3894_v6 = vadd.f32 %v3893_v32, %v3865_v61  ;;  %v3867_v25 = vmul.f32 %v8955_v0, %v8955_v0  ;;  %11582 = vst [vmem:[#allocation63_spill] sm:$0xff] %v8993_v57  ;;  %v8996_v19 = vmul.f32 %v8993_v57, %v3774_v18  ;;  %v11586_v32 = vld [vmem:[#allocation78_spill] sm:$0xff]  ;;  %v11587_v28 = vld [vmem:[#allocation85_spill] sm:$0xff]  ;;  %v11599_v42 = vld [vmem:[#allocation112_spill] sm:$0xff] }
 0x663   :  { %v3776_v10 = vadd.f32 %v8848_v17, %v3745_v27  ;;  %v9002_v30 = vadd.f32 %v11584_v58, %v3382_v20  ;;  %v3383_v61 = vadd.f32 %v11585_v43, %v3197_v41  ;;  %v3013_v9 = vadd.f32 %v11586_v32, %v8775_v24  ;;  %v9015_v27 = vld [vmem:[%s11062_s3 + $0x38] sm:$0xff]  ;;  %v11590_v41 = vld [vmem:[#allocation104_spill] sm:$0xff] }
 0x664   :  { %11583 = vst [vmem:[#allocation27_spill] sm:$0xff] %v8996_v19  ;;  %v3747_v8 = vadd.f32 %v11587_v28, %v8875_v40  ;;  %v3830_v14 = vadd.f32 %v3829_v4, %v8935_v13  ;;  %v3895_v50 = vadd.f32 %v3894_v6, %v3866_v12  ;;  %v3868_v18 = vmul.f32 %v8976_v62, %v8976_v62  ;;  %v11591_v24 = vld [vmem:[#allocation4_spill] sm:$0xff]  ;;  %v9023_v40 = vpop.f32.mrf.mxu0  ;;  %v11592_v4 = vld [vmem:[#allocation89_spill] sm:$0xff] }
 0x665   :  { %v8917_v29 = vpop.f32.mrf.mxu1  ;;  %11588 = vst [vmem:[#allocation20_spill] sm:$0xff] %v9015_v27  ;;  %v9018_v20 = vmul.f32 %v9015_v27, %v3775_v31  ;;  %v3198_v58 = vadd.f32 %v11590_v41, %v3012_v54  ;;  %v3014_v43 = vadd.f32 %v11591_v24, %v8779_v63  ;;  %v3777_v12 = vadd.f32 %v8848_v17, %v3746_v5  ;;  %v9033_v31 = vld [vmem:[%s11062_s3 + $0x40] sm:$0xff]  ;;  %v11596_v5 = vld [vmem:[#allocation105_spill] sm:$0xff] }
 0x666   :  { %v3748_v6 = vadd.f32 %v11592_v4, %v3562_v59  ;;  %v3831_v32 = vadd.f32 %v3830_v14, %v8955_v0  ;;  %v3896_v28 = vadd.f32 %v3895_v50, %v3867_v25  ;;  %v3869_v57 = vmul.f32 %v8996_v19, %v8996_v19  ;;  %11593 = vst [vmem:[#allocation26_spill] sm:$0xff] %v9033_v31  ;;  %v11595_v63 = vld [vmem:[#allocation102_spill] sm:$0xff]  ;;  %v11597_v14 = vld [vmem:[#allocation92_spill] sm:$0xff] }
 0x667   :  { %11589 = vst [vmem:[#allocation28_spill] sm:$0xff] %v9018_v20  ;;  %v9036_v54 = vmul.f32 %v9033_v31, %v3776_v10  ;;  %v9039_v41 = vadd.f32 %v11595_v63, %v3383_v61  ;;  %v3384_v24 = vadd.f32 %v11596_v5, %v3198_v58  ;;  %v3778_v59 = vadd.f32 %v8848_v17, %v3747_v8  ;;  %v11598_v25 = vld [vmem:[#allocation108_spill] sm:$0xff]  ;;  %v9052_v61 = vld [vmem:[%s11062_s3 + $0x48] sm:$0xff]  ;;  %v11603_v5 = vld [vmem:[#allocation106_spill] sm:$0xff] }
 0x668   :  { %v3749_v50 = vadd.f32 %v11597_v14, %v3563_v55  ;;  %v3199_v4 = vadd.f32 %v11598_v25, %v3013_v9  ;;  %v3832_v27 = vadd.f32 %v3831_v32, %v8976_v62  ;;  %v3897_v0 = vadd.f32 %v3896_v28, %v3868_v18  ;;  %11600 = vst [vmem:[#allocation67_spill] sm:$0xff] %v9052_v61  ;;  %v11601_v9 = vld [vmem:[#allocation97_spill] sm:$0xff]  ;;  %v11602_v18 = vld [vmem:[#allocation82_spill] sm:$0xff]  ;;  %v9070_v25 = vpop.f32.mrf.mxu3 }
 0x669   :  { %11594 = vst [vmem:[#allocation51_spill] sm:$0xff] %v9036_v54  ;;  %v3870_v47 = vmul.f32 %v9018_v20, %v9018_v20  ;;  %v3200_v10 = vadd.f32 %v11599_v42, %v3014_v43  ;;  %v9055_v58 = vmul.f32 %v9052_v61, %v3777_v12  ;;  %v3779_v55 = vadd.f32 %v8848_v17, %v3748_v6  ;;  %v9068_v12 = vpop.f32.mrf.mxu2  ;;  %v11606_v6 = vld [vmem:[#allocation109_spill] sm:$0xff] }
 0x66a   :  { %v3750_v8 = vadd.f32 %v11601_v9, %v8921_v34  ;;  %v3015_v32 = vadd.f32 %v11602_v18, %v8785_v51  ;;  %v3833_v28 = vadd.f32 %v3832_v27, %v8996_v19  ;;  %v3898_v63 = vadd.f32 %v3897_v0, %v3869_v57  ;;  %v9075_v34 = vld [vmem:[%s11062_s3 + $0x50] sm:$0xff]  ;;  %v11605_v57 = vld [vmem:[#allocation99_spill] sm:$0xff] }
 0x66b   :  { %v3871_v42 = vmul.f32 %v9036_v54, %v9036_v54  ;;  %v3570_v14 = vadd.f32 %v11603_v5, %v3384_v24  ;;  %11604 = vst [vmem:[#allocation70_spill] sm:$0xff] %v9075_v34  ;;  %v9078_v51 = vmul.f32 %v9075_v34, %v3778_v59  ;;  %v3780_v0 = vadd.f32 %v8848_v17, %v3749_v50  ;;  %v11607_v24 = vld [vmem:[#allocation113_spill] sm:$0xff] }
 0x66c   :  { %v3751_v27 = vadd.f32 %v11605_v57, %v8940_v3  ;;  %v3385_v9 = vadd.f32 %v11606_v6, %v3199_v4  ;;  %v3386_v18 = vadd.f32 %v11607_v24, %v3200_v10  ;;  %v3834_v5 = vadd.f32 %v3833_v28, %v9018_v20  ;;  %v9091_v59 = vld [vmem:[%s11062_s3 + $0x58] sm:$0xff]  ;;  %v11609_v4 = vld [vmem:[#allocation103_spill] sm:$0xff]  ;;  %v9103_v34 = vpop.f32.mrf.mxu0 }
 0x66d   :  { %v8999_v48 = vpop.f32.mrf.mxu1  ;;  %v3899_v61 = vadd.f32 %v3898_v63, %v3870_v47  ;;  %v3872_v31 = vmul.f32 %v9055_v58, %v9055_v58  ;;  %11608 = vst [vmem:[#allocation71_spill] sm:$0xff] %v9091_v59  ;;  %v9094_v50 = vmul.f32 %v9091_v59, %v3779_v55  ;;  %v3781_v3 = vadd.f32 %v8848_v17, %v3750_v8  ;;  %v11610_v10 = vld [vmem:[#allocation117_spill] sm:$0xff]  ;;  %v11611_v47 = vld [vmem:[#allocation40_spill] sm:$0xff]  ;;  %v9110_v55 = vld [vmem:[%s11062_s3 + $0x60] sm:$0xff] }
 0x66e   :  { %v3752_v57 = vadd.f32 %v11609_v4, %v8960_v1  ;;  %v3201_v6 = vadd.f32 %v11610_v10, %v3015_v32  ;;  %v3016_v28 = vadd.f32 %v11611_v47, %v8789_v15  ;;  %v3835_v63 = vadd.f32 %v3834_v5, %v9036_v54  ;;  %11612 = vst [vmem:[#allocation30_spill] sm:$0xff] %v9110_v55  ;;  %v11613_v15 = vld [vmem:[#allocation107_spill] sm:$0xff]  ;;  %v11616_v10 = vld [vmem:[#allocation118_spill] sm:$0xff] }
 0x66f   :  { %v3900_v24 = vadd.f32 %v3899_v61, %v3871_v42  ;;  %v3873_v20 = vmul.f32 %v9078_v51, %v9078_v51  ;;  %v9113_v1 = vmul.f32 %v9110_v55, %v3780_v0  ;;  %v3782_v8 = vadd.f32 %v8848_v17, %v3751_v27  ;;  %v11614_v5 = vld [vmem:[#allocation111_spill] sm:$0xff] }
 0x670   :  { %v3753_v32 = vadd.f32 %v11613_v15, %v8963_v52  ;;  %v3571_v61 = vadd.f32 %v11614_v5, %v3385_v9  ;;  %v11615_v42 = vld [vmem:[#allocation115_spill] sm:$0xff]  ;;  %v3387_v47 = vadd.f32 %v11616_v10, %v3201_v6  ;;  %v3836_v59 = vadd.f32 %v3835_v63, %v9055_v58  ;;  %v11619_v63 = vld [vmem:[#allocation110_spill] sm:$0xff] }
 0x671   :  { %v3572_v4 = vadd.f32 %v11615_v42, %v3386_v18  ;;  %v3901_v54 = vadd.f32 %v3900_v24, %v3872_v31  ;;  %v3874_v19 = vmul.f32 %v9094_v50, %v9094_v50  ;;  %v9127_v0 = vld [vmem:[%s11062_s3 + $0x68] sm:$0xff]  ;;  %v3783_v52 = vadd.f32 %v8848_v17, %v3752_v57  ;;  %v11618_v18 = vld [vmem:[#allocation41_spill] sm:$0xff]  ;;  %v11622_v10 = vld [vmem:[#allocation42_spill] sm:$0xff] }
 0x672   :  { %11617 = vst [vmem:[#allocation74_spill] sm:$0xff] %v9127_v0  ;;  %v9130_v27 = vmul.f32 %v9127_v0, %v3781_v3  ;;  %v3202_v9 = vadd.f32 %v8816_v7, %v3016_v28  ;;  %v3017_v6 = vadd.f32 %v11618_v18, %v8793_v45  ;;  %v3837_v31 = vadd.f32 %v3836_v59, %v9078_v51  ;;  %v9146_v3 = vld [vmem:[%s11062_s3 + $0x70] sm:$0xff]  ;;  %v11620_v59 = vld [vmem:[#allocation61_spill] sm:$0xff]  ;;  %v3356_v0 = vpop.f32.mrf.mxu3 }
 0x673   :  { %v3754_v24 = vadd.f32 %v11619_v63, %v9002_v30  ;;  %v3902_v5 = vadd.f32 %v3901_v54, %v3873_v20  ;;  %v3875_v42 = vmul.f32 %v9113_v1, %v9113_v1  ;;  %v9149_v7 = vmul.f32 %v9146_v3, %v3782_v8  ;;  %v11621_v20 = vld [vmem:[#allocation114_spill] sm:$0xff]  ;;  %v3170_v63 = vpop.f32.mrf.mxu2 }
 0x674   :  { %v3784_v45 = vadd.f32 %v8848_v17, %v3753_v32  ;;  %v3573_v57 = vadd.f32 %v11620_v59, %v3387_v47  ;;  %v3388_v30 = vadd.f32 %v8818_v46, %v3202_v9  ;;  %v3838_v28 = vadd.f32 %v3837_v31, %v9094_v50  ;;  %v9164_v32 = vld [vmem:[%s11062_s3 + $0x78] sm:$0xff]  ;;  %v11623_v9 = vld [vmem:[#allocation116_spill] sm:$0xff] }
 0x675   :  { %v9065_v43 = vpop.f32.mrf.mxu1  ;;  %v3755_v54 = vadd.f32 %v11621_v20, %v9039_v41  ;;  %v3018_v18 = vadd.f32 %v11622_v10, %v8797_v11  ;;  %v3903_v55 = vadd.f32 %v3902_v5, %v3874_v19  ;;  %v3876_v8 = vmul.f32 %v9130_v27, %v9130_v27  ;;  %v11624_v19 = vld [vmem:[#allocation43_spill] sm:$0xff] }
 0x676   :  { %v9167_v46 = vmul.f32 %v9164_v32, %v3783_v52  ;;  %v3203_v47 = vadd.f32 %v8879_v38, %v3017_v6  ;;  %v3839_v41 = vadd.f32 %v3838_v28, %v9113_v1  ;;  %v3785_v11 = vadd.f32 %v8848_v17, %v3754_v24  ;;  %v9180_v52 = vld [vmem:[%s11062_s3 + $0x80] sm:$0xff]  ;;  %v3542_v28 = vpop.f32.mrf.mxu0 }
 0x677   :  { %v3756_v31 = vadd.f32 %v11623_v9, %v3570_v14  ;;  %v3019_v5 = vadd.f32 %v11624_v19, %v8801_v35  ;;  %v3904_v59 = vadd.f32 %v3903_v55, %v3875_v42  ;;  %v3877_v20 = vmul.f32 %v9149_v7, %v9149_v7 }
 0x678   :  { %v9183_v38 = vmul.f32 %v9180_v52, %v3784_v45  ;;  %v3574_v6 = vadd.f32 %v8844_v22, %v3388_v30  ;;  %v3840_v24 = vadd.f32 %v3839_v41, %v9130_v27  ;;  %v3786_v14 = vadd.f32 %v8848_v17, %v3755_v54  ;;  %v9197_v22 = vld [vmem:[%s11062_s3 + $0x88] sm:$0xff]  ;;  %v11625_v54 = vld [vmem:[#allocation9_spill] sm:$0xff] }
 0x679   :  { %v3757_v35 = vadd.f32 %v8781_v37, %v3571_v61  ;;  %v3389_v55 = vadd.f32 %v8881_v16, %v3203_v47  ;;  %v3204_v42 = vadd.f32 %v8982_v53, %v3018_v18  ;;  %v3905_v10 = vadd.f32 %v3904_v59, %v3876_v8 }
 0x67a   :  { %v3878_v9 = vmul.f32 %v9167_v46, %v9167_v46  ;;  %v3841_v45 = vadd.f32 %v3840_v24, %v9149_v7  ;;  %v9200_v30 = vmul.f32 %v9197_v22, %v3785_v11  ;;  %v3787_v37 = vadd.f32 %v8848_v17, %v3756_v31  ;;  %v9213_v11 = vld [vmem:[%s11062_s3 + $0x90] sm:$0xff]  ;;  %v9229_v24 = vld [vmem:[%s11062_s3 + $0x98] sm:$0xff] }
 0x67b   :  { %v3758_v16 = vadd.f32 %v8855_v2, %v3572_v4  ;;  %v3205_v61 = vadd.f32 %v9068_v12, %v3019_v5  ;;  %v3020_v18 = vadd.f32 %v11625_v54, %v8805_v49  ;;  %v3906_v8 = vadd.f32 %v3905_v10, %v3877_v20 }
 0x67c   :  { %v3879_v47 = vmul.f32 %v9183_v38, %v9183_v38  ;;  %v3842_v41 = vadd.f32 %v3841_v45, %v9167_v46  ;;  %v9216_v31 = vmul.f32 %v9213_v11, %v3786_v14  ;;  %v3788_v2 = vadd.f32 %v8848_v17, %v3757_v35  ;;  %v3359_v35 = vpop.f32.mrf.mxu3  ;;  %v9244_v45 = vld [vmem:[%s11062_s3 + $0xa0] sm:$0xff] }
 0x67d   :  { %v9139_v15 = vpop.f32.mrf.mxu1  ;;  %v3759_v12 = vadd.f32 %v8917_v29, %v3573_v57  ;;  %v3575_v49 = vadd.f32 %v8925_v36, %v3389_v55  ;;  %v3390_v4 = vadd.f32 %v8984_v60, %v3204_v42  ;;  %v3391_v19 = vadd.f32 %v9070_v25, %v3205_v61  ;;  %v3173_v36 = vpop.f32.mrf.mxu2  ;;  %v11626_v25 = vld [vmem:[#allocation44_spill] sm:$0xff] }
 0x67e   :  { %v3907_v5 = vadd.f32 %v3906_v8, %v3878_v9  ;;  %v3843_v59 = vadd.f32 %v3842_v41, %v9183_v38  ;;  %v3880_v20 = vmul.f32 %v9200_v30, %v9200_v30  ;;  %v9232_v14 = vmul.f32 %v9229_v24, %v3787_v37  ;;  %v9260_v41 = vld [vmem:[%s11062_s3 + $0xa8] sm:$0xff] }
 0x67f   :  { %v3789_v29 = vadd.f32 %v8848_v17, %v3758_v16  ;;  %v3206_v60 = vadd.f32 %v3170_v63, %v3020_v18  ;;  %v3021_v57 = vadd.f32 %v11626_v25, %v8811_v21  ;;  %v3760_v42 = vadd.f32 %v8999_v48, %v3574_v6  ;;  %v11627_v21 = vld [vmem:[#allocation73_spill] sm:$0xff] }
 0x680   :  { %v3908_v55 = vadd.f32 %v3907_v5, %v3879_v47  ;;  %v3844_v10 = vadd.f32 %v3843_v59, %v9200_v30  ;;  %v3881_v9 = vmul.f32 %v9216_v31, %v9216_v31  ;;  %v9247_v37 = vmul.f32 %v9244_v45, %v3788_v2  ;;  %v11628_v16 = vld [vmem:[#allocation77_spill] sm:$0xff] }
 0x681   :  { %v3790_v63 = vadd.f32 %v8848_v17, %v3759_v12  ;;  %v2836_v61 = vadd.f32 %v11628_v16, %v11627_v21  ;;  %v3576_v48 = vadd.f32 %v9023_v40, %v3390_v4  ;;  %v3392_v6 = vadd.f32 %v3356_v0, %v3206_v60  ;;  %v3545_v4 = vpop.f32.mrf.mxu0 }
 0x682   :  { %v3761_v54 = vadd.f32 %v9065_v43, %v3575_v49  ;;  %v3909_v18 = vadd.f32 %v3908_v55, %v3880_v20  ;;  %v3845_v8 = vadd.f32 %v3844_v10, %v9216_v31  ;;  %v3882_v47 = vmul.f32 %v9232_v14, %v9232_v14 }
 0x683   :  { %v9263_v2 = vmul.f32 %v9260_v41, %v3789_v29  ;;  %v3577_v40 = vadd.f32 %v9103_v34, %v3391_v19  ;;  %v3207_v0 = vadd.f32 %v3173_v36, %v3021_v57  ;;  %v3791_v43 = vadd.f32 %v8848_v17, %v3760_v42  ;;  %v9274_v29 = vld [vmem:[%s11062_s3 + $0xb0] sm:$0xff] }
 0x684   :  { %v3762_v49 = vadd.f32 %v9139_v15, %v3576_v48  ;;  %v3910_v5 = vadd.f32 %v3909_v18, %v3881_v9  ;;  %v3846_v59 = vadd.f32 %v3845_v8, %v9232_v14  ;;  %v3883_v20 = vmul.f32 %v9247_v37, %v9247_v37  ;;  %v11629_v15 = vld [vmem:[#allocation56_spill] sm:$0xff]  ;;  %v9287_v9 = vld [vmem:[%s11062_s3 + $0xb8] sm:$0xff] }
 0x685   :  { %v3725_v53 = vpop.f32.mrf.mxu1  ;;  %v9277_v60 = vmul.f32 %v9274_v29, %v3790_v63  ;;  %v3578_v34 = vadd.f32 %v3542_v28, %v3392_v6  ;;  %v3393_v19 = vadd.f32 %v3359_v35, %v3207_v0  ;;  %v3792_v36 = vadd.f32 %v8848_v17, %v3761_v54  ;;  %v3362_v6 = vpop.f32.mrf.mxu3  ;;  %v9299_v54 = vld [vmem:[%s11062_s3 + $0xc0] sm:$0xff] }
 0x686   :  { %v3763_v25 = vadd.f32 %v3725_v53, %v3577_v40  ;;  %v3022_v57 = vadd.f32 %v11629_v15, %v2836_v61  ;;  %v3911_v55 = vadd.f32 %v3910_v5, %v3882_v47  ;;  %v3847_v42 = vadd.f32 %v3846_v59, %v9247_v37  ;;  %v3176_v61 = vpop.f32.mrf.mxu2  ;;  %v9323_v15 = vld [vmem:[%s11062_s3 + $0xd0] sm:$0xff] }
 0x687   :  { %v3884_v10 = vmul.f32 %v9263_v2, %v9263_v2  ;;  %v9290_v63 = vmul.f32 %v9287_v9, %v3791_v43  ;;  %v3793_v28 = vadd.f32 %v8848_v17, %v3762_v49  ;;  %v3885_v16 = vmul.f32 %v9277_v60, %v9277_v60  ;;  %11631 = vst [vmem:[#allocation55_spill] sm:$0xff] %v9323_v15 }
 0x688   :  { %v3912_v53 = vadd.f32 %v3911_v55, %v3883_v20  ;;  %v3848_v21 = vadd.f32 %v3847_v42, %v9263_v2  ;;  %v3579_v48 = vadd.f32 %v3545_v4, %v3393_v19  ;;  %v9302_v18 = vmul.f32 %v9299_v54, %v3792_v36  ;;  %v9311_v4 = vld [vmem:[%s11062_s3 + $0xc8] sm:$0xff] }
 0x689   :  { %v3794_v8 = vadd.f32 %v8848_v17, %v3763_v25  ;;  %v3208_v47 = vadd.f32 %v3176_v61, %v3022_v57  ;;  %v3886_v43 = vmul.f32 %v9290_v63, %v9290_v63  ;;  %11630 = vst [vmem:[#allocation59_spill] sm:$0xff] %v9311_v4  ;;  %v9314_v49 = vmul.f32 %v9311_v4, %v3793_v28  ;;  %v3548_v19 = vpop.f32.mrf.mxu0 }
 0x68a   :  { %v3849_v40 = vadd.f32 %v3848_v21, %v9277_v60  ;;  %v3887_v25 = vmul.f32 %v9302_v18, %v9302_v18 }
 0x68b   :  { %v3394_v20 = vadd.f32 %v3362_v6, %v3208_v47  ;;  %v9326_v57 = vmul.f32 %v9323_v15, %v3794_v8  ;;  %v3888_v28 = vmul.f32 %v9314_v49, %v9314_v49  ;;  %v9346_v6 = vld [vmem:[%s11062_s3 + $0xe0] sm:$0xff] }
 0x68c   :  { %v3850_v36 = vadd.f32 %v3849_v40, %v9290_v63  ;;  %11633 = vst [vmem:[#allocation54_spill] sm:$0xff] %v9346_v6 }
 0x68d   :  { %v3728_v12 = vpop.f32.mrf.mxu1  ;;  %v3580_v21 = vadd.f32 %v3548_v19, %v3394_v20 }
 0x68e   :  { %v3764_v35 = vadd.f32 %v3728_v12, %v3578_v34  ;;  %v3913_v12 = vadd.f32 %v3912_v53, %v3884_v10  ;;  %v3851_v10 = vadd.f32 %v3850_v36, %v9302_v18 }
 0x690   :  { %v3795_v5 = vadd.f32 %v8848_v17, %v3764_v35  ;;  %v3914_v34 = vadd.f32 %v3913_v12, %v3885_v16  ;;  %v9335_v35 = vld [vmem:[%s11062_s3 + $0xd8] sm:$0xff]  ;;  %v3852_v61 = vadd.f32 %v3851_v10, %v9314_v49 }
 0x691   :  { %11632 = vst [vmem:[#allocation76_spill] sm:$0xff] %v9335_v35 }
 0x692   :  { %v3915_v42 = vadd.f32 %v3914_v34, %v3886_v43  ;;  %v9338_v53 = vmul.f32 %v9335_v35, %v3795_v5  ;;  %v3853_v40 = vadd.f32 %v3852_v61, %v9326_v57 }
 0x694   :  { %v3916_v16 = vadd.f32 %v3915_v42, %v3887_v25  ;;  %v9362_v25 = vld [vmem:[%s11062_s3 + $0xe8] sm:$0xff] }
 0x695   :  { %v3731_v0 = vpop.f32.mrf.mxu1 }
 0x696   :  { %v3765_v59 = vadd.f32 %v3731_v0, %v3579_v48  ;;  %v3889_v48 = vmul.f32 %v9326_v57, %v9326_v57  ;;  %v3917_v12 = vadd.f32 %v3916_v16, %v3888_v28  ;;  %v3890_v0 = vmul.f32 %v9338_v53, %v9338_v53 }
 0x698   :  { %v3796_v55 = vadd.f32 %v8848_v17, %v3765_v59  ;;  %v3918_v5 = vadd.f32 %v3917_v12, %v3889_v48  ;;  %v3854_v59 = vadd.f32 %v3853_v40, %v9338_v53 }
 0x69a   :  { %v9349_v8 = vmul.f32 %v9346_v6, %v3796_v55  ;;  %v3919_v19 = vadd.f32 %v3918_v5, %v3890_v0 }
 0x69c   :  { %v3891_v20 = vmul.f32 %v9349_v8, %v9349_v8  ;;  %v3855_v36 = vadd.f32 %v3854_v59, %v9349_v8 }
 0x69d   :  { %v3734_v47 = vpop.f32.mrf.mxu1 }
 0x69e   :  { %v3766_v43 = vadd.f32 %v3734_v47, %v3580_v21  ;;  %v3920_v42 = vadd.f32 %v3919_v19, %v3891_v20  ;;  %v6254_v19 = vld [vmem:[%s11059_s1 + $0x90] sm:$0xff] }
 0x69f   :  { %4383 = vmatpush.msrb.mxu3 %v6254_v19 }
 0x6a0   :  { %v3797_v34 = vadd.f32 %v8848_v17, %v3766_v43 }
 0x6a2   :  { %v3827_v55 = vmul.f32 %v9362_v25, %v3797_v34 }
 0x6a4   :  { %v3856_v10 = vadd.f32 %v3855_v36, %v3827_v55  ;;  %v3892_v28 = vmul.f32 %v3827_v55, %v3827_v55  ;;  %v4215_v36 = vld [vmem:[#allocation2 + $0x1] sm:$0xff] }
 0x6a5   :  { %4277 = vmatmul.f32.vlgmr.msra.gmra.mxu2 %v4215_v36 }
 0x6a6   :  { %v3857_v21 = vrot.slane %v3856_v10, 4  ;;  %v3921_v16 = vadd.f32 %v3920_v42, %v3892_v28  ;;  %v6256_v42 = vld [vmem:[%s11059_s1 + $0xa0] sm:$0xff] }
 0x6a7   :  { %4539 = vmatpush.msrb.mxu0 %v6256_v42 }
 0x6a8   :  { %v3858_v61 = vadd.f32 %v3857_v21, %v3856_v10  ;;  %v3922_v48 = vrot.slane %v3921_v16, 4  ;;  %v4478_v10 = vld [vmem:[#allocation2 + $0x2] sm:$0xff] }
 0x6a9   :  { %4540 = vmatmul.f32.vlgmr.msrb.gmra.mxu0 %v4478_v10 }
 0x6aa   :  { %v3859_v47 = vrot.slane %v3858_v61, 2  ;;  %v3923_v12 = vadd.f32 %v3922_v48, %v3921_v16 }
 0x6ac   :  { %v3860_v17 = vadd.f32 %v3859_v47, %v3858_v61  ;;  %v3924_v40 = vrot.slane %v3923_v12, 2 }
 0x6ae   :  { %v3861_v0 = vrot.slane %v3860_v17, 1  ;;  %v3925_v43 = vadd.f32 %v3924_v40, %v3923_v12 }
 0x6b0   :  { %v3862_v5 = vadd.f32 %v3861_v0, %v3860_v17  ;;  %v3926_v59 = vrot.slane %v3925_v43, 1 }
 0x6b2   :  { %v3927_v6 = vadd.f32 %v3926_v59, %v3925_v43  ;;  %v3928_v35 = vmul.f32 0.0064102565, %v3862_v5 }
 0x6b4   :  { %v3929_v15 = vmul.f32 0.0064102565, %v3927_v6  ;;  %v3930_v4 = vmul.f32 %v3928_v35, %v3928_v35  ;;  %v6258_v6 = vld [vmem:[%s11059_s1 + $0xb0] sm:$0xff] }
 0x6b5   :  { %4911 = vmatpush.msrb.mxu2 %v6258_v6 }
 0x6b6   :  { %v3931_v34 = vsub.f32 %v3929_v15, %v3930_v4  ;;  %v6257_v4 = vld [vmem:[%s11059_s1 + $0xa8] sm:$0xff]  ;;  %v11634_v15 = vld [vmem:[#allocation94_spill] sm:$0xff] }
 0x6b7   :  { %4384 = vmatmul.f32.vlgmr.msrb.gmra.mxu3 %v11634_v15  ;;  %4725 = vmatpush.msrb.mxu1 %v6257_v4 }
 0x6b8   :  { %v3932_v20 = vadd.f32 1e-05, %v3931_v34 }
 0x6ba   :  { %6269 = vrsqrt.f32 %v3932_v20  ;;  %vm3939_vm2 = vweird.f32 %v3932_v20 }
 0x6bf   :  { %4387 = vmatmul.f32.gmra.mxu3 %v11634_v15 }
 0x6c0   :  { %v6270_v28 = vpop.eup %6269 }
 0x6c1   :  { %v3934_v21 = vmul.f32 %v6270_v28, %v3932_v20  ;;  %vm3940_vm1 = vweird.f32 %v6270_v28 }
 0x6c2   :  { %vm3941_vm3 = vmor %vm3939_vm2, %vm3940_vm1 }
 0x6c3   :  { %v3935_v16 = vmul.f32 %v6270_v28, %v3934_v21 }
 0x6c5   :  { %v3936_v61 = vmul.f32 0.5, %v3935_v16 }
 0x6c7   :  { %v3937_v48 = vsub.f32 1.5, %v3936_v61 }
 0x6c9   :  { %v3938_v47 = vmul.f32 %v6270_v28, %v3937_v48 }
 0x6cb   :  { %v3942_v12 = vsel %vm3941_vm3, %v6270_v28, %v3938_v47  ;;  %v11635_v47 = vld [vmem:[#allocation25_spill] sm:$0xff] }
 0x6cc   :  { %v3943_v17 = vmul.f32 %v8830_v39, %v3942_v12 }
 0x6ce   :  { %v3944_v40 = vmul.f32 %v3943_v17, %v3928_v35  ;;  %v9380_v0 = vperm.slane %v3943_v17, 1 }
 0x6d0   :  { %v3946_v43 = vrot.slane %v3944_v40, 7  ;;  %v3979_v59 = vmul.f32 %v9380_v0, %v3827_v55  ;;  %v3950_v19 = vmul.f32 %v9380_v0, %v8904_v56  ;;  %v3951_v20 = vmul.f32 %v9380_v0, %v8890_v44 }
 0x6d1   :  { %v3952_v36 = vmul.f32 %v9380_v0, %v8913_v33  ;;  %v3953_v55 = vmul.f32 %v9380_v0, %v8935_v13 }
 0x6d2   :  { %v3948_v5 = vsub.f32 %v8830_v39, %v3946_v43  ;;  %v11636_v43 = vld [vmem:[#allocation24_spill] sm:$0xff] }
 0x6d4   :  { %v9384_v34 = vperm.slane %v3948_v5, 2 }
 0x6d6   :  { %v4010_v35 = vadd.f32 %v9384_v34, %v3979_v59  ;;  %v3981_v42 = vadd.f32 %v9384_v34, %v3950_v19  ;;  %v3982_v10 = vadd.f32 %v9384_v34, %v3951_v20  ;;  %v3983_v39 = vadd.f32 %v9384_v34, %v3952_v36  ;;  %v11637_v59 = vld [vmem:[#allocation46_spill] sm:$0xff] }
 0x6d7   :  { %v3984_v28 = vadd.f32 %v9384_v34, %v3953_v55  ;;  %v11639_v55 = vld [vmem:[#allocation27_spill] sm:$0xff] }
 0x6d8   :  { %vm4040_vm4 = vcmp.gt.f32.partialorder %v4010_v35, 0.0  ;;  %v4070_v6 = vmul.f32 0.01, %v4010_v35  ;;  %vm4011_vm5 = vcmp.gt.f32.partialorder %v3981_v42, 0.0  ;;  %v4041_v56 = vmul.f32 0.01, %v3981_v42 }
 0x6d9   :  { %vm4012_vm6 = vcmp.gt.f32.partialorder %v3982_v10, 0.0  ;;  %v4042_v44 = vmul.f32 0.01, %v3982_v10  ;;  %vm4013_vm7 = vcmp.gt.f32.partialorder %v3983_v39, 0.0  ;;  %v4043_v4 = vmul.f32 0.01, %v3983_v39 }
 0x6da   :  { %v4100_v33 = vsel %vm4040_vm4, %v4010_v35, %v4070_v6  ;;  %v4071_v15 = vsel %vm4011_vm5, %v3981_v42, %v4041_v56  ;;  %vm4014_vm8 = vcmp.gt.f32.partialorder %v3984_v28, 0.0  ;;  %v4044_v17 = vmul.f32 0.01, %v3984_v28  ;;  %v11638_v42 = vld [vmem:[#allocation17_spill] sm:$0xff]  ;;  %v11640_v56 = vld [vmem:[#allocation28_spill] sm:$0xff] }
 0x6db   :  { %v4130_v21 = vmul.f32 %v9362_v25, %v4100_v33  ;;  %v4101_v16 = vmul.f32 %v8901_v26, %v4071_v15  ;;  %v4072_v61 = vsel %vm4012_vm6, %v3982_v10, %v4042_v44  ;;  %v4073_v48 = vsel %vm4013_vm7, %v3983_v39, %v4043_v4  ;;  %v11641_v4 = vld [vmem:[#allocation51_spill] sm:$0xff] }
 0x6dc   :  { %v4102_v13 = vmul.f32 %v8887_v23, %v4072_v61  ;;  %v4103_v12 = vmul.f32 %v11635_v47, %v4073_v48  ;;  %v4074_v40 = vsel %vm4014_vm8, %v3984_v28, %v4044_v17  ;;  %v3954_v25 = vmul.f32 %v9380_v0, %v11637_v59  ;;  %v11642_v17 = vld [vmem:[#allocation47_spill] sm:$0xff] }
 0x6dd   :  { %4160 = vst [vmem:[#allocation2 + $0xf8] sm:$0xff] %v4130_v21  ;;  %4390 = vmatmul.f32.gmra.mxu3 %v4101_v16  ;;  %v9404_v5 = vmul.f32 %v11636_v43, %v4074_v40  ;;  %v3955_v39 = vmul.f32 %v9380_v0, %v8976_v62  ;;  %v3956_v6 = vmul.f32 %v9380_v0, %v11639_v55 }
 0x6de   :  { %4131 = vst [vmem:[#allocation2 + $0x10] sm:$0xff] %v4101_v16  ;;  %v3985_v23 = vadd.f32 %v9384_v34, %v3954_v25  ;;  %v3957_v44 = vmul.f32 %v9380_v0, %v11640_v56  ;;  %v3958_v33 = vmul.f32 %v9380_v0, %v11641_v4  ;;  %v3959_v28 = vmul.f32 %v9380_v0, %v9055_v58  ;;  %v11644_v56 = vld [vmem:[#allocation20_spill] sm:$0xff]  ;;  %v11645_v4 = vld [vmem:[#allocation26_spill] sm:$0xff] }
 0x6df   :  { %4132 = vst [vmem:[#allocation2 + $0x18] sm:$0xff] %v4102_v13  ;;  %v3986_v15 = vadd.f32 %v9384_v34, %v3955_v39  ;;  %v3960_v21 = vmul.f32 %v9380_v0, %v9078_v51  ;;  %v3961_v62 = vmul.f32 %v9380_v0, %v9094_v50  ;;  %v3962_v16 = vmul.f32 %v9380_v0, %v9113_v1 }
 0x6e0   :  { %4133 = vst [vmem:[#allocation2 + $0x20] sm:$0xff] %v4103_v12  ;;  %vm4015_vm9 = vcmp.gt.f32.partialorder %v3985_v23, 0.0  ;;  %v4045_v26 = vmul.f32 0.01, %v3985_v23  ;;  %v9433_v61 = vmul.f32 %v9380_v0, %v9130_v27  ;;  %v9437_v48 = vmul.f32 %v9380_v0, %v9149_v7 }
 0x6e1   :  { %4134 = vst [vmem:[#allocation2 + $0x28] sm:$0xff] %v9404_v5  ;;  %v9441_v58 = vmul.f32 %v9380_v0, %v9167_v46  ;;  %vm4016_vm10 = vcmp.gt.f32.partialorder %v3986_v15, 0.0  ;;  %v4046_v51 = vmul.f32 0.01, %v3986_v15  ;;  %v9445_v50 = vmul.f32 %v9380_v0, %v9183_v38 }
 0x6e2   :  { %v4075_v35 = vsel %vm4015_vm9, %v3985_v23, %v4045_v26  ;;  %v9449_v1 = vmul.f32 %v9380_v0, %v9200_v30  ;;  %v9453_v27 = vmul.f32 %v9380_v0, %v9216_v31  ;;  %v9457_v7 = vmul.f32 %v9380_v0, %v9232_v14 }
 0x6e3   :  { %v9411_v10 = vmul.f32 %v11638_v42, %v4075_v35  ;;  %v9461_v46 = vmul.f32 %v9380_v0, %v9247_v37  ;;  %v9465_v38 = vmul.f32 %v9380_v0, %v9263_v2  ;;  %v4076_v47 = vsel %vm4016_vm10, %v3986_v15, %v4046_v51  ;;  %v11643_v42 = vld [vmem:[#allocation63_spill] sm:$0xff] }
 0x6e4   :  { %v9471_v31 = vmul.f32 %v9380_v0, %v9277_v60  ;;  %v9475_v14 = vmul.f32 %v9380_v0, %v9290_v63  ;;  %v9479_v37 = vmul.f32 %v9380_v0, %v9302_v18  ;;  %v9483_v40 = vmul.f32 %v11642_v17, %v4076_v47 }
 0x6e5   :  { %v4216_v19 = vld [vmem:[#allocation2 + $0x9] sm:$0xff]  ;;  %4393 = vmatmul.f32.gmra.mxu3 %v4102_v13  ;;  %4135 = vst [vmem:[#allocation2 + $0x30] sm:$0xff] %v9411_v10  ;;  %v3988_v60 = vadd.f32 %v9384_v34, %v3957_v44  ;;  %v3989_v43 = vadd.f32 %v9384_v34, %v3958_v33  ;;  %v3990_v63 = vadd.f32 %v9384_v34, %v3959_v28 }
 0x6e6   :  { %v4479_v20 = vld [vmem:[#allocation2 + $0xa] sm:$0xff]  ;;  %4280 = vmatmul.f32.gmra.mxu2 %v4216_v19  ;;  %v4480_v30 = vld [vmem:[#allocation2 + $0x12] sm:$0xff]  ;;  %v3991_v59 = vadd.f32 %v9384_v34, %v3960_v21  ;;  %v3992_v18 = vadd.f32 %v9384_v34, %v3961_v62  ;;  %4136 = vst [vmem:[#allocation2 + $0x38] sm:$0xff] %v9483_v40  ;;  %v3993_v23 = vadd.f32 %v9384_v34, %v3962_v16 }
 0x6e7   :  { %v4664_v36 = vld [vmem:[#allocation2 + $0xf] sm:$0xff]  ;;  %4543 = vmatmul.f32.gmra.mxu0 %v4479_v20  ;;  %v4665_v2 = vld [vmem:[#allocation2 + $0x17] sm:$0xff]  ;;  %vm4018_vm12 = vcmp.gt.f32.partialorder %v3988_v60, 0.0  ;;  %v4048_v26 = vmul.f32 0.01, %v3988_v60  ;;  %vm4019_vm13 = vcmp.gt.f32.partialorder %v3989_v43, 0.0 }
 0x6e8   :  { %4726 = vmatmul.f32.vlgmr.msrb.gmra.mxu1 %v4664_v36  ;;  %v9467_v13 = vld [vmem:[#allocation2 + $0x11] sm:$0xff]  ;;  %v4049_v19 = vmul.f32 0.01, %v3989_v43  ;;  %vm4020_vm14 = vcmp.gt.f32.partialorder %v3990_v63, 0.0  ;;  %v4050_v36 = vmul.f32 0.01, %v3990_v63 }
 0x6e9   :  { %vm4021_vm15 = vcmp.gt.f32.partialorder %v3991_v59, 0.0  ;;  %v4051_v35 = vmul.f32 0.01, %v3991_v59  ;;  %v4078_v55 = vsel %vm4018_vm12, %v3988_v60, %v4048_v26  ;;  %vm4022_vm0 = vcmp.gt.f32.partialorder %v3992_v18, 0.0  ;;  %v9502_v21 = vld [vmem:[#allocation2 + $0x19] sm:$0xff]  ;;  %v11646_v16 = vld [vmem:[#allocation67_spill] sm:$0xff] }
 0x6ea   :  { %v9497_v44 = vmul.f32 %v11644_v56, %v4078_v55  ;;  %v4080_v15 = vsel %vm4020_vm14, %v3990_v63, %v4050_v36  ;;  %v4481_v62 = vld [vmem:[#allocation2 + $0x1a] sm:$0xff]  ;;  %vm4023_vm1 = vcmp.gt.f32.partialorder %v3993_v23, 0.0  ;;  %v3995_v60 = vadd.f32 %v9384_v34, %v9437_v48 }
 0x6eb   :  { %v4081_v28 = vsel %vm4021_vm15, %v3991_v59, %v4051_v35  ;;  %v9507_v51 = vmul.f32 %v11646_v16, %v4080_v15  ;;  %v4666_v17 = vld [vmem:[#allocation2 + $0x1f] sm:$0xff]  ;;  %v3996_v63 = vadd.f32 %v9384_v34, %v9441_v58  ;;  %v3997_v59 = vadd.f32 %v9384_v34, %v9445_v50 }
 0x6ec   :  { %4138 = vst [vmem:[#allocation2 + $0x48] sm:$0xff] %v9497_v44  ;;  %v11649_v48 = vld [vmem:[#allocation30_spill] sm:$0xff]  ;;  %vm4025_vm3 = vcmp.gt.f32.partialorder %v3995_v60, 0.0  ;;  %v3998_v55 = vadd.f32 %v9384_v34, %v9449_v1 }
 0x6ed   :  { %4396 = vmatmul.f32.gmra.mxu3 %v4103_v12  ;;  %v3987_v12 = vadd.f32 %v9384_v34, %v3956_v6  ;;  %v4079_v6 = vsel %vm4019_vm13, %v3989_v43, %v4049_v19  ;;  %4140 = vst [vmem:[#allocation2 + $0x58] sm:$0xff] %v9507_v51  ;;  %vm4026_vm4 = vcmp.gt.f32.partialorder %v3996_v63, 0.0  ;;  %v4056_v50 = vmul.f32 0.01, %v3996_v63  ;;  %v11650_v35 = vld [vmem:[#allocation74_spill] sm:$0xff] }
 0x6ee   :  { %4283 = vmatmul.f32.gmra.mxu2 %v9467_v13  ;;  %v9500_v33 = vmul.f32 %v11645_v4, %v4079_v6  ;;  %vm4027_vm5 = vcmp.gt.f32.partialorder %v3997_v59, 0.0  ;;  %v4057_v36 = vmul.f32 0.01, %v3997_v59  ;;  %v3999_v6 = vadd.f32 %v9384_v34, %v9453_v27  ;;  %v4482_v16 = vld [vmem:[#allocation2 + $0x22] sm:$0xff] }
 0x6ef   :  { %4546 = vmatmul.f32.gmra.mxu0 %v4480_v30  ;;  %vm4017_vm11 = vcmp.gt.f32.partialorder %v3987_v12, 0.0  ;;  %v4047_v25 = vmul.f32 0.01, %v3987_v12  ;;  %v11647_v30 = vld [vmem:[#allocation70_spill] sm:$0xff]  ;;  %v4086_v4 = vsel %vm4026_vm4, %v3996_v63, %v4056_v50  ;;  %vm4028_vm6 = vcmp.gt.f32.partialorder %v3998_v55, 0.0 }
 0x6f0   :  { %4729 = vmatmul.f32.gmra.mxu1 %v4665_v2  ;;  %v9510_v47 = vmul.f32 %v11647_v30, %v4081_v28  ;;  %v4052_v2 = vmul.f32 0.01, %v3992_v18  ;;  %4139 = vst [vmem:[#allocation2 + $0x50] sm:$0xff] %v9500_v33  ;;  %v4087_v15 = vsel %vm4027_vm5, %v3997_v59, %v4057_v36  ;;  %v4000_v28 = vadd.f32 %v9384_v34, %v9457_v7  ;;  %v4667_v7 = vld [vmem:[#allocation2 + $0x27] sm:$0xff] }
 0x6f1   :  { %v4077_v20 = vsel %vm4017_vm11, %v3987_v12, %v4047_v25  ;;  %v4053_v12 = vmul.f32 0.01, %v3993_v23  ;;  %v11648_v25 = vld [vmem:[#allocation71_spill] sm:$0xff]  ;;  %v9551_v1 = vmul.f32 %v9164_v32, %v4086_v4  ;;  %v9554_v27 = vmul.f32 %v9180_v52, %v4087_v15 }
 0x6f2   :  { %v9494_v39 = vmul.f32 %v11643_v42, %v4077_v20  ;;  %v4082_v43 = vsel %vm4022_vm0, %v3992_v18, %v4052_v2  ;;  %4141 = vst [vmem:[#allocation2 + $0x60] sm:$0xff] %v9510_v47  ;;  %v4055_v18 = vmul.f32 0.01, %v3995_v60  ;;  %v4058_v30 = vmul.f32 0.01, %v3998_v55 }
 0x6f3   :  { %v9526_v26 = vmul.f32 %v11648_v25, %v4082_v43  ;;  %vm4029_vm7 = vcmp.gt.f32.partialorder %v3999_v6, 0.0  ;;  %v4002_v32 = vadd.f32 %v9384_v34, %v9465_v38  ;;  %4146 = vst [vmem:[#allocation2 + $0x88] sm:$0xff] %v9551_v1  ;;  %v4059_v52 = vmul.f32 0.01, %v3999_v6 }
 0x6f4   :  { %4137 = vst [vmem:[#allocation2 + $0x40] sm:$0xff] %v9494_v39  ;;  %v4085_v42 = vsel %vm4025_vm3, %v3995_v60, %v4055_v18  ;;  %v4004_v2 = vadd.f32 %v9384_v34, %v9475_v14  ;;  %vm4030_vm8 = vcmp.gt.f32.partialorder %v4000_v28, 0.0  ;;  %v4060_v60 = vmul.f32 0.01, %v4000_v28 }
 0x6f5   :  { %4399 = vmatmul.f32.gmra.mxu3 %v9404_v5  ;;  %v3994_v5 = vadd.f32 %v9384_v34, %v9433_v61  ;;  %v4083_v61 = vsel %vm4023_vm1, %v3993_v23, %v4053_v12  ;;  %4142 = vst [vmem:[#allocation2 + $0x68] sm:$0xff] %v9526_v26  ;;  %v9542_v56 = vmul.f32 %v9146_v3, %v4085_v42  ;;  %vm4032_vm10 = vcmp.gt.f32.partialorder %v4002_v32, 0.0 }
 0x6f6   :  { %4286 = vmatmul.f32.gmra.mxu2 %v9502_v21  ;;  %v9530_v20 = vmul.f32 %v11649_v48, %v4083_v61  ;;  %v3975_v3 = vmul.f32 %v9380_v0, %v9314_v49  ;;  %v4003_v49 = vadd.f32 %v9384_v34, %v9471_v31  ;;  %4147 = vst [vmem:[#allocation2 + $0x90] sm:$0xff] %v9554_v27  ;;  %v4062_v63 = vmul.f32 0.01, %v4002_v32  ;;  %v4483_v48 = vld [vmem:[#allocation2 + $0x2a] sm:$0xff] }
 0x6f7   :  { %4549 = vmatmul.f32.gmra.mxu0 %v4481_v62  ;;  %vm4024_vm2 = vcmp.gt.f32.partialorder %v3994_v5, 0.0  ;;  %v4054_v19 = vmul.f32 0.01, %v3994_v5  ;;  %v9546_v62 = vld [vmem:[#allocation2 + $0x21] sm:$0xff]  ;;  %4145 = vst [vmem:[#allocation2 + $0x80] sm:$0xff] %v9542_v56  ;;  %v4090_v43 = vsel %vm4030_vm8, %v4000_v28, %v4060_v60  ;;  %vm4034_vm12 = vcmp.gt.f32.partialorder %v4004_v2, 0.0 }
 0x6f8   :  { %4732 = vmatmul.f32.gmra.mxu1 %v4666_v17  ;;  %4143 = vst [vmem:[#allocation2 + $0x70] sm:$0xff] %v9530_v20  ;;  %v4005_v17 = vadd.f32 %v9384_v34, %v9479_v37  ;;  %v4006_v38 = vadd.f32 %v9384_v34, %v3975_v3  ;;  %vm4033_vm11 = vcmp.gt.f32.partialorder %v4003_v49, 0.0  ;;  %v3976_v37 = vmul.f32 %v9380_v0, %v9326_v57  ;;  %v11652_v3 = vld [vmem:[#allocation55_spill] sm:$0xff] }
 0x6f9   :  { %v4084_v58 = vsel %vm4024_vm2, %v3994_v5, %v4054_v19  ;;  %v4089_v5 = vsel %vm4029_vm7, %v3999_v6, %v4059_v52  ;;  %v4063_v59 = vmul.f32 0.01, %v4003_v49  ;;  %v9589_v19 = vld [vmem:[#allocation2 + $0x29] sm:$0xff]  ;;  %v4092_v18 = vsel %vm4032_vm10, %v4002_v32, %v4062_v63  ;;  %v4669_v32 = vld [vmem:[#allocation2 + $0x37] sm:$0xff] }
 0x6fa   :  { %v9535_v23 = vmul.f32 %v11650_v35, %v4084_v58  ;;  %v9578_v31 = vmul.f32 %v9213_v11, %v4089_v5  ;;  %v4064_v11 = vmul.f32 0.01, %v4004_v2  ;;  %v4007_v61 = vadd.f32 %v9384_v34, %v3976_v37  ;;  %v11653_v52 = vld [vmem:[#allocation76_spill] sm:$0xff] }
 0x6fb   :  { %v4093_v58 = vsel %vm4033_vm11, %v4003_v49, %v4063_v59  ;;  %vm4035_vm13 = vcmp.gt.f32.partialorder %v4005_v17, 0.0  ;;  %v9600_v50 = vmul.f32 %v9260_v41, %v4092_v18  ;;  %v4065_v35 = vmul.f32 0.01, %v4005_v17  ;;  %v4670_v5 = vld [vmem:[#allocation2 + $0x3f] sm:$0xff]  ;;  %v4671_v37 = vld [vmem:[#allocation2 + $0x47] sm:$0xff]  ;;  %v9653_v59 = vld [vmem:[#allocation2 + $0x51] sm:$0xff] }
 0x6fc   :  { %4144 = vst [vmem:[#allocation2 + $0x78] sm:$0xff] %v9535_v23  ;;  %v9603_v36 = vmul.f32 %v9274_v29, %v4093_v58  ;;  %v3977_v42 = vmul.f32 %v9380_v0, %v9338_v53  ;;  %vm4036_vm14 = vcmp.gt.f32.partialorder %v4006_v38, 0.0  ;;  %v4066_v41 = vmul.f32 0.01, %v4006_v38  ;;  %v9645_v60 = vld [vmem:[#allocation2 + $0x41] sm:$0xff]  ;;  %v4487_v63 = vld [vmem:[#allocation2 + $0x4a] sm:$0xff] }
 0x6fd   :  { %4402 = vmatmul.f32.gmra.mxu3 %v9411_v10  ;;  %v4001_v10 = vadd.f32 %v9384_v34, %v9461_v46  ;;  %v4088_v46 = vsel %vm4028_vm6, %v3998_v55, %v4058_v30  ;;  %4149 = vst [vmem:[#allocation2 + $0xa0] sm:$0xff] %v9578_v31  ;;  %v3978_v55 = vmul.f32 %v9380_v0, %v9349_v8  ;;  %vm4037_vm15 = vcmp.gt.f32.partialorder %v4007_v61, 0.0  ;;  %v11651_v0 = vld [vmem:[#allocation59_spill] sm:$0xff] }
 0x6fe   :  { %4289 = vmatmul.f32.gmra.mxu2 %v9546_v62  ;;  %v9575_v12 = vmul.f32 %v9197_v22, %v4088_v46  ;;  %v9585_v22 = vmul.f32 %v9229_v24, %v4090_v43  ;;  %v4668_v24 = vld [vmem:[#allocation2 + $0x2f] sm:$0xff]  ;;  %4152 = vst [vmem:[#allocation2 + $0xb8] sm:$0xff] %v9600_v50  ;;  %v4095_v29 = vsel %vm4035_vm13, %v4005_v17, %v4065_v35  ;;  %v4067_v6 = vmul.f32 0.01, %v4007_v61  ;;  %v11654_v17 = vld [vmem:[#allocation54_spill] sm:$0xff] }
 0x6ff   :  { %4552 = vmatmul.f32.gmra.mxu0 %v4482_v16  ;;  %vm4031_vm9 = vcmp.gt.f32.partialorder %v4001_v10, 0.0  ;;  %v4061_v14 = vmul.f32 0.01, %v4001_v10  ;;  %4153 = vst [vmem:[#allocation2 + $0xc0] sm:$0xff] %v9603_v36  ;;  %v4009_v4 = vadd.f32 %v9384_v34, %v3978_v55  ;;  %v9621_v53 = vmul.f32 %v9299_v54, %v4095_v29  ;;  %v9649_v43 = vld [vmem:[#allocation2 + $0x49] sm:$0xff] }
 0x700   :  { %4735 = vmatmul.f32.gmra.mxu1 %v4667_v7  ;;  %4148 = vst [vmem:[#allocation2 + $0x98] sm:$0xff] %v9575_v12  ;;  %v4096_v8 = vsel %vm4036_vm14, %v4006_v38, %v4066_v41  ;;  %v4097_v28 = vsel %vm4037_vm15, %v4007_v61, %v4067_v6  ;;  %v4485_v38 = vld [vmem:[#allocation2 + $0x3a] sm:$0xff]  ;;  %v4490_v18 = vld [vmem:[#allocation2 + $0x62] sm:$0xff] }
 0x701   :  { %v4091_v25 = vsel %vm4031_vm9, %v4001_v10, %v4061_v14  ;;  %4150 = vst [vmem:[#allocation2 + $0xa8] sm:$0xff] %v9585_v22  ;;  %v9624_v15 = vmul.f32 %v11651_v0, %v4096_v8  ;;  %v9628_v7 = vmul.f32 %v11652_v3, %v4097_v28  ;;  %vm4039_vm1 = vcmp.gt.f32.partialorder %v4009_v4, 0.0  ;;  %v4484_v10 = vld [vmem:[#allocation2 + $0x32] sm:$0xff]  ;;  %v4486_v14 = vld [vmem:[#allocation2 + $0x42] sm:$0xff]  ;;  %v4489_v61 = vld [vmem:[#allocation2 + $0x5a] sm:$0xff] }
 0x702   :  { %v9593_v57 = vmul.f32 %v9244_v45, %v4091_v25  ;;  %v4094_v45 = vsel %vm4034_vm12, %v4004_v2, %v4064_v11  ;;  %4155 = vst [vmem:[#allocation2 + $0xd0] sm:$0xff] %v9621_v53  ;;  %v4069_v30 = vmul.f32 0.01, %v4009_v4  ;;  %v4488_v25 = vld [vmem:[#allocation2 + $0x52] sm:$0xff]  ;;  %v9665_v58 = vld [vmem:[#allocation2 + $0x69] sm:$0xff] }
 0x703   :  { %4156 = vst [vmem:[#allocation2 + $0xd8] sm:$0xff] %v9624_v15  ;;  %v9657_v11 = vld [vmem:[#allocation2 + $0x59] sm:$0xff]  ;;  %v9671_v35 = vld [vmem:[#allocation2 + $0x71] sm:$0xff] }
 0x704   :  { %4151 = vst [vmem:[#allocation2 + $0xb0] sm:$0xff] %v9593_v57  ;;  %v4099_v2 = vsel %vm4039_vm1, %v4009_v4, %v4069_v30  ;;  %v9675_v55 = vld [vmem:[#allocation2 + $0x79] sm:$0xff]  ;;  %v4679_v4 = vld [vmem:[#allocation2 + $0x87] sm:$0xff] }
 0x705   :  { %4405 = vmatmul.f32.gmra.mxu3 %v9483_v40  ;;  %v9608_v40 = vmul.f32 %v9287_v9, %v4094_v45  ;;  %v4008_v9 = vadd.f32 %v9384_v34, %v3977_v42  ;;  %v9630_v34 = vld [vmem:[#allocation2 + $0x31] sm:$0xff]  ;;  %4157 = vst [vmem:[#allocation2 + $0xe0] sm:$0xff] %v9628_v7  ;;  %v4129_v46 = vmul.f32 %v11654_v17, %v4099_v2  ;;  %v4678_v41 = vld [vmem:[#allocation2 + $0x7f] sm:$0xff] }
 0x706   :  { %4292 = vmatmul.f32.gmra.mxu2 %v9589_v19  ;;  %v4677_v42 = vld [vmem:[#allocation2 + $0x77] sm:$0xff]  ;;  %v4495_v3 = vld [vmem:[#allocation2 + $0x8a] sm:$0xff] }
 0x707   :  { %4555 = vmatmul.f32.gmra.mxu0 %v4483_v48  ;;  %4154 = vst [vmem:[#allocation2 + $0xc8] sm:$0xff] %v9608_v40  ;;  %vm4038_vm0 = vcmp.gt.f32.partialorder %v4008_v9, 0.0  ;;  %v4068_v16 = vmul.f32 0.01, %v4008_v9  ;;  %v9661_v48 = vld [vmem:[#allocation2 + $0x61] sm:$0xff]  ;;  %v9700_v17 = vld [vmem:[#allocation2 + $0x91] sm:$0xff] }
 0x708   :  { %4738 = vmatmul.f32.gmra.mxu1 %v4668_v24  ;;  %4159 = vst [vmem:[#allocation2 + $0xf0] sm:$0xff] %v4129_v46  ;;  %v4491_v24 = vld [vmem:[#allocation2 + $0x6a] sm:$0xff]  ;;  %v4496_v46 = vld [vmem:[#allocation2 + $0x92] sm:$0xff] }
 0x709   :  { %v4098_v54 = vsel %vm4038_vm0, %v4008_v9, %v4068_v16  ;;  %v9681_v9 = vld [vmem:[#allocation2 + $0x81] sm:$0xff]  ;;  %v9689_v16 = vld [vmem:[#allocation2 + $0x89] sm:$0xff] }
 0x70a   :  { %v9637_v49 = vmul.f32 %v11653_v52, %v4098_v54 }
 0x70c   :  { %4158 = vst [vmem:[#allocation2 + $0xe8] sm:$0xff] %v9637_v49 }
 0x70d   :  { %4408 = vmatmul.f32.gmra.mxu3 %v9494_v39  ;;  %v9641_v39 = vld [vmem:[#allocation2 + $0x39] sm:$0xff] }
 0x70e   :  { %4295 = vmatmul.f32.gmra.mxu2 %v9630_v34 }
 0x70f   :  { %4558 = vmatmul.f32.gmra.mxu0 %v4484_v10 }
 0x710   :  { %4741 = vmatmul.f32.gmra.mxu1 %v4669_v32 }
 0x715   :  { %4411 = vmatmul.f32.gmra.mxu3 %v9497_v44  ;;  %v4672_v44 = vld [vmem:[#allocation2 + $0x4f] sm:$0xff] }
 0x716   :  { %4298 = vmatmul.f32.gmra.mxu2 %v9641_v39 }
 0x717   :  { %4561 = vmatmul.f32.gmra.mxu0 %v4485_v38 }
 0x718   :  { %4744 = vmatmul.f32.gmra.mxu1 %v4670_v5 }
 0x71d   :  { %4414 = vmatmul.f32.gmra.mxu3 %v9500_v33  ;;  %v4673_v33 = vld [vmem:[#allocation2 + $0x57] sm:$0xff] }
 0x71e   :  { %4301 = vmatmul.f32.gmra.mxu2 %v9645_v60 }
 0x71f   :  { %4564 = vmatmul.f32.gmra.mxu0 %v4486_v14 }
 0x720   :  { %4747 = vmatmul.f32.gmra.mxu1 %v4671_v37 }
 0x725   :  { %4417 = vmatmul.f32.gmra.mxu3 %v9507_v51  ;;  %v4674_v51 = vld [vmem:[#allocation2 + $0x5f] sm:$0xff] }
 0x726   :  { %4304 = vmatmul.f32.gmra.mxu2 %v9649_v43  ;;  %v9679_v6 = vpop.f32.mrf.mxu0 }
 0x727   :  { %4567 = vmatmul.f32.gmra.mxu0 %v4487_v63 }
 0x728   :  { %4750 = vmatmul.f32.gmra.mxu1 %v4672_v44 }
 0x72d   :  { %4420 = vmatmul.f32.gmra.mxu3 %v9510_v47  ;;  %v4675_v47 = vld [vmem:[#allocation2 + $0x67] sm:$0xff] }
 0x72e   :  { %4307 = vmatmul.f32.gmra.mxu2 %v9653_v59 }
 0x72f   :  { %4570 = vmatmul.f32.gmra.mxu0 %v4488_v25  ;;  %v9711_v25 = vld [vmem:[#allocation2 + $0x99] sm:$0xff] }
 0x730   :  { %4753 = vmatmul.f32.gmra.mxu1 %v4673_v33  ;;  %v4497_v33 = vld [vmem:[#allocation2 + $0x9a] sm:$0xff] }
 0x735   :  { %4423 = vmatmul.f32.gmra.mxu3 %v9526_v26  ;;  %v4676_v26 = vld [vmem:[#allocation2 + $0x6f] sm:$0xff] }
 0x736   :  { %4310 = vmatmul.f32.gmra.mxu2 %v9657_v11 }
 0x737   :  { %4573 = vmatmul.f32.gmra.mxu0 %v4489_v61 }
 0x738   :  { %4756 = vmatmul.f32.gmra.mxu1 %v4674_v51 }
 0x73a   :  { %v9669_v45 = vpop.f32.mrf.mxu3 }
 0x73d   :  { %4426 = vmatmul.f32.gmra.mxu3 %v9530_v20  ;;  %v4492_v20 = vld [vmem:[#allocation2 + $0x72] sm:$0xff] }
 0x73e   :  { %4313 = vmatmul.f32.gmra.mxu2 %v9661_v48 }
 0x73f   :  { %4576 = vmatmul.f32.gmra.mxu0 %v4490_v18 }
 0x740   :  { %4759 = vmatmul.f32.gmra.mxu1 %v4675_v47 }
 0x742   :  { %v4388_v29 = vpop.f32.mrf.mxu3 }
 0x745   :  { %4429 = vmatmul.f32.gmra.mxu3 %v9535_v23  ;;  %v4493_v23 = vld [vmem:[#allocation2 + $0x7a] sm:$0xff] }
 0x746   :  { %4316 = vmatmul.f32.gmra.mxu2 %v9665_v58 }
 0x747   :  { %4579 = vmatmul.f32.gmra.mxu0 %v4491_v24 }
 0x748   :  { %4762 = vmatmul.f32.gmra.mxu1 %v4676_v26 }
 0x74d   :  { %4432 = vmatmul.f32.gmra.mxu3 %v9542_v56  ;;  %v4494_v56 = vld [vmem:[#allocation2 + $0x82] sm:$0xff] }
 0x74e   :  { %4319 = vmatmul.f32.gmra.mxu2 %v9671_v35 }
 0x74f   :  { %4582 = vmatmul.f32.gmra.mxu0 %v4492_v20  ;;  %v9722_v20 = vld [vmem:[#allocation2 + $0xa1] sm:$0xff] }
 0x750   :  { %4765 = vmatmul.f32.gmra.mxu1 %v4677_v42  ;;  %v4498_v42 = vld [vmem:[#allocation2 + $0xa2] sm:$0xff] }
 0x755   :  { %4435 = vmatmul.f32.gmra.mxu3 %v9551_v1  ;;  %v9685_v1 = vpop.f32.mrf.mxu2 }
 0x756   :  { %4322 = vmatmul.f32.gmra.mxu2 %v9675_v55 }
 0x757   :  { %4585 = vmatmul.f32.gmra.mxu0 %v4493_v23 }
 0x758   :  { %4768 = vmatmul.f32.gmra.mxu1 %v4678_v41 }
 0x75d   :  { %4438 = vmatmul.f32.gmra.mxu3 %v9554_v27  ;;  %v9693_v27 = vld [vmem:[#allocation2 + $0x8f] sm:$0xff] }
 0x75e   :  { %4325 = vmatmul.f32.gmra.mxu2 %v9681_v9 }
 0x75f   :  { %4588 = vmatmul.f32.gmra.mxu0 %v4494_v56 }
 0x760   :  { %4771 = vmatmul.f32.gmra.mxu1 %v4679_v4  ;;  %v4391_v8 = vpop.f32.mrf.mxu3 }
 0x764   :  { %v4544_v0 = vpop.f32.mrf.mxu0 }
 0x765   :  { %v9687_v28 = vpop.f32.mrf.mxu1  ;;  %4441 = vmatmul.f32.gmra.mxu3 %v9575_v12  ;;  %v9704_v12 = vld [vmem:[#allocation2 + $0x97] sm:$0xff] }
 0x766   :  { %4328 = vmatmul.f32.gmra.mxu2 %v9689_v16 }
 0x767   :  { %4591 = vmatmul.f32.gmra.mxu0 %v4495_v3  ;;  %v4499_v3 = vld [vmem:[#allocation2 + $0xaa] sm:$0xff] }
 0x768   :  { %4774 = vmatmul.f32.gmra.mxu1 %v9693_v27  ;;  %v4394_v30 = vpop.f32.mrf.mxu3 }
 0x769   :  { %v4281_v10 = vpop.f32.mrf.mxu2 }
 0x76a   :  { %v4389_v54 = vadd.f32 %v4388_v29, %v4281_v10 }
 0x76c   :  { %v4547_v32 = vpop.f32.mrf.mxu0  ;;  %v9696_v52 = vadd.f32 %v4544_v0, %v4389_v54  ;;  %v9733_v0 = vld [vmem:[#allocation2 + $0xa9] sm:$0xff] }
 0x76d   :  { %v9698_v2 = vpop.f32.mrf.mxu1  ;;  %4444 = vmatmul.f32.gmra.mxu3 %v9578_v31  ;;  %v9715_v31 = vld [vmem:[#allocation2 + $0x9f] sm:$0xff] }
 0x76e   :  { %4331 = vmatmul.f32.gmra.mxu2 %v9700_v17 }
 0x76f   :  { %4594 = vmatmul.f32.gmra.mxu0 %v4496_v46 }
 0x770   :  { %4777 = vmatmul.f32.gmra.mxu1 %v9704_v12  ;;  %v4397_v38 = vpop.f32.mrf.mxu3 }
 0x771   :  { %v4284_v5 = vpop.f32.mrf.mxu2 }
 0x772   :  { %v4392_v14 = vadd.f32 %v4391_v8, %v4284_v5  ;;  %v9744_v5 = vld [vmem:[#allocation2 + $0xb1] sm:$0xff] }
 0x774   :  { %v4550_v37 = vpop.f32.mrf.mxu0  ;;  %v9707_v63 = vadd.f32 %v4547_v32, %v4392_v14  ;;  %v4500_v14 = vld [vmem:[#allocation2 + $0xb2] sm:$0xff] }
 0x775   :  { %v9709_v44 = vpop.f32.mrf.mxu1  ;;  %4447 = vmatmul.f32.gmra.mxu3 %v9585_v22  ;;  %v9726_v22 = vld [vmem:[#allocation2 + $0xa7] sm:$0xff] }
 0x776   :  { %4334 = vmatmul.f32.gmra.mxu2 %v9711_v25 }
 0x777   :  { %4597 = vmatmul.f32.gmra.mxu0 %v4497_v33 }
 0x778   :  { %4780 = vmatmul.f32.gmra.mxu1 %v9715_v31  ;;  %v4400_v61 = vpop.f32.mrf.mxu3 }
 0x779   :  { %v4287_v51 = vpop.f32.mrf.mxu2 }
 0x77a   :  { %v4395_v18 = vadd.f32 %v4394_v30, %v4287_v51 }
 0x77c   :  { %v4553_v47 = vpop.f32.mrf.mxu0  ;;  %v9718_v24 = vadd.f32 %v4550_v37, %v4395_v18 }
 0x77d   :  { %v9720_v26 = vpop.f32.mrf.mxu1  ;;  %4450 = vmatmul.f32.gmra.mxu3 %v9593_v57  ;;  %v9737_v57 = vld [vmem:[#allocation2 + $0xaf] sm:$0xff] }
 0x77e   :  { %4337 = vmatmul.f32.gmra.mxu2 %v9722_v20 }
 0x77f   :  { %4600 = vmatmul.f32.gmra.mxu0 %v4498_v42  ;;  %v9755_v42 = vld [vmem:[#allocation2 + $0xb9] sm:$0xff] }
 0x780   :  { %4783 = vmatmul.f32.gmra.mxu1 %v9726_v22  ;;  %v4403_v23 = vpop.f32.mrf.mxu3 }
 0x781   :  { %v4290_v41 = vpop.f32.mrf.mxu2 }
 0x782   :  { %v4398_v29 = vadd.f32 %v4397_v38, %v4290_v41  ;;  %v4501_v41 = vld [vmem:[#allocation2 + $0xba] sm:$0xff] }
 0x784   :  { %v4556_v56 = vpop.f32.mrf.mxu0  ;;  %v9729_v4 = vadd.f32 %v4553_v47, %v4398_v29 }
 0x785   :  { %v9731_v8 = vpop.f32.mrf.mxu1  ;;  %4453 = vmatmul.f32.gmra.mxu3 %v9600_v50  ;;  %v9748_v50 = vld [vmem:[#allocation2 + $0xb7] sm:$0xff] }
 0x786   :  { %4340 = vmatmul.f32.gmra.mxu2 %v9733_v0 }
 0x787   :  { %4603 = vmatmul.f32.gmra.mxu0 %v4499_v3 }
 0x788   :  { %4786 = vmatmul.f32.gmra.mxu1 %v9737_v57  ;;  %v4406_v30 = vpop.f32.mrf.mxu3 }
 0x789   :  { %v4293_v10 = vpop.f32.mrf.mxu2 }
 0x78a   :  { %v4401_v54 = vadd.f32 %v4400_v61, %v4293_v10 }
 0x78c   :  { %v4559_v32 = vpop.f32.mrf.mxu0  ;;  %v9740_v46 = vadd.f32 %v4556_v56, %v4401_v54 }
 0x78d   :  { %v9742_v38 = vpop.f32.mrf.mxu1  ;;  %4456 = vmatmul.f32.gmra.mxu3 %v9603_v36  ;;  %v9759_v36 = vld [vmem:[#allocation2 + $0xbf] sm:$0xff] }
 0x78e   :  { %4343 = vmatmul.f32.gmra.mxu2 %v9744_v5 }
 0x78f   :  { %4606 = vmatmul.f32.gmra.mxu0 %v4500_v14  ;;  %v4502_v14 = vld [vmem:[#allocation2 + $0xc2] sm:$0xff] }
 0x790   :  { %4789 = vmatmul.f32.gmra.mxu1 %v9748_v50  ;;  %v4409_v37 = vpop.f32.mrf.mxu3 }
 0x791   :  { %v4296_v33 = vpop.f32.mrf.mxu2 }
 0x792   :  { %v4404_v61 = vadd.f32 %v4403_v23, %v4296_v33 }
 0x794   :  { %v4562_v51 = vpop.f32.mrf.mxu0  ;;  %v9751_v18 = vadd.f32 %v4559_v32, %v4404_v61  ;;  %v9766_v32 = vld [vmem:[#allocation2 + $0xc1] sm:$0xff] }
 0x795   :  { %v9753_v47 = vpop.f32.mrf.mxu1  ;;  %4459 = vmatmul.f32.gmra.mxu3 %v9608_v40  ;;  %v9770_v40 = vld [vmem:[#allocation2 + $0xc7] sm:$0xff] }
 0x796   :  { %4346 = vmatmul.f32.gmra.mxu2 %v9755_v42 }
 0x797   :  { %4609 = vmatmul.f32.gmra.mxu0 %v4501_v41 }
 0x798   :  { %4792 = vmatmul.f32.gmra.mxu1 %v9759_v36  ;;  %v4412_v29 = vpop.f32.mrf.mxu3 }
 0x799   :  { %v4299_v56 = vpop.f32.mrf.mxu2 }
 0x79a   :  { %v4407_v23 = vadd.f32 %v4406_v30, %v4299_v56 }
 0x79c   :  { %v4565_v3 = vpop.f32.mrf.mxu0  ;;  %v9762_v10 = vadd.f32 %v4562_v51, %v4407_v23  ;;  %v9777_v23 = vld [vmem:[#allocation2 + $0xc9] sm:$0xff] }
 0x79d   :  { %v9764_v54 = vpop.f32.mrf.mxu1  ;;  %4462 = vmatmul.f32.gmra.mxu3 %v9621_v53  ;;  %v9781_v53 = vld [vmem:[#allocation2 + $0xcf] sm:$0xff] }
 0x79e   :  { %11655 = vst [vmem:[#allocation32_spill] sm:$0xff] %v9762_v10  ;;  %4349 = vmatmul.f32.gmra.mxu2 %v9766_v32  ;;  %v9795_v10 = vld [vmem:[#allocation2 + $0xd7] sm:$0xff] }
 0x79f   :  { %11656 = vst [vmem:[#allocation31_spill] sm:$0xff] %v9764_v54  ;;  %4612 = vmatmul.f32.gmra.mxu0 %v4502_v14  ;;  %v4503_v54 = vld [vmem:[#allocation2 + $0xca] sm:$0xff]  ;;  %v6259_v14 = vld [vmem:[%s11059_s1 + $0xb8] sm:$0xff] }
 0x7a0   :  { %4795 = vmatmul.f32.gmra.mxu1 %v9770_v40  ;;  %v4415_v33 = vpop.f32.mrf.mxu3  ;;  %11659 = vst [vmem:[#allocation79_spill] sm:$0xff] %v9781_v53  ;;  %5097 = vmatpush.msra.mxu3 %v6259_v14  ;;  %v6260_v14 = vld [vmem:[%s11059_s1 + $0xc0] sm:$0xff] }
 0x7a1   :  { %v4302_v61 = vpop.f32.mrf.mxu2  ;;  %11662 = vst [vmem:[#allocation34_spill] sm:$0xff] %v9795_v10  ;;  %5283 = vmatpush.msra.mxu0 %v6260_v14  ;;  %v4505_v14 = vld [vmem:[#allocation2 + $0xda] sm:$0xff] }
 0x7a2   :  { %v4410_v30 = vadd.f32 %v4409_v37, %v4302_v61 }
 0x7a4   :  { %v4568_v41 = vpop.f32.mrf.mxu0  ;;  %v9773_v51 = vadd.f32 %v4565_v3, %v4410_v30 }
 0x7a5   :  { %v9775_v56 = vpop.f32.mrf.mxu1  ;;  %4465 = vmatmul.f32.gmra.mxu3 %v9624_v15  ;;  %v9791_v15 = vld [vmem:[#allocation2 + $0xd1] sm:$0xff] }
 0x7a6   :  { %11657 = vst [vmem:[#allocation65_spill] sm:$0xff] %v9773_v51  ;;  %4352 = vmatmul.f32.gmra.mxu2 %v9777_v23 }
 0x7a7   :  { %11658 = vst [vmem:[#allocation57_spill] sm:$0xff] %v9775_v56  ;;  %4615 = vmatmul.f32.gmra.mxu0 %v4503_v54  ;;  %v4504_v54 = vld [vmem:[#allocation2 + $0xd2] sm:$0xff] }
 0x7a8   :  { %4798 = vmatmul.f32.gmra.mxu1 %v9781_v53  ;;  %v4418_v37 = vpop.f32.mrf.mxu3 }
 0x7a9   :  { %v4305_v3 = vpop.f32.mrf.mxu2 }
 0x7aa   :  { %v4413_v61 = vadd.f32 %v4412_v29, %v4305_v3  ;;  %v6262_v29 = vld [vmem:[%s11059_s1 + $0xd0] sm:$0xff] }
 0x7ab   :  { %5655 = vmatpush.msra.mxu2 %v6262_v29  ;;  %v9815_v29 = vld [vmem:[#allocation2 + $0xdf] sm:$0xff] }
 0x7ac   :  { %v4571_v30 = vpop.f32.mrf.mxu0  ;;  %v9787_v56 = vadd.f32 %v4568_v41, %v4413_v61  ;;  %v6261_v61 = vld [vmem:[%s11059_s1 + $0xc8] sm:$0xff]  ;;  %11665 = vst [vmem:[#allocation64_spill] sm:$0xff] %v9815_v29 }
 0x7ad   :  { %v9789_v51 = vpop.f32.mrf.mxu1  ;;  %4468 = vmatmul.f32.gmra.mxu3 %v9628_v7  ;;  %5469 = vmatpush.msra.mxu1 %v6261_v61 }
 0x7ae   :  { %11660 = vst [vmem:[#allocation62_spill] sm:$0xff] %v9787_v56  ;;  %4355 = vmatmul.f32.gmra.mxu2 %v9791_v15 }
 0x7af   :  { %11661 = vst [vmem:[#allocation60_spill] sm:$0xff] %v9789_v51  ;;  %4618 = vmatmul.f32.gmra.mxu0 %v4504_v54 }
 0x7b0   :  { %4801 = vmatmul.f32.gmra.mxu1 %v9795_v10  ;;  %v4421_v41 = vpop.f32.mrf.mxu3  ;;  %v9811_v10 = vld [vmem:[#allocation2 + $0xd9] sm:$0xff] }
 0x7b1   :  { %v4308_v3 = vpop.f32.mrf.mxu2 }
 0x7b2   :  { %v4416_v7 = vadd.f32 %v4415_v33, %v4308_v3 }
 0x7b4   :  { %v4574_v54 = vpop.f32.mrf.mxu0  ;;  %v9807_v51 = vadd.f32 %v4571_v30, %v4416_v7 }
 0x7b5   :  { %v9809_v56 = vpop.f32.mrf.mxu1  ;;  %4471 = vmatmul.f32.gmra.mxu3 %v9637_v49  ;;  %v9826_v49 = vld [vmem:[#allocation2 + $0xe7] sm:$0xff] }
 0x7b6   :  { %11663 = vst [vmem:[#allocation33_spill] sm:$0xff] %v9807_v51  ;;  %4358 = vmatmul.f32.gmra.mxu2 %v9811_v10  ;;  %v4506_v51 = vld [vmem:[#allocation2 + $0xe2] sm:$0xff] }
 0x7b7   :  { %11664 = vst [vmem:[#allocation72_spill] sm:$0xff] %v9809_v56  ;;  %4621 = vmatmul.f32.gmra.mxu0 %v4505_v14  ;;  %v9822_v56 = vld [vmem:[#allocation2 + $0xe1] sm:$0xff] }
 0x7b8   :  { %4804 = vmatmul.f32.gmra.mxu1 %v9815_v29  ;;  %v4424_v33 = vpop.f32.mrf.mxu3  ;;  %11668 = vst [vmem:[#allocation7_spill] sm:$0xff] %v9822_v56 }
 0x7b9   :  { %v4311_v3 = vpop.f32.mrf.mxu2  ;;  %11669 = vst [vmem:[#allocation35_spill] sm:$0xff] %v9826_v49 }
 0x7ba   :  { %v4419_v53 = vadd.f32 %v4418_v37, %v4311_v3 }
 0x7bc   :  { %v4577_v61 = vpop.f32.mrf.mxu0  ;;  %v9818_v30 = vadd.f32 %v4574_v54, %v4419_v53 }
 0x7bd   :  { %v9820_v7 = vpop.f32.mrf.mxu1  ;;  %5098 = vmatmul.f32.vlgmr.msra.gmra.mxu3 %v9467_v13  ;;  %v9837_v13 = vld [vmem:[#allocation2 + $0xef] sm:$0xff] }
 0x7be   :  { %11666 = vst [vmem:[#allocation69_spill] sm:$0xff] %v9818_v30  ;;  %4361 = vmatmul.f32.gmra.mxu2 %v9822_v56  ;;  %v4507_v30 = vld [vmem:[#allocation2 + $0xea] sm:$0xff] }
 0x7bf   :  { %11667 = vst [vmem:[#allocation68_spill] sm:$0xff] %v9820_v7  ;;  %4624 = vmatmul.f32.gmra.mxu0 %v4506_v51  ;;  %v9833_v7 = vld [vmem:[#allocation2 + $0xe9] sm:$0xff] }
 0x7c0   :  { %4807 = vmatmul.f32.gmra.mxu1 %v9826_v49  ;;  %v4427_v14 = vpop.f32.mrf.mxu3  ;;  %11672 = vst [vmem:[#allocation6_spill] sm:$0xff] %v9833_v7 }
 0x7c1   :  { %v4314_v29 = vpop.f32.mrf.mxu2  ;;  %11673 = vst [vmem:[#allocation5_spill] sm:$0xff] %v9837_v13 }
 0x7c2   :  { %v4422_v37 = vadd.f32 %v4421_v41, %v4314_v29 }
 0x7c4   :  { %v4580_v3 = vpop.f32.mrf.mxu0  ;;  %v9829_v53 = vadd.f32 %v4577_v61, %v4422_v37 }
 0x7c5   :  { %v9831_v54 = vpop.f32.mrf.mxu1  ;;  %5101 = vmatmul.f32.gmra.mxu3 %v9502_v21  ;;  %v9845_v21 = vld [vmem:[#allocation2 + $0xf7] sm:$0xff] }
 0x7c6   :  { %11670 = vst [vmem:[#allocation81_spill] sm:$0xff] %v9829_v53  ;;  %4364 = vmatmul.f32.gmra.mxu2 %v9833_v7  ;;  %v5222_v53 = vld [vmem:[#allocation2 + $0x1e] sm:$0xff] }
 0x7c7   :  { %11671 = vst [vmem:[#allocation75_spill] sm:$0xff] %v9831_v54  ;;  %4627 = vmatmul.f32.gmra.mxu0 %v4507_v30  ;;  %v4850_v54 = vld [vmem:[#allocation2 + $0x10] sm:$0xff] }
 0x7c8   :  { %4810 = vmatmul.f32.gmra.mxu1 %v9837_v13  ;;  %v4430_v51 = vpop.f32.mrf.mxu3  ;;  %11676 = vst [vmem:[#allocation18_spill] sm:$0xff] %v9845_v21 }
 0x7c9   :  { %v4317_v49 = vpop.f32.mrf.mxu2 }
 0x7ca   :  { %v4425_v41 = vadd.f32 %v4424_v33, %v4317_v49 }
 0x7cc   :  { %v4583_v29 = vpop.f32.mrf.mxu0  ;;  %v9840_v61 = vadd.f32 %v4580_v3, %v4425_v41  ;;  %v4851_v3 = vld [vmem:[#allocation2 + $0x18] sm:$0xff]  ;;  %v5223_v41 = vld [vmem:[#allocation2 + $0x26] sm:$0xff] }
 0x7cd   :  { %v9842_v37 = vpop.f32.mrf.mxu1  ;;  %5104 = vmatmul.f32.gmra.mxu3 %v9546_v62  ;;  %v5408_v62 = vld [vmem:[#allocation2 + $0x1f] sm:$0xff] }
 0x7ce   :  { %11674 = vst [vmem:[#allocation10_spill] sm:$0xff] %v9840_v61  ;;  %4912 = vmatmul.f32.vlgmr.msrb.gmra.mxu2 %v4850_v54 }
 0x7cf   :  { %11675 = vst [vmem:[#allocation12_spill] sm:$0xff] %v9842_v37  ;;  %5284 = vmatmul.f32.vlgmr.msra.gmra.mxu0 %v5222_v53 }
 0x7d0   :  { %4813 = vmatmul.f32.gmra.mxu1 %v9845_v21  ;;  %v4433_v30 = vpop.f32.mrf.mxu3 }
 0x7d1   :  { %v4320_v13 = vpop.f32.mrf.mxu2 }
 0x7d2   :  { %v4428_v7 = vadd.f32 %v4427_v14, %v4320_v13  ;;  %v5224_v13 = vld [vmem:[#allocation2 + $0x2e] sm:$0xff] }
 0x7d4   :  { %v4586_v56 = vpop.f32.mrf.mxu0  ;;  %v9848_v33 = vadd.f32 %v4583_v29, %v4428_v7  ;;  %v9857_v7 = vld [vmem:[#allocation2 + $0x20] sm:$0xff] }
 0x7d5   :  { %v9850_v49 = vpop.f32.mrf.mxu1  ;;  %5107 = vmatmul.f32.gmra.mxu3 %v9589_v19  ;;  %v5409_v19 = vld [vmem:[#allocation2 + $0x27] sm:$0xff] }
 0x7d6   :  { %4915 = vmatmul.f32.gmra.mxu2 %v4851_v3 }
 0x7d7   :  { %5287 = vmatmul.f32.gmra.mxu0 %v5223_v41 }
 0x7d8   :  { %5470 = vmatmul.f32.vlgmr.msra.gmra.mxu1 %v5408_v62  ;;  %v4436_v54 = vpop.f32.mrf.mxu3 }
 0x7d9   :  { %v4323_v53 = vpop.f32.mrf.mxu2 }
 0x7da   :  { %v4431_v37 = vadd.f32 %v4430_v51, %v4323_v53  ;;  %v5225_v53 = vld [vmem:[#allocation2 + $0x36] sm:$0xff] }
 0x7dc   :  { %v4589_v61 = vpop.f32.mrf.mxu0  ;;  %v9853_v21 = vadd.f32 %v4586_v56, %v4431_v37  ;;  %v9865_v37 = vld [vmem:[#allocation2 + $0x28] sm:$0xff] }
 0x7dd   :  { %v9855_v14 = vpop.f32.mrf.mxu1  ;;  %5110 = vmatmul.f32.gmra.mxu3 %v9630_v34  ;;  %v5410_v34 = vld [vmem:[#allocation2 + $0x2f] sm:$0xff] }
 0x7de   :  { %11677 = vst [vmem:[#allocation22_spill] sm:$0xff] %v9853_v21  ;;  %4918 = vmatmul.f32.gmra.mxu2 %v9857_v7 }
 0x7df   :  { %11678 = vst [vmem:[#allocation50_spill] sm:$0xff] %v9855_v14  ;;  %5290 = vmatmul.f32.gmra.mxu0 %v5224_v13 }
 0x7e0   :  { %5473 = vmatmul.f32.gmra.mxu1 %v5409_v19  ;;  %v4439_v29 = vpop.f32.mrf.mxu3 }
 0x7e1   :  { %v4326_v3 = vpop.f32.mrf.mxu2 }
 0x7e2   :  { %v4434_v41 = vadd.f32 %v4433_v30, %v4326_v3  ;;  %v9873_v3 = vld [vmem:[#allocation2 + $0x30] sm:$0xff] }
 0x7e4   :  { %v4592_v62 = vpop.f32.mrf.mxu0  ;;  %v9861_v51 = vadd.f32 %v4589_v61, %v4434_v41  ;;  %v5226_v41 = vld [vmem:[#allocation2 + $0x3e] sm:$0xff] }
 0x7e5   :  { %v9863_v56 = vpop.f32.mrf.mxu1  ;;  %5113 = vmatmul.f32.gmra.mxu3 %v9641_v39  ;;  %v5411_v39 = vld [vmem:[#allocation2 + $0x37] sm:$0xff] }
 0x7e6   :  { %11679 = vst [vmem:[#allocation13_spill] sm:$0xff] %v9861_v51  ;;  %4921 = vmatmul.f32.gmra.mxu2 %v9865_v37 }
 0x7e7   :  { %11680 = vst [vmem:[#allocation14_spill] sm:$0xff] %v9863_v56  ;;  %5293 = vmatmul.f32.gmra.mxu0 %v5225_v53 }
 0x7e8   :  { %5476 = vmatmul.f32.gmra.mxu1 %v5410_v34  ;;  %v4442_v13 = vpop.f32.mrf.mxu3 }
 0x7e9   :  { %v4329_v19 = vpop.f32.mrf.mxu2 }
 0x7ea   :  { %v4437_v14 = vadd.f32 %v4436_v54, %v4329_v19  ;;  %v5227_v19 = vld [vmem:[#allocation2 + $0x46] sm:$0xff] }
 0x7ec   :  { %v4595_v21 = vpop.f32.mrf.mxu0  ;;  %v9869_v30 = vadd.f32 %v4592_v62, %v4437_v14  ;;  %v9881_v62 = vld [vmem:[#allocation2 + $0x38] sm:$0xff] }
 0x7ed   :  { %v9871_v61 = vpop.f32.mrf.mxu1  ;;  %5116 = vmatmul.f32.gmra.mxu3 %v9645_v60  ;;  %v5412_v60 = vld [vmem:[#allocation2 + $0x3f] sm:$0xff] }
 0x7ee   :  { %11681 = vst [vmem:[#allocation36_spill] sm:$0xff] %v9869_v30  ;;  %4924 = vmatmul.f32.gmra.mxu2 %v9873_v3 }
 0x7ef   :  { %11682 = vst [vmem:[#allocation37_spill] sm:$0xff] %v9871_v61  ;;  %5296 = vmatmul.f32.gmra.mxu0 %v5226_v41 }
 0x7f0   :  { %5479 = vmatmul.f32.gmra.mxu1 %v5411_v39  ;;  %v4445_v53 = vpop.f32.mrf.mxu3 }
 0x7f1   :  { %v4332_v34 = vpop.f32.mrf.mxu2 }
 0x7f2   :  { %v4440_v56 = vadd.f32 %v4439_v29, %v4332_v34  ;;  %v5228_v34 = vld [vmem:[#allocation2 + $0x4e] sm:$0xff] }
 0x7f4   :  { %v4598_v51 = vpop.f32.mrf.mxu0  ;;  %v9877_v54 = vadd.f32 %v4595_v21, %v4440_v56  ;;  %v9889_v56 = vld [vmem:[#allocation2 + $0x40] sm:$0xff] }
 0x7f5   :  { %v9879_v14 = vpop.f32.mrf.mxu1  ;;  %5119 = vmatmul.f32.gmra.mxu3 %v9649_v43  ;;  %v5413_v43 = vld [vmem:[#allocation2 + $0x47] sm:$0xff] }
 0x7f6   :  { %11683 = vst [vmem:[#allocation23_spill] sm:$0xff] %v9877_v54  ;;  %4927 = vmatmul.f32.gmra.mxu2 %v9881_v62 }
 0x7f7   :  { %11684 = vst [vmem:[#allocation52_spill] sm:$0xff] %v9879_v14  ;;  %5299 = vmatmul.f32.gmra.mxu0 %v5227_v19 }
 0x7f8   :  { %5482 = vmatmul.f32.gmra.mxu1 %v5412_v60  ;;  %v4448_v41 = vpop.f32.mrf.mxu3 }
 0x7f9   :  { %v4335_v39 = vpop.f32.mrf.mxu2 }
 0x7fa   :  { %v4443_v61 = vadd.f32 %v4442_v13, %v4335_v39  ;;  %v5229_v39 = vld [vmem:[#allocation2 + $0x56] sm:$0xff] }
 0x7fc   :  { %v4601_v30 = vpop.f32.mrf.mxu0  ;;  %v9885_v29 = vadd.f32 %v4598_v51, %v4443_v61  ;;  %v9897_v61 = vld [vmem:[#allocation2 + $0x48] sm:$0xff] }
 0x7fd   :  { %v9887_v21 = vpop.f32.mrf.mxu1  ;;  %5122 = vmatmul.f32.gmra.mxu3 %v9653_v59  ;;  %v5414_v59 = vld [vmem:[#allocation2 + $0x4f] sm:$0xff] }
 0x7fe   :  { %11685 = vst [vmem:[#allocation16_spill] sm:$0xff] %v9885_v29  ;;  %4930 = vmatmul.f32.gmra.mxu2 %v9889_v56 }
 0x7ff   :  { %11686 = vst [vmem:[#allocation15_spill] sm:$0xff] %v9887_v21  ;;  %5302 = vmatmul.f32.gmra.mxu0 %v5228_v34 }
 0x800   :  { %5485 = vmatmul.f32.gmra.mxu1 %v5413_v43  ;;  %v4451_v19 = vpop.f32.mrf.mxu3 }
 0x801   :  { %v4338_v60 = vpop.f32.mrf.mxu2 }
 0x802   :  { %v4446_v14 = vadd.f32 %v4445_v53, %v4338_v60  ;;  %v5230_v60 = vld [vmem:[#allocation2 + $0x5e] sm:$0xff] }
 0x804   :  { %v4604_v54 = vpop.f32.mrf.mxu0  ;;  %v9893_v13 = vadd.f32 %v4601_v30, %v4446_v14  ;;  %v9905_v14 = vld [vmem:[#allocation2 + $0x50] sm:$0xff] }
 0x805   :  { %v9895_v51 = vpop.f32.mrf.mxu1  ;;  %5125 = vmatmul.f32.gmra.mxu3 %v9657_v11  ;;  %v5415_v11 = vld [vmem:[#allocation2 + $0x57] sm:$0xff] }
 0x806   :  { %11687 = vst [vmem:[#allocation19_spill] sm:$0xff] %v9893_v13  ;;  %4933 = vmatmul.f32.gmra.mxu2 %v9897_v61 }
 0x807   :  { %11688 = vst [vmem:[#allocation53_spill] sm:$0xff] %v9895_v51  ;;  %5305 = vmatmul.f32.gmra.mxu0 %v5229_v39 }
 0x808   :  { %5488 = vmatmul.f32.gmra.mxu1 %v5414_v59  ;;  %v4454_v34 = vpop.f32.mrf.mxu3 }
 0x809   :  { %v4341_v43 = vpop.f32.mrf.mxu2 }
 0x80a   :  { %v4449_v21 = vadd.f32 %v4448_v41, %v4341_v43  ;;  %v5231_v43 = vld [vmem:[#allocation2 + $0x66] sm:$0xff] }
 0x80c   :  { %v4607_v29 = vpop.f32.mrf.mxu0  ;;  %v9901_v53 = vadd.f32 %v4604_v54, %v4449_v21  ;;  %v9913_v21 = vld [vmem:[#allocation2 + $0x58] sm:$0xff] }
 0x80d   :  { %v9903_v30 = vpop.f32.mrf.mxu1  ;;  %5128 = vmatmul.f32.gmra.mxu3 %v9661_v48  ;;  %v5416_v48 = vld [vmem:[#allocation2 + $0x5f] sm:$0xff] }
 0x80e   :  { %11689 = vst [vmem:[#allocation29_spill] sm:$0xff] %v9901_v53  ;;  %4936 = vmatmul.f32.gmra.mxu2 %v9905_v14 }
 0x80f   :  { %11690 = vst [vmem:[#allocation83_spill] sm:$0xff] %v9903_v30  ;;  %5308 = vmatmul.f32.gmra.mxu0 %v5230_v60 }
 0x810   :  { %5491 = vmatmul.f32.gmra.mxu1 %v5415_v11  ;;  %v4457_v39 = vpop.f32.mrf.mxu3 }
 0x811   :  { %v4344_v59 = vpop.f32.mrf.mxu2 }
 0x812   :  { %v4452_v51 = vadd.f32 %v4451_v19, %v4344_v59  ;;  %v5232_v59 = vld [vmem:[#allocation2 + $0x6e] sm:$0xff] }
 0x814   :  { %v4610_v13 = vpop.f32.mrf.mxu0  ;;  %v9909_v41 = vadd.f32 %v4607_v29, %v4452_v51  ;;  %v9921_v51 = vld [vmem:[#allocation2 + $0x60] sm:$0xff] }
 0x815   :  { %v9911_v54 = vpop.f32.mrf.mxu1  ;;  %5131 = vmatmul.f32.gmra.mxu3 %v9665_v58  ;;  %v5417_v58 = vld [vmem:[#allocation2 + $0x67] sm:$0xff] }
 0x816   :  { %11691 = vst [vmem:[#allocation21_spill] sm:$0xff] %v9909_v41  ;;  %4939 = vmatmul.f32.gmra.mxu2 %v9913_v21 }
 0x817   :  { %11692 = vst [vmem:[#allocation86_spill] sm:$0xff] %v9911_v54  ;;  %5311 = vmatmul.f32.gmra.mxu0 %v5231_v43 }
 0x818   :  { %5494 = vmatmul.f32.gmra.mxu1 %v5416_v48  ;;  %v4460_v60 = vpop.f32.mrf.mxu3 }
 0x819   :  { %v4347_v11 = vpop.f32.mrf.mxu2 }
 0x81a   :  { %v4455_v30 = vadd.f32 %v4454_v34, %v4347_v11  ;;  %v5233_v11 = vld [vmem:[#allocation2 + $0x76] sm:$0xff] }
 0x81c   :  { %v4613_v53 = vpop.f32.mrf.mxu0  ;;  %v9917_v19 = vadd.f32 %v4610_v13, %v4455_v30  ;;  %v9929_v30 = vld [vmem:[#allocation2 + $0x68] sm:$0xff] }
 0x81d   :  { %v9919_v29 = vpop.f32.mrf.mxu1  ;;  %5134 = vmatmul.f32.gmra.mxu3 %v9671_v35  ;;  %v5418_v35 = vld [vmem:[#allocation2 + $0x6f] sm:$0xff] }
 0x81e   :  { %11693 = vst [vmem:[#allocation90_spill] sm:$0xff] %v9917_v19  ;;  %4942 = vmatmul.f32.gmra.mxu2 %v9921_v51 }
 0x81f   :  { %11694 = vst [vmem:[#allocation38_spill] sm:$0xff] %v9919_v29  ;;  %5314 = vmatmul.f32.gmra.mxu0 %v5232_v59 }
 0x820   :  { %5497 = vmatmul.f32.gmra.mxu1 %v5417_v58  ;;  %v4463_v43 = vpop.f32.mrf.mxu3 }
 0x821   :  { %v4350_v48 = vpop.f32.mrf.mxu2 }
 0x822   :  { %v4458_v54 = vadd.f32 %v4457_v39, %v4350_v48  ;;  %v5234_v48 = vld [vmem:[#allocation2 + $0x7e] sm:$0xff] }
 0x824   :  { %v4616_v41 = vpop.f32.mrf.mxu0  ;;  %v9925_v34 = vadd.f32 %v4613_v53, %v4458_v54  ;;  %v9937_v54 = vld [vmem:[#allocation2 + $0x70] sm:$0xff] }
 0x825   :  { %v9927_v13 = vpop.f32.mrf.mxu1  ;;  %5137 = vmatmul.f32.gmra.mxu3 %v9675_v55  ;;  %v5419_v55 = vld [vmem:[#allocation2 + $0x77] sm:$0xff] }
 0x826   :  { %11695 = vst [vmem:[#allocation8_spill] sm:$0xff] %v9925_v34  ;;  %4945 = vmatmul.f32.gmra.mxu2 %v9929_v30 }
 0x827   :  { %11696 = vst [vmem:[#allocation11_spill] sm:$0xff] %v9927_v13  ;;  %5317 = vmatmul.f32.gmra.mxu0 %v5233_v11 }
 0x828   :  { %5500 = vmatmul.f32.gmra.mxu1 %v5418_v35  ;;  %v4466_v59 = vpop.f32.mrf.mxu3 }
 0x829   :  { %v4353_v58 = vpop.f32.mrf.mxu2 }
 0x82a   :  { %v4461_v29 = vadd.f32 %v4460_v60, %v4353_v58  ;;  %v5235_v58 = vld [vmem:[#allocation2 + $0x86] sm:$0xff] }
 0x82c   :  { %v4619_v19 = vpop.f32.mrf.mxu0  ;;  %v9933_v39 = vadd.f32 %v4616_v41, %v4461_v29  ;;  %v9945_v29 = vld [vmem:[#allocation2 + $0x78] sm:$0xff] }
 0x82d   :  { %v9935_v53 = vpop.f32.mrf.mxu1  ;;  %5140 = vmatmul.f32.gmra.mxu3 %v9681_v9  ;;  %v5420_v9 = vld [vmem:[#allocation2 + $0x7f] sm:$0xff] }
 0x82e   :  { %11697 = vst [vmem:[#allocation45_spill] sm:$0xff] %v9933_v39  ;;  %4948 = vmatmul.f32.gmra.mxu2 %v9937_v54 }
 0x82f   :  { %11698 = vst [vmem:[#allocation48_spill] sm:$0xff] %v9935_v53  ;;  %5320 = vmatmul.f32.gmra.mxu0 %v5234_v48 }
 0x830   :  { %5503 = vmatmul.f32.gmra.mxu1 %v5419_v55  ;;  %v4469_v11 = vpop.f32.mrf.mxu3 }
 0x831   :  { %v4356_v35 = vpop.f32.mrf.mxu2 }
 0x832   :  { %v4464_v13 = vadd.f32 %v4463_v43, %v4356_v35  ;;  %v5236_v35 = vld [vmem:[#allocation2 + $0x8e] sm:$0xff] }
 0x834   :  { %v4622_v34 = vpop.f32.mrf.mxu0  ;;  %v9941_v60 = vadd.f32 %v4619_v19, %v4464_v13  ;;  %v9953_v13 = vld [vmem:[#allocation2 + $0x80] sm:$0xff] }
 0x835   :  { %v9943_v41 = vpop.f32.mrf.mxu1  ;;  %5143 = vmatmul.f32.gmra.mxu3 %v9689_v16  ;;  %v5421_v16 = vld [vmem:[#allocation2 + $0x87] sm:$0xff] }
 0x836   :  { %11699 = vst [vmem:[#allocation87_spill] sm:$0xff] %v9941_v60  ;;  %4951 = vmatmul.f32.gmra.mxu2 %v9945_v29 }
 0x837   :  { %11700 = vst [vmem:[#allocation91_spill] sm:$0xff] %v9943_v41  ;;  %5323 = vmatmul.f32.gmra.mxu0 %v5235_v58 }
 0x838   :  { %5506 = vmatmul.f32.gmra.mxu1 %v5420_v9  ;;  %v4472_v48 = vpop.f32.mrf.mxu3 }
 0x839   :  { %v4359_v55 = vpop.f32.mrf.mxu2 }
 0x83a   :  { %v4467_v53 = vadd.f32 %v4466_v59, %v4359_v55  ;;  %v5237_v55 = vld [vmem:[#allocation2 + $0x96] sm:$0xff] }
 0x83c   :  { %v4625_v39 = vpop.f32.mrf.mxu0  ;;  %v9949_v43 = vadd.f32 %v4622_v34, %v4467_v53  ;;  %v9961_v53 = vld [vmem:[#allocation2 + $0x88] sm:$0xff] }
 0x83d   :  { %v9951_v19 = vpop.f32.mrf.mxu1  ;;  %5146 = vmatmul.f32.gmra.mxu3 %v9700_v17  ;;  %v4386_v17 = vadd.f32 %v9669_v45, %v9685_v1 }
 0x83e   :  { %4954 = vmatmul.f32.gmra.mxu2 %v9953_v13 }
 0x83f   :  { %5326 = vmatmul.f32.gmra.mxu0 %v5236_v35 }
 0x840   :  { %5509 = vmatmul.f32.gmra.mxu1 %v5421_v16  ;;  %v5099_v58 = vpop.f32.mrf.mxu3 }
 0x841   :  { %v4362_v9 = vpop.f32.mrf.mxu2 }
 0x842   :  { %v4470_v41 = vadd.f32 %v4469_v11, %v4362_v9 }
 0x844   :  { %v4628_v60 = vpop.f32.mrf.mxu0  ;;  %v9957_v59 = vadd.f32 %v4625_v39, %v4470_v41  ;;  %v4631_v41 = vadd.f32 %v9679_v6, %v4386_v17  ;;  %v9979_v17 = vld [vmem:[#allocation2 + $0x98] sm:$0xff] }
 0x845   :  { %v9959_v34 = vpop.f32.mrf.mxu1  ;;  %5149 = vmatmul.f32.gmra.mxu3 %v9711_v25  ;;  %v5238_v25 = vld [vmem:[#allocation2 + $0x9e] sm:$0xff] }
 0x846   :  { %11701 = vst [vmem:[#allocation58_spill] sm:$0xff] %v9957_v59  ;;  %4957 = vmatmul.f32.gmra.mxu2 %v9961_v53  ;;  %v9973_v59 = vld [vmem:[#allocation2 + $0x90] sm:$0xff]  ;;  %v4817_v45 = vadd.f32 %v9687_v28, %v4631_v41  ;;  %v4818_v28 = vadd.f32 %v9698_v2, %v9696_v52  ;;  %v4819_v52 = vadd.f32 %v9709_v44, %v9707_v63 }
 0x847   :  { %11702 = vst [vmem:[#allocation84_spill] sm:$0xff] %v9959_v34  ;;  %5329 = vmatmul.f32.gmra.mxu0 %v5237_v55  ;;  %v4820_v63 = vadd.f32 %v9720_v26, %v9718_v24  ;;  %v4821_v24 = vadd.f32 %v9731_v8, %v9729_v4  ;;  %v4822_v4 = vadd.f32 %v9742_v38, %v9740_v46 }
 0x848   :  { %5512 = vmatmul.f32.gmra.mxu1 %v9693_v27  ;;  %v5102_v35 = vpop.f32.mrf.mxu3  ;;  %v4823_v46 = vadd.f32 %v9753_v47, %v9751_v18 }
 0x849   :  { %v4365_v11 = vpop.f32.mrf.mxu2 }
 0x84a   :  { %v4473_v16 = vadd.f32 %v4472_v48, %v4365_v11  ;;  %v5239_v11 = vld [vmem:[#allocation2 + $0xa6] sm:$0xff] }
 0x84c   :  { %v5285_v39 = vpop.f32.mrf.mxu0  ;;  %v9969_v9 = vadd.f32 %v4628_v60, %v4473_v16 }
 0x84d   :  { %v9971_v34 = vpop.f32.mrf.mxu1  ;;  %5152 = vmatmul.f32.gmra.mxu3 %v9722_v20 }
 0x84e   :  { %4960 = vmatmul.f32.gmra.mxu2 %v9973_v59 }
 0x84f   :  { %5332 = vmatmul.f32.gmra.mxu0 %v5238_v25 }
 0x850   :  { %5515 = vmatmul.f32.gmra.mxu1 %v9704_v12  ;;  %v5105_v1 = vpop.f32.mrf.mxu3 }
 0x851   :  { %v4913_v27 = vpop.f32.mrf.mxu2 }
 0x852   :  { %v5003_v48 = vadd.f32 %v4913_v27, %v4817_v45 }
 0x854   :  { %v5288_v6 = vpop.f32.mrf.mxu0  ;;  %v5189_v60 = vadd.f32 %v5099_v58, %v5003_v48  ;;  %v9988_v48 = vld [vmem:[#allocation2 + $0xa0] sm:$0xff] }
 0x855   :  { %v5471_v55 = vpop.f32.mrf.mxu1  ;;  %5155 = vmatmul.f32.gmra.mxu3 %v9733_v0  ;;  %v5240_v0 = vld [vmem:[#allocation2 + $0xae] sm:$0xff] }
 0x856   :  { %v5375_v16 = vadd.f32 %v5285_v39, %v5189_v60  ;;  %4963 = vmatmul.f32.gmra.mxu2 %v9979_v17 }
 0x857   :  { %5335 = vmatmul.f32.gmra.mxu0 %v5239_v11 }
 0x858   :  { %5518 = vmatmul.f32.gmra.mxu1 %v9715_v31  ;;  %v9986_v12 = vadd.f32 %v5471_v55, %v5375_v16  ;;  %v5108_v20 = vpop.f32.mrf.mxu3 }
 0x859   :  { %v4916_v41 = vpop.f32.mrf.mxu2 }
 0x85a   :  { %v5004_v58 = vadd.f32 %v4916_v41, %v4818_v28  ;;  %v5241_v28 = vld [vmem:[#allocation2 + $0xb6] sm:$0xff] }
 0x85c   :  { %v5291_v25 = vpop.f32.mrf.mxu0  ;;  %v5190_v45 = vadd.f32 %v5102_v35, %v5004_v58 }
 0x85d   :  { %v5474_v27 = vpop.f32.mrf.mxu1  ;;  %5158 = vmatmul.f32.gmra.mxu3 %v9744_v5 }
 0x85e   :  { %v5376_v39 = vadd.f32 %v5288_v6, %v5190_v45  ;;  %4966 = vmatmul.f32.gmra.mxu2 %v9988_v48  ;;  %v6315_v6 = vld [vmem:[#allocation2 + $0xa8] sm:$0xff] }
 0x85f   :  { %5338 = vmatmul.f32.gmra.mxu0 %v5240_v0  ;;  %v5242_v0 = vld [vmem:[#allocation2 + $0xbe] sm:$0xff] }
 0x860   :  { %5521 = vmatmul.f32.gmra.mxu1 %v9726_v22  ;;  %v9995_v2 = vadd.f32 %v5474_v27, %v5376_v39  ;;  %v5111_v31 = vpop.f32.mrf.mxu3 }
 0x861   :  { %v4919_v60 = vpop.f32.mrf.mxu2 }
 0x862   :  { %v5005_v35 = vadd.f32 %v4919_v60, %v4819_v52 }
 0x864   :  { %v5294_v55 = vpop.f32.mrf.mxu0  ;;  %v5191_v11 = vadd.f32 %v5105_v1, %v5005_v35 }
 0x865   :  { %v5477_v16 = vpop.f32.mrf.mxu1  ;;  %5161 = vmatmul.f32.gmra.mxu3 %v9755_v42 }
 0x866   :  { %v5377_v5 = vadd.f32 %v5291_v25, %v5191_v11  ;;  %4969 = vmatmul.f32.gmra.mxu2 %v6315_v6  ;;  %v6316_v25 = vld [vmem:[#allocation2 + $0xb0] sm:$0xff]  ;;  %v5243_v11 = vld [vmem:[#allocation2 + $0xc6] sm:$0xff] }
 0x867   :  { %5341 = vmatmul.f32.gmra.mxu0 %v5241_v28 }
 0x868   :  { %5524 = vmatmul.f32.gmra.mxu1 %v9737_v57  ;;  %v10001_v44 = vadd.f32 %v5477_v16, %v5377_v5  ;;  %v5114_v22 = vpop.f32.mrf.mxu3 }
 0x869   :  { %v4922_v41 = vpop.f32.mrf.mxu2 }
 0x86a   :  { %v5006_v58 = vadd.f32 %v4922_v41, %v4820_v63  ;;  %v5244_v63 = vld [vmem:[#allocation2 + $0xce] sm:$0xff]  ;;  %v6318_v41 = vld [vmem:[#allocation2 + $0xc0] sm:$0xff] }
 0x86c   :  { %v5297_v45 = vpop.f32.mrf.mxu0  ;;  %v5192_v1 = vadd.f32 %v5108_v20, %v5006_v58 }
 0x86d   :  { %v5480_v27 = vpop.f32.mrf.mxu1  ;;  %5164 = vmatmul.f32.gmra.mxu3 %v9766_v32 }
 0x86e   :  { %v5378_v42 = vadd.f32 %v5294_v55, %v5192_v1  ;;  %4972 = vmatmul.f32.gmra.mxu2 %v6316_v25  ;;  %v6317_v55 = vld [vmem:[#allocation2 + $0xb8] sm:$0xff]  ;;  %v11703_v25 = vld [vmem:[#allocation79_spill] sm:$0xff] }
 0x86f   :  { %5344 = vmatmul.f32.gmra.mxu0 %v5242_v0  ;;  %v5245_v0 = vld [vmem:[#allocation2 + $0xd6] sm:$0xff] }
 0x870   :  { %5527 = vmatmul.f32.gmra.mxu1 %v9748_v50  ;;  %v10007_v26 = vadd.f32 %v5480_v27, %v5378_v42  ;;  %v5117_v57 = vpop.f32.mrf.mxu3  ;;  %v6319_v42 = vld [vmem:[#allocation2 + $0xc8] sm:$0xff] }
 0x871   :  { %v4925_v39 = vpop.f32.mrf.mxu2 }
 0x872   :  { %v5007_v52 = vadd.f32 %v4925_v39, %v4821_v24  ;;  %v11705_v24 = vld [vmem:[#allocation31_spill] sm:$0xff] }
 0x874   :  { %v5300_v60 = vpop.f32.mrf.mxu0  ;;  %v5193_v20 = vadd.f32 %v5111_v31, %v5007_v52 }
 0x875   :  { %v5483_v35 = vpop.f32.mrf.mxu1  ;;  %5167 = vmatmul.f32.gmra.mxu3 %v9777_v23 }
 0x876   :  { %v5379_v32 = vadd.f32 %v5297_v45, %v5193_v20  ;;  %4975 = vmatmul.f32.gmra.mxu2 %v6317_v55  ;;  %v6320_v55 = vld [vmem:[#allocation2 + $0xd0] sm:$0xff] }
 0x877   :  { %5347 = vmatmul.f32.gmra.mxu0 %v5243_v11  ;;  %v5246_v11 = vld [vmem:[#allocation2 + $0xde] sm:$0xff] }
 0x878   :  { %5530 = vmatmul.f32.gmra.mxu1 %v9759_v36  ;;  %v10013_v8 = vadd.f32 %v5483_v35, %v5379_v32  ;;  %v5120_v50 = vpop.f32.mrf.mxu3  ;;  %v11706_v32 = vld [vmem:[#allocation7_spill] sm:$0xff] }
 0x879   :  { %v4928_v16 = vpop.f32.mrf.mxu2 }
 0x87a   :  { %v5008_v28 = vadd.f32 %v4928_v16, %v4822_v4  ;;  %v11707_v4 = vld [vmem:[#allocation34_spill] sm:$0xff]  ;;  %v11708_v16 = vld [vmem:[#allocation65_spill] sm:$0xff] }
 0x87c   :  { %v5303_v5 = vpop.f32.mrf.mxu0  ;;  %v5194_v31 = vadd.f32 %v5114_v22, %v5008_v28  ;;  %v11709_v28 = vld [vmem:[#allocation57_spill] sm:$0xff] }
 0x87d   :  { %v5486_v6 = vpop.f32.mrf.mxu1  ;;  %5170 = vmatmul.f32.gmra.mxu3 %v9791_v15 }
 0x87e   :  { %v5380_v23 = vadd.f32 %v5300_v60, %v5194_v31  ;;  %4978 = vmatmul.f32.gmra.mxu2 %v6318_v41 }
 0x87f   :  { %5350 = vmatmul.f32.gmra.mxu0 %v5244_v63 }
 0x880   :  { %5533 = vmatmul.f32.gmra.mxu1 %v9770_v40  ;;  %v10019_v38 = vadd.f32 %v5486_v6, %v5380_v23  ;;  %v5123_v36 = vpop.f32.mrf.mxu3  ;;  %v11704_v40 = vld [vmem:[#allocation32_spill] sm:$0xff] }
 0x881   :  { %v4931_v58 = vpop.f32.mrf.mxu2  ;;  %v4824_v18 = vadd.f32 %v11705_v24, %v11704_v40 }
 0x882   :  { %v5009_v45 = vadd.f32 %v4931_v58, %v4823_v46  ;;  %v5247_v58 = vld [vmem:[#allocation2 + $0xe6] sm:$0xff] }
 0x884   :  { %v5306_v1 = vpop.f32.mrf.mxu0  ;;  %v5195_v22 = vadd.f32 %v5117_v57, %v5009_v45  ;;  %v11710_v45 = vld [vmem:[#allocation6_spill] sm:$0xff] }
 0x885   :  { %v5489_v27 = vpop.f32.mrf.mxu1  ;;  %5173 = vmatmul.f32.gmra.mxu3 %v9811_v10 }
 0x886   :  { %v5381_v15 = vadd.f32 %v5303_v5, %v5195_v22  ;;  %4981 = vmatmul.f32.gmra.mxu2 %v6319_v42  ;;  %v4825_v5 = vadd.f32 %v11709_v28, %v11708_v16  ;;  %v6321_v22 = vld [vmem:[#allocation2 + $0xd8] sm:$0xff] }
 0x887   :  { %5353 = vmatmul.f32.gmra.mxu0 %v5245_v0  ;;  %v11712_v0 = vld [vmem:[#allocation62_spill] sm:$0xff] }
 0x888   :  { %5536 = vmatmul.f32.gmra.mxu1 %v11703_v25  ;;  %v10025_v47 = vadd.f32 %v5489_v27, %v5381_v15  ;;  %v5126_v52 = vpop.f32.mrf.mxu3  ;;  %v11711_v27 = vld [vmem:[#allocation64_spill] sm:$0xff] }
 0x889   :  { %v4934_v39 = vpop.f32.mrf.mxu2  ;;  %v11713_v15 = vld [vmem:[#allocation60_spill] sm:$0xff] }
 0x88a   :  { %v5010_v60 = vadd.f32 %v4934_v39, %v4824_v18  ;;  %v4826_v42 = vadd.f32 %v11713_v15, %v11712_v0 }
 0x88c   :  { %v5309_v20 = vpop.f32.mrf.mxu0  ;;  %v5196_v57 = vadd.f32 %v5120_v50, %v5010_v60  ;;  %v5064_v60 = vld [vmem:[#allocation2 + $0xf1] sm:$0xff] }
 0x88d   :  { %v5492_v35 = vpop.f32.mrf.mxu1  ;;  %5176 = vmatmul.f32.gmra.mxu3 %v11706_v32  ;;  %v11714_v32 = vld [vmem:[#allocation35_spill] sm:$0xff] }
 0x88e   :  { %v5382_v10 = vadd.f32 %v5306_v1, %v5196_v57  ;;  %4984 = vmatmul.f32.gmra.mxu2 %v6320_v55  ;;  %v5248_v57 = vld [vmem:[#allocation2 + $0xee] sm:$0xff] }
 0x88f   :  { %5356 = vmatmul.f32.gmra.mxu0 %v5246_v11  ;;  %v6322_v11 = vld [vmem:[#allocation2 + $0xe0] sm:$0xff]  ;;  %v11716_v55 = vld [vmem:[#allocation72_spill] sm:$0xff] }
 0x890   :  { %5539 = vmatmul.f32.gmra.mxu1 %v11707_v4  ;;  %v10031_v31 = vadd.f32 %v5492_v35, %v5382_v10  ;;  %v5129_v41 = vpop.f32.mrf.mxu3  ;;  %v11715_v10 = vld [vmem:[#allocation33_spill] sm:$0xff] }
 0x891   :  { %v4937_v6 = vpop.f32.mrf.mxu2  ;;  %v4827_v4 = vadd.f32 %v11716_v55, %v11715_v10 }
 0x892   :  { %v5011_v63 = vadd.f32 %v4937_v6, %v4825_v5 }
 0x894   :  { %v5312_v23 = vpop.f32.mrf.mxu0  ;;  %v5197_v50 = vadd.f32 %v5123_v36, %v5011_v63 }
 0x895   :  { %v5495_v46 = vpop.f32.mrf.mxu1  ;;  %5179 = vmatmul.f32.gmra.mxu3 %v11710_v45  ;;  %v11717_v45 = vld [vmem:[#allocation5_spill] sm:$0xff] }
 0x896   :  { %v5383_v1 = vadd.f32 %v5309_v20, %v5197_v50  ;;  %4987 = vmatmul.f32.gmra.mxu2 %v6321_v22  ;;  %v5065_v50 = vld [vmem:[#allocation2 + $0xf9] sm:$0xff] }
 0x897   :  { %5359 = vmatmul.f32.gmra.mxu0 %v5247_v58  ;;  %v11718_v22 = vld [vmem:[#allocation69_spill] sm:$0xff] }
 0x898   :  { %5542 = vmatmul.f32.gmra.mxu1 %v11711_v27  ;;  %v10037_v25 = vadd.f32 %v5495_v46, %v5383_v1  ;;  %v5132_v35 = vpop.f32.mrf.mxu3  ;;  %v5249_v46 = vld [vmem:[#allocation2 + $0xf6] sm:$0xff] }
 0x899   :  { %v4940_v40 = vpop.f32.mrf.mxu2  ;;  %v11719_v27 = vld [vmem:[#allocation68_spill] sm:$0xff] }
 0x89a   :  { %v5012_v24 = vadd.f32 %v4940_v40, %v4826_v42  ;;  %v4828_v0 = vadd.f32 %v11719_v27, %v11718_v22 }
 0x89c   :  { %v5315_v18 = vpop.f32.mrf.mxu0  ;;  %v5198_v39 = vadd.f32 %v5126_v52, %v5012_v24 }
 0x89d   :  { %v5498_v36 = vpop.f32.mrf.mxu1  ;;  %5182 = vmatmul.f32.gmra.mxu3 %v5064_v60 }
 0x89e   :  { %v5384_v20 = vadd.f32 %v5312_v23, %v5198_v39  ;;  %4990 = vmatmul.f32.gmra.mxu2 %v6322_v11  ;;  %v6323_v23 = vld [vmem:[#allocation2 + $0xe8] sm:$0xff] }
 0x89f   :  { %5362 = vmatmul.f32.gmra.mxu0 %v5248_v57  ;;  %v6324_v57 = vld [vmem:[#allocation2 + $0xf0] sm:$0xff]  ;;  %v11722_v11 = vld [vmem:[#allocation75_spill] sm:$0xff] }
 0x8a0   :  { %5545 = vmatmul.f32.gmra.mxu1 %v11714_v32  ;;  %v10042_v16 = vadd.f32 %v5498_v36, %v5384_v20  ;;  %v5135_v1 = vpop.f32.mrf.mxu3  ;;  %v5250_v36 = vld [vmem:[#allocation2 + $0xfe] sm:$0xff] }
 0x8a1   :  { %v4943_v28 = vpop.f32.mrf.mxu2  ;;  %v11721_v20 = vld [vmem:[#allocation81_spill] sm:$0xff] }
 0x8a2   :  { %v5013_v5 = vadd.f32 %v4943_v28, %v4827_v4  ;;  %v4829_v32 = vadd.f32 %v11722_v11, %v11721_v20 }
 0x8a4   :  { %v5318_v6 = vpop.f32.mrf.mxu0  ;;  %v5199_v52 = vadd.f32 %v5129_v41, %v5013_v5 }
 0x8a5   :  { %v5501_v63 = vpop.f32.mrf.mxu1  ;;  %5185 = vmatmul.f32.gmra.mxu3 %v5065_v50  ;;  %v10054_v50 = vld [vmem:[#allocation2 + $0xf8] sm:$0xff] }
 0x8a6   :  { %v5385_v58 = vadd.f32 %v5315_v18, %v5199_v52  ;;  %4993 = vmatmul.f32.gmra.mxu2 %v6323_v23  ;;  %v11720_v18 = vld [vmem:[#allocation18_spill] sm:$0xff]  ;;  %v11724_v23 = vld [vmem:[#allocation12_spill] sm:$0xff] }
 0x8a7   :  { %5365 = vmatmul.f32.gmra.mxu0 %v5249_v46  ;;  %v5251_v52 = vld [vmem:[#allocation2 + $0x106] sm:$0xff] }
 0x8a8   :  { %5548 = vmatmul.f32.gmra.mxu1 %v11717_v45  ;;  %v10047_v15 = vadd.f32 %v5501_v63, %v5385_v58  ;;  %v5138_v4 = vpop.f32.mrf.mxu3  ;;  %v5436_v46 = vld [vmem:[#allocation2 + $0xff] sm:$0xff] }
 0x8a9   :  { %v4946_v42 = vpop.f32.mrf.mxu2  ;;  %v11723_v58 = vld [vmem:[#allocation10_spill] sm:$0xff] }
 0x8aa   :  { %v5014_v40 = vadd.f32 %v4946_v42, %v4828_v0  ;;  %v4830_v45 = vadd.f32 %v11724_v23, %v11723_v58  ;;  %v11727_v58 = vld [vmem:[#allocation13_spill] sm:$0xff]  ;;  %v11728_v23 = vld [vmem:[#allocation14_spill] sm:$0xff] }
 0x8ac   :  { %v5321_v24 = vpop.f32.mrf.mxu0  ;;  %v5200_v41 = vadd.f32 %v5132_v35, %v5014_v40 }
 0x8ad   :  { %v5504_v39 = vpop.f32.mrf.mxu1 }
 0x8ae   :  { %v5386_v60 = vadd.f32 %v5318_v6, %v5200_v41  ;;  %4996 = vmatmul.f32.gmra.mxu2 %v6324_v57 }
 0x8af   :  { %5368 = vmatmul.f32.gmra.mxu0 %v5250_v36 }
 0x8b0   :  { %5551 = vmatmul.f32.gmra.mxu1 %v11720_v18  ;;  %v10052_v10 = vadd.f32 %v5504_v39, %v5386_v60  ;;  %v5141_v42 = vpop.f32.mrf.mxu3 }
 0x8b1   :  { %v4949_v55 = vpop.f32.mrf.mxu2 }
 0x8b2   :  { %v5015_v28 = vadd.f32 %v4949_v55, %v4829_v32 }
 0x8b4   :  { %v5324_v5 = vpop.f32.mrf.mxu0  ;;  %v5201_v63 = vadd.f32 %v5135_v1, %v5015_v28  ;;  %v5437_v1 = vld [vmem:[#allocation2 + $0x107] sm:$0xff] }
 0x8b5   :  { %v5507_v35 = vpop.f32.mrf.mxu1  ;;  %v11725_v28 = vld [vmem:[#allocation22_spill] sm:$0xff] }
 0x8b6   :  { %v5387_v6 = vadd.f32 %v5321_v24, %v5201_v63  ;;  %4999 = vmatmul.f32.gmra.mxu2 %v10054_v50  ;;  %v4831_v24 = vadd.f32 %v9850_v49, %v9848_v33 }
 0x8b7   :  { %5371 = vmatmul.f32.gmra.mxu0 %v5251_v52  ;;  %v11726_v52 = vld [vmem:[#allocation50_spill] sm:$0xff] }
 0x8b8   :  { %5554 = vmatmul.f32.gmra.mxu1 %v5436_v46  ;;  %v10059_v22 = vadd.f32 %v5507_v35, %v5387_v6  ;;  %v5144_v32 = vpop.f32.mrf.mxu3 }
 0x8b9   :  { %v4952_v27 = vpop.f32.mrf.mxu2 }
 0x8ba   :  { %v5016_v0 = vadd.f32 %v4952_v27, %v4830_v45  ;;  %v4833_v45 = vadd.f32 %v11728_v23, %v11727_v58  ;;  %v11733_v23 = vld [vmem:[#allocation16_spill] sm:$0xff] }
 0x8bc   :  { %v5202_v40 = vadd.f32 %v5138_v4, %v5016_v0  ;;  %v5327_v39 = vpop.f32.mrf.mxu0 }
 0x8bd   :  { %v5510_v41 = vpop.f32.mrf.mxu1 }
 0x8be   :  { %v5388_v36 = vadd.f32 %v5324_v5, %v5202_v40  ;;  %5656 = vmatmul.f32.vlgmr.msra.gmra.mxu2 %v9857_v7  ;;  %v4832_v5 = vadd.f32 %v11726_v52, %v11725_v28  ;;  %v11731_v28 = vld [vmem:[#allocation23_spill] sm:$0xff]  ;;  %v11732_v52 = vld [vmem:[#allocation52_spill] sm:$0xff] }
 0x8c0   :  { %5557 = vmatmul.f32.gmra.mxu1 %v5437_v1  ;;  %v10064_v60 = vadd.f32 %v5510_v41, %v5388_v36  ;;  %v5147_v46 = vpop.f32.mrf.mxu3  ;;  %v11730_v36 = vld [vmem:[#allocation37_spill] sm:$0xff] }
 0x8c1   :  { %v4955_v57 = vpop.f32.mrf.mxu2 }
 0x8c2   :  { %v5017_v18 = vadd.f32 %v4955_v57, %v4831_v24 }
 0x8c4   :  { %v5203_v20 = vadd.f32 %v5141_v42, %v5017_v18  ;;  %v5330_v4 = vpop.f32.mrf.mxu0 }
 0x8c5   :  { %v5513_v11 = vpop.f32.mrf.mxu1 }
 0x8c6   :  { %v5389_v55 = vadd.f32 %v5327_v39, %v5203_v20  ;;  %5659 = vmatmul.f32.gmra.mxu2 %v9865_v37  ;;  %v11729_v39 = vld [vmem:[#allocation36_spill] sm:$0xff] }
 0x8c7   :  { %v4834_v24 = vadd.f32 %v11730_v36, %v11729_v39 }
 0x8c8   :  { %v10069_v63 = vadd.f32 %v5513_v11, %v5389_v55 }
 0x8c9   :  { %v4958_v7 = vpop.f32.mrf.mxu2 }
 0x8ca   :  { %v5018_v35 = vadd.f32 %v4958_v7, %v4832_v5  ;;  %v4835_v5 = vadd.f32 %v11732_v52, %v11731_v28  ;;  %v11741_v28 = vld [vmem:[#allocation90_spill] sm:$0xff] }
 0x8cb   :  { %v11742_v52 = vld [vmem:[#allocation38_spill] sm:$0xff] }
 0x8cc   :  { %v5204_v6 = vadd.f32 %v5144_v32, %v5018_v35  ;;  %v5333_v37 = vpop.f32.mrf.mxu0 }
 0x8cd   :  { %v5516_v33 = vpop.f32.mrf.mxu1 }
 0x8ce   :  { %v5390_v49 = vadd.f32 %v5330_v4, %v5204_v6  ;;  %5662 = vmatmul.f32.gmra.mxu2 %v9873_v3  ;;  %v5150_v3 = vpop.f32.mrf.mxu3 }
 0x8d0   :  { %v10074_v27 = vadd.f32 %v5516_v33, %v5390_v49 }
 0x8d1   :  { %v4961_v0 = vpop.f32.mrf.mxu2 }
 0x8d2   :  { %v5019_v42 = vadd.f32 %v4961_v0, %v4833_v45  ;;  %v11734_v45 = vld [vmem:[#allocation15_spill] sm:$0xff] }
 0x8d4   :  { %v5205_v40 = vadd.f32 %v5147_v46, %v5019_v42  ;;  %v5336_v11 = vpop.f32.mrf.mxu0 }
 0x8d5   :  { %v5519_v41 = vpop.f32.mrf.mxu1 }
 0x8d6   :  { %v5391_v1 = vadd.f32 %v5333_v37, %v5205_v40  ;;  %5665 = vmatmul.f32.gmra.mxu2 %v9881_v62  ;;  %v5153_v6 = vpop.f32.mrf.mxu3  ;;  %v4836_v37 = vadd.f32 %v11734_v45, %v11733_v23  ;;  %v11735_v40 = vld [vmem:[#allocation19_spill] sm:$0xff] }
 0x8d8   :  { %v10079_v57 = vadd.f32 %v5519_v41, %v5391_v1  ;;  %v11736_v41 = vld [vmem:[#allocation53_spill] sm:$0xff] }
 0x8d9   :  { %v4964_v18 = vpop.f32.mrf.mxu2  ;;  %v4837_v1 = vadd.f32 %v11736_v41, %v11735_v40 }
 0x8da   :  { %v5020_v20 = vadd.f32 %v4964_v18, %v4834_v24  ;;  %v11738_v24 = vld [vmem:[#allocation83_spill] sm:$0xff] }
 0x8dc   :  { %v5206_v32 = vadd.f32 %v5150_v3, %v5020_v20  ;;  %v5339_v49 = vpop.f32.mrf.mxu0 }
 0x8dd   :  { %v5522_v55 = vpop.f32.mrf.mxu1 }
 0x8de   :  { %v5392_v4 = vadd.f32 %v5336_v11, %v5206_v32  ;;  %5668 = vmatmul.f32.gmra.mxu2 %v9889_v56  ;;  %v11739_v11 = vld [vmem:[#allocation21_spill] sm:$0xff]  ;;  %v11740_v32 = vld [vmem:[#allocation86_spill] sm:$0xff] }
 0x8e0   :  { %v10084_v7 = vadd.f32 %v5522_v55, %v5392_v4  ;;  %v4839_v55 = vadd.f32 %v11740_v32, %v11739_v11  ;;  %v4846_v11 = vadd.f32 %v9971_v34, %v9969_v9  ;;  %v5613_v9 = vld [vmem:[#allocation2 + $0xb8] sm:$0xff] }
 0x8e1   :  { %v4967_v62 = vpop.f32.mrf.mxu2 }
 0x8e2   :  { %v5021_v35 = vadd.f32 %v4967_v62, %v4835_v5  ;;  %v4840_v5 = vadd.f32 %v11742_v52, %v11741_v28  ;;  %v5612_v28 = vld [vmem:[#allocation2 + $0xb0] sm:$0xff] }
 0x8e4   :  { %v5207_v33 = vadd.f32 %v5153_v6, %v5021_v35  ;;  %v11743_v35 = vld [vmem:[#allocation8_spill] sm:$0xff]  ;;  %v11744_v6 = vld [vmem:[#allocation11_spill] sm:$0xff] }
 0x8e5   :  { %v5525_v58 = vpop.f32.mrf.mxu1 }
 0x8e6   :  { %v5393_v46 = vadd.f32 %v5339_v49, %v5207_v33  ;;  %5671 = vmatmul.f32.gmra.mxu2 %v9897_v61  ;;  %v11737_v61 = vld [vmem:[#allocation29_spill] sm:$0xff]  ;;  %v4841_v33 = vadd.f32 %v11744_v6, %v11743_v35 }
 0x8e7   :  { %v4838_v3 = vadd.f32 %v11738_v24, %v11737_v61  ;;  %v11749_v61 = vld [vmem:[#allocation58_spill] sm:$0xff]  ;;  %v11750_v24 = vld [vmem:[#allocation84_spill] sm:$0xff] }
 0x8e8   :  { %v10089_v0 = vadd.f32 %v5525_v58, %v5393_v46  ;;  %v11745_v46 = vld [vmem:[#allocation45_spill] sm:$0xff]  ;;  %v11746_v58 = vld [vmem:[#allocation48_spill] sm:$0xff] }
 0x8e9   :  { %v4970_v56 = vpop.f32.mrf.mxu2  ;;  %v4842_v23 = vadd.f32 %v11746_v58, %v11745_v46 }
 0x8ea   :  { %v10091_v42 = vadd.f32 %v4970_v56, %v4836_v37  ;;  %v11747_v37 = vld [vmem:[#allocation87_spill] sm:$0xff] }
 0x8eb   :  { %v11748_v56 = vld [vmem:[#allocation91_spill] sm:$0xff] }
 0x8ec   :  { %v4843_v40 = vadd.f32 %v11748_v56, %v11747_v37 }
 0x8ee   :  { %5674 = vmatmul.f32.gmra.mxu2 %v9905_v14 }
 0x8f1   :  { %v4973_v39 = vpop.f32.mrf.mxu2 }
 0x8f2   :  { %v10096_v36 = vadd.f32 %v4973_v39, %v4837_v1  ;;  %v4844_v1 = vadd.f32 %v9951_v19, %v9949_v43 }
 0x8f6   :  { %5677 = vmatmul.f32.gmra.mxu2 %v9913_v21 }
 0x8f9   :  { %v4976_v18 = vpop.f32.mrf.mxu2 }
 0x8fa   :  { %v10101_v20 = vadd.f32 %v4976_v18, %v4838_v3  ;;  %v4845_v3 = vadd.f32 %v11750_v24, %v11749_v61 }
 0x8fe   :  { %5680 = vmatmul.f32.gmra.mxu2 %v9921_v51 }
 0x901   :  { %v4979_v14 = vpop.f32.mrf.mxu2 }
 0x902   :  { %v10106_v4 = vadd.f32 %v4979_v14, %v4839_v55 }
 0x906   :  { %5683 = vmatmul.f32.gmra.mxu2 %v9929_v30 }
 0x909   :  { %v4982_v21 = vpop.f32.mrf.mxu2 }
 0x90a   :  { %v10111_v62 = vadd.f32 %v4982_v21, %v4840_v5 }
 0x90e   :  { %5686 = vmatmul.f32.gmra.mxu2 %v9937_v54 }
 0x911   :  { %v4985_v51 = vpop.f32.mrf.mxu2 }
 0x912   :  { %v10116_v49 = vadd.f32 %v4985_v51, %v4841_v33 }
 0x916   :  { %5689 = vmatmul.f32.gmra.mxu2 %v9945_v29 }
 0x919   :  { %v4988_v30 = vpop.f32.mrf.mxu2 }
 0x91a   :  { %v10121_v45 = vadd.f32 %v4988_v30, %v4842_v23 }
 0x91e   :  { %5692 = vmatmul.f32.gmra.mxu2 %v9953_v13 }
 0x921   :  { %v4991_v54 = vpop.f32.mrf.mxu2 }
 0x922   :  { %v10126_v41 = vadd.f32 %v4991_v54, %v4843_v40 }
 0x926   :  { %5695 = vmatmul.f32.gmra.mxu2 %v9961_v53 }
 0x929   :  { %v4994_v29 = vpop.f32.mrf.mxu2 }
 0x92a   :  { %v10131_v39 = vadd.f32 %v4994_v29, %v4844_v1 }
 0x92e   :  { %5698 = vmatmul.f32.gmra.mxu2 %v9973_v59  ;;  %v5611_v59 = vld [vmem:[#allocation2 + $0xa8] sm:$0xff] }
 0x931   :  { %v4997_v13 = vpop.f32.mrf.mxu2 }
 0x932   :  { %v10136_v18 = vadd.f32 %v4997_v13, %v4845_v3  ;;  %v10190_v13 = vpop.f32.mrf.mxu3 }
 0x936   :  { %5701 = vmatmul.f32.gmra.mxu2 %v9979_v17 }
 0x939   :  { %v5000_v53 = vpop.f32.mrf.mxu2 }
 0x93a   :  { %v10141_v32 = vadd.f32 %v5000_v53, %v4846_v11  ;;  %v10195_v11 = vpop.f32.mrf.mxu0 }
 0x93c   :  { %11751 = vst [vmem:[#allocation95_spill] sm:$0xff] %v10141_v32 }
 0x93e   :  { %5704 = vmatmul.f32.gmra.mxu2 %v9988_v48 }
 0x941   :  { %v5657_v43 = vpop.f32.mrf.mxu2 }
 0x942   :  { %v10145_v19 = vadd.f32 %v5657_v43, %v9986_v12  ;;  %v5614_v12 = vld [vmem:[#allocation2 + $0xc0] sm:$0xff] }
 0x946   :  { %5707 = vmatmul.f32.gmra.mxu2 %v5611_v59  ;;  %v10204_v59 = vpop.f32.mrf.mxu0 }
 0x949   :  { %v5660_v55 = vpop.f32.mrf.mxu2 }
 0x94a   :  { %v10148_v14 = vadd.f32 %v5660_v55, %v9995_v2  ;;  %v5615_v2 = vld [vmem:[#allocation2 + $0xc8] sm:$0xff] }
 0x94e   :  { %5710 = vmatmul.f32.gmra.mxu2 %v5612_v28 }
 0x951   :  { %v5663_v17 = vpop.f32.mrf.mxu2 }
 0x952   :  { %v10151_v34 = vadd.f32 %v5663_v17, %v10001_v44  ;;  %v5616_v44 = vld [vmem:[#allocation2 + $0xd0] sm:$0xff] }
 0x956   :  { %5713 = vmatmul.f32.gmra.mxu2 %v5613_v9  ;;  %v10213_v9 = vpop.f32.mrf.mxu0 }
 0x959   :  { %v5666_v52 = vpop.f32.mrf.mxu2 }
 0x95a   :  { %v10154_v48 = vadd.f32 %v5666_v52, %v10007_v26  ;;  %v5617_v26 = vld [vmem:[#allocation2 + $0xd8] sm:$0xff] }
 0x95e   :  { %5716 = vmatmul.f32.gmra.mxu2 %v5614_v12 }
 0x961   :  { %v5669_v5 = vpop.f32.mrf.mxu2 }
 0x962   :  { %v10157_v21 = vadd.f32 %v5669_v5, %v10013_v8  ;;  %v5618_v8 = vld [vmem:[#allocation2 + $0xe0] sm:$0xff] }
 0x966   :  { %5719 = vmatmul.f32.gmra.mxu2 %v5615_v2  ;;  %v10224_v2 = vpop.f32.mrf.mxu0 }
 0x969   :  { %v5672_v35 = vpop.f32.mrf.mxu2 }
 0x96a   :  { %v10160_v6 = vadd.f32 %v5672_v35, %v10019_v38  ;;  %v5619_v38 = vld [vmem:[#allocation2 + $0xe8] sm:$0xff] }
 0x96e   :  { %5722 = vmatmul.f32.gmra.mxu2 %v5616_v44 }
 0x971   :  { %v5675_v33 = vpop.f32.mrf.mxu2 }
 0x972   :  { %v10163_v51 = vadd.f32 %v5675_v33, %v10025_v47  ;;  %v5620_v47 = vld [vmem:[#allocation2 + $0xf0] sm:$0xff]  ;;  %v10232_v33 = vpop.f32.mrf.mxu0 }
 0x976   :  { %5725 = vmatmul.f32.gmra.mxu2 %v5617_v26 }
 0x979   :  { %v5678_v46 = vpop.f32.mrf.mxu2 }
 0x97a   :  { %v10166_v58 = vadd.f32 %v5678_v46, %v10031_v31 }
 0x97e   :  { %5728 = vmatmul.f32.gmra.mxu2 %v5618_v8 }
 0x981   :  { %v5681_v23 = vpop.f32.mrf.mxu2 }
 0x982   :  { %v10169_v30 = vadd.f32 %v5681_v23, %v10037_v25  ;;  %v6325_v25 = vld [vmem:[#allocation2] sm:$0xff] }
 0x986   :  { %5731 = vmatmul.f32.gmra.mxu2 %v5619_v38 }
 0x989   :  { %v5684_v37 = vpop.f32.mrf.mxu2 }
 0x98a   :  { %v10172_v56 = vadd.f32 %v5684_v37, %v10042_v16 }
 0x98e   :  { %5734 = vmatmul.f32.gmra.mxu2 %v5620_v47 }
 0x991   :  { %v5687_v40 = vpop.f32.mrf.mxu2 }
 0x992   :  { %v10175_v54 = vadd.f32 %v5687_v40, %v10047_v15  ;;  %v10254_v40 = vpop.f32.mrf.mxu0 }
 0x996   :  { %5737 = vmatmul.f32.gmra.mxu2 %v10054_v50 }
 0x999   :  { %v5690_v31 = vpop.f32.mrf.mxu2 }
 0x99a   :  { %v10179_v1 = vadd.f32 %v5690_v31, %v10052_v10  ;;  %v10259_v31 = vld [vmem:[%s11062_s3 + $0x8] sm:$0xff] }
 0x99b   :  { %11753 = vst [vmem:[#allocation66_spill] sm:$0xff] %v10259_v31 }
 0x99e   :  { %5740 = vmatmul.f32.gmra.mxu2 %v6325_v25 }
 0x9a1   :  { %v5693_v29 = vpop.f32.mrf.mxu2 }
 0x9a2   :  { %v10182_v61 = vadd.f32 %v5693_v29, %v10059_v22  ;;  %v10197_v22 = vpop.f32.mrf.mxu1 }
 0x9a6   :  { %5743 = vmatmul.f32.gmra.mxu2 %v6325_v25 }
 0x9a9   :  { %v5696_v16 = vpop.f32.mrf.mxu2 }
 0x9aa   :  { %v10185_v24 = vadd.f32 %v5696_v16, %v10064_v60  ;;  %v10202_v60 = vpop.f32.mrf.mxu3  ;;  %v10209_v28 = vpop.f32.mrf.mxu1  ;;  %v10279_v16 = vld [vmem:[%s11062_s3 + $0x10] sm:$0xff] }
 0x9ab   :  { %11757 = vst [vmem:[#allocation100_spill] sm:$0xff] %v10279_v16 }
 0x9b1   :  { %v5699_v3 = vpop.f32.mrf.mxu2 }
 0x9b2   :  { %v10188_v15 = vadd.f32 %v5699_v3, %v10069_v63 }
 0x9b9   :  { %v5702_v50 = vpop.f32.mrf.mxu2 }
 0x9ba   :  { %v10193_v10 = vadd.f32 %v5702_v50, %v10074_v27  ;;  %v10211_v27 = vpop.f32.mrf.mxu3 }
 0x9c1   :  { %v5705_v53 = vpop.f32.mrf.mxu2 }
 0x9c2   :  { %v10200_v43 = vadd.f32 %v5705_v53, %v10079_v57  ;;  %v10218_v57 = vpop.f32.mrf.mxu1  ;;  %v10220_v12 = vpop.f32.mrf.mxu3 }
 0x9c9   :  { %v5708_v63 = vpop.f32.mrf.mxu2 }
 0x9ca   :  { %v10207_v55 = vadd.f32 %v5708_v63, %v10084_v7  ;;  %v10226_v7 = vpop.f32.mrf.mxu1  ;;  %v10230_v44 = vpop.f32.mrf.mxu3  ;;  %v10293_v63 = vld [vmem:[%s11062_s3 + $0x18] sm:$0xff] }
 0x9cb   :  { %11759 = vst [vmem:[#allocation49_spill] sm:$0xff] %v10293_v63 }
 0x9d1   :  { %v5711_v17 = vpop.f32.mrf.mxu2 }
 0x9d2   :  { %v10216_v52 = vadd.f32 %v5711_v17, %v10089_v0  ;;  %v10237_v0 = vld [vmem:[%s11061_s2 + $0x10] sm:$0xff]  ;;  %v10241_v46 = vpop.f32.mrf.mxu1  ;;  %v10246_v23 = vpop.f32.mrf.mxu3 }
 0x9d3   :  { %11752 = vst [vmem:[#allocation39_spill] sm:$0xff] %v10237_v0  ;;  %v10244_v8 = vperm.slane %v10237_v0, 0  ;;  %v10323_v0 = vld [vmem:[%s11062_s3 + $0x28] sm:$0xff] }
 0x9d4   :  { %11763 = vst [vmem:[#allocation85_spill] sm:$0xff] %v10323_v0 }
 0x9d5   :  { %v5779_v38 = vadd.f32 %v10244_v8, %v10148_v14  ;;  %v5778_v37 = vadd.f32 %v10244_v8, %v10145_v19  ;;  %v5780_v47 = vadd.f32 %v10244_v8, %v10151_v34  ;;  %v5781_v29 = vadd.f32 %v10244_v8, %v10154_v48  ;;  %v10271_v19 = vld [vmem:[%s11062_s3] sm:$0xff] }
 0x9d6   :  { %11755 = vst [vmem:[#allocation93_spill] sm:$0xff] %v10271_v19  ;;  %v5782_v48 = vadd.f32 %v10244_v8, %v10157_v21 }
 0x9d7   :  { %v10262_v25 = vmul.f32 %v10259_v31, %v5779_v38  ;;  %v10274_v34 = vmul.f32 %v10271_v19, %v5778_v37  ;;  %v10282_v3 = vmul.f32 %v10279_v16, %v5780_v47  ;;  %v10296_v17 = vmul.f32 %v10293_v63, %v5781_v29  ;;  %v10309_v16 = vld [vmem:[%s11062_s3 + $0x20] sm:$0xff] }
 0x9d8   :  { %v5783_v38 = vadd.f32 %v10244_v8, %v10160_v6  ;;  %11761 = vst [vmem:[#allocation101_spill] sm:$0xff] %v10309_v16  ;;  %v10312_v31 = vmul.f32 %v10309_v16, %v5782_v48  ;;  %v5784_v29 = vadd.f32 %v10244_v8, %v10163_v51  ;;  %v5785_v48 = vadd.f32 %v10244_v8, %v10166_v58 }
 0x9d9   :  { %v10222_v5 = vpop.f32.mrf.mxu2  ;;  %11754 = vst [vmem:[#allocation88_spill] sm:$0xff] %v10262_v25  ;;  %v5874_v53 = vmul.f32 %v10262_v25, %v10262_v25  ;;  %v5873_v21 = vmul.f32 %v10274_v34, %v10274_v34  ;;  %v5875_v47 = vmul.f32 %v10282_v3, %v10282_v3  ;;  %v5838_v6 = vadd.f32 %v10262_v25, %v10274_v34  ;;  %v10333_v25 = vpop.f32.mrf.mxu0 }
 0x9da   :  { %11756 = vst [vmem:[#allocation96_spill] sm:$0xff] %v10274_v34  ;;  %v10286_v50 = vpop.f32.mrf.mxu1  ;;  %v10300_v37 = vpop.f32.mrf.mxu3  ;;  %v5876_v19 = vmul.f32 %v10296_v17, %v10296_v17  ;;  %v10326_v32 = vmul.f32 %v10323_v0, %v5783_v38  ;;  %v10340_v34 = vld [vmem:[%s11062_s3 + $0x30] sm:$0xff]  ;;  %v5786_v58 = vadd.f32 %v10244_v8, %v10169_v30 }
 0x9db   :  { %11758 = vst [vmem:[#allocation80_spill] sm:$0xff] %v10282_v3  ;;  %v5903_v63 = vadd.f32 %v5874_v53, %v5873_v21  ;;  %v5839_v51 = vadd.f32 %v5838_v6, %v10282_v3  ;;  %v5877_v21 = vmul.f32 %v10312_v31, %v10312_v31  ;;  %v10343_v38 = vmul.f32 %v10340_v34, %v5784_v29 }
 0x9dc   :  { %11760 = vst [vmem:[#allocation98_spill] sm:$0xff] %v10296_v17  ;;  %v5787_v29 = vadd.f32 %v10244_v8, %v10172_v56 }
 0x9dd   :  { %11762 = vst [vmem:[#allocation78_spill] sm:$0xff] %v10312_v31  ;;  %v5904_v53 = vadd.f32 %v5903_v63, %v5875_v47  ;;  %v5840_v6 = vadd.f32 %v5839_v51, %v10296_v17  ;;  %v5878_v63 = vmul.f32 %v10326_v32, %v10326_v32  ;;  %v10353_v47 = vld [vmem:[%s11062_s3 + $0x38] sm:$0xff] }
 0x9de   :  { %11764 = vst [vmem:[#allocation104_spill] sm:$0xff] %v10326_v32  ;;  %v10356_v3 = vmul.f32 %v10353_v47, %v5785_v48  ;;  %v5788_v48 = vadd.f32 %v10244_v8, %v10175_v54 }
 0x9df   :  { %11765 = vst [vmem:[#allocation4_spill] sm:$0xff] %v10340_v34  ;;  %v5905_v0 = vadd.f32 %v5904_v53, %v5876_v19  ;;  %v5841_v34 = vadd.f32 %v5840_v6, %v10312_v31  ;;  %v5879_v19 = vmul.f32 %v10343_v38, %v10343_v38  ;;  %v10368_v53 = vld [vmem:[%s11062_s3 + $0x40] sm:$0xff] }
 0x9e0   :  { %11766 = vst [vmem:[#allocation89_spill] sm:$0xff] %v10343_v38  ;;  %v10371_v17 = vmul.f32 %v10368_v53, %v5786_v58  ;;  %v5789_v58 = vadd.f32 %v10244_v8, %v10179_v1  ;;  %v5208_v1 = vadd.f32 %v10190_v13, %v10091_v42  ;;  %v5791_v42 = vadd.f32 %v10244_v8, %v10185_v24 }
 0x9e1   :  { %v10228_v35 = vpop.f32.mrf.mxu2  ;;  %11767 = vst [vmem:[#allocation102_spill] sm:$0xff] %v10353_v47  ;;  %v5906_v51 = vadd.f32 %v5905_v0, %v5877_v21  ;;  %v5842_v56 = vadd.f32 %v5841_v34, %v10326_v32  ;;  %v5880_v0 = vmul.f32 %v10356_v3, %v10356_v3  ;;  %v10383_v21 = vld [vmem:[%s11062_s3 + $0x48] sm:$0xff]  ;;  %v5792_v24 = vadd.f32 %v10244_v8, %v10188_v15 }
 0x9e2   :  { %v10361_v30 = vpop.f32.mrf.mxu1  ;;  %11768 = vst [vmem:[#allocation105_spill] sm:$0xff] %v10368_v53  ;;  %v10376_v6 = vpop.f32.mrf.mxu3  ;;  %v10386_v31 = vmul.f32 %v10383_v21, %v5787_v29  ;;  %v5790_v29 = vadd.f32 %v10244_v8, %v10182_v61 }
 0x9e3   :  { %v5907_v47 = vadd.f32 %v5906_v51, %v5878_v63  ;;  %11769 = vst [vmem:[#allocation92_spill] sm:$0xff] %v10383_v21  ;;  %v5843_v54 = vadd.f32 %v5842_v56, %v10343_v38  ;;  %v5881_v63 = vmul.f32 %v10371_v17, %v10371_v17  ;;  %v10398_v51 = vld [vmem:[%s11062_s3 + $0x50] sm:$0xff]  ;;  %v10410_v56 = vpop.f32.mrf.mxu0 }
 0x9e4   :  { %v10401_v32 = vmul.f32 %v10398_v51, %v5788_v48  ;;  %v5882_v38 = vmul.f32 %v10386_v31, %v10386_v31  ;;  %v10417_v48 = vld [vmem:[%s11062_s3 + $0x58] sm:$0xff] }
 0x9e5   :  { %v5908_v53 = vadd.f32 %v5907_v47, %v5879_v19  ;;  %v5209_v47 = vadd.f32 %v10202_v60, %v10096_v36  ;;  %v5844_v19 = vadd.f32 %v5843_v54, %v10356_v3  ;;  %11770 = vst [vmem:[#allocation108_spill] sm:$0xff] %v10417_v48  ;;  %v10420_v61 = vmul.f32 %v10417_v48, %v5789_v58 }
 0x9e6   :  { %v5210_v36 = vadd.f32 %v10211_v27, %v10101_v20  ;;  %v5394_v54 = vadd.f32 %v10195_v11, %v5208_v1  ;;  %v5211_v27 = vadd.f32 %v10220_v12, %v10106_v4  ;;  %v5793_v11 = vadd.f32 %v10244_v8, %v10193_v10 }
 0x9e7   :  { %v5909_v21 = vadd.f32 %v5908_v53, %v5880_v0  ;;  %v5845_v13 = vadd.f32 %v5844_v19, %v10371_v17  ;;  %v5883_v53 = vmul.f32 %v10401_v32, %v10401_v32  ;;  %v10432_v0 = vld [vmem:[%s11062_s3 + $0x60] sm:$0xff]  ;;  %v5395_v20 = vadd.f32 %v10204_v59, %v5209_v47 }
 0x9e8   :  { %v10435_v58 = vmul.f32 %v10432_v0, %v5790_v29  ;;  %v5884_v48 = vmul.f32 %v10420_v61, %v10420_v61  ;;  %v10451_v29 = vld [vmem:[%s11062_s3 + $0x68] sm:$0xff]  ;;  %v5396_v4 = vadd.f32 %v10213_v9, %v5210_v36  ;;  %v5794_v10 = vadd.f32 %v10244_v8, %v10200_v43 }
 0x9e9   :  { %v10239_v26 = vpop.f32.mrf.mxu2  ;;  %v5910_v60 = vadd.f32 %v5909_v21, %v5881_v63  ;;  %v5846_v21 = vadd.f32 %v5845_v13, %v10386_v31  ;;  %11771 = vst [vmem:[#allocation112_spill] sm:$0xff] %v10451_v29  ;;  %v10454_v15 = vmul.f32 %v10451_v29, %v5791_v42  ;;  %v10467_v13 = vld [vmem:[%s11062_s3 + $0x70] sm:$0xff]  ;;  %v5580_v9 = vadd.f32 %v10197_v22, %v5394_v54 }
 0x9ea   :  { %v10444_v63 = vpop.f32.mrf.mxu1  ;;  %v5885_v47 = vmul.f32 %v10435_v58, %v10435_v58  ;;  %v10470_v42 = vmul.f32 %v10467_v13, %v5792_v24  ;;  %v5581_v36 = vadd.f32 %v10209_v28, %v5395_v20  ;;  %v10485_v24 = vld [vmem:[%s11062_s3 + $0x78] sm:$0xff]  ;;  %v5582_v43 = vadd.f32 %v10218_v57, %v5396_v4 }
 0x9eb   :  { %v5911_v19 = vadd.f32 %v5910_v60, %v5882_v38  ;;  %v5847_v59 = vadd.f32 %v5846_v21, %v10401_v32  ;;  %v5180_v38 = vpop.f32.mrf.mxu3  ;;  %v5397_v60 = vadd.f32 %v10224_v2, %v5211_v27  ;;  %v5212_v21 = vadd.f32 %v10230_v44, %v10111_v62  ;;  %v10502_v27 = vld [vmem:[%s11062_s3 + $0x80] sm:$0xff] }
 0x9ec   :  { %v5886_v29 = vmul.f32 %v10454_v15, %v10454_v15  ;;  %v10488_v22 = vmul.f32 %v10485_v24, %v5793_v11  ;;  %v5795_v2 = vadd.f32 %v10244_v8, %v10207_v55  ;;  %v5766_v62 = vadd.f32 %v10222_v5, %v5580_v9 }
 0x9ed   :  { %v5912_v1 = vadd.f32 %v5911_v19, %v5883_v53  ;;  %v5848_v53 = vadd.f32 %v5847_v59, %v10420_v61  ;;  %v5213_v44 = vadd.f32 %v10246_v23, %v10116_v49  ;;  %v5887_v20 = vmul.f32 %v10470_v42, %v10470_v42 }
 0x9ee   :  { %v10505_v57 = vmul.f32 %v10502_v27, %v5794_v10  ;;  %v5583_v55 = vadd.f32 %v10226_v7, %v5397_v60  ;;  %v5796_v49 = vadd.f32 %v10244_v8, %v10216_v52  ;;  %v5767_v23 = vadd.f32 %v10228_v35, %v5581_v36  ;;  %v10521_v7 = vld [vmem:[%s11062_s3 + $0x88] sm:$0xff] }
 0x9ef   :  { %v5913_v19 = vadd.f32 %v5912_v1, %v5884_v48  ;;  %v5849_v28 = vadd.f32 %v5848_v53, %v10435_v58  ;;  %v5366_v48 = vpop.f32.mrf.mxu0  ;;  %v5398_v11 = vadd.f32 %v10232_v33, %v5212_v21  ;;  %v5214_v4 = vadd.f32 %v10300_v37, %v10121_v45  ;;  %v10537_v53 = vld [vmem:[%s11062_s3 + $0x90] sm:$0xff] }
 0x9f0   :  { %v5888_v1 = vmul.f32 %v10488_v22, %v10488_v22  ;;  %v10524_v52 = vmul.f32 %v10521_v7, %v5795_v2  ;;  %v5797_v35 = vadd.f32 %v10244_v8, %v5766_v62  ;;  %v5768_v33 = vadd.f32 %v10239_v26, %v5582_v43 }
 0x9f1   :  { %v10266_v14 = vpop.f32.mrf.mxu2  ;;  %v5914_v54 = vadd.f32 %v5913_v19, %v5885_v47  ;;  %v5850_v5 = vadd.f32 %v5849_v28, %v10454_v15  ;;  %v5399_v45 = vadd.f32 %v10254_v40, %v5213_v44  ;;  %v5215_v37 = vadd.f32 %v10376_v6, %v10126_v41  ;;  %v10553_v44 = vld [vmem:[%s11062_s3 + $0x98] sm:$0xff] }
 0x9f2   :  { %v5889_v36 = vmul.f32 %v10505_v57, %v10505_v57  ;;  %v10540_v26 = vmul.f32 %v10537_v53, %v5796_v49  ;;  %v5798_v40 = vadd.f32 %v10244_v8, %v5767_v23  ;;  %v5769_v21 = vadd.f32 %v10266_v14, %v5583_v55 }
 0x9f3   :  { %v5915_v59 = vadd.f32 %v5914_v54, %v5886_v29  ;;  %v5851_v47 = vadd.f32 %v5850_v5, %v10470_v42  ;;  %v5552_v29 = vpop.f32.mrf.mxu1  ;;  %v5584_v41 = vadd.f32 %v10241_v46, %v5398_v11  ;;  %v5400_v6 = vadd.f32 %v10333_v25, %v5214_v4  ;;  %v5183_v43 = vpop.f32.mrf.mxu3  ;;  %v10568_v5 = vld [vmem:[%s11062_s3 + $0xa0] sm:$0xff] }
 0x9f4   :  { %v5216_v19 = vadd.f32 %v5180_v38, %v10131_v39  ;;  %v5890_v62 = vmul.f32 %v10524_v52, %v10524_v52  ;;  %v10556_v14 = vmul.f32 %v10553_v44, %v5797_v35  ;;  %v5799_v46 = vadd.f32 %v10244_v8, %v5768_v33  ;;  %v10583_v35 = vld [vmem:[%s11062_s3 + $0xa8] sm:$0xff] }
 0x9f5   :  { %v5916_v9 = vadd.f32 %v5915_v59, %v5887_v20  ;;  %v5852_v60 = vadd.f32 %v5851_v47, %v10488_v22  ;;  %v5585_v25 = vadd.f32 %v10286_v50, %v5399_v45  ;;  %v5401_v39 = vadd.f32 %v10410_v56, %v5215_v37 }
 0x9f6   :  { %v5891_v55 = vmul.f32 %v10540_v26, %v10540_v26  ;;  %v10571_v49 = vmul.f32 %v10568_v5, %v5798_v40  ;;  %v5800_v50 = vadd.f32 %v10244_v8, %v5769_v21  ;;  %v5586_v56 = vadd.f32 %v10361_v30, %v5400_v6 }
 0x9f7   :  { %v5917_v28 = vadd.f32 %v5916_v9, %v5888_v1  ;;  %v5853_v2 = vadd.f32 %v5852_v60, %v10505_v57  ;;  %v5369_v23 = vpop.f32.mrf.mxu0  ;;  %v5402_v11 = vadd.f32 %v5366_v48, %v5216_v19  ;;  %v5892_v47 = vmul.f32 %v10556_v14, %v10556_v14 }
 0x9f8   :  { %v10586_v33 = vmul.f32 %v10583_v35, %v5799_v46  ;;  %v5587_v48 = vadd.f32 %v10444_v63, %v5401_v39  ;;  %v5893_v9 = vmul.f32 %v10571_v49, %v10571_v49 }
 0x9f9   :  { %v10331_v16 = vpop.f32.mrf.mxu2  ;;  %v5918_v38 = vadd.f32 %v5917_v28, %v5889_v36  ;;  %v5854_v20 = vadd.f32 %v5853_v2, %v10524_v52  ;;  %v10597_v36 = vld [vmem:[%s11062_s3 + $0xb0] sm:$0xff]  ;;  %v5588_v40 = vadd.f32 %v5552_v29, %v5402_v11  ;;  %v10609_v2 = vld [vmem:[%s11062_s3 + $0xb8] sm:$0xff] }
 0x9fa   :  { %v5770_v54 = vadd.f32 %v10331_v16, %v5584_v41  ;;  %v5217_v16 = vadd.f32 %v5183_v43, %v10136_v18  ;;  %v10600_v60 = vmul.f32 %v10597_v36, %v5800_v50  ;;  %v5894_v43 = vmul.f32 %v10586_v33, %v10586_v33  ;;  %v10622_v50 = vld [vmem:[%s11062_s3 + $0xc0] sm:$0xff] }
 0x9fb   :  { %v5919_v59 = vadd.f32 %v5918_v38, %v5890_v62  ;;  %v5855_v1 = vadd.f32 %v5854_v20, %v10540_v26  ;;  %v5555_v21 = vpop.f32.mrf.mxu1  ;;  %v5186_v28 = vpop.f32.mrf.mxu3 }
 0x9fc   :  { %v5801_v18 = vadd.f32 %v10244_v8, %v5770_v54  ;;  %v5403_v63 = vadd.f32 %v5369_v23, %v5217_v16  ;;  %v5895_v54 = vmul.f32 %v10600_v60, %v10600_v60 }
 0x9fd   :  { %v5920_v45 = vadd.f32 %v5919_v59, %v5891_v55  ;;  %v5856_v37 = vadd.f32 %v5855_v1, %v10556_v14  ;;  %v10634_v1 = vld [vmem:[%s11062_s3 + $0xc8] sm:$0xff] }
 0x9fe   :  { %v10612_v62 = vmul.f32 %v10609_v2, %v5801_v18  ;;  %v5589_v20 = vadd.f32 %v5555_v21, %v5403_v63 }
 0x9ff   :  { %v5921_v6 = vadd.f32 %v5920_v45, %v5892_v47  ;;  %v5857_v19 = vadd.f32 %v5856_v37, %v10571_v49  ;;  %v5372_v55 = vpop.f32.mrf.mxu0 }
 0xa00   :  { %v5896_v59 = vmul.f32 %v10612_v62, %v10612_v62 }
 0xa01   :  { %v10391_v34 = vpop.f32.mrf.mxu2  ;;  %v5922_v39 = vadd.f32 %v5921_v6, %v5893_v9  ;;  %v5858_v38 = vadd.f32 %v5857_v19, %v10586_v33  ;;  %v10658_v19 = vld [vmem:[%s11062_s3 + $0xd8] sm:$0xff] }
 0xa02   :  { %v5771_v4 = vadd.f32 %v10391_v34, %v5585_v25  ;;  %v11772_v25 = vld [vmem:[#allocation95_spill] sm:$0xff]  ;;  %11774 = vst [vmem:[#allocation82_spill] sm:$0xff] %v10658_v19 }
 0xa03   :  { %v5923_v11 = vadd.f32 %v5922_v39, %v5894_v43  ;;  %v5859_v16 = vadd.f32 %v5858_v38, %v10600_v60  ;;  %v5558_v45 = vpop.f32.mrf.mxu1 }
 0xa04   :  { %v5802_v41 = vadd.f32 %v10244_v8, %v5771_v4 }
 0xa05   :  { %v5860_v37 = vadd.f32 %v5859_v16, %v10612_v62 }
 0xa09   :  { %v10460_v12 = vpop.f32.mrf.mxu2 }
 0xa0a   :  { %v5772_v34 = vadd.f32 %v10460_v12, %v5586_v56  ;;  %v10625_v56 = vmul.f32 %v10622_v50, %v5802_v41 }
 0xa0c   :  { %v5803_v29 = vadd.f32 %v10244_v8, %v5772_v34  ;;  %v5924_v34 = vadd.f32 %v5923_v11, %v5895_v54  ;;  %v5897_v9 = vmul.f32 %v10625_v56, %v10625_v56 }
 0xa0e   :  { %v10637_v47 = vmul.f32 %v10634_v1, %v5803_v29  ;;  %v5925_v41 = vadd.f32 %v5924_v34, %v5896_v59 }
 0xa10   :  { %v5898_v6 = vmul.f32 %v10637_v47, %v10637_v47  ;;  %v5926_v29 = vadd.f32 %v5925_v41, %v5897_v9 }
 0xa11   :  { %v5735_v10 = vpop.f32.mrf.mxu2 }
 0xa12   :  { %v5773_v12 = vadd.f32 %v5735_v10, %v5587_v48  ;;  %v5218_v10 = vadd.f32 %v5186_v28, %v11772_v25  ;;  %v5927_v54 = vadd.f32 %v5926_v29, %v5898_v6 }
 0xa14   :  { %v5804_v23 = vadd.f32 %v10244_v8, %v5773_v12  ;;  %v5404_v18 = vadd.f32 %v5372_v55, %v5218_v10  ;;  %v5861_v12 = vadd.f32 %v5860_v37, %v10625_v56  ;;  %v10669_v10 = vld [vmem:[%s11062_s3 + $0xe0] sm:$0xff] }
 0xa15   :  { %11775 = vst [vmem:[#allocation106_spill] sm:$0xff] %v10669_v10 }
 0xa16   :  { %v5590_v28 = vadd.f32 %v5558_v45, %v5404_v18  ;;  %v10685_v18 = vld [vmem:[%s11062_s3 + $0xe8] sm:$0xff] }
 0xa17   :  { %11776 = vst [vmem:[#allocation99_spill] sm:$0xff] %v10685_v18 }
 0xa19   :  { %v5738_v30 = vpop.f32.mrf.mxu2 }
 0xa1a   :  { %v5774_v46 = vadd.f32 %v5738_v30, %v5588_v40  ;;  %v10646_v40 = vld [vmem:[%s11062_s3 + $0xd0] sm:$0xff] }
 0xa1b   :  { %11773 = vst [vmem:[#allocation97_spill] sm:$0xff] %v10646_v40  ;;  %v10649_v63 = vmul.f32 %v10646_v40, %v5804_v23 }
 0xa1c   :  { %v5805_v30 = vadd.f32 %v10244_v8, %v5774_v46  ;;  %v5862_v46 = vadd.f32 %v5861_v12, %v10637_v47 }
 0xa1d   :  { %v5899_v25 = vmul.f32 %v10649_v63, %v10649_v63 }
 0xa1e   :  { %v10661_v43 = vmul.f32 %v10658_v19, %v5805_v30  ;;  %v11786_v19 = vld [vmem:[#allocation66_spill] sm:$0xff] }
 0xa1f   :  { %v5928_v11 = vadd.f32 %v5927_v54, %v5899_v25 }
 0xa20   :  { %v5900_v55 = vmul.f32 %v10661_v43, %v10661_v43 }
 0xa21   :  { %v5741_v4 = vpop.f32.mrf.mxu2 }
 0xa22   :  { %v5775_v48 = vadd.f32 %v5741_v4, %v5589_v20  ;;  %v5863_v20 = vadd.f32 %v5862_v46, %v10649_v63  ;;  %v5929_v30 = vadd.f32 %v5928_v11, %v5900_v55 }
 0xa24   :  { %v5806_v21 = vadd.f32 %v10244_v8, %v5775_v48  ;;  %v5864_v16 = vadd.f32 %v5863_v20, %v10661_v43 }
 0xa26   :  { %v10672_v39 = vmul.f32 %v10669_v10, %v5806_v21 }
 0xa28   :  { %v5901_v4 = vmul.f32 %v10672_v39, %v10672_v39  ;;  %v5865_v48 = vadd.f32 %v5864_v16, %v10672_v39 }
 0xa29   :  { %v5744_v38 = vpop.f32.mrf.mxu2 }
 0xa2a   :  { %v5776_v23 = vadd.f32 %v5744_v38, %v5590_v28  ;;  %v5930_v45 = vadd.f32 %v5929_v30, %v5901_v4 }
 0xa2c   :  { %v5807_v59 = vadd.f32 %v10244_v8, %v5776_v23 }
 0xa2e   :  { %v5837_v34 = vmul.f32 %v10685_v18, %v5807_v59 }
 0xa30   :  { %v5866_v37 = vadd.f32 %v5865_v48, %v5837_v34  ;;  %v5902_v9 = vmul.f32 %v5837_v34, %v5837_v34 }
 0xa32   :  { %v5867_v21 = vrot.slane %v5866_v37, 4  ;;  %v5931_v41 = vadd.f32 %v5930_v45, %v5902_v9 }
 0xa34   :  { %v5868_v12 = vadd.f32 %v5867_v21, %v5866_v37  ;;  %v5932_v6 = vrot.slane %v5931_v41, 4 }
 0xa36   :  { %v5869_v28 = vrot.slane %v5868_v12, 2  ;;  %v5933_v29 = vadd.f32 %v5932_v6, %v5931_v41 }
 0xa38   :  { %v5870_v8 = vadd.f32 %v5869_v28, %v5868_v12  ;;  %v5934_v46 = vrot.slane %v5933_v29, 2  ;;  %v11777_v12 = vld [vmem:[#allocation39_spill] sm:$0xff] }
 0xa3a   :  { %v5871_v25 = vrot.slane %v5870_v8, 1  ;;  %v5935_v38 = vadd.f32 %v5934_v46, %v5933_v29  ;;  %v11778_v46 = vld [vmem:[#allocation96_spill] sm:$0xff] }
 0xa3c   :  { %v5872_v54 = vadd.f32 %v5871_v25, %v5870_v8  ;;  %v5936_v20 = vrot.slane %v5935_v38, 1 }
 0xa3e   :  { %v5937_v55 = vadd.f32 %v5936_v20, %v5935_v38  ;;  %v5938_v23 = vmul.f32 0.0064102565, %v5872_v54  ;;  %v11779_v38 = vld [vmem:[#allocation88_spill] sm:$0xff] }
 0xa3f   :  { %v11780_v20 = vld [vmem:[#allocation80_spill] sm:$0xff] }
 0xa40   :  { %v5939_v11 = vmul.f32 0.0064102565, %v5937_v55  ;;  %v5940_v16 = vmul.f32 %v5938_v23, %v5938_v23 }
 0xa42   :  { %v5941_v59 = vsub.f32 %v5939_v11, %v5940_v16  ;;  %v11781_v11 = vld [vmem:[#allocation98_spill] sm:$0xff] }
 0xa44   :  { %v5942_v4 = vadd.f32 1e-05, %v5941_v59 }
 0xa46   :  { %6271 = vrsqrt.f32 %v5942_v4  ;;  %vm5949_vm3 = vweird.f32 %v5942_v4 }
 0xa4c   :  { %v6272_v30 = vpop.eup %6271 }
 0xa4d   :  { %v5944_v48 = vmul.f32 %v6272_v30, %v5942_v4  ;;  %vm5950_vm2 = vweird.f32 %v6272_v30  ;;  %v11783_v4 = vld [vmem:[#allocation104_spill] sm:$0xff] }
 0xa4e   :  { %vm5951_vm4 = vmor %vm5949_vm3, %vm5950_vm2 }
 0xa4f   :  { %v5945_v45 = vmul.f32 %v6272_v30, %v5944_v48  ;;  %v11782_v48 = vld [vmem:[#allocation78_spill] sm:$0xff] }
 0xa51   :  { %v5946_v37 = vmul.f32 0.5, %v5945_v45 }
 0xa53   :  { %v5947_v9 = vsub.f32 1.5, %v5946_v37 }
 0xa55   :  { %v5948_v21 = vmul.f32 %v6272_v30, %v5947_v9 }
 0xa57   :  { %v5952_v41 = vsel %vm5951_vm4, %v6272_v30, %v5948_v21  ;;  %v11784_v30 = vld [vmem:[#allocation89_spill] sm:$0xff] }
 0xa58   :  { %v5953_v6 = vmul.f32 %v11777_v12, %v5952_v41 }
 0xa5a   :  { %v5954_v28 = vmul.f32 %v5953_v6, %v5938_v23  ;;  %v5959_v29 = vperm.slane %v5953_v6, 1 }
 0xa5c   :  { %v5956_v8 = vrot.slane %v5954_v28, 7  ;;  %v5960_v25 = vmul.f32 %v5959_v29, %v11778_v46  ;;  %v5961_v54 = vmul.f32 %v5959_v29, %v11779_v38  ;;  %v5962_v55 = vmul.f32 %v5959_v29, %v11780_v20 }
 0xa5d   :  { %v5963_v16 = vmul.f32 %v5959_v29, %v11781_v11  ;;  %v5964_v45 = vmul.f32 %v5959_v29, %v11782_v48  ;;  %v5965_v37 = vmul.f32 %v5959_v29, %v11783_v4  ;;  %v5966_v9 = vmul.f32 %v5959_v29, %v11784_v30 }
 0xa5e   :  { %v5958_v59 = vsub.f32 %v11777_v12, %v5956_v8  ;;  %v5967_v23 = vmul.f32 %v5959_v29, %v10356_v3  ;;  %v5968_v21 = vmul.f32 %v5959_v29, %v10371_v17  ;;  %v5969_v41 = vmul.f32 %v5959_v29, %v10386_v31 }
 0xa5f   :  { %v5970_v6 = vmul.f32 %v5959_v29, %v10401_v32  ;;  %v5971_v28 = vmul.f32 %v5959_v29, %v10420_v61  ;;  %v5972_v46 = vmul.f32 %v5959_v29, %v10435_v58  ;;  %v5973_v12 = vmul.f32 %v5959_v29, %v10454_v15 }
 0xa60   :  { %v5974_v8 = vmul.f32 %v5959_v29, %v10470_v42  ;;  %v5975_v38 = vmul.f32 %v5959_v29, %v10488_v22  ;;  %v5976_v20 = vmul.f32 %v5959_v29, %v10505_v57  ;;  %v5977_v3 = vmul.f32 %v5959_v29, %v10524_v52 }
 0xa61   :  { %v5978_v17 = vmul.f32 %v5959_v29, %v10540_v26  ;;  %v5979_v31 = vmul.f32 %v5959_v29, %v10556_v14  ;;  %v5980_v32 = vmul.f32 %v5959_v29, %v10571_v49  ;;  %v5988_v61 = vmul.f32 %v5959_v29, %v10672_v39 }
 0xa62   :  { %v5989_v11 = vmul.f32 %v5959_v29, %v5837_v34  ;;  %v5981_v58 = vmul.f32 %v5959_v29, %v10586_v33  ;;  %v5982_v15 = vmul.f32 %v5959_v29, %v10600_v60  ;;  %v5983_v42 = vmul.f32 %v5959_v29, %v10612_v62 }
 0xa63   :  { %v5990_v22 = vperm.slane %v5958_v59, 2  ;;  %v5984_v57 = vmul.f32 %v5959_v29, %v10625_v56  ;;  %v5985_v52 = vmul.f32 %v5959_v29, %v10637_v47  ;;  %v5986_v26 = vmul.f32 %v5959_v29, %v10649_v63 }
 0xa64   :  { %v5987_v14 = vmul.f32 %v5959_v29, %v10661_v43 }
 0xa65   :  { %v5991_v48 = vadd.f32 %v5990_v22, %v5960_v25  ;;  %v5992_v49 = vadd.f32 %v5990_v22, %v5961_v54  ;;  %v5993_v4 = vadd.f32 %v5990_v22, %v5962_v55  ;;  %v5994_v39 = vadd.f32 %v5990_v22, %v5963_v16 }
 0xa66   :  { %v5995_v34 = vadd.f32 %v5990_v22, %v5964_v45  ;;  %v5996_v30 = vadd.f32 %v5990_v22, %v5965_v37  ;;  %v5997_v33 = vadd.f32 %v5990_v22, %v5966_v9  ;;  %v5998_v18 = vadd.f32 %v5990_v22, %v5967_v23 }
 0xa67   :  { %v5999_v60 = vadd.f32 %v5990_v22, %v5968_v21  ;;  %v10719_v10 = vadd.f32 %v5990_v22, %v5969_v41  ;;  %v10721_v62 = vadd.f32 %v5990_v22, %v5970_v6  ;;  %v10723_v56 = vadd.f32 %v5990_v22, %v5971_v28 }
 0xa68   :  { %v10725_v47 = vadd.f32 %v5990_v22, %v5972_v46  ;;  %v10727_v63 = vadd.f32 %v5990_v22, %v5973_v12  ;;  %v10729_v43 = vadd.f32 %v5990_v22, %v5974_v8  ;;  %v10731_v29 = vadd.f32 %v5990_v22, %v5975_v38 }
 0xa69   :  { %v10733_v25 = vadd.f32 %v5990_v22, %v5976_v20  ;;  %v10735_v54 = vadd.f32 %v5990_v22, %v5977_v3  ;;  %v10737_v55 = vadd.f32 %v5990_v22, %v5978_v17  ;;  %v10739_v16 = vadd.f32 %v5990_v22, %v5979_v31 }
 0xa6a   :  { %v10741_v59 = vadd.f32 %v5990_v22, %v5980_v32  ;;  %v10743_v45 = vadd.f32 %v5990_v22, %v5981_v58  ;;  %v10745_v37 = vadd.f32 %v5990_v22, %v5982_v15  ;;  %v10747_v9 = vadd.f32 %v5990_v22, %v5983_v42 }
 0xa6b   :  { %v10749_v23 = vadd.f32 %v5990_v22, %v5984_v57  ;;  %v10751_v21 = vadd.f32 %v5990_v22, %v5985_v52  ;;  %v10753_v41 = vadd.f32 %v5990_v22, %v5986_v26  ;;  %v10755_v6 = vadd.f32 %v5990_v22, %v5987_v14  ;;  %v11785_v26 = vld [vmem:[#allocation93_spill] sm:$0xff] }
 0xa6c   :  { %v10757_v28 = vadd.f32 %v5990_v22, %v5988_v61  ;;  %v10759_v46 = vadd.f32 %v5990_v22, %v5989_v11  ;;  %v6051_v12 = vmul.f32 0.01, %v5991_v48  ;;  %v6052_v8 = vmul.f32 0.01, %v5992_v49 }
 0xa6d   :  { %vm6021_vm5 = vcmp.gt.f32.partialorder %v5991_v48, 0.0  ;;  %vm6022_vm6 = vcmp.gt.f32.partialorder %v5992_v49, 0.0  ;;  %v6053_v38 = vmul.f32 0.01, %v5993_v4  ;;  %v6054_v20 = vmul.f32 0.01, %v5994_v39 }
 0xa6e   :  { %vm6023_vm7 = vcmp.gt.f32.partialorder %v5993_v4, 0.0  ;;  %vm6024_vm8 = vcmp.gt.f32.partialorder %v5994_v39, 0.0  ;;  %v6055_v3 = vmul.f32 0.01, %v5995_v34  ;;  %vm6025_vm9 = vcmp.gt.f32.partialorder %v5995_v34, 0.0 }
 0xa6f   :  { %vm6026_vm10 = vcmp.gt.f32.partialorder %v5996_v30, 0.0  ;;  %v6056_v17 = vmul.f32 0.01, %v5996_v30  ;;  %vm6027_vm11 = vcmp.gt.f32.partialorder %v5997_v33, 0.0  ;;  %v6057_v31 = vmul.f32 0.01, %v5997_v33 }
 0xa70   :  { %v6081_v32 = vsel %vm6021_vm5, %v5991_v48, %v6051_v12  ;;  %v6082_v58 = vsel %vm6022_vm6, %v5992_v49, %v6052_v8  ;;  %vm6028_vm12 = vcmp.gt.f32.partialorder %v5998_v18, 0.0  ;;  %v6058_v61 = vmul.f32 0.01, %v5998_v18  ;;  %v11788_v12 = vld [vmem:[#allocation49_spill] sm:$0xff] }
 0xa71   :  { %v6083_v11 = vsel %vm6023_vm7, %v5993_v4, %v6053_v38  ;;  %v6084_v15 = vsel %vm6024_vm8, %v5994_v39, %v6054_v20  ;;  %vm6029_vm13 = vcmp.gt.f32.partialorder %v5999_v60, 0.0  ;;  %vm6030_vm14 = vcmp.gt.f32.partialorder %v10719_v10, 0.0  ;;  %v11787_v4 = vld [vmem:[#allocation100_spill] sm:$0xff]  ;;  %v11789_v38 = vld [vmem:[#allocation101_spill] sm:$0xff] }
 0xa72   :  { %v6059_v42 = vmul.f32 0.01, %v5999_v60  ;;  %v6085_v22 = vsel %vm6025_vm9, %v5995_v34, %v6055_v3  ;;  %v6060_v57 = vmul.f32 0.01, %v10719_v10  ;;  %v6086_v52 = vsel %vm6026_vm10, %v5996_v30, %v6056_v17  ;;  %v11790_v3 = vld [vmem:[#allocation85_spill] sm:$0xff] }
 0xa73   :  { %v10764_v14 = vmul.f32 %v11785_v26, %v6081_v32  ;;  %v10767_v40 = vmul.f32 %v11786_v19, %v6082_v58  ;;  %v6061_v48 = vmul.f32 0.01, %v10721_v62  ;;  %v6087_v49 = vsel %vm6027_vm11, %v5997_v33, %v6057_v31  ;;  %v11791_v32 = vld [vmem:[#allocation4_spill] sm:$0xff] }
 0xa74   :  { %v10772_v39 = vmul.f32 %v11787_v4, %v6083_v11  ;;  %v10775_v8 = vmul.f32 %v11788_v12, %v6084_v15  ;;  %vm6031_vm15 = vcmp.gt.f32.partialorder %v10721_v62, 0.0  ;;  %v6062_v34 = vmul.f32 0.01, %v10723_v56  ;;  %v11792_v11 = vld [vmem:[#allocation102_spill] sm:$0xff]  ;;  %v11794_v26 = vld [vmem:[#allocation92_spill] sm:$0xff] }
 0xa75   :  { %v6088_v30 = vsel %vm6028_vm12, %v5998_v18, %v6058_v61  ;;  %v10781_v20 = vmul.f32 %v11789_v38, %v6085_v22  ;;  %6141 = vst [vmem:[#allocation2 + $0x10] sm:$0xff] %v10764_v14  ;;  %vm6032_vm0 = vcmp.gt.f32.partialorder %v10723_v56, 0.0  ;;  %v6063_v19 = vmul.f32 0.01, %v10725_v47  ;;  %v11793_v22 = vld [vmem:[#allocation105_spill] sm:$0xff] }
 0xa76   :  { %v6089_v33 = vsel %vm6029_vm13, %v5999_v60, %v6059_v42  ;;  %v10788_v17 = vmul.f32 %v11790_v3, %v6086_v52  ;;  %6142 = vst [vmem:[#allocation2 + $0x18] sm:$0xff] %v10767_v40  ;;  %vm6033_vm1 = vcmp.gt.f32.partialorder %v10725_v47, 0.0  ;;  %v6064_v18 = vmul.f32 0.01, %v10727_v63 }
 0xa77   :  { %v6090_v31 = vsel %vm6030_vm14, %v10719_v10, %v6060_v57  ;;  %v10797_v58 = vmul.f32 %v11791_v32, %v6087_v49  ;;  %6143 = vst [vmem:[#allocation2 + $0x20] sm:$0xff] %v10772_v39  ;;  %vm6034_vm2 = vcmp.gt.f32.partialorder %v10727_v63, 0.0  ;;  %v6065_v60 = vmul.f32 0.01, %v10729_v43 }
 0xa78   :  { %v6091_v61 = vsel %vm6031_vm15, %v10721_v62, %v6061_v48  ;;  %v10806_v15 = vmul.f32 %v11792_v11, %v6088_v30  ;;  %6144 = vst [vmem:[#allocation2 + $0x28] sm:$0xff] %v10775_v8  ;;  %vm6035_vm3 = vcmp.gt.f32.partialorder %v10729_v43, 0.0  ;;  %v6066_v10 = vmul.f32 0.01, %v10731_v29 }
 0xa79   :  { %v6092_v42 = vsel %vm6032_vm0, %v10723_v56, %v6062_v34  ;;  %v10815_v57 = vmul.f32 %v11793_v22, %v6089_v33  ;;  %6145 = vst [vmem:[#allocation2 + $0x30] sm:$0xff] %v10781_v20  ;;  %vm6036_vm4 = vcmp.gt.f32.partialorder %v10731_v29, 0.0  ;;  %v6067_v62 = vmul.f32 0.01, %v10733_v25  ;;  %v11795_v34 = vld [vmem:[#allocation108_spill] sm:$0xff] }
 0xa7a   :  { %v6093_v52 = vsel %vm6033_vm1, %v10725_v47, %v6063_v19  ;;  %v10824_v48 = vmul.f32 %v11794_v26, %v6090_v31  ;;  %6146 = vst [vmem:[#allocation2 + $0x38] sm:$0xff] %v10788_v17  ;;  %vm6037_vm5 = vcmp.gt.f32.partialorder %v10733_v25, 0.0  ;;  %v6068_v56 = vmul.f32 0.01, %v10735_v54  ;;  %v11796_v33 = vld [vmem:[#allocation112_spill] sm:$0xff] }
 0xa7b   :  { %v6094_v49 = vsel %vm6034_vm2, %v10727_v63, %v6064_v18  ;;  %v10833_v4 = vmul.f32 %v10398_v51, %v6091_v61  ;;  %6147 = vst [vmem:[#allocation2 + $0x40] sm:$0xff] %v10797_v58  ;;  %vm6038_vm6 = vcmp.gt.f32.partialorder %v10735_v54, 0.0  ;;  %v6069_v47 = vmul.f32 0.01, %v10737_v55 }
 0xa7c   :  { %v6095_v12 = vsel %vm6035_vm3, %v10729_v43, %v6065_v60  ;;  %v10842_v30 = vmul.f32 %v11795_v34, %v6092_v42  ;;  %6148 = vst [vmem:[#allocation2 + $0x48] sm:$0xff] %v10806_v15  ;;  %vm6039_vm7 = vcmp.gt.f32.partialorder %v10737_v55, 0.0  ;;  %v6070_v51 = vmul.f32 0.01, %v10739_v16 }
 0xa7d   :  { %v6096_v63 = vsel %vm6036_vm4, %v10731_v29, %v6066_v10  ;;  %v10851_v38 = vmul.f32 %v10432_v0, %v6093_v52  ;;  %6149 = vst [vmem:[#allocation2 + $0x50] sm:$0xff] %v10815_v57  ;;  %vm6040_vm8 = vcmp.gt.f32.partialorder %v10739_v16, 0.0  ;;  %v6071_v43 = vmul.f32 0.01, %v10741_v59 }
 0xa7e   :  { %v6097_v19 = vsel %vm6037_vm5, %v10733_v25, %v6067_v62  ;;  %v10860_v3 = vmul.f32 %v11796_v33, %v6094_v49  ;;  %6150 = vst [vmem:[#allocation2 + $0x58] sm:$0xff] %v10824_v48  ;;  %vm6041_vm9 = vcmp.gt.f32.partialorder %v10741_v59, 0.0  ;;  %v6072_v0 = vmul.f32 0.01, %v10743_v45  ;;  %v11797_v49 = vld [vmem:[#allocation97_spill] sm:$0xff] }
 0xa7f   :  { %v6098_v29 = vsel %vm6038_vm6, %v10735_v54, %v6068_v56  ;;  %v10869_v18 = vmul.f32 %v10467_v13, %v6095_v12  ;;  %6151 = vst [vmem:[#allocation2 + $0x60] sm:$0xff] %v10833_v4  ;;  %vm6042_vm10 = vcmp.gt.f32.partialorder %v10743_v45, 0.0  ;;  %v6073_v25 = vmul.f32 0.01, %v10745_v37  ;;  %v11798_v12 = vld [vmem:[#allocation82_spill] sm:$0xff] }
 0xa80   :  { %v6099_v31 = vsel %vm6039_vm7, %v10737_v55, %v6069_v47  ;;  %v10878_v32 = vmul.f32 %v10485_v24, %v6096_v63  ;;  %6152 = vst [vmem:[#allocation2 + $0x68] sm:$0xff] %v10842_v30  ;;  %vm6043_vm11 = vcmp.gt.f32.partialorder %v10745_v37, 0.0  ;;  %v6074_v13 = vmul.f32 0.01, %v10747_v9 }
 0xa81   :  { %v6100_v54 = vsel %vm6040_vm8, %v10739_v16, %v6070_v51  ;;  %v10887_v60 = vmul.f32 %v10502_v27, %v6097_v19  ;;  %6153 = vst [vmem:[#allocation2 + $0x70] sm:$0xff] %v10851_v38  ;;  %vm6044_vm12 = vcmp.gt.f32.partialorder %v10747_v9, 0.0  ;;  %v6075_v24 = vmul.f32 0.01, %v10749_v23 }
 0xa82   :  { %v6101_v55 = vsel %vm6041_vm9, %v10741_v59, %v6071_v43  ;;  %v10896_v61 = vmul.f32 %v10521_v7, %v6098_v29  ;;  %6154 = vst [vmem:[#allocation2 + $0x78] sm:$0xff] %v10860_v3  ;;  %vm6045_vm13 = vcmp.gt.f32.partialorder %v10749_v23, 0.0  ;;  %v6076_v27 = vmul.f32 0.01, %v10751_v21 }
 0xa83   :  { %v6102_v16 = vsel %vm6042_vm10, %v10743_v45, %v6072_v0  ;;  %v10905_v11 = vmul.f32 %v10537_v53, %v6099_v31  ;;  %6155 = vst [vmem:[#allocation2 + $0x80] sm:$0xff] %v10869_v18  ;;  %vm6046_vm14 = vcmp.gt.f32.partialorder %v10751_v21, 0.0  ;;  %v6077_v7 = vmul.f32 0.01, %v10753_v41 }
 0xa84   :  { %v6103_v59 = vsel %vm6043_vm11, %v10745_v37, %v6073_v25  ;;  %v6130_v10 = vmul.f32 %v10553_v44, %v6100_v54  ;;  %6156 = vst [vmem:[#allocation2 + $0x88] sm:$0xff] %v10878_v32  ;;  %vm6047_vm15 = vcmp.gt.f32.partialorder %v10753_v41, 0.0  ;;  %v6078_v45 = vmul.f32 0.01, %v10755_v6 }
 0xa85   :  { %v6104_v53 = vsel %vm6044_vm12, %v10747_v9, %v6074_v13  ;;  %v6131_v42 = vmul.f32 %v10568_v5, %v6101_v55  ;;  %6157 = vst [vmem:[#allocation2 + $0x90] sm:$0xff] %v10887_v60  ;;  %vm6048_vm0 = vcmp.gt.f32.partialorder %v10755_v6, 0.0  ;;  %v6079_v37 = vmul.f32 0.01, %v10757_v28 }
 0xa86   :  { %v6105_v44 = vsel %vm6045_vm13, %v10749_v23, %v6075_v24  ;;  %v6132_v22 = vmul.f32 %v10583_v35, %v6102_v16  ;;  %6158 = vst [vmem:[#allocation2 + $0x98] sm:$0xff] %v10896_v61  ;;  %vm6049_vm1 = vcmp.gt.f32.partialorder %v10757_v28, 0.0  ;;  %v6080_v9 = vmul.f32 0.01, %v10759_v46 }
 0xa87   :  { %v6106_v5 = vsel %vm6046_vm14, %v10751_v21, %v6076_v27  ;;  %v6133_v62 = vmul.f32 %v10597_v36, %v6103_v59  ;;  %6159 = vst [vmem:[#allocation2 + $0xa0] sm:$0xff] %v10905_v11  ;;  %vm6050_vm2 = vcmp.gt.f32.partialorder %v10759_v46, 0.0  ;;  %v6107_v35 = vsel %vm6047_vm15, %v10753_v41, %v6077_v7 }
 0xa88   :  { %v6134_v23 = vmul.f32 %v10609_v2, %v6104_v53  ;;  %6160 = vst [vmem:[#allocation2 + $0xa8] sm:$0xff] %v6130_v10  ;;  %v6108_v52 = vsel %vm6048_vm0, %v10755_v6, %v6078_v45  ;;  %v6135_v26 = vmul.f32 %v10622_v50, %v6105_v44  ;;  %v6109_v21 = vsel %vm6049_vm1, %v10757_v28, %v6079_v37  ;;  %v11799_v2 = vld [vmem:[#allocation106_spill] sm:$0xff]  ;;  %v11800_v6 = vld [vmem:[#allocation99_spill] sm:$0xff] }
 0xa89   :  { %6161 = vst [vmem:[#allocation2 + $0xb0] sm:$0xff] %v6131_v42  ;;  %v6136_v36 = vmul.f32 %v10634_v1, %v6106_v5  ;;  %v6110_v56 = vsel %vm6050_vm2, %v10759_v46, %v6080_v9  ;;  %v6137_v47 = vmul.f32 %v11797_v49, %v6107_v35  ;;  %v6138_v41 = vmul.f32 %v11798_v12, %v6108_v52 }
 0xa8a   :  { %6162 = vst [vmem:[#allocation2 + $0xb8] sm:$0xff] %v6132_v22  ;;  %v6139_v34 = vmul.f32 %v11799_v2, %v6109_v21  ;;  %v6140_v51 = vmul.f32 %v11800_v6, %v6110_v56 }
 0xa8b   :  { %6163 = vst [vmem:[#allocation2 + $0xc0] sm:$0xff] %v6133_v62 }
 0xa8c   :  { %6164 = vst [vmem:[#allocation2 + $0xc8] sm:$0xff] %v6134_v23 }
 0xa8d   :  { %6165 = vst [vmem:[#allocation2 + $0xd0] sm:$0xff] %v6135_v26 }
 0xa8e   :  { %6166 = vst [vmem:[#allocation2 + $0xd8] sm:$0xff] %v6136_v36 }
 0xa8f   :  { %6167 = vst [vmem:[#allocation2 + $0xe0] sm:$0xff] %v6137_v47 }
 0xa90   :  { %6168 = vst [vmem:[#allocation2 + $0xe8] sm:$0xff] %v6138_v41 }
 0xa91   :  { %6169 = vst [vmem:[#allocation2 + $0xf0] sm:$0xff] %v6139_v34 }
 0xa92   :  { %6170 = vst [vmem:[#allocation2 + $0xf8] sm:$0xff] %v6140_v51 }
 0xa93   :  { %6201 = vst [vmem:[%s11063_s4] sm:$0xff] %v10764_v14 }
 0xa94   :  { %6202 = vst [vmem:[%s11063_s4 + $0x8] sm:$0xff] %v10767_v40 }
 0xa95   :  { %6203 = vst [vmem:[%s11063_s4 + $0x10] sm:$0xff] %v10772_v39 }
 0xa96   :  { %6204 = vst [vmem:[%s11063_s4 + $0x18] sm:$0xff] %v10775_v8 }
 0xa97   :  { %6205 = vst [vmem:[%s11063_s4 + $0x20] sm:$0xff] %v10781_v20 }
 0xa98   :  { %6206 = vst [vmem:[%s11063_s4 + $0x28] sm:$0xff] %v10788_v17 }
 0xa99   :  { %6207 = vst [vmem:[%s11063_s4 + $0x30] sm:$0xff] %v10797_v58 }
 0xa9a   :  { %6208 = vst [vmem:[%s11063_s4 + $0x38] sm:$0xff] %v10806_v15 }
 0xa9b   :  { %6209 = vst [vmem:[%s11063_s4 + $0x40] sm:$0xff] %v10815_v57 }
 0xa9c   :  { %6210 = vst [vmem:[%s11063_s4 + $0x48] sm:$0xff] %v10824_v48 }
 0xa9d   :  { %6211 = vst [vmem:[%s11063_s4 + $0x50] sm:$0xff] %v10833_v4 }
 0xa9e   :  { %6212 = vst [vmem:[%s11063_s4 + $0x58] sm:$0xff] %v10842_v30 }
 0xa9f   :  { %6213 = vst [vmem:[%s11063_s4 + $0x60] sm:$0xff] %v10851_v38 }
 0xaa0   :  { %6214 = vst [vmem:[%s11063_s4 + $0x68] sm:$0xff] %v10860_v3 }
 0xaa1   :  { %6215 = vst [vmem:[%s11063_s4 + $0x70] sm:$0xff] %v10869_v18 }
 0xaa2   :  { %6216 = vst [vmem:[%s11063_s4 + $0x78] sm:$0xff] %v10878_v32 }
 0xaa3   :  { %6217 = vst [vmem:[%s11063_s4 + $0x80] sm:$0xff] %v10887_v60 }
 0xaa4   :  { %6218 = vst [vmem:[%s11063_s4 + $0x88] sm:$0xff] %v10896_v61 }
 0xaa5   :  { %6219 = vst [vmem:[%s11063_s4 + $0x90] sm:$0xff] %v10905_v11 }
 0xaa6   :  { %6220 = vst [vmem:[%s11063_s4 + $0x98] sm:$0xff] %v6130_v10 }
 0xaa7   :  { %6221 = vst [vmem:[%s11063_s4 + $0xa0] sm:$0xff] %v6131_v42 }
 0xaa8   :  { %6222 = vst [vmem:[%s11063_s4 + $0xa8] sm:$0xff] %v6132_v22 }
 0xaa9   :  { %6223 = vst [vmem:[%s11063_s4 + $0xb0] sm:$0xff] %v6133_v62 }
 0xaaa   :  { %6224 = vst [vmem:[%s11063_s4 + $0xb8] sm:$0xff] %v6134_v23 }
 0xaab   :  { %6225 = vst [vmem:[%s11063_s4 + $0xc0] sm:$0xff] %v6135_v26 }
 0xaac   :  { %6226 = vst [vmem:[%s11063_s4 + $0xc8] sm:$0xff] %v6136_v36 }
 0xaad   :  { %6227 = vst [vmem:[%s11063_s4 + $0xd0] sm:$0xff] %v6137_v47 }
 0xaae   :  { %6228 = vst [vmem:[%s11063_s4 + $0xd8] sm:$0xff] %v6138_v41 }
 0xaaf   :  { %6229 = vst [vmem:[%s11063_s4 + $0xe0] sm:$0xff] %v6139_v34 }
 0xab0   :  { %6230 = vst [vmem:[%s11063_s4 + $0xe8] sm:$0xff] %v6140_v51 }

</bundles_post_ra>
